<compile_context>
chip_gen: v7x
topology: tpu7x:2x2x1
jax: 0.10.0
libtpu: 0.0.40
codegen_flags: <defaults>
</compile_context>

<pallas_src>
import jax
import jax.numpy as jnp
from jax.experimental import pallas as pl
from jax.experimental.pallas import tpu as pltpu

BN_EPS = 1e-5

# ---------------------------------------------------------------------------
# Static geometry for the 18x18 single-channel input implied by Linear(256, 8):
#   18 -(conv p=2)-> 20 -pool-> 10 -> 12 -> 6 -> 8 -pool-> 4; 16*4*4 = 256.
# For each block: Hp = Hi+4 (padded), Ho = Hi+2 (conv out), Hq = Ho//2 (pooled),
# L = rows of conv output kept in the flat (h*Hp + w) layout.
# ---------------------------------------------------------------------------
def _geom(hi):
    hp, ho = hi + 4, hi + 2
    return hp, ho, ho // 2, (ho - 1) * hp + ho


HP1, HO1, HQ1, L1 = _geom(18)      # 22, 20, 10, 438
HP2, HO2, HQ2, L2 = _geom(HQ1)     # 14, 12,  6, 166
HP3, HO3, HQ3, L3 = _geom(HQ2)     # 10,  8,  4,  78
C1, C2, C3 = 32, 32, 16


# ---------------------------------------------------------------------------
# In-kernel helpers
# ---------------------------------------------------------------------------
def _pool_rows(src, hp, hq):
    """2x2/stride-2 average pool of a conv output stored in scratch `src`.

    `src` rows are ordered (h, w) with row index r = h*hp + w (square images,
    conv width = 2*hq, padded width = hp).  Returns `hq` values of shape
    (hq, C): pooled output row i.
    """
    wh = hp // 2
    n = src.shape[0] // 2
    # pair adjacent w's via stride-2 sublane reads (VPU, no pool matmul)
    ev = src[pl.ds(0, n, stride=2), :]
    od = src[pl.ds(1, n, stride=2), :]
    sw = ev + od                       # rows ordered (h, w//2), width wh per h
    rows = []
    for i in range(hq):
        top = sw[2 * i * wh: 2 * i * wh + hq, :]
        bot = sw[(2 * i + 1) * wh: (2 * i + 1) * wh + hq, :]
        rows.append((top + bot) * 0.25)
    return rows


def _im2col_matmul(xp_ref, w_ref, hp, length):
    """9-tap shifted-slice im2col (lane concat -> K=9*Cin) + bf16 MXU matmul."""
    cols = [xp_ref[pl.ds(kh * hp + kw, length), :]
            for kh in range(3) for kw in range(3)]
    xcat = jnp.concatenate(cols, axis=1).astype(jnp.bfloat16)
    return jnp.dot(xcat, w_ref[...], preferred_element_type=jnp.float32)


# ---------------------------------------------------------------------------
# The fused kernel (one grid step == one batch element)
# ---------------------------------------------------------------------------
def _wavelet_kernel(x_ref, w1_ref, w2_ref, w3_ref, wf1_ref, wf2_ref, c_ref,
                    out_ref, s1, xp2, s2, xp3, s3):
    f32 = jnp.float32

    # ---- block 1: conv(1->32) on the VPU (Cin=1 -> shifted multiply-adds) ----
    shift1 = c_ref[0:1, 0:C1]                                    # (1, 32)
    acc = jnp.zeros((L1, C1), f32)
    for kh in range(3):
        for kw in range(3):
            xs = x_ref[0, pl.ds(kh * HP1 + kw, L1), :]           # (L1, 1)
            wk = w1_ref[kh * 3 + kw: kh * 3 + kw + 1, :]         # (1, 32)
            acc = acc + xs * wk
    s1[...] = jnp.maximum(acc + shift1, 0.0)

    # pool 1 -> zero-padded block-2 input (padding = 2)
    xp2[...] = jnp.zeros_like(xp2)
    for i, r in enumerate(_pool_rows(s1, HP1, HQ1)):
        xp2[pl.ds((i + 2) * HP2 + 2, HQ1), :] = r.astype(xp2.dtype)

    # ---- block 2: conv(32->32) on the MXU (bf16 operands, f32 accumulate) ----
    shift2 = c_ref[1:2, 0:C2]
    s2[...] = jnp.maximum(_im2col_matmul(xp2, w2_ref, HP2, L2) + shift2, 0.0)

    xp3[...] = jnp.zeros_like(xp3)
    for i, r in enumerate(_pool_rows(s2, HP2, HQ2)):
        xp3[pl.ds((i + 2) * HP3 + 2, HQ2), :] = r.astype(xp3.dtype)

    # ---- block 3: conv(32->16) on the MXU ----
    shift3 = c_ref[2:3, 0:C3]
    s3[...] = jnp.maximum(_im2col_matmul(xp3, w3_ref, HP3, L3) + shift3, 0.0)

    rows3 = _pool_rows(s3, HP3, HQ3)                             # 4 x (4, 16)

    # ---- flatten (weights pre-permuted to match (h, w, c) order) + FC head ----
    pieces = [r[w:w + 1, :] for r in rows3 for w in range(HQ3)]  # 16 x (1, 16)
    fcvec = jnp.concatenate(pieces, axis=1)                      # (1, 256)
    b1 = c_ref[3:4, 0:8]
    b2 = c_ref[4:5, 0:1]
    h1 = jnp.dot(fcvec.astype(jnp.bfloat16), wf1_ref[...],
                 preferred_element_type=f32) + b1                # (1, 8)
    h1 = jnp.maximum(h1, 0.0)
    res = jnp.sum(h1 * wf2_ref[...], axis=1, keepdims=True) + b2  # (1, 1) VPU dot
    out_ref[...] = jnp.broadcast_to(res, out_ref.shape)          # lane-dense store


# ---------------------------------------------------------------------------
# Wrapper: fold BN into weights, pack constants, one pallas_call over the batch.
# ---------------------------------------------------------------------------
def wavelet_model_forward(x_nchw, params):
    B, cin, H, W = x_nchw.shape
    assert (cin, H, W) == (1, 18, 18), "kernel is specialized to (1, 18, 18) inputs"

    def fold(p, cout):
        scale = p["gamma"] / jnp.sqrt(p["var"] + BN_EPS)
        shift = p["beta"] + (p["b"] - p["mean"]) * scale
        # torch (cout, cin, kh, kw) -> (kh, kw, cin, cout) -> (9*cin, cout); fold BN scale
        w = jnp.transpose(p["w"], (2, 3, 1, 0)).reshape(-1, cout) * scale[None, :]
        return w.astype(jnp.float32), shift.astype(jnp.float32)

    w1b, sh1 = fold(params["block1"], C1)                        # (9, 32)
    w2b, sh2 = fold(params["block2"], C2)                        # (288, 32)
    w3b, sh3 = fold(params["block3"], C3)                        # (288, 16)
    fc = params["fc"]
    # torch flatten order is (c, h, w); kernel flatten order is (h, w, c) -> permute cols
    wf1 = jnp.transpose(fc["w1"].reshape(8, C3, HQ3, HQ3),
                        (2, 3, 1, 0)).reshape(C3 * HQ3 * HQ3, 8)
    wf2 = fc["w2"].reshape(1, 8).astype(jnp.float32)

    consts = jnp.zeros((8, 128), jnp.float32)
    consts = consts.at[0, :C1].set(sh1)
    consts = consts.at[1, :C2].set(sh2)
    consts = consts.at[2, :C3].set(sh3)
    consts = consts.at[3, :8].set(fc["b1"].astype(jnp.float32))
    consts = consts.at[4, 0].set(fc["b2"].astype(jnp.float32)[0])

    # pad=2 and flatten to (h*Wp + w) rows with a single lane (Cin=1)
    xpad = jnp.pad(x_nchw[:, 0].astype(jnp.float32), ((0, 0), (2, 2), (2, 2)))
    xpad = xpad.reshape(B, HP1 * HP1, 1)

    out = pl.pallas_call(
        _wavelet_kernel,
        out_shape=jax.ShapeDtypeStruct((B, 1, 128), jnp.float32),
        grid=(B,),
        in_specs=[
            pl.BlockSpec((1, HP1 * HP1, 1), lambda b: (b, 0, 0)),   # padded image
            pl.BlockSpec((9, C1), lambda b: (0, 0)),                # w1 (folded)
            pl.BlockSpec((9 * C1, C2), lambda b: (0, 0)),           # w2 (288, 32) bf16
            pl.BlockSpec((9 * C2, C3), lambda b: (0, 0)),           # w3 (288, 16) bf16
            pl.BlockSpec((C3 * HQ3 * HQ3, 8), lambda b: (0, 0)),    # fc1 (256, 8) bf16
            pl.BlockSpec((1, 8), lambda b: (0, 0)),                 # fc2 row
            pl.BlockSpec((8, 128), lambda b: (0, 0)),               # packed shifts/biases
        ],
        out_specs=pl.BlockSpec((1, 1, 128), lambda b: (b, 0, 0)),
        scratch_shapes=[
            pltpu.VMEM((L1, C1), jnp.float32),          # block1 relu output
            pltpu.VMEM((HP2 * HP2, C1), jnp.float32),   # block2 padded input
            pltpu.VMEM((L2, C2), jnp.float32),          # block2 relu output
            pltpu.VMEM((HP3 * HP3, C2), jnp.float32),   # block3 padded input
            pltpu.VMEM((L3, C3), jnp.float32),          # block3 relu output
        ],
        compiler_params=pltpu.CompilerParams(dimension_semantics=("parallel",)),
    )(xpad, w1b,
      w2b.astype(jnp.bfloat16), w3b.astype(jnp.bfloat16),
      wf1.astype(jnp.bfloat16), wf2, consts)
    return out[:, 0, :1]


# ---------------------------------------------------------------------------
# Deterministic parameter init (shapes match the nn.Module's __init__)
# ---------------------------------------------------------------------------
def init_params(key):
    ks = jax.random.split(key, 10)

    def conv_block_params(kw, kb, cout, cin):
        return dict(
            w=jax.random.normal(kw, (cout, cin, 3, 3), jnp.float32) * 0.1,
            b=jax.random.normal(kb, (cout,), jnp.float32) * 0.1,
            gamma=jnp.ones((cout,), jnp.float32),     # BN weight init
            beta=jnp.zeros((cout,), jnp.float32),     # BN bias init
            mean=jnp.zeros((cout,), jnp.float32),     # running_mean
            var=jnp.ones((cout,), jnp.float32),       # running_var
        )

    return {
        "block1": conv_block_params(ks[0], ks[1], 32, 1),
        "block2": conv_block_params(ks[2], ks[3], 32, 32),
        "block3": conv_block_params(ks[4], ks[5], 16, 32),
        "fc": dict(
            w1=jax.random.normal(ks[6], (8, 256), jnp.float32) * 0.05,
            b1=jax.random.normal(ks[7], (8,), jnp.float32) * 0.05,
            w2=jax.random.normal(ks[8], (1, 8), jnp.float32) * 0.05,
            b2=jax.random.normal(ks[9], (1,), jnp.float32) * 0.05,
        ),
    }


if __name__ == "__main__":
    key = jax.random.PRNGKey(0)
    kx, kp = jax.random.split(key)
    params = init_params(kp)

    x = jax.random.normal(kx, (2, 1, 18, 18), jnp.float32)

    out = jax.jit(wavelet_model_forward)(x, params)
    out = jax.block_until_ready(out)
    assert out.shape == (2, 1) and out.dtype == jnp.float32
    print("KERNEL_OK")
</pallas_src>

<mosaic_0001>
module attributes {stable_mosaic.version = 11 : i64} {
  func.func @_wavelet_kernel(%arg0: i32, %arg1: memref<1x484x1xf32, #tpu.memory_space<vmem>>, %arg2: memref<9x32xf32, #tpu.memory_space<vmem>>, %arg3: memref<288x32xbf16, #tpu.memory_space<vmem>>, %arg4: memref<288x16xbf16, #tpu.memory_space<vmem>>, %arg5: memref<256x8xbf16, #tpu.memory_space<vmem>>, %arg6: memref<1x8xf32, #tpu.memory_space<vmem>>, %arg7: memref<8x128xf32, #tpu.memory_space<vmem>>, %arg8: memref<1x1x128xf32, #tpu.memory_space<vmem>>, %arg9: memref<438x32xf32, #tpu.memory_space<vmem>>, %arg10: memref<196x32xf32, #tpu.memory_space<vmem>>, %arg11: memref<166x32xf32, #tpu.memory_space<vmem>>, %arg12: memref<100x32xf32, #tpu.memory_space<vmem>>, %arg13: memref<78x16xf32, #tpu.memory_space<vmem>>) attributes {dimension_semantics = [#tpu.dimension_semantics<parallel>], iteration_bounds = array<i64: 2>, scalar_prefetch = 0 : i64, scratch_operands = 5 : i64, tpu.core_type = #tpu.core_type<tc>, window_params = [{transform_indices = @transform_0, window_bounds = array<i64: 1, 484, 1>}, {pipeline_mode = #tpu.pipeline_mode<synchronous>, transform_indices = @transform_1, window_bounds = array<i64: 9, 32>}, {pipeline_mode = #tpu.pipeline_mode<synchronous>, transform_indices = @transform_2, window_bounds = array<i64: 288, 32>}, {pipeline_mode = #tpu.pipeline_mode<synchronous>, transform_indices = @transform_3, window_bounds = array<i64: 288, 16>}, {pipeline_mode = #tpu.pipeline_mode<synchronous>, transform_indices = @transform_4, window_bounds = array<i64: 256, 8>}, {pipeline_mode = #tpu.pipeline_mode<synchronous>, transform_indices = @transform_5, window_bounds = array<i64: 1, 8>}, {pipeline_mode = #tpu.pipeline_mode<synchronous>, transform_indices = @transform_6, window_bounds = array<i64: 8, 128>}, {transform_indices = @transform_7, window_bounds = array<i64: 1, 1, 128>}]} {
    %c0 = arith.constant 0 : index
    %c0_0 = arith.constant 0 : index
    %0 = vector.load %arg7[%c0, %c0_0] : memref<8x128xf32, #tpu.memory_space<vmem>>, vector<1x32xf32>
    %cst = arith.constant 0.000000e+00 : f32
    %1 = vector.broadcast %cst : f32 to vector<438x32xf32>
    %c0_1 = arith.constant 0 : index
    %c0_2 = arith.constant 0 : index
    %c0_3 = arith.constant 0 : index
    %2 = vector.load %arg1[%c0_1, %c0_2, %c0_3] : memref<1x484x1xf32, #tpu.memory_space<vmem>>, vector<1x438x1xf32>
    %3 = vector.shape_cast %2 : vector<1x438x1xf32> to vector<438x1xf32>
    %c0_4 = arith.constant 0 : index
    %c0_5 = arith.constant 0 : index
    %4 = vector.load %arg2[%c0_4, %c0_5] : memref<9x32xf32, #tpu.memory_space<vmem>>, vector<1x32xf32>
    %5 = vector.broadcast %3 : vector<438x1xf32> to vector<438x32xf32>
    %6 = vector.broadcast %4 : vector<1x32xf32> to vector<438x32xf32>
    %7 = arith.mulf %5, %6 : vector<438x32xf32>
    %8 = arith.addf %1, %7 : vector<438x32xf32>
    %c0_6 = arith.constant 0 : index
    %c1 = arith.constant 1 : index
    %c0_7 = arith.constant 0 : index
    %9 = vector.load %arg1[%c0_6, %c1, %c0_7] : memref<1x484x1xf32, #tpu.memory_space<vmem>>, vector<1x438x1xf32>
    %10 = vector.shape_cast %9 : vector<1x438x1xf32> to vector<438x1xf32>
    %c1_8 = arith.constant 1 : index
    %c0_9 = arith.constant 0 : index
    %11 = vector.load %arg2[%c1_8, %c0_9] : memref<9x32xf32, #tpu.memory_space<vmem>>, vector<1x32xf32>
    %12 = vector.broadcast %10 : vector<438x1xf32> to vector<438x32xf32>
    %13 = vector.broadcast %11 : vector<1x32xf32> to vector<438x32xf32>
    %14 = arith.mulf %12, %13 : vector<438x32xf32>
    %15 = arith.addf %8, %14 : vector<438x32xf32>
    %c0_10 = arith.constant 0 : index
    %c2 = arith.constant 2 : index
    %c0_11 = arith.constant 0 : index
    %16 = vector.load %arg1[%c0_10, %c2, %c0_11] : memref<1x484x1xf32, #tpu.memory_space<vmem>>, vector<1x438x1xf32>
    %17 = vector.shape_cast %16 : vector<1x438x1xf32> to vector<438x1xf32>
    %c2_12 = arith.constant 2 : index
    %c0_13 = arith.constant 0 : index
    %18 = vector.load %arg2[%c2_12, %c0_13] : memref<9x32xf32, #tpu.memory_space<vmem>>, vector<1x32xf32>
    %19 = vector.broadcast %17 : vector<438x1xf32> to vector<438x32xf32>
    %20 = vector.broadcast %18 : vector<1x32xf32> to vector<438x32xf32>
    %21 = arith.mulf %19, %20 : vector<438x32xf32>
    %22 = arith.addf %15, %21 : vector<438x32xf32>
    %c0_14 = arith.constant 0 : index
    %c22 = arith.constant 22 : index
    %c0_15 = arith.constant 0 : index
    %23 = vector.load %arg1[%c0_14, %c22, %c0_15] : memref<1x484x1xf32, #tpu.memory_space<vmem>>, vector<1x438x1xf32>
    %24 = vector.shape_cast %23 : vector<1x438x1xf32> to vector<438x1xf32>
    %c3 = arith.constant 3 : index
    %c0_16 = arith.constant 0 : index
    %25 = vector.load %arg2[%c3, %c0_16] : memref<9x32xf32, #tpu.memory_space<vmem>>, vector<1x32xf32>
    %26 = vector.broadcast %24 : vector<438x1xf32> to vector<438x32xf32>
    %27 = vector.broadcast %25 : vector<1x32xf32> to vector<438x32xf32>
    %28 = arith.mulf %26, %27 : vector<438x32xf32>
    %29 = arith.addf %22, %28 : vector<438x32xf32>
    %c0_17 = arith.constant 0 : index
    %c23 = arith.constant 23 : index
    %c0_18 = arith.constant 0 : index
    %30 = vector.load %arg1[%c0_17, %c23, %c0_18] : memref<1x484x1xf32, #tpu.memory_space<vmem>>, vector<1x438x1xf32>
    %31 = vector.shape_cast %30 : vector<1x438x1xf32> to vector<438x1xf32>
    %c4 = arith.constant 4 : index
    %c0_19 = arith.constant 0 : index
    %32 = vector.load %arg2[%c4, %c0_19] : memref<9x32xf32, #tpu.memory_space<vmem>>, vector<1x32xf32>
    %33 = vector.broadcast %31 : vector<438x1xf32> to vector<438x32xf32>
    %34 = vector.broadcast %32 : vector<1x32xf32> to vector<438x32xf32>
    %35 = arith.mulf %33, %34 : vector<438x32xf32>
    %36 = arith.addf %29, %35 : vector<438x32xf32>
    %c0_20 = arith.constant 0 : index
    %c24 = arith.constant 24 : index
    %c0_21 = arith.constant 0 : index
    %37 = vector.load %arg1[%c0_20, %c24, %c0_21] : memref<1x484x1xf32, #tpu.memory_space<vmem>>, vector<1x438x1xf32>
    %38 = vector.shape_cast %37 : vector<1x438x1xf32> to vector<438x1xf32>
    %c5 = arith.constant 5 : index
    %c0_22 = arith.constant 0 : index
    %39 = vector.load %arg2[%c5, %c0_22] : memref<9x32xf32, #tpu.memory_space<vmem>>, vector<1x32xf32>
    %40 = vector.broadcast %38 : vector<438x1xf32> to vector<438x32xf32>
    %41 = vector.broadcast %39 : vector<1x32xf32> to vector<438x32xf32>
    %42 = arith.mulf %40, %41 : vector<438x32xf32>
    %43 = arith.addf %36, %42 : vector<438x32xf32>
    %c0_23 = arith.constant 0 : index
    %c44 = arith.constant 44 : index
    %c0_24 = arith.constant 0 : index
    %44 = vector.load %arg1[%c0_23, %c44, %c0_24] : memref<1x484x1xf32, #tpu.memory_space<vmem>>, vector<1x438x1xf32>
    %45 = vector.shape_cast %44 : vector<1x438x1xf32> to vector<438x1xf32>
    %c6 = arith.constant 6 : index
    %c0_25 = arith.constant 0 : index
    %46 = vector.load %arg2[%c6, %c0_25] : memref<9x32xf32, #tpu.memory_space<vmem>>, vector<1x32xf32>
    %47 = vector.broadcast %45 : vector<438x1xf32> to vector<438x32xf32>
    %48 = vector.broadcast %46 : vector<1x32xf32> to vector<438x32xf32>
    %49 = arith.mulf %47, %48 : vector<438x32xf32>
    %50 = arith.addf %43, %49 : vector<438x32xf32>
    %c0_26 = arith.constant 0 : index
    %c45 = arith.constant 45 : index
    %c0_27 = arith.constant 0 : index
    %51 = vector.load %arg1[%c0_26, %c45, %c0_27] : memref<1x484x1xf32, #tpu.memory_space<vmem>>, vector<1x438x1xf32>
    %52 = vector.shape_cast %51 : vector<1x438x1xf32> to vector<438x1xf32>
    %c7 = arith.constant 7 : index
    %c0_28 = arith.constant 0 : index
    %53 = vector.load %arg2[%c7, %c0_28] : memref<9x32xf32, #tpu.memory_space<vmem>>, vector<1x32xf32>
    %54 = vector.broadcast %52 : vector<438x1xf32> to vector<438x32xf32>
    %55 = vector.broadcast %53 : vector<1x32xf32> to vector<438x32xf32>
    %56 = arith.mulf %54, %55 : vector<438x32xf32>
    %57 = arith.addf %50, %56 : vector<438x32xf32>
    %c0_29 = arith.constant 0 : index
    %c46 = arith.constant 46 : index
    %c0_30 = arith.constant 0 : index
    %58 = vector.load %arg1[%c0_29, %c46, %c0_30] : memref<1x484x1xf32, #tpu.memory_space<vmem>>, vector<1x438x1xf32>
    %59 = vector.shape_cast %58 : vector<1x438x1xf32> to vector<438x1xf32>
    %c8 = arith.constant 8 : index
    %c0_31 = arith.constant 0 : index
    %60 = vector.load %arg2[%c8, %c0_31] : memref<9x32xf32, #tpu.memory_space<vmem>>, vector<1x32xf32>
    %61 = vector.broadcast %59 : vector<438x1xf32> to vector<438x32xf32>
    %62 = vector.broadcast %60 : vector<1x32xf32> to vector<438x32xf32>
    %63 = arith.mulf %61, %62 : vector<438x32xf32>
    %64 = arith.addf %57, %63 : vector<438x32xf32>
    %65 = vector.broadcast %0 : vector<1x32xf32> to vector<438x32xf32>
    %66 = arith.addf %64, %65 : vector<438x32xf32>
    %cst_32 = arith.constant 0.000000e+00 : f32
    %67 = vector.broadcast %cst_32 : f32 to vector<438x32xf32>
    %68 = arith.maximumf %66, %67 : vector<438x32xf32>
    %c0_33 = arith.constant 0 : index
    %c0_34 = arith.constant 0 : index
    %69 = vector.load %arg9[%c0_33, %c0_34] : memref<438x32xf32, #tpu.memory_space<vmem>>, vector<438x32xf32>
    tpu.vector_store %arg9[%c0_33, %c0_34], %68 {strides = array<i32>} : memref<438x32xf32, #tpu.memory_space<vmem>>, vector<438x32xf32>,
    %cst_35 = arith.constant 0.000000e+00 : f32
    %70 = vector.broadcast %cst_35 : f32 to vector<196x32xf32>
    %c0_36 = arith.constant 0 : index
    %c0_37 = arith.constant 0 : index
    %71 = vector.load %arg10[%c0_36, %c0_37] : memref<196x32xf32, #tpu.memory_space<vmem>>, vector<196x32xf32>
    tpu.vector_store %arg10[%c0_36, %c0_37], %70 {strides = array<i32>} : memref<196x32xf32, #tpu.memory_space<vmem>>, vector<196x32xf32>,
    %c0_38 = arith.constant 0 : index
    %c0_39 = arith.constant 0 : index
    %72 = tpu.strided_load %arg9[%c0_38, %c0_39] {strides = array<i32: 2, 1>} : memref<438x32xf32, #tpu.memory_space<vmem>>, vector<219x32xf32>
    %c1_40 = arith.constant 1 : index
    %c0_41 = arith.constant 0 : index
    %73 = tpu.strided_load %arg9[%c1_40, %c0_41] {strides = array<i32: 2, 1>} : memref<438x32xf32, #tpu.memory_space<vmem>>, vector<219x32xf32>
    %74 = arith.addf %72, %73 : vector<219x32xf32>
    %75 = vector.extract_strided_slice %74 {offsets = [0, 0], sizes = [10, 32], strides = [1, 1]} : vector<219x32xf32> to vector<10x32xf32>
    %76 = vector.extract_strided_slice %74 {offsets = [11, 0], sizes = [10, 32], strides = [1, 1]} : vector<219x32xf32> to vector<10x32xf32>
    %77 = arith.addf %75, %76 : vector<10x32xf32>
    %cst_42 = arith.constant 2.500000e-01 : f32
    %78 = vector.broadcast %cst_42 : f32 to vector<10x32xf32>
    %79 = arith.mulf %77, %78 : vector<10x32xf32>
    %80 = vector.extract_strided_slice %74 {offsets = [22, 0], sizes = [10, 32], strides = [1, 1]} : vector<219x32xf32> to vector<10x32xf32>
    %81 = vector.extract_strided_slice %74 {offsets = [33, 0], sizes = [10, 32], strides = [1, 1]} : vector<219x32xf32> to vector<10x32xf32>
    %82 = arith.addf %80, %81 : vector<10x32xf32>
    %cst_43 = arith.constant 2.500000e-01 : f32
    %83 = vector.broadcast %cst_43 : f32 to vector<10x32xf32>
    %84 = arith.mulf %82, %83 : vector<10x32xf32>
    %85 = vector.extract_strided_slice %74 {offsets = [44, 0], sizes = [10, 32], strides = [1, 1]} : vector<219x32xf32> to vector<10x32xf32>
    %86 = vector.extract_strided_slice %74 {offsets = [55, 0], sizes = [10, 32], strides = [1, 1]} : vector<219x32xf32> to vector<10x32xf32>
    %87 = arith.addf %85, %86 : vector<10x32xf32>
    %cst_44 = arith.constant 2.500000e-01 : f32
    %88 = vector.broadcast %cst_44 : f32 to vector<10x32xf32>
    %89 = arith.mulf %87, %88 : vector<10x32xf32>
    %90 = vector.extract_strided_slice %74 {offsets = [66, 0], sizes = [10, 32], strides = [1, 1]} : vector<219x32xf32> to vector<10x32xf32>
    %91 = vector.extract_strided_slice %74 {offsets = [77, 0], sizes = [10, 32], strides = [1, 1]} : vector<219x32xf32> to vector<10x32xf32>
    %92 = arith.addf %90, %91 : vector<10x32xf32>
    %cst_45 = arith.constant 2.500000e-01 : f32
    %93 = vector.broadcast %cst_45 : f32 to vector<10x32xf32>
    %94 = arith.mulf %92, %93 : vector<10x32xf32>
    %95 = vector.extract_strided_slice %74 {offsets = [88, 0], sizes = [10, 32], strides = [1, 1]} : vector<219x32xf32> to vector<10x32xf32>
    %96 = vector.extract_strided_slice %74 {offsets = [99, 0], sizes = [10, 32], strides = [1, 1]} : vector<219x32xf32> to vector<10x32xf32>
    %97 = arith.addf %95, %96 : vector<10x32xf32>
    %cst_46 = arith.constant 2.500000e-01 : f32
    %98 = vector.broadcast %cst_46 : f32 to vector<10x32xf32>
    %99 = arith.mulf %97, %98 : vector<10x32xf32>
    %100 = vector.extract_strided_slice %74 {offsets = [110, 0], sizes = [10, 32], strides = [1, 1]} : vector<219x32xf32> to vector<10x32xf32>
    %101 = vector.extract_strided_slice %74 {offsets = [121, 0], sizes = [10, 32], strides = [1, 1]} : vector<219x32xf32> to vector<10x32xf32>
    %102 = arith.addf %100, %101 : vector<10x32xf32>
    %cst_47 = arith.constant 2.500000e-01 : f32
    %103 = vector.broadcast %cst_47 : f32 to vector<10x32xf32>
    %104 = arith.mulf %102, %103 : vector<10x32xf32>
    %105 = vector.extract_strided_slice %74 {offsets = [132, 0], sizes = [10, 32], strides = [1, 1]} : vector<219x32xf32> to vector<10x32xf32>
    %106 = vector.extract_strided_slice %74 {offsets = [143, 0], sizes = [10, 32], strides = [1, 1]} : vector<219x32xf32> to vector<10x32xf32>
    %107 = arith.addf %105, %106 : vector<10x32xf32>
    %cst_48 = arith.constant 2.500000e-01 : f32
    %108 = vector.broadcast %cst_48 : f32 to vector<10x32xf32>
    %109 = arith.mulf %107, %108 : vector<10x32xf32>
    %110 = vector.extract_strided_slice %74 {offsets = [154, 0], sizes = [10, 32], strides = [1, 1]} : vector<219x32xf32> to vector<10x32xf32>
    %111 = vector.extract_strided_slice %74 {offsets = [165, 0], sizes = [10, 32], strides = [1, 1]} : vector<219x32xf32> to vector<10x32xf32>
    %112 = arith.addf %110, %111 : vector<10x32xf32>
    %cst_49 = arith.constant 2.500000e-01 : f32
    %113 = vector.broadcast %cst_49 : f32 to vector<10x32xf32>
    %114 = arith.mulf %112, %113 : vector<10x32xf32>
    %115 = vector.extract_strided_slice %74 {offsets = [176, 0], sizes = [10, 32], strides = [1, 1]} : vector<219x32xf32> to vector<10x32xf32>
    %116 = vector.extract_strided_slice %74 {offsets = [187, 0], sizes = [10, 32], strides = [1, 1]} : vector<219x32xf32> to vector<10x32xf32>
    %117 = arith.addf %115, %116 : vector<10x32xf32>
    %cst_50 = arith.constant 2.500000e-01 : f32
    %118 = vector.broadcast %cst_50 : f32 to vector<10x32xf32>
    %119 = arith.mulf %117, %118 : vector<10x32xf32>
    %120 = vector.extract_strided_slice %74 {offsets = [198, 0], sizes = [10, 32], strides = [1, 1]} : vector<219x32xf32> to vector<10x32xf32>
    %121 = vector.extract_strided_slice %74 {offsets = [209, 0], sizes = [10, 32], strides = [1, 1]} : vector<219x32xf32> to vector<10x32xf32>
    %122 = arith.addf %120, %121 : vector<10x32xf32>
    %cst_51 = arith.constant 2.500000e-01 : f32
    %123 = vector.broadcast %cst_51 : f32 to vector<10x32xf32>
    %124 = arith.mulf %122, %123 : vector<10x32xf32>
    %c30 = arith.constant 30 : index
    %c0_52 = arith.constant 0 : index
    %125 = vector.load %arg10[%c30, %c0_52] : memref<196x32xf32, #tpu.memory_space<vmem>>, vector<10x32xf32>
    tpu.vector_store %arg10[%c30, %c0_52], %79 {strides = array<i32>} : memref<196x32xf32, #tpu.memory_space<vmem>>, vector<10x32xf32>,
    %c44_53 = arith.constant 44 : index
    %c0_54 = arith.constant 0 : index
    %126 = vector.load %arg10[%c44_53, %c0_54] : memref<196x32xf32, #tpu.memory_space<vmem>>, vector<10x32xf32>
    tpu.vector_store %arg10[%c44_53, %c0_54], %84 {strides = array<i32>} : memref<196x32xf32, #tpu.memory_space<vmem>>, vector<10x32xf32>,
    %c58 = arith.constant 58 : index
    %c0_55 = arith.constant 0 : index
    %127 = vector.load %arg10[%c58, %c0_55] : memref<196x32xf32, #tpu.memory_space<vmem>>, vector<10x32xf32>
    tpu.vector_store %arg10[%c58, %c0_55], %89 {strides = array<i32>} : memref<196x32xf32, #tpu.memory_space<vmem>>, vector<10x32xf32>,
    %c72 = arith.constant 72 : index
    %c0_56 = arith.constant 0 : index
    %128 = vector.load %arg10[%c72, %c0_56] : memref<196x32xf32, #tpu.memory_space<vmem>>, vector<10x32xf32>
    tpu.vector_store %arg10[%c72, %c0_56], %94 {strides = array<i32>} : memref<196x32xf32, #tpu.memory_space<vmem>>, vector<10x32xf32>,
    %c86 = arith.constant 86 : index
    %c0_57 = arith.constant 0 : index
    %129 = vector.load %arg10[%c86, %c0_57] : memref<196x32xf32, #tpu.memory_space<vmem>>, vector<10x32xf32>
    tpu.vector_store %arg10[%c86, %c0_57], %99 {strides = array<i32>} : memref<196x32xf32, #tpu.memory_space<vmem>>, vector<10x32xf32>,
    %c100 = arith.constant 100 : index
    %c0_58 = arith.constant 0 : index
    %130 = vector.load %arg10[%c100, %c0_58] : memref<196x32xf32, #tpu.memory_space<vmem>>, vector<10x32xf32>
    tpu.vector_store %arg10[%c100, %c0_58], %104 {strides = array<i32>} : memref<196x32xf32, #tpu.memory_space<vmem>>, vector<10x32xf32>,
    %c114 = arith.constant 114 : index
    %c0_59 = arith.constant 0 : index
    %131 = vector.load %arg10[%c114, %c0_59] : memref<196x32xf32, #tpu.memory_space<vmem>>, vector<10x32xf32>
    tpu.vector_store %arg10[%c114, %c0_59], %109 {strides = array<i32>} : memref<196x32xf32, #tpu.memory_space<vmem>>, vector<10x32xf32>,
    %c128 = arith.constant 128 : index
    %c0_60 = arith.constant 0 : index
    %132 = vector.load %arg10[%c128, %c0_60] : memref<196x32xf32, #tpu.memory_space<vmem>>, vector<10x32xf32>
    tpu.vector_store %arg10[%c128, %c0_60], %114 {strides = array<i32>} : memref<196x32xf32, #tpu.memory_space<vmem>>, vector<10x32xf32>,
    %c142 = arith.constant 142 : index
    %c0_61 = arith.constant 0 : index
    %133 = vector.load %arg10[%c142, %c0_61] : memref<196x32xf32, #tpu.memory_space<vmem>>, vector<10x32xf32>
    tpu.vector_store %arg10[%c142, %c0_61], %119 {strides = array<i32>} : memref<196x32xf32, #tpu.memory_space<vmem>>, vector<10x32xf32>,
    %c156 = arith.constant 156 : index
    %c0_62 = arith.constant 0 : index
    %134 = vector.load %arg10[%c156, %c0_62] : memref<196x32xf32, #tpu.memory_space<vmem>>, vector<10x32xf32>
    tpu.vector_store %arg10[%c156, %c0_62], %124 {strides = array<i32>} : memref<196x32xf32, #tpu.memory_space<vmem>>, vector<10x32xf32>,
    %c1_63 = arith.constant 1 : index
    %c0_64 = arith.constant 0 : index
    %135 = vector.load %arg7[%c1_63, %c0_64] : memref<8x128xf32, #tpu.memory_space<vmem>>, vector<1x32xf32>
    %c0_65 = arith.constant 0 : index
    %c0_66 = arith.constant 0 : index
    %136 = vector.load %arg10[%c0_65, %c0_66] : memref<196x32xf32, #tpu.memory_space<vmem>>, vector<166x32xf32>
    %c1_67 = arith.constant 1 : index
    %c0_68 = arith.constant 0 : index
    %137 = vector.load %arg10[%c1_67, %c0_68] : memref<196x32xf32, #tpu.memory_space<vmem>>, vector<166x32xf32>
    %c2_69 = arith.constant 2 : index
    %c0_70 = arith.constant 0 : index
    %138 = vector.load %arg10[%c2_69, %c0_70] : memref<196x32xf32, #tpu.memory_space<vmem>>, vector<166x32xf32>
    %c14 = arith.constant 14 : index
    %c0_71 = arith.constant 0 : index
    %139 = vector.load %arg10[%c14, %c0_71] : memref<196x32xf32, #tpu.memory_space<vmem>>, vector<166x32xf32>
    %c15 = arith.constant 15 : index
    %c0_72 = arith.constant 0 : index
    %140 = vector.load %arg10[%c15, %c0_72] : memref<196x32xf32, #tpu.memory_space<vmem>>, vector<166x32xf32>
    %c16 = arith.constant 16 : index
    %c0_73 = arith.constant 0 : index
    %141 = vector.load %arg10[%c16, %c0_73] : memref<196x32xf32, #tpu.memory_space<vmem>>, vector<166x32xf32>
    %c28 = arith.constant 28 : index
    %c0_74 = arith.constant 0 : index
    %142 = vector.load %arg10[%c28, %c0_74] : memref<196x32xf32, #tpu.memory_space<vmem>>, vector<166x32xf32>
    %c29 = arith.constant 29 : index
    %c0_75 = arith.constant 0 : index
    %143 = vector.load %arg10[%c29, %c0_75] : memref<196x32xf32, #tpu.memory_space<vmem>>, vector<166x32xf32>
    %c30_76 = arith.constant 30 : index
    %c0_77 = arith.constant 0 : index
    %144 = vector.load %arg10[%c30_76, %c0_77] : memref<196x32xf32, #tpu.memory_space<vmem>>, vector<166x32xf32>
    %145 = tpu.concatenate %136, %137, %138, %139, %140, %141, %142, %143, %144 in 1 : vector<166x32xf32>, vector<166x32xf32>, vector<166x32xf32>, vector<166x32xf32>, vector<166x32xf32>, vector<166x32xf32>, vector<166x32xf32>, vector<166x32xf32>, vector<166x32xf32> -> vector<166x288xf32>
    %146 = arith.truncf %145 : vector<166x288xf32> to vector<166x288xbf16>
    %c0_78 = arith.constant 0 : index
    %c0_79 = arith.constant 0 : index
    %147 = vector.load %arg3[%c0_78, %c0_79] : memref<288x32xbf16, #tpu.memory_space<vmem>>, vector<288x32xbf16>
    %cst_80 = arith.constant dense<0.000000e+00> : vector<166x32xf32>
    %148 = tpu.matmul %146, %147, %cst_80 {dimension_numbers = #tpu.dot_dimension_numbers<[1], [0], [0], [1], [0, 0, 1, 1], [], []>} : vector<166x288xbf16>, vector<288x32xbf16>, vector<166x32xf32> -> vector<166x32xf32>
    %149 = vector.broadcast %135 : vector<1x32xf32> to vector<166x32xf32>
    %150 = arith.addf %148, %149 : vector<166x32xf32>
    %cst_81 = arith.constant 0.000000e+00 : f32
    %151 = vector.broadcast %cst_81 : f32 to vector<166x32xf32>
    %152 = arith.maximumf %150, %151 : vector<166x32xf32>
    %c0_82 = arith.constant 0 : index
    %c0_83 = arith.constant 0 : index
    %153 = vector.load %arg11[%c0_82, %c0_83] : memref<166x32xf32, #tpu.memory_space<vmem>>, vector<166x32xf32>
    tpu.vector_store %arg11[%c0_82, %c0_83], %152 {strides = array<i32>} : memref<166x32xf32, #tpu.memory_space<vmem>>, vector<166x32xf32>,
    %cst_84 = arith.constant 0.000000e+00 : f32
    %154 = vector.broadcast %cst_84 : f32 to vector<100x32xf32>
    %c0_85 = arith.constant 0 : index
    %c0_86 = arith.constant 0 : index
    %155 = vector.load %arg12[%c0_85, %c0_86] : memref<100x32xf32, #tpu.memory_space<vmem>>, vector<100x32xf32>
    tpu.vector_store %arg12[%c0_85, %c0_86], %154 {strides = array<i32>} : memref<100x32xf32, #tpu.memory_space<vmem>>, vector<100x32xf32>,
    %c0_87 = arith.constant 0 : index
    %c0_88 = arith.constant 0 : index
    %156 = tpu.strided_load %arg11[%c0_87, %c0_88] {strides = array<i32: 2, 1>} : memref<166x32xf32, #tpu.memory_space<vmem>>, vector<83x32xf32>
    %c1_89 = arith.constant 1 : index
    %c0_90 = arith.constant 0 : index
    %157 = tpu.strided_load %arg11[%c1_89, %c0_90] {strides = array<i32: 2, 1>} : memref<166x32xf32, #tpu.memory_space<vmem>>, vector<83x32xf32>
    %158 = arith.addf %156, %157 : vector<83x32xf32>
    %159 = vector.extract_strided_slice %158 {offsets = [0, 0], sizes = [6, 32], strides = [1, 1]} : vector<83x32xf32> to vector<6x32xf32>
    %160 = vector.extract_strided_slice %158 {offsets = [7, 0], sizes = [6, 32], strides = [1, 1]} : vector<83x32xf32> to vector<6x32xf32>
    %161 = arith.addf %159, %160 : vector<6x32xf32>
    %cst_91 = arith.constant 2.500000e-01 : f32
    %162 = vector.broadcast %cst_91 : f32 to vector<6x32xf32>
    %163 = arith.mulf %161, %162 : vector<6x32xf32>
    %164 = vector.extract_strided_slice %158 {offsets = [14, 0], sizes = [6, 32], strides = [1, 1]} : vector<83x32xf32> to vector<6x32xf32>
    %165 = vector.extract_strided_slice %158 {offsets = [21, 0], sizes = [6, 32], strides = [1, 1]} : vector<83x32xf32> to vector<6x32xf32>
    %166 = arith.addf %164, %165 : vector<6x32xf32>
    %cst_92 = arith.constant 2.500000e-01 : f32
    %167 = vector.broadcast %cst_92 : f32 to vector<6x32xf32>
    %168 = arith.mulf %166, %167 : vector<6x32xf32>
    %169 = vector.extract_strided_slice %158 {offsets = [28, 0], sizes = [6, 32], strides = [1, 1]} : vector<83x32xf32> to vector<6x32xf32>
    %170 = vector.extract_strided_slice %158 {offsets = [35, 0], sizes = [6, 32], strides = [1, 1]} : vector<83x32xf32> to vector<6x32xf32>
    %171 = arith.addf %169, %170 : vector<6x32xf32>
    %cst_93 = arith.constant 2.500000e-01 : f32
    %172 = vector.broadcast %cst_93 : f32 to vector<6x32xf32>
    %173 = arith.mulf %171, %172 : vector<6x32xf32>
    %174 = vector.extract_strided_slice %158 {offsets = [42, 0], sizes = [6, 32], strides = [1, 1]} : vector<83x32xf32> to vector<6x32xf32>
    %175 = vector.extract_strided_slice %158 {offsets = [49, 0], sizes = [6, 32], strides = [1, 1]} : vector<83x32xf32> to vector<6x32xf32>
    %176 = arith.addf %174, %175 : vector<6x32xf32>
    %cst_94 = arith.constant 2.500000e-01 : f32
    %177 = vector.broadcast %cst_94 : f32 to vector<6x32xf32>
    %178 = arith.mulf %176, %177 : vector<6x32xf32>
    %179 = vector.extract_strided_slice %158 {offsets = [56, 0], sizes = [6, 32], strides = [1, 1]} : vector<83x32xf32> to vector<6x32xf32>
    %180 = vector.extract_strided_slice %158 {offsets = [63, 0], sizes = [6, 32], strides = [1, 1]} : vector<83x32xf32> to vector<6x32xf32>
    %181 = arith.addf %179, %180 : vector<6x32xf32>
    %cst_95 = arith.constant 2.500000e-01 : f32
    %182 = vector.broadcast %cst_95 : f32 to vector<6x32xf32>
    %183 = arith.mulf %181, %182 : vector<6x32xf32>
    %184 = vector.extract_strided_slice %158 {offsets = [70, 0], sizes = [6, 32], strides = [1, 1]} : vector<83x32xf32> to vector<6x32xf32>
    %185 = vector.extract_strided_slice %158 {offsets = [77, 0], sizes = [6, 32], strides = [1, 1]} : vector<83x32xf32> to vector<6x32xf32>
    %186 = arith.addf %184, %185 : vector<6x32xf32>
    %cst_96 = arith.constant 2.500000e-01 : f32
    %187 = vector.broadcast %cst_96 : f32 to vector<6x32xf32>
    %188 = arith.mulf %186, %187 : vector<6x32xf32>
    %c22_97 = arith.constant 22 : index
    %c0_98 = arith.constant 0 : index
    %189 = vector.load %arg12[%c22_97, %c0_98] : memref<100x32xf32, #tpu.memory_space<vmem>>, vector<6x32xf32>
    tpu.vector_store %arg12[%c22_97, %c0_98], %163 {strides = array<i32>} : memref<100x32xf32, #tpu.memory_space<vmem>>, vector<6x32xf32>,
    %c32 = arith.constant 32 : index
    %c0_99 = arith.constant 0 : index
    %190 = vector.load %arg12[%c32, %c0_99] : memref<100x32xf32, #tpu.memory_space<vmem>>, vector<6x32xf32>
    tpu.vector_store %arg12[%c32, %c0_99], %168 {strides = array<i32>} : memref<100x32xf32, #tpu.memory_space<vmem>>, vector<6x32xf32>,
    %c42 = arith.constant 42 : index
    %c0_100 = arith.constant 0 : index
    %191 = vector.load %arg12[%c42, %c0_100] : memref<100x32xf32, #tpu.memory_space<vmem>>, vector<6x32xf32>
    tpu.vector_store %arg12[%c42, %c0_100], %173 {strides = array<i32>} : memref<100x32xf32, #tpu.memory_space<vmem>>, vector<6x32xf32>,
    %c52 = arith.constant 52 : index
    %c0_101 = arith.constant 0 : index
    %192 = vector.load %arg12[%c52, %c0_101] : memref<100x32xf32, #tpu.memory_space<vmem>>, vector<6x32xf32>
    tpu.vector_store %arg12[%c52, %c0_101], %178 {strides = array<i32>} : memref<100x32xf32, #tpu.memory_space<vmem>>, vector<6x32xf32>,
    %c62 = arith.constant 62 : index
    %c0_102 = arith.constant 0 : index
    %193 = vector.load %arg12[%c62, %c0_102] : memref<100x32xf32, #tpu.memory_space<vmem>>, vector<6x32xf32>
    tpu.vector_store %arg12[%c62, %c0_102], %183 {strides = array<i32>} : memref<100x32xf32, #tpu.memory_space<vmem>>, vector<6x32xf32>,
    %c72_103 = arith.constant 72 : index
    %c0_104 = arith.constant 0 : index
    %194 = vector.load %arg12[%c72_103, %c0_104] : memref<100x32xf32, #tpu.memory_space<vmem>>, vector<6x32xf32>
    tpu.vector_store %arg12[%c72_103, %c0_104], %188 {strides = array<i32>} : memref<100x32xf32, #tpu.memory_space<vmem>>, vector<6x32xf32>,
    %c2_105 = arith.constant 2 : index
    %c0_106 = arith.constant 0 : index
    %195 = vector.load %arg7[%c2_105, %c0_106] : memref<8x128xf32, #tpu.memory_space<vmem>>, vector<1x16xf32>
    %c0_107 = arith.constant 0 : index
    %c0_108 = arith.constant 0 : index
    %196 = vector.load %arg12[%c0_107, %c0_108] : memref<100x32xf32, #tpu.memory_space<vmem>>, vector<78x32xf32>
    %c1_109 = arith.constant 1 : index
    %c0_110 = arith.constant 0 : index
    %197 = vector.load %arg12[%c1_109, %c0_110] : memref<100x32xf32, #tpu.memory_space<vmem>>, vector<78x32xf32>
    %c2_111 = arith.constant 2 : index
    %c0_112 = arith.constant 0 : index
    %198 = vector.load %arg12[%c2_111, %c0_112] : memref<100x32xf32, #tpu.memory_space<vmem>>, vector<78x32xf32>
    %c10 = arith.constant 10 : index
    %c0_113 = arith.constant 0 : index
    %199 = vector.load %arg12[%c10, %c0_113] : memref<100x32xf32, #tpu.memory_space<vmem>>, vector<78x32xf32>
    %c11 = arith.constant 11 : index
    %c0_114 = arith.constant 0 : index
    %200 = vector.load %arg12[%c11, %c0_114] : memref<100x32xf32, #tpu.memory_space<vmem>>, vector<78x32xf32>
    %c12 = arith.constant 12 : index
    %c0_115 = arith.constant 0 : index
    %201 = vector.load %arg12[%c12, %c0_115] : memref<100x32xf32, #tpu.memory_space<vmem>>, vector<78x32xf32>
    %c20 = arith.constant 20 : index
    %c0_116 = arith.constant 0 : index
    %202 = vector.load %arg12[%c20, %c0_116] : memref<100x32xf32, #tpu.memory_space<vmem>>, vector<78x32xf32>
    %c21 = arith.constant 21 : index
    %c0_117 = arith.constant 0 : index
    %203 = vector.load %arg12[%c21, %c0_117] : memref<100x32xf32, #tpu.memory_space<vmem>>, vector<78x32xf32>
    %c22_118 = arith.constant 22 : index
    %c0_119 = arith.constant 0 : index
    %204 = vector.load %arg12[%c22_118, %c0_119] : memref<100x32xf32, #tpu.memory_space<vmem>>, vector<78x32xf32>
    %205 = tpu.concatenate %196, %197, %198, %199, %200, %201, %202, %203, %204 in 1 : vector<78x32xf32>, vector<78x32xf32>, vector<78x32xf32>, vector<78x32xf32>, vector<78x32xf32>, vector<78x32xf32>, vector<78x32xf32>, vector<78x32xf32>, vector<78x32xf32> -> vector<78x288xf32>
    %206 = arith.truncf %205 : vector<78x288xf32> to vector<78x288xbf16>
    %c0_120 = arith.constant 0 : index
    %c0_121 = arith.constant 0 : index
    %207 = vector.load %arg4[%c0_120, %c0_121] : memref<288x16xbf16, #tpu.memory_space<vmem>>, vector<288x16xbf16>
    %cst_122 = arith.constant dense<0.000000e+00> : vector<78x16xf32>
    %208 = tpu.matmul %206, %207, %cst_122 {dimension_numbers = #tpu.dot_dimension_numbers<[1], [0], [0], [1], [0, 0, 1, 1], [], []>} : vector<78x288xbf16>, vector<288x16xbf16>, vector<78x16xf32> -> vector<78x16xf32>
    %209 = vector.broadcast %195 : vector<1x16xf32> to vector<78x16xf32>
    %210 = arith.addf %208, %209 : vector<78x16xf32>
    %cst_123 = arith.constant 0.000000e+00 : f32
    %211 = vector.broadcast %cst_123 : f32 to vector<78x16xf32>
    %212 = arith.maximumf %210, %211 : vector<78x16xf32>
    %c0_124 = arith.constant 0 : index
    %c0_125 = arith.constant 0 : index
    %213 = vector.load %arg13[%c0_124, %c0_125] : memref<78x16xf32, #tpu.memory_space<vmem>>, vector<78x16xf32>
    tpu.vector_store %arg13[%c0_124, %c0_125], %212 {strides = array<i32>} : memref<78x16xf32, #tpu.memory_space<vmem>>, vector<78x16xf32>,
    %c0_126 = arith.constant 0 : index
    %c0_127 = arith.constant 0 : index
    %214 = tpu.strided_load %arg13[%c0_126, %c0_127] {strides = array<i32: 2, 1>} : memref<78x16xf32, #tpu.memory_space<vmem>>, vector<39x16xf32>
    %c1_128 = arith.constant 1 : index
    %c0_129 = arith.constant 0 : index
    %215 = tpu.strided_load %arg13[%c1_128, %c0_129] {strides = array<i32: 2, 1>} : memref<78x16xf32, #tpu.memory_space<vmem>>, vector<39x16xf32>
    %216 = arith.addf %214, %215 : vector<39x16xf32>
    %217 = vector.extract_strided_slice %216 {offsets = [0, 0], sizes = [4, 16], strides = [1, 1]} : vector<39x16xf32> to vector<4x16xf32>
    %218 = vector.extract_strided_slice %216 {offsets = [5, 0], sizes = [4, 16], strides = [1, 1]} : vector<39x16xf32> to vector<4x16xf32>
    %219 = arith.addf %217, %218 : vector<4x16xf32>
    %cst_130 = arith.constant 2.500000e-01 : f32
    %220 = vector.broadcast %cst_130 : f32 to vector<4x16xf32>
    %221 = arith.mulf %219, %220 : vector<4x16xf32>
    %222 = vector.extract_strided_slice %216 {offsets = [10, 0], sizes = [4, 16], strides = [1, 1]} : vector<39x16xf32> to vector<4x16xf32>
    %223 = vector.extract_strided_slice %216 {offsets = [15, 0], sizes = [4, 16], strides = [1, 1]} : vector<39x16xf32> to vector<4x16xf32>
    %224 = arith.addf %222, %223 : vector<4x16xf32>
    %cst_131 = arith.constant 2.500000e-01 : f32
    %225 = vector.broadcast %cst_131 : f32 to vector<4x16xf32>
    %226 = arith.mulf %224, %225 : vector<4x16xf32>
    %227 = vector.extract_strided_slice %216 {offsets = [20, 0], sizes = [4, 16], strides = [1, 1]} : vector<39x16xf32> to vector<4x16xf32>
    %228 = vector.extract_strided_slice %216 {offsets = [25, 0], sizes = [4, 16], strides = [1, 1]} : vector<39x16xf32> to vector<4x16xf32>
    %229 = arith.addf %227, %228 : vector<4x16xf32>
    %cst_132 = arith.constant 2.500000e-01 : f32
    %230 = vector.broadcast %cst_132 : f32 to vector<4x16xf32>
    %231 = arith.mulf %229, %230 : vector<4x16xf32>
    %232 = vector.extract_strided_slice %216 {offsets = [30, 0], sizes = [4, 16], strides = [1, 1]} : vector<39x16xf32> to vector<4x16xf32>
    %233 = vector.extract_strided_slice %216 {offsets = [35, 0], sizes = [4, 16], strides = [1, 1]} : vector<39x16xf32> to vector<4x16xf32>
    %234 = arith.addf %232, %233 : vector<4x16xf32>
    %cst_133 = arith.constant 2.500000e-01 : f32
    %235 = vector.broadcast %cst_133 : f32 to vector<4x16xf32>
    %236 = arith.mulf %234, %235 : vector<4x16xf32>
    %237 = vector.extract_strided_slice %221 {offsets = [0, 0], sizes = [1, 16], strides = [1, 1]} : vector<4x16xf32> to vector<1x16xf32>
    %238 = vector.extract_strided_slice %221 {offsets = [1, 0], sizes = [1, 16], strides = [1, 1]} : vector<4x16xf32> to vector<1x16xf32>
    %239 = vector.extract_strided_slice %221 {offsets = [2, 0], sizes = [1, 16], strides = [1, 1]} : vector<4x16xf32> to vector<1x16xf32>
    %240 = vector.extract_strided_slice %221 {offsets = [3, 0], sizes = [1, 16], strides = [1, 1]} : vector<4x16xf32> to vector<1x16xf32>
    %241 = vector.extract_strided_slice %226 {offsets = [0, 0], sizes = [1, 16], strides = [1, 1]} : vector<4x16xf32> to vector<1x16xf32>
    %242 = vector.extract_strided_slice %226 {offsets = [1, 0], sizes = [1, 16], strides = [1, 1]} : vector<4x16xf32> to vector<1x16xf32>
    %243 = vector.extract_strided_slice %226 {offsets = [2, 0], sizes = [1, 16], strides = [1, 1]} : vector<4x16xf32> to vector<1x16xf32>
    %244 = vector.extract_strided_slice %226 {offsets = [3, 0], sizes = [1, 16], strides = [1, 1]} : vector<4x16xf32> to vector<1x16xf32>
    %245 = vector.extract_strided_slice %231 {offsets = [0, 0], sizes = [1, 16], strides = [1, 1]} : vector<4x16xf32> to vector<1x16xf32>
    %246 = vector.extract_strided_slice %231 {offsets = [1, 0], sizes = [1, 16], strides = [1, 1]} : vector<4x16xf32> to vector<1x16xf32>
    %247 = vector.extract_strided_slice %231 {offsets = [2, 0], sizes = [1, 16], strides = [1, 1]} : vector<4x16xf32> to vector<1x16xf32>
    %248 = vector.extract_strided_slice %231 {offsets = [3, 0], sizes = [1, 16], strides = [1, 1]} : vector<4x16xf32> to vector<1x16xf32>
    %249 = vector.extract_strided_slice %236 {offsets = [0, 0], sizes = [1, 16], strides = [1, 1]} : vector<4x16xf32> to vector<1x16xf32>
    %250 = vector.extract_strided_slice %236 {offsets = [1, 0], sizes = [1, 16], strides = [1, 1]} : vector<4x16xf32> to vector<1x16xf32>
    %251 = vector.extract_strided_slice %236 {offsets = [2, 0], sizes = [1, 16], strides = [1, 1]} : vector<4x16xf32> to vector<1x16xf32>
    %252 = vector.extract_strided_slice %236 {offsets = [3, 0], sizes = [1, 16], strides = [1, 1]} : vector<4x16xf32> to vector<1x16xf32>
    %253 = tpu.concatenate %237, %238, %239, %240, %241, %242, %243, %244, %245, %246, %247, %248, %249, %250, %251, %252 in 1 : vector<1x16xf32>, vector<1x16xf32>, vector<1x16xf32>, vector<1x16xf32>, vector<1x16xf32>, vector<1x16xf32>, vector<1x16xf32>, vector<1x16xf32>, vector<1x16xf32>, vector<1x16xf32>, vector<1x16xf32>, vector<1x16xf32>, vector<1x16xf32>, vector<1x16xf32>, vector<1x16xf32>, vector<1x16xf32> -> vector<1x256xf32>
    %c3_134 = arith.constant 3 : index
    %c0_135 = arith.constant 0 : index
    %254 = vector.load %arg7[%c3_134, %c0_135] : memref<8x128xf32, #tpu.memory_space<vmem>>, vector<1x8xf32>
    %c4_136 = arith.constant 4 : index
    %c0_137 = arith.constant 0 : index
    %255 = vector.load %arg7[%c4_136, %c0_137] : memref<8x128xf32, #tpu.memory_space<vmem>>, vector<1x1xf32>
    %256 = arith.truncf %253 : vector<1x256xf32> to vector<1x256xbf16>
    %c0_138 = arith.constant 0 : index
    %c0_139 = arith.constant 0 : index
    %257 = vector.load %arg5[%c0_138, %c0_139] : memref<256x8xbf16, #tpu.memory_space<vmem>>, vector<256x8xbf16>
    %cst_140 = arith.constant dense<0.000000e+00> : vector<1x8xf32>
    %258 = tpu.matmul %256, %257, %cst_140 {dimension_numbers = #tpu.dot_dimension_numbers<[1], [0], [0], [1], [0, 0, 1, 1], [], []>} : vector<1x256xbf16>, vector<256x8xbf16>, vector<1x8xf32> -> vector<1x8xf32>
    %259 = arith.addf %258, %254 : vector<1x8xf32>
    %cst_141 = arith.constant 0.000000e+00 : f32
    %260 = vector.broadcast %cst_141 : f32 to vector<1x8xf32>
    %261 = arith.maximumf %259, %260 : vector<1x8xf32>
    %c0_142 = arith.constant 0 : index
    %c0_143 = arith.constant 0 : index
    %262 = vector.load %arg6[%c0_142, %c0_143] : memref<1x8xf32, #tpu.memory_space<vmem>>, vector<1x8xf32>
    %263 = arith.mulf %261, %262 : vector<1x8xf32>
    %cst_144 = arith.constant dense<0.000000e+00> : vector<1xf32>
    %264 = vector.multi_reduction <add>, %263, %cst_144 [1] : vector<1x8xf32> to vector<1xf32>
    %265 = vector.shape_cast %264 : vector<1xf32> to vector<1x1xf32>
    %266 = arith.addf %265, %255 : vector<1x1xf32>
    %267 = vector.shape_cast %266 : vector<1x1xf32> to vector<1x1x1xf32>
    %268 = vector.broadcast %267 : vector<1x1x1xf32> to vector<1x1x128xf32>
    %c0_145 = arith.constant 0 : index
    %c0_146 = arith.constant 0 : index
    %c0_147 = arith.constant 0 : index
    %269 = vector.load %arg8[%c0_145, %c0_146, %c0_147] : memref<1x1x128xf32, #tpu.memory_space<vmem>>, vector<1x1x128xf32>
    tpu.vector_store %arg8[%c0_145, %c0_146, %c0_147], %268 {strides = array<i32>} : memref<1x1x128xf32, #tpu.memory_space<vmem>>, vector<1x1x128xf32>,
    return
  }
  func.func @transform_0(%arg0: i32) -> (i32, i32, i32) {
    %c0_i32 = arith.constant 0 : i32
    %c0_i32_0 = arith.constant 0 : i32
    %c0_i32_1 = arith.constant 0 : i32
    return %arg0, %c0_i32, %c0_i32_0 : i32, i32, i32
  }
  func.func @transform_1(%arg0: i32) -> (i32, i32) {
    %c0_i32 = arith.constant 0 : i32
    %c0_i32_0 = arith.constant 0 : i32
    %c0_i32_1 = arith.constant 0 : i32
    return %c0_i32, %c0_i32_0 : i32, i32
  }
  func.func @transform_2(%arg0: i32) -> (i32, i32) {
    %c0_i32 = arith.constant 0 : i32
    %c0_i32_0 = arith.constant 0 : i32
    %c0_i32_1 = arith.constant 0 : i32
    return %c0_i32, %c0_i32_0 : i32, i32
  }
  func.func @transform_3(%arg0: i32) -> (i32, i32) {
    %c0_i32 = arith.constant 0 : i32
    %c0_i32_0 = arith.constant 0 : i32
    %c0_i32_1 = arith.constant 0 : i32
    return %c0_i32, %c0_i32_0 : i32, i32
  }
  func.func @transform_4(%arg0: i32) -> (i32, i32) {
    %c0_i32 = arith.constant 0 : i32
    %c0_i32_0 = arith.constant 0 : i32
    %c0_i32_1 = arith.constant 0 : i32
    return %c0_i32, %c0_i32_0 : i32, i32
  }
  func.func @transform_5(%arg0: i32) -> (i32, i32) {
    %c0_i32 = arith.constant 0 : i32
    %c0_i32_0 = arith.constant 0 : i32
    %c0_i32_1 = arith.constant 0 : i32
    return %c0_i32, %c0_i32_0 : i32, i32
  }
  func.func @transform_6(%arg0: i32) -> (i32, i32) {
    %c0_i32 = arith.constant 0 : i32
    %c0_i32_0 = arith.constant 0 : i32
    %c0_i32_1 = arith.constant 0 : i32
    return %c0_i32, %c0_i32_0 : i32, i32
  }
  func.func @transform_7(%arg0: i32) -> (i32, i32, i32) {
    %c0_i32 = arith.constant 0 : i32
    %c0_i32_0 = arith.constant 0 : i32
    %c0_i32_1 = arith.constant 0 : i32
    return %arg0, %c0_i32, %c0_i32_0 : i32, i32, i32
  }
}

</mosaic_0001>

<bundles_post_ra>
// kernel: wavelet_model_forward.1
= control target key start
LH: loop header
LB: loop body
LE: loop exit
PB: predicated region body
PF: predicated region fallthrough
CT: control target
= control target key end

     0   :  { %s8245_s24 = smov 0   ;;  %s11805_s0 = inlined_call_operand.vmem [shape: f32[2,484,1], index: 0, kind: input, shape index: {}]   ;;  %s11806_s1 = inlined_call_operand.vmem [shape: f32[9,32], index: 1, kind: input, shape index: {}]   ;;  %s11807_s2 = inlined_call_operand.vmem [shape: bf16[288,32], index: 2, kind: input, shape index: {}]   ;;  %s11808_s3 = inlined_call_operand.vmem [shape: bf16[288,16], index: 3, kind: input, shape index: {}]   ;;  %s11809_s4 = inlined_call_operand.vmem [shape: bf16[256,8], index: 4, kind: input, shape index: {}]   ;;  %s11810_s5 = inlined_call_operand.vmem [shape: f32[1,8], index: 5, kind: input, shape index: {}]   ;;  %s11811_s6 = inlined_call_operand.vmem [shape: f32[8,128], index: 6, kind: input, shape index: {}]   ;;  %s11812_s7 = inlined_call_operand.vmem [shape: f32[2,1,128], index: 7, kind: output, shape index: {}]  }
   0x1 LB: > { %s7240_s25 = sadd.s32 4294967295, %s8193_s24   ;;  %p7244_p0 = scmp.ge.s32.totalorder %s8193_s24, 1  ;;  %s8193_s24 = sphi %s8245_s24, %s17_s24  }
   0x2   : > { %p237_p1 = scmp.lt.s32.totalorder %s8193_s24, 3 }
   0x4   : > { %p238_p2 = pnand %p7244_p0, %p237_p1 }
   0x6   : > { %241 = sbr.rel (%p238_p2) target bundleno = 2578 (0xa12), region = 48 }
   0xd   : > { %p267_p3 = scmp.lt.s32.totalorder %s7240_s25, 1  ;;  %v8195_v0 = vmov 0   ;;  %vm4396_vm0 = vcmask 261120   ;;  %vm8197_vm1 = vmmov 0   ;;  %vm4477_vm2 = vcmask 257024   ;;  %s8199_s30 = smov 64  }
   0xe   : > { %7590 = vset.pattern.permute.xlu1 %v8195_v0  ;;  %7589 = vset.pattern.permute.xlu0 %v8195_v0  ;;  %vm4736_vm3 = vcmask 254976   ;;  %vm4620_vm4 = vcmask 1044480   ;;  %vm4738_vm5 = vcmask 261126   ;;  %vm4741_vm6 = vcmask 261124   ;;  %s8200_s12 = smov 96   ;;  %s8201_s19 = smov 16  }
   0xf   : > { %s12342_s25 = smov (!%p267_p3, %s7240_s25), 1  ;;  %vm4451_vm7 = vcmask 259072   ;;  %vm4744_vm8 = vcmask 261122   ;;  %vm5438_vm9 = vcmask 523264   ;;  %vm5460_vm10 = vcmask 785408   ;;  %s8203_s9 = smov 80  }
  0x10   : > { %s7570_s26 = smul.u32 488, %s12342_s25  ;;  %vm6110_vm11 = vcmask 1040384   ;;  %vm6865_vm12 = vcmask 130048   ;;  %vm6903_vm13 = vcmask 1042432   ;;  %vm6875_vm14 = vcmask 128000   ;;  %s8204_s10 = smov 112  }
  0x11   : > { %vm6992_vm15 = vcmask 392192   ;;  %s274_s18 = scalar_lea.vmem %s11812_s7, %s12342_s25 }
  0x12   : > { %s8259_s29 = scalar_lea.vmem %s11805_s0, %s7570_s26  ;;  %s8202_s26 = smov 48  }
  0x13   : > { %v279_v1 = vld [vmem:[%s8259_s29 + $0x10] sm:$0xff]  ;;  %v277_v2 = vld [vmem:[%s8259_s29] sm:$0xff]  ;;  %v280_v3 = vld [vmem:[%s8259_s29 + $0x18] sm:$0xff] }
  0x14   : > { %345 = vperm.xlu1 %7590, %v279_v1   ;;  %335 = vperm.xlu0 %7589, %v277_v2   ;;  %v278_v4 = vld [vmem:[%s8259_s29 + $0x8] sm:$0xff]  ;;  %v281_v6 = vld [vmem:[%s8259_s29 + $0x20] sm:$0xff]  ;;  %v284_v7 = vld [vmem:[%s8259_s29 + $0x38] sm:$0xff] }
  0x15   : > { %v282_v5 = vld [vmem:[%s8259_s29 + $0x28] sm:$0xff]  ;;  %v283_v8 = vld [vmem:[%s8259_s29 + $0x30] sm:$0xff]  ;;  %v285_v10 = vld [vmem:[%s8259_s29 + $0x40] sm:$0xff] }
  0x16   : > { %v286_v9 = vld [vmem:[%s8259_s29 + $0x48] sm:$0xff]  ;;  %v288_v11 = vld [vmem:[%s8259_s29 + $0x58] sm:$0xff]  ;;  %v287_v12 = vld [vmem:[%s8259_s29 + $0x50] sm:$0xff] }
  0x17   : > { %v290_v13 = vld [vmem:[%s8259_s29 + $0x68] sm:$0xff]  ;;  %v289_v14 = vld [vmem:[%s8259_s29 + $0x60] sm:$0xff]  ;;  %v292_v15 = vld [vmem:[%s8259_s29 + $0x78] sm:$0xff] }
  0x18   : > { %350 = vperm.xlu1 %7590, %v280_v3   ;;  %340 = vperm.xlu0 %7589, %v278_v4   ;;  %v291_v16 = vld [vmem:[%s8259_s29 + $0x70] sm:$0xff]  ;;  %v294_v17 = vld [vmem:[%s8259_s29 + $0x88] sm:$0xff]  ;;  %v293_v18 = vld [vmem:[%s8259_s29 + $0x80] sm:$0xff] }
  0x19   : > { %v296_v19 = vld [vmem:[%s8259_s29 + $0x98] sm:$0xff]  ;;  %v295_v20 = vld [vmem:[%s8259_s29 + $0x90] sm:$0xff]  ;;  %v298_v21 = vld [vmem:[%s8259_s29 + $0xa8] sm:$0xff] }
  0x1a   : > { %v297_v22 = vld [vmem:[%s8259_s29 + $0xa0] sm:$0xff]  ;;  %v300_v23 = vld [vmem:[%s8259_s29 + $0xb8] sm:$0xff]  ;;  %v299_v24 = vld [vmem:[%s8259_s29 + $0xb0] sm:$0xff] }
  0x1b   : > { %v302_v25 = vld [vmem:[%s8259_s29 + $0xc8] sm:$0xff]  ;;  %v301_v26 = vld [vmem:[%s8259_s29 + $0xc0] sm:$0xff]  ;;  %v304_v27 = vld [vmem:[%s8259_s29 + $0xd8] sm:$0xff] }
  0x1c   : > { %360 = vperm.xlu1 %7590, %v282_v5   ;;  %355 = vperm.xlu0 %7589, %v281_v6   ;;  %v303_v28 = vld [vmem:[%s8259_s29 + $0xd0] sm:$0xff]  ;;  %v306_v29 = vld [vmem:[%s8259_s29 + $0xe8] sm:$0xff]  ;;  %v305_v30 = vld [vmem:[%s8259_s29 + $0xe0] sm:$0xff] }
  0x1d   : > { %v308_v31 = vld [vmem:[%s8259_s29 + $0xf8] sm:$0xff]  ;;  %v307_v32 = vld [vmem:[%s8259_s29 + $0xf0] sm:$0xff]  ;;  %v310_v33 = vld [vmem:[%s8259_s29 + $0x108] sm:$0xff] }
  0x1e   : > { %v309_v34 = vld [vmem:[%s8259_s29 + $0x100] sm:$0xff]  ;;  %v312_v35 = vld [vmem:[%s8259_s29 + $0x118] sm:$0xff]  ;;  %v311_v36 = vld [vmem:[%s8259_s29 + $0x110] sm:$0xff] }
  0x1f   : > { %v314_v37 = vld [vmem:[%s8259_s29 + $0x128] sm:$0xff]  ;;  %v313_v38 = vld [vmem:[%s8259_s29 + $0x120] sm:$0xff]  ;;  %v316_v39 = vld [vmem:[%s8259_s29 + $0x138] sm:$0xff] }
  0x20   : > { %370 = vperm.xlu1 %7590, %v284_v7   ;;  %365 = vperm.xlu0 %7589, %v283_v8   ;;  %v315_v40 = vld [vmem:[%s8259_s29 + $0x130] sm:$0xff]  ;;  %v318_v41 = vld [vmem:[%s8259_s29 + $0x148] sm:$0xff]  ;;  %v317_v42 = vld [vmem:[%s8259_s29 + $0x140] sm:$0xff] }
  0x21   : > { %v320_v43 = vld [vmem:[%s8259_s29 + $0x158] sm:$0xff]  ;;  %v319_v44 = vld [vmem:[%s8259_s29 + $0x150] sm:$0xff]  ;;  %v322_v45 = vld [vmem:[%s8259_s29 + $0x168] sm:$0xff] }
  0x22   : > { %v321_v46 = vld [vmem:[%s8259_s29 + $0x160] sm:$0xff]  ;;  %v324_v47 = vld [vmem:[%s8259_s29 + $0x178] sm:$0xff]  ;;  %v323_v48 = vld [vmem:[%s8259_s29 + $0x170] sm:$0xff] }
  0x23   : > { %v326_v49 = vld [vmem:[%s8259_s29 + $0x188] sm:$0xff]  ;;  %v325_v50 = vld [vmem:[%s8259_s29 + $0x180] sm:$0xff]  ;;  %v328_v51 = vld [vmem:[%s8259_s29 + $0x198] sm:$0xff] }
  0x24   : > { %380 = vperm.xlu1 %7590, %v286_v9   ;;  %375 = vperm.xlu0 %7589, %v285_v10   ;;  %v327_v52 = vld [vmem:[%s8259_s29 + $0x190] sm:$0xff]  ;;  %v330_v53 = vld [vmem:[%s8259_s29 + $0x1a8] sm:$0xff]  ;;  %v329_v54 = vld [vmem:[%s8259_s29 + $0x1a0] sm:$0xff] }
  0x25   : > { %v722_v55 = vld [vmem:[%s8259_s29 + $0x1] sm:$0xff]  ;;  %v331_v56 = vld [vmem:[%s8259_s29 + $0x1b0] sm:$0x3f]  ;;  %v725_v60 = vld [vmem:[%s8259_s29 + $0x19] sm:$0xff] }
  0x26   : > { %v724_v57 = vld [vmem:[%s8259_s29 + $0x11] sm:$0xff]  ;;  %v723_v58 = vld [vmem:[%s8259_s29 + $0x9] sm:$0xff]  ;;  %v726_v59 = vld [vmem:[%s8259_s29 + $0x21] sm:$0xff] }
  0x27   : > { %v728_v61 = vld [vmem:[%s8259_s29 + $0x31] sm:$0xff]  ;;  %v727_v62 = vld [vmem:[%s8259_s29 + $0x29] sm:$0xff]  ;;  %v730_v63 = vld [vmem:[%s8259_s29 + $0x41] sm:$0xff] }
  0x28   : > { %390 = vperm.xlu1 %7590, %v288_v11   ;;  %385 = vperm.xlu0 %7589, %v287_v12   ;;  %v729_v0 = vld [vmem:[%s8259_s29 + $0x39] sm:$0xff]  ;;  %v732_v1 = vld [vmem:[%s8259_s29 + $0x51] sm:$0xff]  ;;  %v731_v2 = vld [vmem:[%s8259_s29 + $0x49] sm:$0xff] }
  0x29   : > { %v734_v5 = vld [vmem:[%s8259_s29 + $0x61] sm:$0xff]  ;;  %v733_v6 = vld [vmem:[%s8259_s29 + $0x59] sm:$0xff]  ;;  %v736_v9 = vld [vmem:[%s8259_s29 + $0x71] sm:$0xff] }
  0x2a   : > { %v735_v10 = vld [vmem:[%s8259_s29 + $0x69] sm:$0xff] }
  0x2c   : > { %400 = vperm.xlu1 %7590, %v290_v13   ;;  %395 = vperm.xlu0 %7589, %v289_v14   ;;  %v738_v13 = vld [vmem:[%s8259_s29 + $0x81] sm:$0xff]  ;;  %v737_v14 = vld [vmem:[%s8259_s29 + $0x79] sm:$0xff] }
  0x30   : > { %410 = vperm.xlu1 %7590, %v292_v15   ;;  %405 = vperm.xlu0 %7589, %v291_v16  }
  0x34   : > { %420 = vperm.xlu1 %7590, %v294_v17   ;;  %415 = vperm.xlu0 %7589, %v293_v18   ;;  %v740_v17 = vld [vmem:[%s8259_s29 + $0x91] sm:$0xff]  ;;  %v739_v18 = vld [vmem:[%s8259_s29 + $0x89] sm:$0xff] }
  0x38   : > { %430 = vperm.xlu1 %7590, %v296_v19   ;;  %425 = vperm.xlu0 %7589, %v295_v20  }
  0x3c   : > { %440 = vperm.xlu1 %7590, %v298_v21   ;;  %435 = vperm.xlu0 %7589, %v297_v22   ;;  %v742_v21 = vld [vmem:[%s8259_s29 + $0xa1] sm:$0xff]  ;;  %v741_v22 = vld [vmem:[%s8259_s29 + $0x99] sm:$0xff] }
  0x40   : > { %450 = vperm.xlu1 %7590, %v300_v23   ;;  %445 = vperm.xlu0 %7589, %v299_v24  }
  0x44   : > { %460 = vperm.xlu1 %7590, %v302_v25   ;;  %455 = vperm.xlu0 %7589, %v301_v26   ;;  %v744_v25 = vld [vmem:[%s8259_s29 + $0xb1] sm:$0xff]  ;;  %v743_v26 = vld [vmem:[%s8259_s29 + $0xa9] sm:$0xff] }
  0x48   : > { %470 = vperm.xlu1 %7590, %v304_v27   ;;  %465 = vperm.xlu0 %7589, %v303_v28  }
  0x4c   : > { %480 = vperm.xlu1 %7590, %v306_v29   ;;  %475 = vperm.xlu0 %7589, %v305_v30   ;;  %v746_v29 = vld [vmem:[%s8259_s29 + $0xc1] sm:$0xff]  ;;  %v745_v30 = vld [vmem:[%s8259_s29 + $0xb9] sm:$0xff] }
  0x50   : > { %490 = vperm.xlu1 %7590, %v308_v31   ;;  %485 = vperm.xlu0 %7589, %v307_v32  }
  0x54   : > { %500 = vperm.xlu1 %7590, %v310_v33   ;;  %495 = vperm.xlu0 %7589, %v309_v34   ;;  %v748_v33 = vld [vmem:[%s8259_s29 + $0xd1] sm:$0xff]  ;;  %v747_v34 = vld [vmem:[%s8259_s29 + $0xc9] sm:$0xff] }
  0x58   : > { %510 = vperm.xlu1 %7590, %v312_v35   ;;  %505 = vperm.xlu0 %7589, %v311_v36  }
  0x5c   : > { %520 = vperm.xlu1 %7590, %v314_v37   ;;  %515 = vperm.xlu0 %7589, %v313_v38   ;;  %v750_v37 = vld [vmem:[%s8259_s29 + $0xe1] sm:$0xff]  ;;  %v749_v38 = vld [vmem:[%s8259_s29 + $0xd9] sm:$0xff] }
  0x60   : > { %530 = vperm.xlu1 %7590, %v316_v39   ;;  %525 = vperm.xlu0 %7589, %v315_v40  }
  0x64   : > { %540 = vperm.xlu1 %7590, %v318_v41   ;;  %535 = vperm.xlu0 %7589, %v317_v42   ;;  %v752_v41 = vld [vmem:[%s8259_s29 + $0xf1] sm:$0xff]  ;;  %v751_v42 = vld [vmem:[%s8259_s29 + $0xe9] sm:$0xff] }
  0x68   : > { %550 = vperm.xlu1 %7590, %v320_v43   ;;  %545 = vperm.xlu0 %7589, %v319_v44  }
  0x6c   : > { %560 = vperm.xlu1 %7590, %v322_v45   ;;  %555 = vperm.xlu0 %7589, %v321_v46   ;;  %v754_v45 = vld [vmem:[%s8259_s29 + $0x101] sm:$0xff]  ;;  %v753_v46 = vld [vmem:[%s8259_s29 + $0xf9] sm:$0xff] }
  0x70   : > { %570 = vperm.xlu1 %7590, %v324_v47   ;;  %565 = vperm.xlu0 %7589, %v323_v48  }
  0x74   : > { %580 = vperm.xlu1 %7590, %v326_v49   ;;  %575 = vperm.xlu0 %7589, %v325_v50   ;;  %v756_v49 = vld [vmem:[%s8259_s29 + $0x111] sm:$0xff]  ;;  %v755_v50 = vld [vmem:[%s8259_s29 + $0x109] sm:$0xff] }
  0x78   : > { %590 = vperm.xlu1 %7590, %v328_v51   ;;  %585 = vperm.xlu0 %7589, %v327_v52  }
  0x7c   : > { %600 = vperm.xlu1 %7590, %v330_v53   ;;  %595 = vperm.xlu0 %7589, %v329_v54   ;;  %v758_v53 = vld [vmem:[%s8259_s29 + $0x121] sm:$0xff]  ;;  %v757_v54 = vld [vmem:[%s8259_s29 + $0x119] sm:$0xff] }
  0x80   : > { %780 = vperm.xlu1 %7590, %v722_v55   ;;  %605 = vperm.xlu0 %7589, %v331_v56  }
  0x84   : > { %790 = vperm.xlu1 %7590, %v724_v57   ;;  %785 = vperm.xlu0 %7589, %v723_v58   ;;  %v760_v57 = vld [vmem:[%s8259_s29 + $0x131] sm:$0xff]  ;;  %v759_v58 = vld [vmem:[%s8259_s29 + $0x129] sm:$0xff] }
  0x88   : > { %800 = vperm.xlu1 %7590, %v726_v59   ;;  %795 = vperm.xlu0 %7589, %v725_v60  }
  0x8c   : > { %810 = vperm.xlu1 %7590, %v728_v61   ;;  %805 = vperm.xlu0 %7589, %v727_v62   ;;  %v762_v61 = vld [vmem:[%s8259_s29 + $0x141] sm:$0xff]  ;;  %v761_v62 = vld [vmem:[%s8259_s29 + $0x139] sm:$0xff] }
  0x90   : > { %820 = vperm.xlu1 %7590, %v730_v63   ;;  %815 = vperm.xlu0 %7589, %v729_v0  }
  0x93   : > { %v8327_v3 = vpop.permute.xlu1 %345  ;;  %v8329_v4 = vpop.permute.xlu0 %335 }
  0x94   : > { %830 = vperm.xlu1 %7590, %v732_v1   ;;  %825 = vperm.xlu0 %7589, %v731_v2   ;;  %v764_v1 = vld [vmem:[%s8259_s29 + $0x151] sm:$0xff]  ;;  %v763_v2 = vld [vmem:[%s8259_s29 + $0x149] sm:$0xff] }
  0x97   : > { %v8333_v7 = vpop.permute.xlu1 %350  ;;  %v8335_v8 = vpop.permute.xlu0 %340 }
  0x98   : > { %840 = vperm.xlu1 %7590, %v734_v5   ;;  %835 = vperm.xlu0 %7589, %v733_v6  }
  0x9b   : > { %v8339_v11 = vpop.permute.xlu1 %360  ;;  %v8341_v12 = vpop.permute.xlu0 %355 }
  0x9c   : > { %850 = vperm.xlu1 %7590, %v736_v9   ;;  %845 = vperm.xlu0 %7589, %v735_v10   ;;  %v766_v9 = vld [vmem:[%s8259_s29 + $0x161] sm:$0xff]  ;;  %v765_v10 = vld [vmem:[%s8259_s29 + $0x159] sm:$0xff] }
  0x9f   : > { %v8345_v15 = vpop.permute.xlu1 %370  ;;  %v8347_v16 = vpop.permute.xlu0 %365 }
  0xa0   : > { %11819 = vst [vmem:[#allocation7_spill] sm:$0xff] %v8345_v15  ;;  %11820 = vst [vmem:[#allocation8_spill] sm:$0xff] %v8347_v16  ;;  %860 = vperm.xlu1 %7590, %v738_v13   ;;  %855 = vperm.xlu0 %7589, %v737_v14  }
  0xa3   : > { %v8351_v19 = vpop.permute.xlu1 %380  ;;  %v8353_v20 = vpop.permute.xlu0 %375 }
  0xa4   : > { %870 = vperm.xlu1 %7590, %v740_v17   ;;  %865 = vperm.xlu0 %7589, %v739_v18   ;;  %v768_v17 = vld [vmem:[%s8259_s29 + $0x171] sm:$0xff]  ;;  %v767_v18 = vld [vmem:[%s8259_s29 + $0x169] sm:$0xff] }
  0xa7   : > { %v8357_v23 = vpop.permute.xlu1 %390  ;;  %v8359_v24 = vpop.permute.xlu0 %385 }
  0xa8   : > { %11821 = vst [vmem:[#allocation9_spill] sm:$0xff] %v8357_v23  ;;  %11822 = vst [vmem:[#allocation10_spill] sm:$0xff] %v8359_v24  ;;  %880 = vperm.xlu1 %7590, %v742_v21   ;;  %875 = vperm.xlu0 %7589, %v741_v22  }
  0xab   : > { %v8363_v27 = vpop.permute.xlu1 %400  ;;  %v8365_v28 = vpop.permute.xlu0 %395 }
  0xac   : > { %11823 = vst [vmem:[#allocation11_spill] sm:$0xff] %v8363_v27  ;;  %11824 = vst [vmem:[#allocation12_spill] sm:$0xff] %v8365_v28  ;;  %890 = vperm.xlu1 %7590, %v744_v25   ;;  %885 = vperm.xlu0 %7589, %v743_v26   ;;  %v770_v25 = vld [vmem:[%s8259_s29 + $0x181] sm:$0xff]  ;;  %v769_v26 = vld [vmem:[%s8259_s29 + $0x179] sm:$0xff] }
  0xaf   : > { %v8369_v31 = vpop.permute.xlu1 %410  ;;  %v8371_v32 = vpop.permute.xlu0 %405 }
  0xb0   : > { %11825 = vst [vmem:[#allocation13_spill] sm:$0xff] %v8369_v31  ;;  %11826 = vst [vmem:[#allocation14_spill] sm:$0xff] %v8371_v32  ;;  %900 = vperm.xlu1 %7590, %v746_v29   ;;  %895 = vperm.xlu0 %7589, %v745_v30  }
  0xb3   : > { %v8375_v35 = vpop.permute.xlu1 %420  ;;  %v8377_v36 = vpop.permute.xlu0 %415 }
  0xb4   : > { %11827 = vst [vmem:[#allocation15_spill] sm:$0xff] %v8375_v35  ;;  %11828 = vst [vmem:[#allocation16_spill] sm:$0xff] %v8377_v36  ;;  %910 = vperm.xlu1 %7590, %v748_v33   ;;  %905 = vperm.xlu0 %7589, %v747_v34   ;;  %v772_v33 = vld [vmem:[%s8259_s29 + $0x191] sm:$0xff]  ;;  %v771_v34 = vld [vmem:[%s8259_s29 + $0x189] sm:$0xff] }
  0xb7   : > { %v8381_v39 = vpop.permute.xlu1 %430  ;;  %v8383_v40 = vpop.permute.xlu0 %425 }
  0xb8   : > { %11829 = vst [vmem:[#allocation17_spill] sm:$0xff] %v8381_v39  ;;  %11830 = vst [vmem:[#allocation18_spill] sm:$0xff] %v8383_v40  ;;  %920 = vperm.xlu1 %7590, %v750_v37   ;;  %915 = vperm.xlu0 %7589, %v749_v38  }
  0xbb   : > { %v8387_v43 = vpop.permute.xlu1 %440  ;;  %v8389_v44 = vpop.permute.xlu0 %435 }
  0xbc   : > { %11831 = vst [vmem:[#allocation19_spill] sm:$0xff] %v8387_v43  ;;  %11832 = vst [vmem:[#allocation20_spill] sm:$0xff] %v8389_v44  ;;  %930 = vperm.xlu1 %7590, %v752_v41   ;;  %925 = vperm.xlu0 %7589, %v751_v42   ;;  %v774_v41 = vld [vmem:[%s8259_s29 + $0x1a1] sm:$0xff]  ;;  %v773_v42 = vld [vmem:[%s8259_s29 + $0x199] sm:$0xff] }
  0xbf   : > { %v8393_v47 = vpop.permute.xlu1 %450  ;;  %v8395_v48 = vpop.permute.xlu0 %445 }
  0xc0   : > { %11833 = vst [vmem:[#allocation21_spill] sm:$0xff] %v8393_v47  ;;  %11834 = vst [vmem:[#allocation22_spill] sm:$0xff] %v8395_v48  ;;  %940 = vperm.xlu1 %7590, %v754_v45   ;;  %935 = vperm.xlu0 %7589, %v753_v46  }
  0xc3   : > { %v8399_v51 = vpop.permute.xlu1 %460  ;;  %v8401_v52 = vpop.permute.xlu0 %455 }
  0xc4   : > { %11835 = vst [vmem:[#allocation23_spill] sm:$0xff] %v8399_v51  ;;  %11836 = vst [vmem:[#allocation24_spill] sm:$0xff] %v8401_v52  ;;  %950 = vperm.xlu1 %7590, %v756_v49   ;;  %945 = vperm.xlu0 %7589, %v755_v50   ;;  %v776_v49 = vld [vmem:[%s8259_s29 + $0x1b1] sm:$0x3f]  ;;  %v775_v50 = vld [vmem:[%s8259_s29 + $0x1a9] sm:$0xff] }
  0xc7   : > { %v8405_v55 = vpop.permute.xlu1 %470  ;;  %v8407_v56 = vpop.permute.xlu0 %465 }
  0xc8   : > { %11837 = vst [vmem:[#allocation25_spill] sm:$0xff] %v8405_v55  ;;  %11838 = vst [vmem:[#allocation26_spill] sm:$0xff] %v8407_v56  ;;  %960 = vperm.xlu1 %7590, %v758_v53   ;;  %955 = vperm.xlu0 %7589, %v757_v54  }
  0xcb   : > { %v8411_v59 = vpop.permute.xlu1 %480  ;;  %v8413_v60 = vpop.permute.xlu0 %475 }
  0xcc   : > { %11839 = vst [vmem:[#allocation27_spill] sm:$0xff] %v8411_v59  ;;  %11840 = vst [vmem:[#allocation28_spill] sm:$0xff] %v8413_v60  ;;  %970 = vperm.xlu1 %7590, %v760_v57   ;;  %965 = vperm.xlu0 %7589, %v759_v58   ;;  %v1168_v57 = vld [vmem:[%s8259_s29 + $0xa] sm:$0xff]  ;;  %v1167_v58 = vld [vmem:[%s8259_s29 + $0x2] sm:$0xff] }
  0xcf   : > { %v8417_v63 = vpop.permute.xlu1 %490  ;;  %v8419_v0 = vpop.permute.xlu0 %485 }
  0xd0   : > { %11841 = vst [vmem:[#allocation29_spill] sm:$0xff] %v8417_v63  ;;  %11842 = vst [vmem:[#allocation30_spill] sm:$0xff] %v8419_v0  ;;  %980 = vperm.xlu1 %7590, %v762_v61   ;;  %975 = vperm.xlu0 %7589, %v761_v62  }
  0xd3   : > { %v8423_v5 = vpop.permute.xlu1 %500  ;;  %v8425_v6 = vpop.permute.xlu0 %495 }
  0xd4   : > { %11843 = vst [vmem:[#allocation31_spill] sm:$0xff] %v8423_v5  ;;  %11844 = vst [vmem:[#allocation32_spill] sm:$0xff] %v8425_v6  ;;  %990 = vperm.xlu1 %7590, %v764_v1   ;;  %985 = vperm.xlu0 %7589, %v763_v2   ;;  %v1170_v1 = vld [vmem:[%s8259_s29 + $0x1a] sm:$0xff]  ;;  %v1169_v2 = vld [vmem:[%s8259_s29 + $0x12] sm:$0xff] }
  0xd7   : > { %v8429_v13 = vpop.permute.xlu1 %510  ;;  %v8431_v14 = vpop.permute.xlu0 %505 }
  0xd8   : > { %11845 = vst [vmem:[#allocation33_spill] sm:$0xff] %v8429_v13  ;;  %11846 = vst [vmem:[#allocation34_spill] sm:$0xff] %v8431_v14  ;;  %1000 = vperm.xlu1 %7590, %v766_v9   ;;  %995 = vperm.xlu0 %7589, %v765_v10  }
  0xdb   : > { %v8435_v21 = vpop.permute.xlu1 %520  ;;  %v8437_v22 = vpop.permute.xlu0 %515 }
  0xdc   : > { %11847 = vst [vmem:[#allocation35_spill] sm:$0xff] %v8435_v21  ;;  %11848 = vst [vmem:[#allocation36_spill] sm:$0xff] %v8437_v22  ;;  %1010 = vperm.xlu1 %7590, %v768_v17   ;;  %1005 = vperm.xlu0 %7589, %v767_v18   ;;  %v1172_v17 = vld [vmem:[%s8259_s29 + $0x2a] sm:$0xff]  ;;  %v1171_v18 = vld [vmem:[%s8259_s29 + $0x22] sm:$0xff] }
  0xdf   : > { %v8441_v29 = vpop.permute.xlu1 %530  ;;  %v8443_v30 = vpop.permute.xlu0 %525 }
  0xe0   : > { %11849 = vst [vmem:[#allocation37_spill] sm:$0xff] %v8441_v29  ;;  %11850 = vst [vmem:[#allocation38_spill] sm:$0xff] %v8443_v30  ;;  %1020 = vperm.xlu1 %7590, %v770_v25   ;;  %1015 = vperm.xlu0 %7589, %v769_v26  }
  0xe3   : > { %v8447_v37 = vpop.permute.xlu1 %540  ;;  %v8449_v38 = vpop.permute.xlu0 %535 }
  0xe4   : > { %11851 = vst [vmem:[#allocation39_spill] sm:$0xff] %v8447_v37  ;;  %11852 = vst [vmem:[#allocation40_spill] sm:$0xff] %v8449_v38  ;;  %1030 = vperm.xlu1 %7590, %v772_v33   ;;  %1025 = vperm.xlu0 %7589, %v771_v34   ;;  %v1174_v33 = vld [vmem:[%s8259_s29 + $0x3a] sm:$0xff]  ;;  %v1173_v34 = vld [vmem:[%s8259_s29 + $0x32] sm:$0xff] }
  0xe7   : > { %v8453_v45 = vpop.permute.xlu1 %550  ;;  %v8455_v46 = vpop.permute.xlu0 %545 }
  0xe8   : > { %11853 = vst [vmem:[#allocation41_spill] sm:$0xff] %v8453_v45  ;;  %11854 = vst [vmem:[#allocation42_spill] sm:$0xff] %v8455_v46  ;;  %1040 = vperm.xlu1 %7590, %v774_v41   ;;  %1035 = vperm.xlu0 %7589, %v773_v42  }
  0xeb   : > { %v8459_v53 = vpop.permute.xlu1 %560  ;;  %v8461_v54 = vpop.permute.xlu0 %555 }
  0xec   : > { %11855 = vst [vmem:[#allocation43_spill] sm:$0xff] %v8459_v53  ;;  %11856 = vst [vmem:[#allocation44_spill] sm:$0xff] %v8461_v54  ;;  %1050 = vperm.xlu1 %7590, %v776_v49   ;;  %1045 = vperm.xlu0 %7589, %v775_v50   ;;  %v1176_v49 = vld [vmem:[%s8259_s29 + $0x4a] sm:$0xff]  ;;  %v1175_v50 = vld [vmem:[%s8259_s29 + $0x42] sm:$0xff] }
  0xef   : > { %v8465_v61 = vpop.permute.xlu1 %570  ;;  %v8467_v62 = vpop.permute.xlu0 %565 }
  0xf0   : > { %11857 = vst [vmem:[#allocation45_spill] sm:$0xff] %v8465_v61  ;;  %11858 = vst [vmem:[#allocation46_spill] sm:$0xff] %v8467_v62  ;;  %1230 = vperm.xlu1 %7590, %v1168_v57   ;;  %1225 = vperm.xlu0 %7589, %v1167_v58  }
  0xf3   : > { %v8471_v9 = vpop.permute.xlu1 %580  ;;  %v8473_v10 = vpop.permute.xlu0 %575 }
  0xf4   : > { %11859 = vst [vmem:[#allocation47_spill] sm:$0xff] %v8471_v9  ;;  %11860 = vst [vmem:[#allocation48_spill] sm:$0xff] %v8473_v10  ;;  %1240 = vperm.xlu1 %7590, %v1170_v1   ;;  %1235 = vperm.xlu0 %7589, %v1169_v2   ;;  %v1178_v1 = vld [vmem:[%s8259_s29 + $0x5a] sm:$0xff]  ;;  %v1177_v2 = vld [vmem:[%s8259_s29 + $0x52] sm:$0xff] }
  0xf7   : > { %v8477_v25 = vpop.permute.xlu1 %590  ;;  %v8479_v26 = vpop.permute.xlu0 %585 }
  0xf8   : > { %11861 = vst [vmem:[#allocation49_spill] sm:$0xff] %v8477_v25  ;;  %11862 = vst [vmem:[#allocation50_spill] sm:$0xff] %v8479_v26  ;;  %1250 = vperm.xlu1 %7590, %v1172_v17   ;;  %1245 = vperm.xlu0 %7589, %v1171_v18  }
  0xfb   : > { %v8483_v41 = vpop.permute.xlu1 %600  ;;  %v8485_v42 = vpop.permute.xlu0 %595 }
  0xfc   : > { %11863 = vst [vmem:[#allocation51_spill] sm:$0xff] %v8483_v41  ;;  %11864 = vst [vmem:[#allocation52_spill] sm:$0xff] %v8485_v42  ;;  %1260 = vperm.xlu1 %7590, %v1174_v33   ;;  %1255 = vperm.xlu0 %7589, %v1173_v34   ;;  %v1180_v33 = vld [vmem:[%s8259_s29 + $0x6a] sm:$0xff]  ;;  %v1179_v34 = vld [vmem:[%s8259_s29 + $0x62] sm:$0xff] }
  0xff   : > { %v8489_v57 = vpop.permute.xlu1 %780  ;;  %v8491_v58 = vpop.permute.xlu0 %605 }
 0x100   : > { %11865 = vst [vmem:[#allocation53_spill] sm:$0xff] %v8491_v58  ;;  %1270 = vperm.xlu1 %7590, %v1176_v49   ;;  %1265 = vperm.xlu0 %7589, %v1175_v50   ;;  %v1182_v49 = vld [vmem:[%s8259_s29 + $0x7a] sm:$0xff]  ;;  %v1181_v50 = vld [vmem:[%s8259_s29 + $0x72] sm:$0xff] }
 0x103   : > { %v8495_v17 = vpop.permute.xlu1 %790  ;;  %v8497_v18 = vpop.permute.xlu0 %785 }
 0x104   : > { %1280 = vperm.xlu1 %7590, %v1178_v1   ;;  %1275 = vperm.xlu0 %7589, %v1177_v2   ;;  %v1184_v1 = vld [vmem:[%s8259_s29 + $0x8a] sm:$0xff]  ;;  %v1183_v2 = vld [vmem:[%s8259_s29 + $0x82] sm:$0xff] }
 0x107   : > { %v8501_v25 = vpop.permute.xlu1 %800  ;;  %v8503_v26 = vpop.permute.xlu0 %795 }
 0x108   : > { %1290 = vperm.xlu1 %7590, %v1180_v33   ;;  %1285 = vperm.xlu0 %7589, %v1179_v34   ;;  %v1186_v33 = vld [vmem:[%s8259_s29 + $0x9a] sm:$0xff]  ;;  %v1185_v34 = vld [vmem:[%s8259_s29 + $0x92] sm:$0xff] }
 0x10b   : > { %v8507_v58 = vpop.permute.xlu1 %810  ;;  %v8509_v42 = vpop.permute.xlu0 %805 }
 0x10c   : > { %11866 = vst [vmem:[#allocation54_spill] sm:$0xff] %v8507_v58  ;;  %1300 = vperm.xlu1 %7590, %v1182_v49   ;;  %1295 = vperm.xlu0 %7589, %v1181_v50   ;;  %v1188_v49 = vld [vmem:[%s8259_s29 + $0xaa] sm:$0xff]  ;;  %v1187_v50 = vld [vmem:[%s8259_s29 + $0xa2] sm:$0xff] }
 0x10f   : > { %v8513_v41 = vpop.permute.xlu1 %820  ;;  %v8515_v10 = vpop.permute.xlu0 %815 }
 0x110   : > { %11867 = vst [vmem:[#allocation55_spill] sm:$0xff] %v8515_v10  ;;  %1310 = vperm.xlu1 %7590, %v1184_v1   ;;  %1305 = vperm.xlu0 %7589, %v1183_v2   ;;  %v1190_v1 = vld [vmem:[%s8259_s29 + $0xba] sm:$0xff]  ;;  %v1189_v2 = vld [vmem:[%s8259_s29 + $0xb2] sm:$0xff] }
 0x113   : > { %v8519_v9 = vpop.permute.xlu1 %830  ;;  %v8521_v62 = vpop.permute.xlu0 %825 }
 0x114   : > { %11868 = vst [vmem:[#allocation56_spill] sm:$0xff] %v8519_v9  ;;  %1320 = vperm.xlu1 %7590, %v1186_v33   ;;  %1315 = vperm.xlu0 %7589, %v1185_v34   ;;  %v1192_v33 = vld [vmem:[%s8259_s29 + $0xca] sm:$0xff]  ;;  %v1191_v34 = vld [vmem:[%s8259_s29 + $0xc2] sm:$0xff] }
 0x117   : > { %v8525_v61 = vpop.permute.xlu1 %840  ;;  %v8527_v54 = vpop.permute.xlu0 %835 }
 0x118   : > { %11869 = vst [vmem:[#allocation57_spill] sm:$0xff] %v8525_v61  ;;  %11870 = vst [vmem:[#allocation58_spill] sm:$0xff] %v8527_v54  ;;  %1330 = vperm.xlu1 %7590, %v1188_v49   ;;  %1325 = vperm.xlu0 %7589, %v1187_v50   ;;  %v1194_v49 = vld [vmem:[%s8259_s29 + $0xda] sm:$0xff]  ;;  %v1193_v50 = vld [vmem:[%s8259_s29 + $0xd2] sm:$0xff] }
 0x11b   : > { %v8531_v53 = vpop.permute.xlu1 %850  ;;  %v8533_v46 = vpop.permute.xlu0 %845 }
 0x11c   : > { %11871 = vst [vmem:[#allocation59_spill] sm:$0xff] %v8531_v53  ;;  %11872 = vst [vmem:[#allocation60_spill] sm:$0xff] %v8533_v46  ;;  %1340 = vperm.xlu1 %7590, %v1190_v1   ;;  %1335 = vperm.xlu0 %7589, %v1189_v2   ;;  %v1196_v1 = vld [vmem:[%s8259_s29 + $0xea] sm:$0xff]  ;;  %v1195_v2 = vld [vmem:[%s8259_s29 + $0xe2] sm:$0xff] }
 0x11f   : > { %v8537_v45 = vpop.permute.xlu1 %860  ;;  %v8539_v38 = vpop.permute.xlu0 %855 }
 0x120   : > { %11873 = vst [vmem:[#allocation61_spill] sm:$0xff] %v8537_v45  ;;  %11874 = vst [vmem:[#allocation62_spill] sm:$0xff] %v8539_v38  ;;  %1350 = vperm.xlu1 %7590, %v1192_v33   ;;  %1345 = vperm.xlu0 %7589, %v1191_v34   ;;  %v1198_v33 = vld [vmem:[%s8259_s29 + $0xfa] sm:$0xff]  ;;  %v1197_v34 = vld [vmem:[%s8259_s29 + $0xf2] sm:$0xff] }
 0x123   : > { %v8543_v37 = vpop.permute.xlu1 %870  ;;  %v8545_v30 = vpop.permute.xlu0 %865 }
 0x124   : > { %11875 = vst [vmem:[#allocation63_spill] sm:$0xff] %v8543_v37  ;;  %11876 = vst [vmem:[#allocation64_spill] sm:$0xff] %v8545_v30  ;;  %1360 = vperm.xlu1 %7590, %v1194_v49   ;;  %1355 = vperm.xlu0 %7589, %v1193_v50   ;;  %v1200_v49 = vld [vmem:[%s8259_s29 + $0x10a] sm:$0xff]  ;;  %v1199_v50 = vld [vmem:[%s8259_s29 + $0x102] sm:$0xff] }
 0x127   : > { %v8549_v29 = vpop.permute.xlu1 %880  ;;  %v8551_v22 = vpop.permute.xlu0 %875 }
 0x128   : > { %11877 = vst [vmem:[#allocation65_spill] sm:$0xff] %v8549_v29  ;;  %11878 = vst [vmem:[#allocation66_spill] sm:$0xff] %v8551_v22  ;;  %1370 = vperm.xlu1 %7590, %v1196_v1   ;;  %1365 = vperm.xlu0 %7589, %v1195_v2   ;;  %v1202_v1 = vld [vmem:[%s8259_s29 + $0x11a] sm:$0xff]  ;;  %v1201_v2 = vld [vmem:[%s8259_s29 + $0x112] sm:$0xff] }
 0x12b   : > { %v8555_v21 = vpop.permute.xlu1 %890  ;;  %v8557_v14 = vpop.permute.xlu0 %885 }
 0x12c   : > { %11879 = vst [vmem:[#allocation67_spill] sm:$0xff] %v8555_v21  ;;  %11880 = vst [vmem:[#allocation68_spill] sm:$0xff] %v8557_v14  ;;  %1380 = vperm.xlu1 %7590, %v1198_v33   ;;  %1375 = vperm.xlu0 %7589, %v1197_v34   ;;  %v1204_v33 = vld [vmem:[%s8259_s29 + $0x12a] sm:$0xff]  ;;  %v1203_v34 = vld [vmem:[%s8259_s29 + $0x122] sm:$0xff] }
 0x12f   : > { %v8561_v13 = vpop.permute.xlu1 %900  ;;  %v8563_v59 = vpop.permute.xlu0 %895 }
 0x130   : > { %11881 = vst [vmem:[#allocation69_spill] sm:$0xff] %v8561_v13  ;;  %11882 = vst [vmem:[#allocation70_spill] sm:$0xff] %v8563_v59  ;;  %1390 = vperm.xlu1 %7590, %v1200_v49   ;;  %1385 = vperm.xlu0 %7589, %v1199_v50   ;;  %v1206_v49 = vld [vmem:[%s8259_s29 + $0x13a] sm:$0xff]  ;;  %v1205_v50 = vld [vmem:[%s8259_s29 + $0x132] sm:$0xff] }
 0x133   : > { %v8567_v60 = vpop.permute.xlu1 %910  ;;  %v8569_v5 = vpop.permute.xlu0 %905 }
 0x134   : > { %11883 = vst [vmem:[#allocation71_spill] sm:$0xff] %v8567_v60  ;;  %11884 = vst [vmem:[#allocation72_spill] sm:$0xff] %v8569_v5  ;;  %1400 = vperm.xlu1 %7590, %v1202_v1   ;;  %1395 = vperm.xlu0 %7589, %v1201_v2   ;;  %v1208_v1 = vld [vmem:[%s8259_s29 + $0x14a] sm:$0xff]  ;;  %v1207_v2 = vld [vmem:[%s8259_s29 + $0x142] sm:$0xff] }
 0x137   : > { %v8573_v6 = vpop.permute.xlu1 %920  ;;  %v8575_v63 = vpop.permute.xlu0 %915 }
 0x138   : > { %11885 = vst [vmem:[#allocation73_spill] sm:$0xff] %v8573_v6  ;;  %11886 = vst [vmem:[#allocation74_spill] sm:$0xff] %v8575_v63  ;;  %1410 = vperm.xlu1 %7590, %v1204_v33   ;;  %1405 = vperm.xlu0 %7589, %v1203_v34   ;;  %v1210_v33 = vld [vmem:[%s8259_s29 + $0x15a] sm:$0xff]  ;;  %v1209_v34 = vld [vmem:[%s8259_s29 + $0x152] sm:$0xff] }
 0x13b   : > { %v8579_v0 = vpop.permute.xlu1 %930  ;;  %v8581_v47 = vpop.permute.xlu0 %925 }
 0x13c   : > { %11887 = vst [vmem:[#allocation75_spill] sm:$0xff] %v8579_v0  ;;  %11888 = vst [vmem:[#allocation76_spill] sm:$0xff] %v8581_v47  ;;  %1420 = vperm.xlu1 %7590, %v1206_v49   ;;  %1415 = vperm.xlu0 %7589, %v1205_v50   ;;  %v1212_v49 = vld [vmem:[%s8259_s29 + $0x16a] sm:$0xff]  ;;  %v1211_v50 = vld [vmem:[%s8259_s29 + $0x162] sm:$0xff] }
 0x13f   : > { %v8585_v59 = vpop.permute.xlu1 %940  ;;  %v8587_v6 = vpop.permute.xlu0 %935 }
 0x140   : > { %11889 = vst [vmem:[#allocation77_spill] sm:$0xff] %v8585_v59  ;;  %11890 = vst [vmem:[#allocation78_spill] sm:$0xff] %v8587_v6  ;;  %1430 = vperm.xlu1 %7590, %v1208_v1   ;;  %1425 = vperm.xlu0 %7589, %v1207_v2   ;;  %v1214_v1 = vld [vmem:[%s8259_s29 + $0x17a] sm:$0xff]  ;;  %v1213_v2 = vld [vmem:[%s8259_s29 + $0x172] sm:$0xff] }
 0x143   : > { %v8591_v48 = vpop.permute.xlu1 %950  ;;  %v8593_v0 = vpop.permute.xlu0 %945 }
 0x144   : > { %11891 = vst [vmem:[#allocation79_spill] sm:$0xff] %v8591_v48  ;;  %11892 = vst [vmem:[#allocation80_spill] sm:$0xff] %v8593_v0  ;;  %1440 = vperm.xlu1 %7590, %v1210_v33   ;;  %1435 = vperm.xlu0 %7589, %v1209_v34   ;;  %v1216_v33 = vld [vmem:[%s8259_s29 + $0x18a] sm:$0xff]  ;;  %v1215_v34 = vld [vmem:[%s8259_s29 + $0x182] sm:$0xff] }
 0x147   : > { %v8597_v47 = vpop.permute.xlu1 %960  ;;  %v8599_v59 = vpop.permute.xlu0 %955 }
 0x148   : > { %11893 = vst [vmem:[#allocation81_spill] sm:$0xff] %v8597_v47  ;;  %11894 = vst [vmem:[#allocation82_spill] sm:$0xff] %v8599_v59  ;;  %1450 = vperm.xlu1 %7590, %v1212_v49   ;;  %1445 = vperm.xlu0 %7589, %v1211_v50   ;;  %v1218_v49 = vld [vmem:[%s8259_s29 + $0x19a] sm:$0xff]  ;;  %v1217_v50 = vld [vmem:[%s8259_s29 + $0x192] sm:$0xff] }
 0x14b   : > { %v8603_v6 = vpop.permute.xlu1 %970  ;;  %v8605_v48 = vpop.permute.xlu0 %965 }
 0x14c   : > { %11895 = vst [vmem:[#allocation83_spill] sm:$0xff] %v8603_v6  ;;  %11896 = vst [vmem:[#allocation84_spill] sm:$0xff] %v8605_v48  ;;  %1460 = vperm.xlu1 %7590, %v1214_v1   ;;  %1455 = vperm.xlu0 %7589, %v1213_v2   ;;  %v1220_v1 = vld [vmem:[%s8259_s29 + $0x1aa] sm:$0xff]  ;;  %v1219_v2 = vld [vmem:[%s8259_s29 + $0x1a2] sm:$0xff] }
 0x14f   : > { %v8609_v0 = vpop.permute.xlu1 %980  ;;  %v8611_v47 = vpop.permute.xlu0 %975 }
 0x150   : > { %11897 = vst [vmem:[#allocation85_spill] sm:$0xff] %v8609_v0  ;;  %11898 = vst [vmem:[#allocation86_spill] sm:$0xff] %v8611_v47  ;;  %1470 = vperm.xlu1 %7590, %v1216_v33   ;;  %1465 = vperm.xlu0 %7589, %v1215_v34   ;;  %v1612_v33 = vld [vmem:[%s8259_s29 + $0x16] sm:$0xff] }
 0x151   : > { %v1221_v34 = vld [vmem:[%s8259_s29 + $0x1b2] sm:$0x3f] }
 0x153   : > { %v8615_v59 = vpop.permute.xlu1 %990  ;;  %v8617_v6 = vpop.permute.xlu0 %985 }
 0x154   : > { %11899 = vst [vmem:[#allocation87_spill] sm:$0xff] %v8615_v59  ;;  %11900 = vst [vmem:[#allocation88_spill] sm:$0xff] %v8617_v6  ;;  %1480 = vperm.xlu1 %7590, %v1218_v49   ;;  %1475 = vperm.xlu0 %7589, %v1217_v50   ;;  %v1614_v49 = vld [vmem:[%s8259_s29 + $0x26] sm:$0xff]  ;;  %v1613_v50 = vld [vmem:[%s8259_s29 + $0x1e] sm:$0xff] }
 0x157   : > { %v8621_v48 = vpop.permute.xlu1 %1000  ;;  %v8623_v0 = vpop.permute.xlu0 %995 }
 0x158   : > { %11901 = vst [vmem:[#allocation89_spill] sm:$0xff] %v8621_v48  ;;  %11902 = vst [vmem:[#allocation90_spill] sm:$0xff] %v8623_v0  ;;  %1490 = vperm.xlu1 %7590, %v1220_v1   ;;  %1485 = vperm.xlu0 %7589, %v1219_v2   ;;  %v1616_v1 = vld [vmem:[%s8259_s29 + $0x36] sm:$0xff]  ;;  %v1615_v2 = vld [vmem:[%s8259_s29 + $0x2e] sm:$0xff] }
 0x15b   : > { %v8627_v47 = vpop.permute.xlu1 %1010  ;;  %v8629_v59 = vpop.permute.xlu0 %1005 }
 0x15c   : > { %11903 = vst [vmem:[#allocation91_spill] sm:$0xff] %v8627_v47  ;;  %11904 = vst [vmem:[#allocation92_spill] sm:$0xff] %v8629_v59  ;;  %1670 = vperm.xlu1 %7590, %v1612_v33   ;;  %1495 = vperm.xlu0 %7589, %v1221_v34   ;;  %v1618_v33 = vld [vmem:[%s8259_s29 + $0x46] sm:$0xff]  ;;  %v1617_v34 = vld [vmem:[%s8259_s29 + $0x3e] sm:$0xff] }
 0x15f   : > { %v8633_v6 = vpop.permute.xlu1 %1020  ;;  %v8635_v48 = vpop.permute.xlu0 %1015 }
 0x160   : > { %11905 = vst [vmem:[#allocation93_spill] sm:$0xff] %v8633_v6  ;;  %11906 = vst [vmem:[#allocation94_spill] sm:$0xff] %v8635_v48  ;;  %1680 = vperm.xlu1 %7590, %v1614_v49   ;;  %1675 = vperm.xlu0 %7589, %v1613_v50   ;;  %v1620_v49 = vld [vmem:[%s8259_s29 + $0x56] sm:$0xff]  ;;  %v1619_v50 = vld [vmem:[%s8259_s29 + $0x4e] sm:$0xff] }
 0x163   : > { %v8639_v0 = vpop.permute.xlu1 %1030  ;;  %v8641_v47 = vpop.permute.xlu0 %1025 }
 0x164   : > { %11907 = vst [vmem:[#allocation95_spill] sm:$0xff] %v8639_v0  ;;  %11908 = vst [vmem:[#allocation96_spill] sm:$0xff] %v8641_v47  ;;  %1690 = vperm.xlu1 %7590, %v1616_v1   ;;  %1685 = vperm.xlu0 %7589, %v1615_v2   ;;  %v1622_v1 = vld [vmem:[%s8259_s29 + $0x66] sm:$0xff]  ;;  %v1621_v2 = vld [vmem:[%s8259_s29 + $0x5e] sm:$0xff] }
 0x167   : > { %v8645_v59 = vpop.permute.xlu1 %1040  ;;  %v8647_v6 = vpop.permute.xlu0 %1035 }
 0x168   : > { %11909 = vst [vmem:[#allocation97_spill] sm:$0xff] %v8645_v59  ;;  %11910 = vst [vmem:[#allocation98_spill] sm:$0xff] %v8647_v6  ;;  %1700 = vperm.xlu1 %7590, %v1618_v33   ;;  %1695 = vperm.xlu0 %7589, %v1617_v34   ;;  %v1624_v33 = vld [vmem:[%s8259_s29 + $0x76] sm:$0xff]  ;;  %v1623_v34 = vld [vmem:[%s8259_s29 + $0x6e] sm:$0xff] }
 0x16b   : > { %v8651_v48 = vpop.permute.xlu1 %1050  ;;  %v8653_v0 = vpop.permute.xlu0 %1045 }
 0x16c   : > { %11911 = vst [vmem:[#allocation99_spill] sm:$0xff] %v8651_v48  ;;  %11912 = vst [vmem:[#allocation100_spill] sm:$0xff] %v8653_v0  ;;  %1710 = vperm.xlu1 %7590, %v1620_v49   ;;  %1705 = vperm.xlu0 %7589, %v1619_v50   ;;  %v1626_v49 = vld [vmem:[%s8259_s29 + $0x86] sm:$0xff]  ;;  %v1625_v50 = vld [vmem:[%s8259_s29 + $0x7e] sm:$0xff] }
 0x16f   : > { %v8657_v47 = vpop.permute.xlu1 %1230  ;;  %v8659_v59 = vpop.permute.xlu0 %1225 }
 0x170   : > { %1720 = vperm.xlu1 %7590, %v1622_v1   ;;  %1715 = vperm.xlu0 %7589, %v1621_v2   ;;  %v1628_v1 = vld [vmem:[%s8259_s29 + $0x96] sm:$0xff]  ;;  %v1627_v2 = vld [vmem:[%s8259_s29 + $0x8e] sm:$0xff] }
 0x173   : > { %v8663_v6 = vpop.permute.xlu1 %1240  ;;  %v8665_v48 = vpop.permute.xlu0 %1235 }
 0x174   : > { %1730 = vperm.xlu1 %7590, %v1624_v33   ;;  %1725 = vperm.xlu0 %7589, %v1623_v34   ;;  %v1630_v33 = vld [vmem:[%s8259_s29 + $0xa6] sm:$0xff]  ;;  %v1629_v34 = vld [vmem:[%s8259_s29 + $0x9e] sm:$0xff] }
 0x177   : > { %v8669_v0 = vpop.permute.xlu1 %1250  ;;  %v8671_v21 = vpop.permute.xlu0 %1245 }
 0x178   : > { %1740 = vperm.xlu1 %7590, %v1626_v49   ;;  %1735 = vperm.xlu0 %7589, %v1625_v50   ;;  %v1632_v49 = vld [vmem:[%s8259_s29 + $0xb6] sm:$0xff]  ;;  %v1631_v50 = vld [vmem:[%s8259_s29 + $0xae] sm:$0xff] }
 0x17b   : > { %v8675_v55 = vpop.permute.xlu1 %1260  ;;  %v8677_v63 = vpop.permute.xlu0 %1255 }
 0x17c   : > { %11913 = vst [vmem:[#allocation101_spill] sm:$0xff] %v8675_v55  ;;  %11914 = vst [vmem:[#allocation102_spill] sm:$0xff] %v8677_v63  ;;  %1750 = vperm.xlu1 %7590, %v1628_v1   ;;  %1745 = vperm.xlu0 %7589, %v1627_v2   ;;  %v1634_v1 = vld [vmem:[%s8259_s29 + $0xc6] sm:$0xff]  ;;  %v1633_v2 = vld [vmem:[%s8259_s29 + $0xbe] sm:$0xff] }
 0x17f   : > { %v8681_v51 = vpop.permute.xlu1 %1270  ;;  %v8683_v5 = vpop.permute.xlu0 %1265 }
 0x180   : > { %1760 = vperm.xlu1 %7590, %v1630_v33   ;;  %1755 = vperm.xlu0 %7589, %v1629_v34   ;;  %v1636_v33 = vld [vmem:[%s8259_s29 + $0xd6] sm:$0xff]  ;;  %v1635_v34 = vld [vmem:[%s8259_s29 + $0xce] sm:$0xff] }
 0x183   : > { %v8687_v56 = vpop.permute.xlu1 %1280  ;;  %v8689_v60 = vpop.permute.xlu0 %1275 }
 0x184   : > { %11915 = vst [vmem:[#allocation103_spill] sm:$0xff] %v8687_v56  ;;  %11916 = vst [vmem:[#allocation104_spill] sm:$0xff] %v8689_v60  ;;  %1770 = vperm.xlu1 %7590, %v1632_v49   ;;  %1765 = vperm.xlu0 %7589, %v1631_v50   ;;  %v1638_v49 = vld [vmem:[%s8259_s29 + $0xe6] sm:$0xff]  ;;  %v1637_v50 = vld [vmem:[%s8259_s29 + $0xde] sm:$0xff] }
 0x187   : > { %v8693_v52 = vpop.permute.xlu1 %1290  ;;  %v8695_v13 = vpop.permute.xlu0 %1285 }
 0x188   : > { %11917 = vst [vmem:[#allocation105_spill] sm:$0xff] %v8693_v52  ;;  %11918 = vst [vmem:[#allocation106_spill] sm:$0xff] %v8695_v13  ;;  %1780 = vperm.xlu1 %7590, %v1634_v1   ;;  %1775 = vperm.xlu0 %7589, %v1633_v2   ;;  %v1640_v1 = vld [vmem:[%s8259_s29 + $0xf6] sm:$0xff]  ;;  %v1639_v2 = vld [vmem:[%s8259_s29 + $0xee] sm:$0xff] }
 0x18b   : > { %v8699_v44 = vpop.permute.xlu1 %1300  ;;  %v8701_v43 = vpop.permute.xlu0 %1295 }
 0x18c   : > { %11919 = vst [vmem:[#allocation107_spill] sm:$0xff] %v8699_v44  ;;  %11920 = vst [vmem:[#allocation108_spill] sm:$0xff] %v8701_v43  ;;  %1790 = vperm.xlu1 %7590, %v1636_v33   ;;  %1785 = vperm.xlu0 %7589, %v1635_v34   ;;  %v1642_v33 = vld [vmem:[%s8259_s29 + $0x106] sm:$0xff]  ;;  %v1641_v34 = vld [vmem:[%s8259_s29 + $0xfe] sm:$0xff] }
 0x18f   : > { %v8705_v14 = vpop.permute.xlu1 %1310  ;;  %v8707_v40 = vpop.permute.xlu0 %1305 }
 0x190   : > { %11921 = vst [vmem:[#allocation109_spill] sm:$0xff] %v8705_v14  ;;  %11922 = vst [vmem:[#allocation110_spill] sm:$0xff] %v8707_v40  ;;  %1800 = vperm.xlu1 %7590, %v1638_v49   ;;  %1795 = vperm.xlu0 %7589, %v1637_v50   ;;  %v1644_v49 = vld [vmem:[%s8259_s29 + $0x116] sm:$0xff]  ;;  %v1643_v50 = vld [vmem:[%s8259_s29 + $0x10e] sm:$0xff] }
 0x193   : > { %v8711_v39 = vpop.permute.xlu1 %1320  ;;  %v8713_v22 = vpop.permute.xlu0 %1315 }
 0x194   : > { %11923 = vst [vmem:[#allocation111_spill] sm:$0xff] %v8711_v39  ;;  %11924 = vst [vmem:[#allocation112_spill] sm:$0xff] %v8713_v22  ;;  %1810 = vperm.xlu1 %7590, %v1640_v1   ;;  %1805 = vperm.xlu0 %7589, %v1639_v2   ;;  %v1646_v1 = vld [vmem:[%s8259_s29 + $0x126] sm:$0xff]  ;;  %v1645_v2 = vld [vmem:[%s8259_s29 + $0x11e] sm:$0xff] }
 0x197   : > { %v8717_v29 = vpop.permute.xlu1 %1330  ;;  %v8719_v14 = vpop.permute.xlu0 %1325 }
 0x198   : > { %11925 = vst [vmem:[#allocation113_spill] sm:$0xff] %v8717_v29  ;;  %11926 = vst [vmem:[#allocation114_spill] sm:$0xff] %v8719_v14  ;;  %1820 = vperm.xlu1 %7590, %v1642_v33   ;;  %1815 = vperm.xlu0 %7589, %v1641_v34   ;;  %v1648_v33 = vld [vmem:[%s8259_s29 + $0x136] sm:$0xff]  ;;  %v1647_v34 = vld [vmem:[%s8259_s29 + $0x12e] sm:$0xff] }
 0x19b   : > { %v8723_v40 = vpop.permute.xlu1 %1340  ;;  %v8725_v39 = vpop.permute.xlu0 %1335 }
 0x19c   : > { %11927 = vst [vmem:[#allocation115_spill] sm:$0xff] %v8723_v40  ;;  %11928 = vst [vmem:[#allocation116_spill] sm:$0xff] %v8725_v39  ;;  %1830 = vperm.xlu1 %7590, %v1644_v49   ;;  %1825 = vperm.xlu0 %7589, %v1643_v50   ;;  %v1650_v49 = vld [vmem:[%s8259_s29 + $0x146] sm:$0xff]  ;;  %v1649_v50 = vld [vmem:[%s8259_s29 + $0x13e] sm:$0xff] }
 0x19f   : > { %v8729_v22 = vpop.permute.xlu1 %1350  ;;  %v8731_v29 = vpop.permute.xlu0 %1345 }
 0x1a0   : > { %11929 = vst [vmem:[#allocation117_spill] sm:$0xff] %v8729_v22  ;;  %11930 = vst [vmem:[#allocation118_spill] sm:$0xff] %v8731_v29  ;;  %1840 = vperm.xlu1 %7590, %v1646_v1   ;;  %1835 = vperm.xlu0 %7589, %v1645_v2   ;;  %v1652_v1 = vld [vmem:[%s8259_s29 + $0x156] sm:$0xff]  ;;  %v1651_v2 = vld [vmem:[%s8259_s29 + $0x14e] sm:$0xff] }
 0x1a3   : > { %v8735_v14 = vpop.permute.xlu1 %1360  ;;  %v8737_v40 = vpop.permute.xlu0 %1355 }
 0x1a4   : > { %11931 = vst [vmem:[#allocation119_spill] sm:$0xff] %v8735_v14  ;;  %11932 = vst [vmem:[#allocation120_spill] sm:$0xff] %v8737_v40  ;;  %1850 = vperm.xlu1 %7590, %v1648_v33   ;;  %1845 = vperm.xlu0 %7589, %v1647_v34   ;;  %v1654_v33 = vld [vmem:[%s8259_s29 + $0x166] sm:$0xff]  ;;  %v1653_v34 = vld [vmem:[%s8259_s29 + $0x15e] sm:$0xff] }
 0x1a7   : > { %v8741_v39 = vpop.permute.xlu1 %1370  ;;  %v8743_v22 = vpop.permute.xlu0 %1365 }
 0x1a8   : > { %11933 = vst [vmem:[#allocation121_spill] sm:$0xff] %v8741_v39  ;;  %11934 = vst [vmem:[#allocation122_spill] sm:$0xff] %v8743_v22  ;;  %1860 = vperm.xlu1 %7590, %v1650_v49   ;;  %1855 = vperm.xlu0 %7589, %v1649_v50   ;;  %v1656_v49 = vld [vmem:[%s8259_s29 + $0x176] sm:$0xff]  ;;  %v1655_v50 = vld [vmem:[%s8259_s29 + $0x16e] sm:$0xff] }
 0x1ab   : > { %v8747_v29 = vpop.permute.xlu1 %1380  ;;  %v8749_v14 = vpop.permute.xlu0 %1375 }
 0x1ac   : > { %11935 = vst [vmem:[#allocation123_spill] sm:$0xff] %v8747_v29  ;;  %11936 = vst [vmem:[#allocation124_spill] sm:$0xff] %v8749_v14  ;;  %1870 = vperm.xlu1 %7590, %v1652_v1   ;;  %1865 = vperm.xlu0 %7589, %v1651_v2   ;;  %v1658_v1 = vld [vmem:[%s8259_s29 + $0x186] sm:$0xff]  ;;  %v1657_v2 = vld [vmem:[%s8259_s29 + $0x17e] sm:$0xff] }
 0x1af   : > { %v8753_v40 = vpop.permute.xlu1 %1390  ;;  %v8755_v39 = vpop.permute.xlu0 %1385 }
 0x1b0   : > { %11937 = vst [vmem:[#allocation125_spill] sm:$0xff] %v8753_v40  ;;  %11938 = vst [vmem:[#allocation126_spill] sm:$0xff] %v8755_v39  ;;  %1880 = vperm.xlu1 %7590, %v1654_v33   ;;  %1875 = vperm.xlu0 %7589, %v1653_v34   ;;  %v1660_v33 = vld [vmem:[%s8259_s29 + $0x196] sm:$0xff]  ;;  %v1659_v34 = vld [vmem:[%s8259_s29 + $0x18e] sm:$0xff] }
 0x1b3   : > { %v8759_v22 = vpop.permute.xlu1 %1400  ;;  %v8761_v29 = vpop.permute.xlu0 %1395 }
 0x1b4   : > { %11939 = vst [vmem:[#allocation127_spill] sm:$0xff] %v8759_v22  ;;  %11940 = vst [vmem:[#allocation128_spill] sm:$0xff] %v8761_v29  ;;  %1890 = vperm.xlu1 %7590, %v1656_v49   ;;  %1885 = vperm.xlu0 %7589, %v1655_v50   ;;  %v1662_v49 = vld [vmem:[%s8259_s29 + $0x1a6] sm:$0xff]  ;;  %v1661_v50 = vld [vmem:[%s8259_s29 + $0x19e] sm:$0xff] }
 0x1b7   : > { %v8765_v14 = vpop.permute.xlu1 %1410  ;;  %v8767_v40 = vpop.permute.xlu0 %1405 }
 0x1b8   : > { %11941 = vst [vmem:[#allocation129_spill] sm:$0xff] %v8765_v14  ;;  %11942 = vst [vmem:[#allocation130_spill] sm:$0xff] %v8767_v40  ;;  %1900 = vperm.xlu1 %7590, %v1658_v1   ;;  %1895 = vperm.xlu0 %7589, %v1657_v2   ;;  %v1664_v1 = vld [vmem:[%s8259_s29 + $0x1b6] sm:$0xff]  ;;  %v1663_v2 = vld [vmem:[%s8259_s29 + $0x1ae] sm:$0xff] }
 0x1bb   : > { %v8771_v39 = vpop.permute.xlu1 %1420  ;;  %v8773_v22 = vpop.permute.xlu0 %1415 }
 0x1bc   : > { %11943 = vst [vmem:[#allocation131_spill] sm:$0xff] %v8771_v39  ;;  %11944 = vst [vmem:[#allocation132_spill] sm:$0xff] %v8773_v22  ;;  %1910 = vperm.xlu1 %7590, %v1660_v33   ;;  %1905 = vperm.xlu0 %7589, %v1659_v34   ;;  %v1666_v33 = vld [vmem:[%s8259_s29 + $0x1c6] sm:$0x3f]  ;;  %v1665_v34 = vld [vmem:[%s8259_s29 + $0x1be] sm:$0xff] }
 0x1bf   : > { %v8777_v29 = vpop.permute.xlu1 %1430  ;;  %v8779_v14 = vpop.permute.xlu0 %1425 }
 0x1c0   : > { %11945 = vst [vmem:[#allocation133_spill] sm:$0xff] %v8777_v29  ;;  %11946 = vst [vmem:[#allocation134_spill] sm:$0xff] %v8779_v14  ;;  %1920 = vperm.xlu1 %7590, %v1662_v49   ;;  %1915 = vperm.xlu0 %7589, %v1661_v50   ;;  %v2058_v49 = vld [vmem:[%s8259_s29 + $0x1f] sm:$0xff]  ;;  %v2057_v50 = vld [vmem:[%s8259_s29 + $0x17] sm:$0xff] }
 0x1c3   : > { %v8783_v40 = vpop.permute.xlu1 %1440  ;;  %v8785_v39 = vpop.permute.xlu0 %1435 }
 0x1c4   : > { %11947 = vst [vmem:[#allocation135_spill] sm:$0xff] %v8783_v40  ;;  %11948 = vst [vmem:[#allocation136_spill] sm:$0xff] %v8785_v39  ;;  %1930 = vperm.xlu1 %7590, %v1664_v1   ;;  %1925 = vperm.xlu0 %7589, %v1663_v2   ;;  %v2060_v1 = vld [vmem:[%s8259_s29 + $0x2f] sm:$0xff]  ;;  %v2059_v2 = vld [vmem:[%s8259_s29 + $0x27] sm:$0xff] }
 0x1c7   : > { %v8789_v22 = vpop.permute.xlu1 %1450  ;;  %v8791_v29 = vpop.permute.xlu0 %1445 }
 0x1c8   : > { %11949 = vst [vmem:[#allocation137_spill] sm:$0xff] %v8789_v22  ;;  %11950 = vst [vmem:[#allocation138_spill] sm:$0xff] %v8791_v29  ;;  %1940 = vperm.xlu1 %7590, %v1666_v33   ;;  %1935 = vperm.xlu0 %7589, %v1665_v34   ;;  %v2062_v33 = vld [vmem:[%s8259_s29 + $0x3f] sm:$0xff]  ;;  %v2061_v34 = vld [vmem:[%s8259_s29 + $0x37] sm:$0xff] }
 0x1cb   : > { %v8795_v14 = vpop.permute.xlu1 %1460  ;;  %v8797_v40 = vpop.permute.xlu0 %1455 }
 0x1cc   : > { %11951 = vst [vmem:[#allocation139_spill] sm:$0xff] %v8795_v14  ;;  %11952 = vst [vmem:[#allocation140_spill] sm:$0xff] %v8797_v40  ;;  %2120 = vperm.xlu1 %7590, %v2058_v49   ;;  %2115 = vperm.xlu0 %7589, %v2057_v50   ;;  %v2064_v49 = vld [vmem:[%s8259_s29 + $0x4f] sm:$0xff]  ;;  %v2063_v50 = vld [vmem:[%s8259_s29 + $0x47] sm:$0xff] }
 0x1cf   : > { %v8801_v39 = vpop.permute.xlu1 %1470  ;;  %v8803_v22 = vpop.permute.xlu0 %1465 }
 0x1d0   : > { %11953 = vst [vmem:[#allocation141_spill] sm:$0xff] %v8801_v39  ;;  %11954 = vst [vmem:[#allocation142_spill] sm:$0xff] %v8803_v22  ;;  %2130 = vperm.xlu1 %7590, %v2060_v1   ;;  %2125 = vperm.xlu0 %7589, %v2059_v2   ;;  %v2066_v1 = vld [vmem:[%s8259_s29 + $0x5f] sm:$0xff]  ;;  %v2065_v2 = vld [vmem:[%s8259_s29 + $0x57] sm:$0xff] }
 0x1d3   : > { %v8807_v29 = vpop.permute.xlu1 %1480  ;;  %v8809_v14 = vpop.permute.xlu0 %1475 }
 0x1d4   : > { %11955 = vst [vmem:[#allocation143_spill] sm:$0xff] %v8807_v29  ;;  %11956 = vst [vmem:[#allocation144_spill] sm:$0xff] %v8809_v14  ;;  %2140 = vperm.xlu1 %7590, %v2062_v33   ;;  %2135 = vperm.xlu0 %7589, %v2061_v34   ;;  %v2068_v33 = vld [vmem:[%s8259_s29 + $0x6f] sm:$0xff]  ;;  %v2067_v34 = vld [vmem:[%s8259_s29 + $0x67] sm:$0xff] }
 0x1d7   : > { %v8813_v40 = vpop.permute.xlu1 %1490  ;;  %v8815_v39 = vpop.permute.xlu0 %1485 }
 0x1d8   : > { %11957 = vst [vmem:[#allocation145_spill] sm:$0xff] %v8813_v40  ;;  %11958 = vst [vmem:[#allocation146_spill] sm:$0xff] %v8815_v39  ;;  %2150 = vperm.xlu1 %7590, %v2064_v49   ;;  %2145 = vperm.xlu0 %7589, %v2063_v50   ;;  %v2070_v49 = vld [vmem:[%s8259_s29 + $0x7f] sm:$0xff]  ;;  %v2069_v50 = vld [vmem:[%s8259_s29 + $0x77] sm:$0xff] }
 0x1db   : > { %v8819_v22 = vpop.permute.xlu1 %1670  ;;  %v8821_v29 = vpop.permute.xlu0 %1495 }
 0x1dc   : > { %11959 = vst [vmem:[#allocation147_spill] sm:$0xff] %v8821_v29  ;;  %2160 = vperm.xlu1 %7590, %v2066_v1   ;;  %2155 = vperm.xlu0 %7589, %v2065_v2   ;;  %v2072_v1 = vld [vmem:[%s8259_s29 + $0x8f] sm:$0xff]  ;;  %v2071_v2 = vld [vmem:[%s8259_s29 + $0x87] sm:$0xff] }
 0x1df   : > { %v8825_v14 = vpop.permute.xlu1 %1680  ;;  %v8827_v40 = vpop.permute.xlu0 %1675 }
 0x1e0   : > { %2170 = vperm.xlu1 %7590, %v2068_v33   ;;  %2165 = vperm.xlu0 %7589, %v2067_v34   ;;  %v2074_v33 = vld [vmem:[%s8259_s29 + $0x9f] sm:$0xff]  ;;  %v2073_v34 = vld [vmem:[%s8259_s29 + $0x97] sm:$0xff] }
 0x1e3   : > { %v8831_v39 = vpop.permute.xlu1 %1690  ;;  %v8833_v36 = vpop.permute.xlu0 %1685 }
 0x1e4   : > { %2180 = vperm.xlu1 %7590, %v2070_v49   ;;  %2175 = vperm.xlu0 %7589, %v2069_v50   ;;  %v2076_v49 = vld [vmem:[%s8259_s29 + $0xaf] sm:$0xff]  ;;  %v2075_v50 = vld [vmem:[%s8259_s29 + $0xa7] sm:$0xff] }
 0x1e7   : > { %v8837_v29 = vpop.permute.xlu1 %1700  ;;  %v8839_v35 = vpop.permute.xlu0 %1695 }
 0x1e8   : > { %11960 = vst [vmem:[#allocation148_spill] sm:$0xff] %v8837_v29  ;;  %2190 = vperm.xlu1 %7590, %v2072_v1   ;;  %2185 = vperm.xlu0 %7589, %v2071_v2   ;;  %v2078_v1 = vld [vmem:[%s8259_s29 + $0xbf] sm:$0xff]  ;;  %v2077_v2 = vld [vmem:[%s8259_s29 + $0xb7] sm:$0xff] }
 0x1eb   : > { %v8843_v30 = vpop.permute.xlu1 %1710  ;;  %v8845_v37 = vpop.permute.xlu0 %1705 }
 0x1ec   : > { %11961 = vst [vmem:[#allocation149_spill] sm:$0xff] %v8845_v37  ;;  %2200 = vperm.xlu1 %7590, %v2074_v33   ;;  %2195 = vperm.xlu0 %7589, %v2073_v34   ;;  %v2080_v33 = vld [vmem:[%s8259_s29 + $0xcf] sm:$0xff]  ;;  %v2079_v34 = vld [vmem:[%s8259_s29 + $0xc7] sm:$0xff] }
 0x1ef   : > { %v8849_v45 = vpop.permute.xlu1 %1720  ;;  %v8851_v29 = vpop.permute.xlu0 %1715 }
 0x1f0   : > { %11962 = vst [vmem:[#allocation150_spill] sm:$0xff] %v8849_v45  ;;  %11963 = vst [vmem:[#allocation151_spill] sm:$0xff] %v8851_v29  ;;  %2210 = vperm.xlu1 %7590, %v2076_v49   ;;  %2205 = vperm.xlu0 %7589, %v2075_v50   ;;  %v2082_v49 = vld [vmem:[%s8259_s29 + $0xdf] sm:$0xff]  ;;  %v2081_v50 = vld [vmem:[%s8259_s29 + $0xd7] sm:$0xff] }
 0x1f3   : > { %v8855_v43 = vpop.permute.xlu1 %1730  ;;  %v8857_v44 = vpop.permute.xlu0 %1725 }
 0x1f4   : > { %11964 = vst [vmem:[#allocation152_spill] sm:$0xff] %v8855_v43  ;;  %11965 = vst [vmem:[#allocation153_spill] sm:$0xff] %v8857_v44  ;;  %2220 = vperm.xlu1 %7590, %v2078_v1   ;;  %2215 = vperm.xlu0 %7589, %v2077_v2   ;;  %v2084_v1 = vld [vmem:[%s8259_s29 + $0xef] sm:$0xff]  ;;  %v2083_v2 = vld [vmem:[%s8259_s29 + $0xe7] sm:$0xff] }
 0x1f7   : > { %v8861_v37 = vpop.permute.xlu1 %1740  ;;  %v8863_v45 = vpop.permute.xlu0 %1735 }
 0x1f8   : > { %11966 = vst [vmem:[#allocation154_spill] sm:$0xff] %v8861_v37  ;;  %11967 = vst [vmem:[#allocation155_spill] sm:$0xff] %v8863_v45  ;;  %2230 = vperm.xlu1 %7590, %v2080_v33   ;;  %2225 = vperm.xlu0 %7589, %v2079_v34   ;;  %v2086_v33 = vld [vmem:[%s8259_s29 + $0xff] sm:$0xff]  ;;  %v2085_v34 = vld [vmem:[%s8259_s29 + $0xf7] sm:$0xff] }
 0x1fb   : > { %v8867_v13 = vpop.permute.xlu1 %1750  ;;  %v8869_v43 = vpop.permute.xlu0 %1745 }
 0x1fc   : > { %11968 = vst [vmem:[#allocation156_spill] sm:$0xff] %v8867_v13  ;;  %11969 = vst [vmem:[#allocation157_spill] sm:$0xff] %v8869_v43  ;;  %2240 = vperm.xlu1 %7590, %v2082_v49   ;;  %2235 = vperm.xlu0 %7589, %v2081_v50   ;;  %v2088_v49 = vld [vmem:[%s8259_s29 + $0x10f] sm:$0xff]  ;;  %v2087_v50 = vld [vmem:[%s8259_s29 + $0x107] sm:$0xff] }
 0x1ff   : > { %v8873_v44 = vpop.permute.xlu1 %1760  ;;  %v8875_v37 = vpop.permute.xlu0 %1755 }
 0x200   : > { %11970 = vst [vmem:[#allocation158_spill] sm:$0xff] %v8873_v44  ;;  %11971 = vst [vmem:[#allocation159_spill] sm:$0xff] %v8875_v37  ;;  %2250 = vperm.xlu1 %7590, %v2084_v1   ;;  %2245 = vperm.xlu0 %7589, %v2083_v2   ;;  %v2090_v1 = vld [vmem:[%s8259_s29 + $0x11f] sm:$0xff]  ;;  %v2089_v2 = vld [vmem:[%s8259_s29 + $0x117] sm:$0xff] }
 0x203   : > { %v8879_v45 = vpop.permute.xlu1 %1770  ;;  %v8881_v13 = vpop.permute.xlu0 %1765 }
 0x204   : > { %11972 = vst [vmem:[#allocation160_spill] sm:$0xff] %v8879_v45  ;;  %11973 = vst [vmem:[#allocation161_spill] sm:$0xff] %v8881_v13  ;;  %2260 = vperm.xlu1 %7590, %v2086_v33   ;;  %2255 = vperm.xlu0 %7589, %v2085_v34   ;;  %v2092_v33 = vld [vmem:[%s8259_s29 + $0x12f] sm:$0xff]  ;;  %v2091_v34 = vld [vmem:[%s8259_s29 + $0x127] sm:$0xff] }
 0x207   : > { %v8885_v43 = vpop.permute.xlu1 %1780  ;;  %v8887_v44 = vpop.permute.xlu0 %1775 }
 0x208   : > { %11974 = vst [vmem:[#allocation162_spill] sm:$0xff] %v8885_v43  ;;  %11975 = vst [vmem:[#allocation163_spill] sm:$0xff] %v8887_v44  ;;  %2270 = vperm.xlu1 %7590, %v2088_v49   ;;  %2265 = vperm.xlu0 %7589, %v2087_v50   ;;  %v2094_v49 = vld [vmem:[%s8259_s29 + $0x13f] sm:$0xff]  ;;  %v2093_v50 = vld [vmem:[%s8259_s29 + $0x137] sm:$0xff] }
 0x20b   : > { %v8891_v37 = vpop.permute.xlu1 %1790  ;;  %v8893_v45 = vpop.permute.xlu0 %1785 }
 0x20c   : > { %11976 = vst [vmem:[#allocation164_spill] sm:$0xff] %v8891_v37  ;;  %11977 = vst [vmem:[#allocation165_spill] sm:$0xff] %v8893_v45  ;;  %2280 = vperm.xlu1 %7590, %v2090_v1   ;;  %2275 = vperm.xlu0 %7589, %v2089_v2   ;;  %v2096_v1 = vld [vmem:[%s8259_s29 + $0x14f] sm:$0xff]  ;;  %v2095_v2 = vld [vmem:[%s8259_s29 + $0x147] sm:$0xff] }
 0x20f   : > { %v8897_v13 = vpop.permute.xlu1 %1800  ;;  %v8899_v43 = vpop.permute.xlu0 %1795 }
 0x210   : > { %11978 = vst [vmem:[#allocation166_spill] sm:$0xff] %v8897_v13  ;;  %11979 = vst [vmem:[#allocation167_spill] sm:$0xff] %v8899_v43  ;;  %2290 = vperm.xlu1 %7590, %v2092_v33   ;;  %2285 = vperm.xlu0 %7589, %v2091_v34   ;;  %v2098_v33 = vld [vmem:[%s8259_s29 + $0x15f] sm:$0xff]  ;;  %v2097_v34 = vld [vmem:[%s8259_s29 + $0x157] sm:$0xff] }
 0x213   : > { %v8903_v44 = vpop.permute.xlu1 %1810  ;;  %v8905_v37 = vpop.permute.xlu0 %1805 }
 0x214   : > { %11980 = vst [vmem:[#allocation168_spill] sm:$0xff] %v8903_v44  ;;  %11981 = vst [vmem:[#allocation169_spill] sm:$0xff] %v8905_v37  ;;  %2300 = vperm.xlu1 %7590, %v2094_v49   ;;  %2295 = vperm.xlu0 %7589, %v2093_v50   ;;  %v2100_v49 = vld [vmem:[%s8259_s29 + $0x16f] sm:$0xff]  ;;  %v2099_v50 = vld [vmem:[%s8259_s29 + $0x167] sm:$0xff] }
 0x217   : > { %v8909_v45 = vpop.permute.xlu1 %1820  ;;  %v8911_v13 = vpop.permute.xlu0 %1815 }
 0x218   : > { %11982 = vst [vmem:[#allocation170_spill] sm:$0xff] %v8909_v45  ;;  %11983 = vst [vmem:[#allocation171_spill] sm:$0xff] %v8911_v13  ;;  %2310 = vperm.xlu1 %7590, %v2096_v1   ;;  %2305 = vperm.xlu0 %7589, %v2095_v2   ;;  %v2102_v1 = vld [vmem:[%s8259_s29 + $0x17f] sm:$0xff]  ;;  %v2101_v2 = vld [vmem:[%s8259_s29 + $0x177] sm:$0xff] }
 0x21b   : > { %v8915_v43 = vpop.permute.xlu1 %1830  ;;  %v8917_v44 = vpop.permute.xlu0 %1825 }
 0x21c   : > { %11984 = vst [vmem:[#allocation172_spill] sm:$0xff] %v8915_v43  ;;  %11985 = vst [vmem:[#allocation173_spill] sm:$0xff] %v8917_v44  ;;  %2320 = vperm.xlu1 %7590, %v2098_v33   ;;  %2315 = vperm.xlu0 %7589, %v2097_v34   ;;  %v2104_v33 = vld [vmem:[%s8259_s29 + $0x18f] sm:$0xff]  ;;  %v2103_v34 = vld [vmem:[%s8259_s29 + $0x187] sm:$0xff] }
 0x21f   : > { %v8921_v37 = vpop.permute.xlu1 %1840  ;;  %v8923_v45 = vpop.permute.xlu0 %1835 }
 0x220   : > { %11986 = vst [vmem:[#allocation174_spill] sm:$0xff] %v8921_v37  ;;  %11987 = vst [vmem:[#allocation175_spill] sm:$0xff] %v8923_v45  ;;  %2330 = vperm.xlu1 %7590, %v2100_v49   ;;  %2325 = vperm.xlu0 %7589, %v2099_v50   ;;  %v2106_v49 = vld [vmem:[%s8259_s29 + $0x19f] sm:$0xff]  ;;  %v2105_v50 = vld [vmem:[%s8259_s29 + $0x197] sm:$0xff] }
 0x223   : > { %v8927_v13 = vpop.permute.xlu1 %1850  ;;  %v8929_v43 = vpop.permute.xlu0 %1845 }
 0x224   : > { %11988 = vst [vmem:[#allocation176_spill] sm:$0xff] %v8927_v13  ;;  %11989 = vst [vmem:[#allocation177_spill] sm:$0xff] %v8929_v43  ;;  %2340 = vperm.xlu1 %7590, %v2102_v1   ;;  %2335 = vperm.xlu0 %7589, %v2101_v2   ;;  %v2108_v1 = vld [vmem:[%s8259_s29 + $0x1af] sm:$0xff]  ;;  %v2107_v2 = vld [vmem:[%s8259_s29 + $0x1a7] sm:$0xff] }
 0x227   : > { %v8933_v44 = vpop.permute.xlu1 %1860  ;;  %v8935_v37 = vpop.permute.xlu0 %1855 }
 0x228   : > { %11990 = vst [vmem:[#allocation178_spill] sm:$0xff] %v8933_v44  ;;  %11991 = vst [vmem:[#allocation179_spill] sm:$0xff] %v8935_v37  ;;  %2350 = vperm.xlu1 %7590, %v2104_v33   ;;  %2345 = vperm.xlu0 %7589, %v2103_v34   ;;  %v2110_v33 = vld [vmem:[%s8259_s29 + $0x1bf] sm:$0xff]  ;;  %v2109_v34 = vld [vmem:[%s8259_s29 + $0x1b7] sm:$0xff] }
 0x22b   : > { %v8939_v45 = vpop.permute.xlu1 %1870  ;;  %v8941_v13 = vpop.permute.xlu0 %1865 }
 0x22c   : > { %11992 = vst [vmem:[#allocation180_spill] sm:$0xff] %v8939_v45  ;;  %11993 = vst [vmem:[#allocation181_spill] sm:$0xff] %v8941_v13  ;;  %2360 = vperm.xlu1 %7590, %v2106_v49   ;;  %2355 = vperm.xlu0 %7589, %v2105_v50   ;;  %v2502_v49 = vld [vmem:[%s8259_s29 + $0x18] sm:$0xff]  ;;  %v2111_v50 = vld [vmem:[%s8259_s29 + $0x1c7] sm:$0x3f] }
 0x22f   : > { %v8945_v43 = vpop.permute.xlu1 %1880  ;;  %v8947_v44 = vpop.permute.xlu0 %1875 }
 0x230   : > { %11994 = vst [vmem:[#allocation182_spill] sm:$0xff] %v8945_v43  ;;  %11995 = vst [vmem:[#allocation183_spill] sm:$0xff] %v8947_v44  ;;  %2370 = vperm.xlu1 %7590, %v2108_v1   ;;  %2365 = vperm.xlu0 %7589, %v2107_v2   ;;  %v2504_v1 = vld [vmem:[%s8259_s29 + $0x28] sm:$0xff]  ;;  %v2503_v2 = vld [vmem:[%s8259_s29 + $0x20] sm:$0xff] }
 0x233   : > { %v8951_v37 = vpop.permute.xlu1 %1890  ;;  %v8953_v45 = vpop.permute.xlu0 %1885 }
 0x234   : > { %11996 = vst [vmem:[#allocation184_spill] sm:$0xff] %v8951_v37  ;;  %11997 = vst [vmem:[#allocation185_spill] sm:$0xff] %v8953_v45  ;;  %2380 = vperm.xlu1 %7590, %v2110_v33   ;;  %2375 = vperm.xlu0 %7589, %v2109_v34   ;;  %v2506_v33 = vld [vmem:[%s8259_s29 + $0x38] sm:$0xff]  ;;  %v2505_v34 = vld [vmem:[%s8259_s29 + $0x30] sm:$0xff] }
 0x237   : > { %v8957_v13 = vpop.permute.xlu1 %1900  ;;  %v8959_v43 = vpop.permute.xlu0 %1895 }
 0x238   : > { %11998 = vst [vmem:[#allocation186_spill] sm:$0xff] %v8957_v13  ;;  %11999 = vst [vmem:[#allocation187_spill] sm:$0xff] %v8959_v43  ;;  %2560 = vperm.xlu1 %7590, %v2502_v49   ;;  %2385 = vperm.xlu0 %7589, %v2111_v50   ;;  %v2508_v49 = vld [vmem:[%s8259_s29 + $0x48] sm:$0xff]  ;;  %v2507_v50 = vld [vmem:[%s8259_s29 + $0x40] sm:$0xff] }
 0x23b   : > { %v8963_v44 = vpop.permute.xlu1 %1910  ;;  %v8965_v37 = vpop.permute.xlu0 %1905 }
 0x23c   : > { %12000 = vst [vmem:[#allocation188_spill] sm:$0xff] %v8963_v44  ;;  %12001 = vst [vmem:[#allocation189_spill] sm:$0xff] %v8965_v37  ;;  %2570 = vperm.xlu1 %7590, %v2504_v1   ;;  %2565 = vperm.xlu0 %7589, %v2503_v2   ;;  %v2510_v1 = vld [vmem:[%s8259_s29 + $0x58] sm:$0xff]  ;;  %v2509_v2 = vld [vmem:[%s8259_s29 + $0x50] sm:$0xff] }
 0x23f   : > { %v8969_v45 = vpop.permute.xlu1 %1920  ;;  %v8971_v13 = vpop.permute.xlu0 %1915 }
 0x240   : > { %12002 = vst [vmem:[#allocation190_spill] sm:$0xff] %v8969_v45  ;;  %12003 = vst [vmem:[#allocation191_spill] sm:$0xff] %v8971_v13  ;;  %2580 = vperm.xlu1 %7590, %v2506_v33   ;;  %2575 = vperm.xlu0 %7589, %v2505_v34   ;;  %v2512_v33 = vld [vmem:[%s8259_s29 + $0x68] sm:$0xff]  ;;  %v2511_v34 = vld [vmem:[%s8259_s29 + $0x60] sm:$0xff] }
 0x243   : > { %v8975_v43 = vpop.permute.xlu1 %1930  ;;  %v8977_v44 = vpop.permute.xlu0 %1925 }
 0x244   : > { %12004 = vst [vmem:[#allocation192_spill] sm:$0xff] %v8975_v43  ;;  %12005 = vst [vmem:[#allocation193_spill] sm:$0xff] %v8977_v44  ;;  %2590 = vperm.xlu1 %7590, %v2508_v49   ;;  %2585 = vperm.xlu0 %7589, %v2507_v50   ;;  %v2514_v49 = vld [vmem:[%s8259_s29 + $0x78] sm:$0xff]  ;;  %v2513_v50 = vld [vmem:[%s8259_s29 + $0x70] sm:$0xff] }
 0x247   : > { %v8981_v37 = vpop.permute.xlu1 %1940  ;;  %v8983_v45 = vpop.permute.xlu0 %1935 }
 0x248   : > { %12006 = vst [vmem:[#allocation194_spill] sm:$0xff] %v8981_v37  ;;  %12007 = vst [vmem:[#allocation195_spill] sm:$0xff] %v8983_v45  ;;  %2600 = vperm.xlu1 %7590, %v2510_v1   ;;  %2595 = vperm.xlu0 %7589, %v2509_v2   ;;  %v2516_v1 = vld [vmem:[%s8259_s29 + $0x88] sm:$0xff]  ;;  %v2515_v2 = vld [vmem:[%s8259_s29 + $0x80] sm:$0xff] }
 0x24b   : > { %v8987_v13 = vpop.permute.xlu1 %2120  ;;  %v8989_v43 = vpop.permute.xlu0 %2115 }
 0x24c   : > { %2610 = vperm.xlu1 %7590, %v2512_v33   ;;  %2605 = vperm.xlu0 %7589, %v2511_v34   ;;  %v2518_v33 = vld [vmem:[%s8259_s29 + $0x98] sm:$0xff]  ;;  %v2517_v34 = vld [vmem:[%s8259_s29 + $0x90] sm:$0xff] }
 0x24f   : > { %v8993_v44 = vpop.permute.xlu1 %2130  ;;  %v8995_v37 = vpop.permute.xlu0 %2125 }
 0x250   : > { %2620 = vperm.xlu1 %7590, %v2514_v49   ;;  %2615 = vperm.xlu0 %7589, %v2513_v50   ;;  %v2520_v49 = vld [vmem:[%s8259_s29 + $0xa8] sm:$0xff]  ;;  %v2519_v50 = vld [vmem:[%s8259_s29 + $0xa0] sm:$0xff] }
 0x253   : > { %v8999_v45 = vpop.permute.xlu1 %2140  ;;  %v9001_v52 = vpop.permute.xlu0 %2135 }
 0x254   : > { %2630 = vperm.xlu1 %7590, %v2516_v1   ;;  %2625 = vperm.xlu0 %7589, %v2515_v2   ;;  %v2522_v1 = vld [vmem:[%s8259_s29 + $0xb8] sm:$0xff]  ;;  %v2521_v2 = vld [vmem:[%s8259_s29 + $0xb0] sm:$0xff] }
 0x257   : > { %v9005_v60 = vpop.permute.xlu1 %2150  ;;  %v9007_v56 = vpop.permute.xlu0 %2145 }
 0x258   : > { %12008 = vst [vmem:[#allocation196_spill] sm:$0xff] %v9005_v60  ;;  %12009 = vst [vmem:[#allocation197_spill] sm:$0xff] %v9007_v56  ;;  %2640 = vperm.xlu1 %7590, %v2518_v33   ;;  %2635 = vperm.xlu0 %7589, %v2517_v34   ;;  %v2949_v33 = vld [vmem:[%s8259_s29 + $0x3c] sm:$0xff] }
 0x259   : > { %v2523_v34 = vld [vmem:[%s8259_s29 + $0xc0] sm:$0xff] }
 0x25b   : > { %v9011_v63 = vpop.permute.xlu1 %2160  ;;  %v9013_v55 = vpop.permute.xlu0 %2155 }
 0x25c   : > { %12010 = vst [vmem:[#allocation198_spill] sm:$0xff] %v9011_v63  ;;  %2650 = vperm.xlu1 %7590, %v2520_v49   ;;  %2645 = vperm.xlu0 %7589, %v2519_v50   ;;  %v2951_v49 = vld [vmem:[%s8259_s29 + $0x4c] sm:$0xff]  ;;  %v2950_v50 = vld [vmem:[%s8259_s29 + $0x44] sm:$0xff] }
 0x25f   : > { %v9017_v38 = vpop.permute.xlu1 %2170  ;;  %v9019_v60 = vpop.permute.xlu0 %2165 }
 0x260   : > { %12011 = vst [vmem:[#allocation199_spill] sm:$0xff] %v9017_v38  ;;  %12012 = vst [vmem:[#allocation200_spill] sm:$0xff] %v9019_v60  ;;  %2660 = vperm.xlu1 %7590, %v2522_v1   ;;  %2655 = vperm.xlu0 %7589, %v2521_v2   ;;  %v3394_v1 = vld [vmem:[%s8259_s29 + $0x3d] sm:$0xff]  ;;  %v2952_v2 = vld [vmem:[%s8259_s29 + $0x54] sm:$0xff] }
 0x263   : > { %v9023_v56 = vpop.permute.xlu1 %2180  ;;  %v9025_v46 = vpop.permute.xlu0 %2175 }
 0x264   : > { %12013 = vst [vmem:[#allocation201_spill] sm:$0xff] %v9023_v56  ;;  %12014 = vst [vmem:[#allocation202_spill] sm:$0xff] %v9025_v46  ;;  %3015 = vperm.xlu1 %7590, %v2949_v33   ;;  %2665 = vperm.xlu0 %7589, %v2523_v34   ;;  %v3396_v33 = vld [vmem:[%s8259_s29 + $0x4d] sm:$0xff]  ;;  %v3395_v34 = vld [vmem:[%s8259_s29 + $0x45] sm:$0xff] }
 0x267   : > { %v9029_v53 = vpop.permute.xlu1 %2190  ;;  %v9031_v38 = vpop.permute.xlu0 %2185 }
 0x268   : > { %12015 = vst [vmem:[#allocation203_spill] sm:$0xff] %v9029_v53  ;;  %12016 = vst [vmem:[#allocation204_spill] sm:$0xff] %v9031_v38  ;;  %3025 = vperm.xlu1 %7590, %v2951_v49   ;;  %3020 = vperm.xlu0 %7589, %v2950_v50   ;;  %v2947_v49 = vld [vmem:[%s8259_s29 + $0x2c] sm:$0xff]  ;;  %v3397_v50 = vld [vmem:[%s8259_s29 + $0x55] sm:$0xff] }
 0x26b   : > { %v9035_v60 = vpop.permute.xlu1 %2200  ;;  %v9037_v56 = vpop.permute.xlu0 %2195 }
 0x26c   : > { %12017 = vst [vmem:[#allocation205_spill] sm:$0xff] %v9035_v60  ;;  %12018 = vst [vmem:[#allocation206_spill] sm:$0xff] %v9037_v56  ;;  %3460 = vperm.xlu1 %7590, %v3394_v1   ;;  %3030 = vperm.xlu0 %7589, %v2952_v2   ;;  %v2955_v1 = vld [vmem:[%s8259_s29 + $0x6c] sm:$0xff]  ;;  %v2948_v2 = vld [vmem:[%s8259_s29 + $0x34] sm:$0xff] }
 0x26f   : > { %v9041_v46 = vpop.permute.xlu1 %2210  ;;  %v9043_v53 = vpop.permute.xlu0 %2205 }
 0x270   : > { %12019 = vst [vmem:[#allocation207_spill] sm:$0xff] %v9041_v46  ;;  %12020 = vst [vmem:[#allocation208_spill] sm:$0xff] %v9043_v53  ;;  %3470 = vperm.xlu1 %7590, %v3396_v33   ;;  %3465 = vperm.xlu0 %7589, %v3395_v34   ;;  %v3839_v33 = vld [vmem:[%s8259_s29 + $0x3e] sm:$0xff]  ;;  %v2956_v34 = vld [vmem:[%s8259_s29 + $0x74] sm:$0xff] }
 0x273   : > { %v9047_v38 = vpop.permute.xlu1 %2220  ;;  %v9049_v60 = vpop.permute.xlu0 %2215 }
 0x274   : > { %12021 = vst [vmem:[#allocation209_spill] sm:$0xff] %v9047_v38  ;;  %12022 = vst [vmem:[#allocation210_spill] sm:$0xff] %v9049_v60  ;;  %3005 = vperm.xlu1 %7590, %v2947_v49   ;;  %3475 = vperm.xlu0 %7589, %v3397_v50   ;;  %v3841_v49 = vld [vmem:[%s8259_s29 + $0x4e] sm:$0xff]  ;;  %v3840_v50 = vld [vmem:[%s8259_s29 + $0x46] sm:$0xff] }
 0x277   : > { %v9053_v56 = vpop.permute.xlu1 %2230  ;;  %v9055_v46 = vpop.permute.xlu0 %2225 }
 0x278   : > { %12023 = vst [vmem:[#allocation211_spill] sm:$0xff] %v9053_v56  ;;  %12024 = vst [vmem:[#allocation212_spill] sm:$0xff] %v9055_v46  ;;  %3045 = vperm.xlu1 %7590, %v2955_v1   ;;  %3010 = vperm.xlu0 %7589, %v2948_v2   ;;  %v3392_v1 = vld [vmem:[%s8259_s29 + $0x2d] sm:$0xff]  ;;  %v3842_v2 = vld [vmem:[%s8259_s29 + $0x56] sm:$0xff] }
 0x27b   : > { %v9059_v53 = vpop.permute.xlu1 %2240  ;;  %v9061_v38 = vpop.permute.xlu0 %2235 }
 0x27c   : > { %12025 = vst [vmem:[#allocation213_spill] sm:$0xff] %v9059_v53  ;;  %12026 = vst [vmem:[#allocation214_spill] sm:$0xff] %v9061_v38  ;;  %3905 = vperm.xlu1 %7590, %v3839_v33   ;;  %3050 = vperm.xlu0 %7589, %v2956_v34   ;;  %v3400_v33 = vld [vmem:[%s8259_s29 + $0x6d] sm:$0xff]  ;;  %v3393_v34 = vld [vmem:[%s8259_s29 + $0x35] sm:$0xff] }
 0x27f   : > { %v9065_v60 = vpop.permute.xlu1 %2250  ;;  %v9067_v56 = vpop.permute.xlu0 %2245 }
 0x280   : > { %12027 = vst [vmem:[#allocation215_spill] sm:$0xff] %v9065_v60  ;;  %12028 = vst [vmem:[#allocation216_spill] sm:$0xff] %v9067_v56  ;;  %3915 = vperm.xlu1 %7590, %v3841_v49   ;;  %3910 = vperm.xlu0 %7589, %v3840_v50   ;;  %v3837_v49 = vld [vmem:[%s8259_s29 + $0x2e] sm:$0xff] }
 0x281   : > { %v3401_v50 = vld [vmem:[%s8259_s29 + $0x75] sm:$0xff] }
 0x283   : > { %v9071_v46 = vpop.permute.xlu1 %2260  ;;  %v9073_v53 = vpop.permute.xlu0 %2255 }
 0x284   : > { %12029 = vst [vmem:[#allocation217_spill] sm:$0xff] %v9071_v46  ;;  %12030 = vst [vmem:[#allocation218_spill] sm:$0xff] %v9073_v53  ;;  %3450 = vperm.xlu1 %7590, %v3392_v1   ;;  %3920 = vperm.xlu0 %7589, %v3842_v2   ;;  %v3845_v1 = vld [vmem:[%s8259_s29 + $0x6e] sm:$0xff]  ;;  %v3838_v2 = vld [vmem:[%s8259_s29 + $0x36] sm:$0xff] }
 0x287   : > { %v9077_v38 = vpop.permute.xlu1 %2270  ;;  %v9079_v60 = vpop.permute.xlu0 %2265 }
 0x288   : > { %12031 = vst [vmem:[#allocation219_spill] sm:$0xff] %v9077_v38  ;;  %12032 = vst [vmem:[#allocation220_spill] sm:$0xff] %v9079_v60  ;;  %3490 = vperm.xlu1 %7590, %v3400_v33   ;;  %3455 = vperm.xlu0 %7589, %v3393_v34   ;;  %v2957_v33 = vld [vmem:[%s8259_s29 + $0x7c] sm:$0xff] }
 0x289   : > { %v3846_v34 = vld [vmem:[%s8259_s29 + $0x76] sm:$0xff] }
 0x28b   : > { %v9083_v56 = vpop.permute.xlu1 %2280  ;;  %v9085_v46 = vpop.permute.xlu0 %2275 }
 0x28c   : > { %12033 = vst [vmem:[#allocation221_spill] sm:$0xff] %v9083_v56  ;;  %12034 = vst [vmem:[#allocation222_spill] sm:$0xff] %v9085_v46  ;;  %3895 = vperm.xlu1 %7590, %v3837_v49   ;;  %3495 = vperm.xlu0 %7589, %v3401_v50   ;;  %v2959_v49 = vld [vmem:[%s8259_s29 + $0x8c] sm:$0xff]  ;;  %v2958_v50 = vld [vmem:[%s8259_s29 + $0x84] sm:$0xff] }
 0x28f   : > { %v9089_v53 = vpop.permute.xlu1 %2290  ;;  %v9091_v38 = vpop.permute.xlu0 %2285 }
 0x290   : > { %12035 = vst [vmem:[#allocation223_spill] sm:$0xff] %v9089_v53  ;;  %12036 = vst [vmem:[#allocation224_spill] sm:$0xff] %v9091_v38  ;;  %3935 = vperm.xlu1 %7590, %v3845_v1   ;;  %3900 = vperm.xlu0 %7589, %v3838_v2   ;;  %v2961_v53 = vld [vmem:[%s8259_s29 + $0x9c] sm:$0xff]  ;;  %v2960_v38 = vld [vmem:[%s8259_s29 + $0x94] sm:$0xff] }
 0x293   : > { %v9095_v60 = vpop.permute.xlu1 %2300  ;;  %v9097_v56 = vpop.permute.xlu0 %2295 }
 0x294   : > { %12037 = vst [vmem:[#allocation225_spill] sm:$0xff] %v9095_v60  ;;  %12038 = vst [vmem:[#allocation226_spill] sm:$0xff] %v9097_v56  ;;  %3055 = vperm.xlu1 %7590, %v2957_v33   ;;  %3940 = vperm.xlu0 %7589, %v3846_v34   ;;  %v11813_v56 = vmov 0.0  }
 0x295   : > { %4453 = vst.msk [vmem:[#allocation3] sm:$0xff] %vm4396_vm0, %v11813_v56  ;;  %4454 = vst.msk [vmem:[#allocation3 + $0x8] sm:$0xff] %vm4396_vm0, %v11813_v56  ;;  %7498 = vmatprep.subr.bf16.mxu1 %v11813_v56 }
 0x296   : > { %4455 = vst.msk [vmem:[#allocation3 + $0x10] sm:$0xff] %vm4396_vm0, %v11813_v56  ;;  %4456 = vst.msk [vmem:[#allocation3 + $0x18] sm:$0xff] %vm4396_vm0, %v11813_v56 }
 0x297   : > { %v9101_v46 = vpop.permute.xlu1 %2310  ;;  %v9103_v32 = vpop.permute.xlu0 %2305  ;;  %4457 = vst.msk [vmem:[#allocation3 + $0x20] sm:$0xff] %vm4396_vm0, %v11813_v56  ;;  %4458 = vst.msk [vmem:[#allocation3 + $0x28] sm:$0xff] %vm4396_vm0, %v11813_v56 }
 0x298   : > { %12039 = vst [vmem:[#allocation227_spill] sm:$0xff] %v9101_v46  ;;  %12040 = vst [vmem:[#allocation228_spill] sm:$0xff] %v9103_v32  ;;  %3065 = vperm.xlu1 %7590, %v2959_v49   ;;  %3060 = vperm.xlu0 %7589, %v2958_v50   ;;  %v2953_v49 = vld [vmem:[%s8259_s29 + $0x5c] sm:$0xff]  ;;  %v3403_v50 = vld [vmem:[%s8259_s29 + $0x85] sm:$0xff] }
 0x299   : > { %4459 = vst.msk [vmem:[#allocation3 + $0x30] sm:$0xff] %vm4396_vm0, %v11813_v56  ;;  %4460 = vst.msk [vmem:[#allocation3 + $0x38] sm:$0xff] %vm4396_vm0, %v11813_v56  ;;  %v3404_v32 = vld [vmem:[%s8259_s29 + $0x8d] sm:$0xff] }
 0x29a   : > { %4461 = vst.msk [vmem:[#allocation3 + $0x40] sm:$0xff] %vm4396_vm0, %v11813_v56  ;;  %4462 = vst.msk [vmem:[#allocation3 + $0x48] sm:$0xff] %vm4396_vm0, %v11813_v56 }
 0x29b   : > { %v9107_v1 = vpop.permute.xlu1 %2320  ;;  %v9109_v2 = vpop.permute.xlu0 %2315  ;;  %4463 = vst.msk [vmem:[#allocation3 + $0x50] sm:$0xff] %vm4396_vm0, %v11813_v56  ;;  %4464 = vst.msk [vmem:[#allocation3 + $0x58] sm:$0xff] %vm4396_vm0, %v11813_v56 }
 0x29c   : > { %12041 = vst [vmem:[#allocation229_spill] sm:$0xff] %v9107_v1  ;;  %12042 = vst [vmem:[#allocation230_spill] sm:$0xff] %v9109_v2  ;;  %3075 = vperm.xlu1 %7590, %v2961_v53   ;;  %3070 = vperm.xlu0 %7589, %v2960_v38   ;;  %v3402_v38 = vld [vmem:[%s8259_s29 + $0x7d] sm:$0xff] }
 0x29d   : > { %4465 = vst.msk [vmem:[#allocation3 + $0x60] sm:$0xff] %vm4396_vm0, %v11813_v56  ;;  %4466 = vst.msk [vmem:[#allocation3 + $0x68] sm:$0xff] %vm4396_vm0, %v11813_v56  ;;  %v2962_v53 = vld [vmem:[%s8259_s29 + $0xa4] sm:$0xff] }
 0x29e   : > { %4467 = vst.msk [vmem:[#allocation3 + $0x70] sm:$0xff] %vm4396_vm0, %v11813_v56  ;;  %4468 = vst.msk [vmem:[#allocation3 + $0x78] sm:$0xff] %vm4396_vm0, %v11813_v56 }
 0x29f   : > { %4469 = vst.msk [vmem:[#allocation3 + $0x80] sm:$0xff] %vm4396_vm0, %v11813_v56  ;;  %4470 = vst.msk [vmem:[#allocation3 + $0x88] sm:$0xff] %vm4396_vm0, %v11813_v56  ;;  %v9186_v33 = vpop.permute.xlu1 %2330  ;;  %v9188_v34 = vpop.permute.xlu0 %2325 }
 0x2a0   : > { %4471 = vst.msk [vmem:[#allocation3 + $0x90] sm:$0xff] %vm4396_vm0, %v11813_v56  ;;  %4472 = vst.msk [vmem:[#allocation3 + $0x98] sm:$0xff] %vm4396_vm0, %v11813_v56  ;;  %3500 = vperm.xlu1 %7590, %v3402_v38   ;;  %3080 = vperm.xlu0 %7589, %v2962_v53   ;;  %v3406_v38 = vld [vmem:[%s8259_s29 + $0x9d] sm:$0xff]  ;;  %v3405_v53 = vld [vmem:[%s8259_s29 + $0x95] sm:$0xff] }
 0x2a1   : > { %4473 = vst.msk [vmem:[#allocation3 + $0xa0] sm:$0xff] %vm4396_vm0, %v11813_v56  ;;  %4474 = vst.msk [vmem:[#allocation3 + $0xa8] sm:$0xff] %vm4396_vm0, %v11813_v56 }
 0x2a2   : > { %4475 = vst.msk [vmem:[#allocation3 + $0xb0] sm:$0xff] %vm4396_vm0, %v11813_v56  ;;  %4476 = vst.msk [vmem:[#allocation3 + $0xb8] sm:$0xff] %vm4396_vm0, %v11813_v56 }
 0x2a3   : > { %6041 = vst.msk [vmem:[#allocation5] sm:$0xff] %vm4396_vm0, %v11813_v56  ;;  %6042 = vst.msk [vmem:[#allocation5 + $0x8] sm:$0xff] %vm4396_vm0, %v11813_v56  ;;  %v9192_v1 = vpop.permute.xlu1 %2340  ;;  %v9194_v2 = vpop.permute.xlu0 %2335 }
 0x2a4   : > { %6043 = vst.msk [vmem:[#allocation5 + $0x10] sm:$0xff] %vm4396_vm0, %v11813_v56  ;;  %6044 = vst.msk [vmem:[#allocation5 + $0x18] sm:$0xff] %vm4396_vm0, %v11813_v56  ;;  %3035 = vperm.xlu1 %7590, %v2953_v49   ;;  %3505 = vperm.xlu0 %7589, %v3403_v50   ;;  %v3847_v49 = vld [vmem:[%s8259_s29 + $0x7e] sm:$0xff] }
 0x2a5   : > { %6045 = vst.msk [vmem:[#allocation5 + $0x20] sm:$0xff] %vm4396_vm0, %v11813_v56  ;;  %6046 = vst.msk [vmem:[#allocation5 + $0x28] sm:$0xff] %vm4396_vm0, %v11813_v56  ;;  %v3407_v50 = vld [vmem:[%s8259_s29 + $0xa5] sm:$0xff] }
 0x2a6   : > { %6047 = vst.msk [vmem:[#allocation5 + $0x30] sm:$0xff] %vm4396_vm0, %v11813_v56  ;;  %6048 = vst.msk [vmem:[#allocation5 + $0x38] sm:$0xff] %vm4396_vm0, %v11813_v56 }
 0x2a7   : > { %6049 = vst.msk [vmem:[#allocation5 + $0x40] sm:$0xff] %vm4396_vm0, %v11813_v56  ;;  %6050 = vst.msk [vmem:[#allocation5 + $0x48] sm:$0xff] %vm4396_vm0, %v11813_v56  ;;  %v9198_v46 = vpop.permute.xlu1 %2350 }
 0x2a8   : > { %6051 = vst.msk [vmem:[#allocation5 + $0x50] sm:$0xff] %vm4396_vm0, %v11813_v56  ;;  %6052 = vst.msk [vmem:[#allocation5 + $0x58] sm:$0xff] %vm4396_vm0, %v11813_v56  ;;  %v2954_v56 = vld [vmem:[%s8259_s29 + $0x64] sm:$0xff]  ;;  %3510 = vperm.xlu1 %7590, %v3404_v32  }
 0x2a9   : > { %12043 = vst [vmem:[#allocation231_spill] sm:$0xff] %v9186_v33  ;;  %12044 = vst [vmem:[#allocation232_spill] sm:$0xff] %v9188_v34  ;;  %v9200_v33 = vpop.permute.xlu0 %2345  ;;  %3040 = vperm.xlu0 %7589, %v2954_v56   ;;  %v3398_v56 = vld [vmem:[%s8259_s29 + $0x5d] sm:$0xff] }
 0x2aa   : > { %12045 = vst [vmem:[#allocation233_spill] sm:$0xff] %v9192_v1  ;;  %12046 = vst [vmem:[#allocation234_spill] sm:$0xff] %v9194_v2  ;;  %v8091_v2 = vld [vmem:[%s11807_s2 + $0x80] sm:$0xff]  }
 0x2ab   : > { %12047 = vst [vmem:[#allocation235_spill] sm:$0xff] %v9198_v46  ;;  %12048 = vst [vmem:[#allocation236_spill] sm:$0xff] %v9200_v33  ;;  %v9204_v34 = vpop.permute.xlu1 %2360  ;;  %7499 = vmatpush3.bf16.msra.mxu1 %v8091_v2 }
 0x2ac   : > { %12049 = vst [vmem:[#allocation237_spill] sm:$0xff] %v9204_v34  ;;  %3520 = vperm.xlu1 %7590, %v3406_v38   ;;  %v3848_v34 = vld [vmem:[%s8259_s29 + $0x86] sm:$0xff] }
 0x2ad   : > { %v9206_v1 = vpop.permute.xlu0 %2355  ;;  %3515 = vperm.xlu0 %7589, %v3405_v53   ;;  %v8092_v38 = vld [vmem:[%s11807_s2 + $0x88] sm:$0xff]  }
 0x2ae   : > { %12050 = vst [vmem:[#allocation238_spill] sm:$0xff] %v9206_v1  ;;  %v12053_v1 = vmov 0.0  }
 0x2af   : > { %v9213_v46 = vpop.permute.xlu1 %2370  ;;  %7500 = vmatprep.subr.bf16.mxu1 %v12053_v1  ;;  %7502 = vmatprep.mubr.msk.bf16.mxu1 %vm8197_vm1, %v12053_v1  ;;  %4478 = vst.msk [vmem:[#allocation3 + $0xc0] sm:$0xf] %vm4477_vm2, %v12053_v1  ;;  %6053 = vst.msk [vmem:[#allocation5 + $0x60] sm:$0xf] %vm4477_vm2, %v12053_v1 }
 0x2b0   : > { %12051 = vst [vmem:[#allocation239_spill] sm:$0xff] %v9213_v46  ;;  %3945 = vperm.xlu1 %7590, %v3847_v49   ;;  %v3849_v49 = vld [vmem:[%s8259_s29 + $0x8e] sm:$0xff]  ;;  %7501 = vmatpush3.bf16.msra.mxu1 %v8092_v38  ;;  %v3843_v38 = vld [vmem:[%s8259_s29 + $0x5e] sm:$0xff] }
 0x2b1   : > { %v9215_v32 = vpop.permute.xlu0 %2365  ;;  %3525 = vperm.xlu0 %7589, %v3407_v50   ;;  %v3399_v50 = vld [vmem:[%s8259_s29 + $0x65] sm:$0xff] }
 0x2b2   : > { %12052 = vst [vmem:[#allocation240_spill] sm:$0xff] %v9215_v32  ;;  %v3851_v32 = vld [vmem:[%s8259_s29 + $0x9e] sm:$0xff] }
 0x2b3   : > { %v9223_v53 = vpop.permute.xlu1 %2380 }
 0x2b4   : > { %12054 = vst [vmem:[#allocation241_spill] sm:$0xff] %v9223_v53  ;;  %3480 = vperm.xlu1 %7590, %v3398_v56   ;;  %v3850_v56 = vld [vmem:[%s8259_s29 + $0x96] sm:$0xff]  ;;  %v3852_v53 = vld [vmem:[%s8259_s29 + $0xa6] sm:$0xff] }
 0x2b5   : > { %v9225_v33 = vpop.permute.xlu0 %2375  ;;  %3950 = vperm.xlu0 %7589, %v3848_v34  }
 0x2b6   : > { %12055 = vst [vmem:[#allocation242_spill] sm:$0xff] %v9225_v33 }
 0x2b7   : > { %v9231_v2 = vpop.permute.xlu1 %2560 }
 0x2b8   : > { %3955 = vperm.xlu1 %7590, %v3849_v49   ;;  %v2963_v49 = vld [vmem:[%s8259_s29 + $0xac] sm:$0xff] }
 0x2b9   : > { %v9233_v46 = vpop.permute.xlu0 %2385  ;;  %3485 = vperm.xlu0 %7589, %v3399_v50   ;;  %v3844_v50 = vld [vmem:[%s8259_s29 + $0x66] sm:$0xff] }
 0x2ba   : > { %12056 = vst [vmem:[#allocation243_spill] sm:$0xff] %v9233_v46 }
 0x2bb   : > { %v9237_v34 = vpop.permute.xlu1 %2570 }
 0x2bc   : > { %3965 = vperm.xlu1 %7590, %v3851_v32   ;;  %v2965_v32 = vld [vmem:[%s8259_s29 + $0xbc] sm:$0xff] }
 0x2bd   : > { %v9239_v33 = vpop.permute.xlu0 %2565  ;;  %3960 = vperm.xlu0 %7589, %v3850_v56   ;;  %v2964_v56 = vld [vmem:[%s8259_s29 + $0xb4] sm:$0xff] }
 0x2be   : > { %12057 = vst [vmem:[#allocation244_spill] sm:$0xff] %v9239_v33 }
 0x2bf   : > { %v9243_v60 = vpop.permute.xlu1 %2580 }
 0x2c0   : > { %3925 = vperm.xlu1 %7590, %v3843_v38   ;;  %v2966_v38 = vld [vmem:[%s8259_s29 + $0xc4] sm:$0xff] }
 0x2c1   : > { %v9245_v31 = vpop.permute.xlu0 %2575  ;;  %3970 = vperm.xlu0 %7589, %v3852_v53   ;;  %v2967_v53 = vld [vmem:[%s8259_s29 + $0xcc] sm:$0xff] }
 0x2c3   : > { %v9249_v46 = vpop.permute.xlu1 %2590 }
 0x2c4   : > { %12058 = vst [vmem:[#allocation245_spill] sm:$0xff] %v9249_v46  ;;  %3085 = vperm.xlu1 %7590, %v2963_v49   ;;  %v3408_v49 = vld [vmem:[%s8259_s29 + $0xad] sm:$0xff] }
 0x2c5   : > { %v9251_v54 = vpop.permute.xlu0 %2585  ;;  %3930 = vperm.xlu0 %7589, %v3844_v50   ;;  %v2968_v50 = vld [vmem:[%s8259_s29 + $0xd4] sm:$0xff] }
 0x2c7   : > { %v9255_v28 = vpop.permute.xlu1 %2600 }
 0x2c8   : > { %12059 = vst [vmem:[#allocation246_spill] sm:$0xff] %v9255_v28  ;;  %3095 = vperm.xlu1 %7590, %v2965_v32   ;;  %v3410_v32 = vld [vmem:[%s8259_s29 + $0xbd] sm:$0xff] }
 0x2c9   : > { %v9257_v27 = vpop.permute.xlu0 %2595  ;;  %3090 = vperm.xlu0 %7589, %v2964_v56   ;;  %v3409_v56 = vld [vmem:[%s8259_s29 + $0xb5] sm:$0xff]  ;;  %v9382_v28 = vld [vmem:[%s11806_s1 + $0x4] ss:$0 sm:$0xff] }
 0x2ca   : > { %12060 = vst [vmem:[#allocation247_spill] sm:$0xff] %v9257_v27 }
 0x2cb   : > { %v9261_v24 = vpop.permute.xlu1 %2610 }
 0x2cc   : > { %12061 = vst [vmem:[#allocation248_spill] sm:$0xff] %v9261_v24  ;;  %3105 = vperm.xlu1 %7590, %v2967_v53   ;;  %v3412_v53 = vld [vmem:[%s8259_s29 + $0xcd] sm:$0xff] }
 0x2cd   : > { %v9263_v46 = vpop.permute.xlu0 %2605  ;;  %3100 = vperm.xlu0 %7589, %v2966_v38   ;;  %v3411_v38 = vld [vmem:[%s8259_s29 + $0xc5] sm:$0xff] }
 0x2ce   : > { %12062 = vst [vmem:[#allocation249_spill] sm:$0xff] %v9263_v46 }
 0x2cf   : > { %v9267_v61 = vpop.permute.xlu1 %2620 }
 0x2d0   : > { %12063 = vst [vmem:[#allocation250_spill] sm:$0xff] %v9267_v61  ;;  %3530 = vperm.xlu1 %7590, %v3408_v49   ;;  %v3853_v49 = vld [vmem:[%s8259_s29 + $0xae] sm:$0xff] }
 0x2d1   : > { %v9269_v9 = vpop.permute.xlu0 %2615  ;;  %3110 = vperm.xlu0 %7589, %v2968_v50   ;;  %v3413_v50 = vld [vmem:[%s8259_s29 + $0xd5] sm:$0xff] }
 0x2d2   : > { %12064 = vst [vmem:[#allocation251_spill] sm:$0xff] %v9269_v9 }
 0x2d3   : > { %v9273_v27 = vpop.permute.xlu1 %2630 }
 0x2d4   : > { %12065 = vst [vmem:[#allocation252_spill] sm:$0xff] %v9273_v27  ;;  %3540 = vperm.xlu1 %7590, %v3410_v32   ;;  %v3855_v32 = vld [vmem:[%s8259_s29 + $0xbe] sm:$0xff] }
 0x2d5   : > { %v9275_v24 = vpop.permute.xlu0 %2625  ;;  %3535 = vperm.xlu0 %7589, %v3409_v56   ;;  %v3854_v56 = vld [vmem:[%s8259_s29 + $0xb6] sm:$0xff] }
 0x2d6   : > { %12066 = vst [vmem:[#allocation253_spill] sm:$0xff] %v9275_v24 }
 0x2d7   : > { %v9279_v23 = vpop.permute.xlu1 %2640 }
 0x2d8   : > { %12067 = vst [vmem:[#allocation254_spill] sm:$0xff] %v9279_v23  ;;  %3550 = vperm.xlu1 %7590, %v3412_v53   ;;  %v3857_v53 = vld [vmem:[%s8259_s29 + $0xce] sm:$0xff] }
 0x2d9   : > { %v9281_v61 = vpop.permute.xlu0 %2635  ;;  %3545 = vperm.xlu0 %7589, %v3411_v38   ;;  %v3856_v38 = vld [vmem:[%s8259_s29 + $0xc6] sm:$0xff] }
 0x2da   : > { %12068 = vst [vmem:[#allocation255_spill] sm:$0xff] %v9281_v61 }
 0x2db   : > { %v9285_v9 = vpop.permute.xlu1 %2650 }
 0x2dc   : > { %12069 = vst [vmem:[#allocation256_spill] sm:$0xff] %v9285_v9  ;;  %3975 = vperm.xlu1 %7590, %v3853_v49   ;;  %v2526_v49 = vld [vmem:[%s8259_s29 + $0xd8] sm:$0xff] }
 0x2dd   : > { %v9287_v27 = vpop.permute.xlu0 %2645  ;;  %3555 = vperm.xlu0 %7589, %v3413_v50   ;;  %v3858_v50 = vld [vmem:[%s8259_s29 + $0xd6] sm:$0xff] }
 0x2de   : > { %12070 = vst [vmem:[#allocation257_spill] sm:$0xff] %v9287_v27 }
 0x2df   : > { %v9291_v24 = vpop.permute.xlu1 %2660 }
 0x2e0   : > { %12071 = vst [vmem:[#allocation258_spill] sm:$0xff] %v9291_v24  ;;  %3985 = vperm.xlu1 %7590, %v3855_v32   ;;  %v2527_v32 = vld [vmem:[%s8259_s29 + $0xe0] sm:$0xff] }
 0x2e1   : > { %v9293_v23 = vpop.permute.xlu0 %2655  ;;  %3980 = vperm.xlu0 %7589, %v3854_v56   ;;  %v9312_v56 = vld [vmem:[%s11806_s1] ss:$0 sm:$0xff] }
 0x2e2   : > { %12072 = vst [vmem:[#allocation259_spill] sm:$0xff] %v9293_v23  ;;  %v2528_v23 = vld [vmem:[%s8259_s29 + $0xe8] sm:$0xff]  ;;  %v612_v24 = vmul.f32 %v9312_v56, %v8329_v4  ;;  %v615_v10 = vmul.f32 %v9312_v56, %v8333_v7  ;;  %v617_v4 = vmul.f32 %v9312_v56, %v8339_v11  ;;  %v9354_v46 = vmul.f32 %v9312_v56, %v8351_v19 }
 0x2e3   : > { %v9297_v61 = vpop.permute.xlu1 %3015  ;;  %v620_v19 = vmul.f32 %v9312_v56, %v8353_v20  ;;  %v2973_v20 = vld [vmem:[%s8259_s29 + $0xfc] sm:$0xff] }
 0x2e4   : > { %3995 = vperm.xlu1 %7590, %v3857_v53   ;;  %v9317_v53 = vld [vmem:[%s11806_s1 + $0x1] ss:$0 sm:$0xff]  ;;  %12074 = vst [vmem:[#allocation261_spill] sm:$0xff] %v9354_v46 }
 0x2e5   : > { %v9299_v9 = vpop.permute.xlu0 %2665  ;;  %3990 = vperm.xlu0 %7589, %v3856_v38   ;;  %v1057_v15 = vmul.f32 %v9317_v53, %v8489_v57  ;;  %v1061_v58 = vmul.f32 %v9317_v53, %v8501_v25  ;;  %v1060_v7 = vmul.f32 %v9317_v53, %v8503_v26  ;;  %v616_v25 = vmul.f32 %v9312_v56, %v8341_v12  ;;  %v9363_v26 = vld [vmem:[%s11806_s1 + $0x3] ss:$0 sm:$0xff] }
 0x2e6   : > { %12073 = vst [vmem:[#allocation260_spill] sm:$0xff] %v9299_v9  ;;  %v1951_v33 = vmul.f32 %v9363_v26, %v8831_v39 }
 0x2e7   : > { %v9303_v27 = vpop.permute.xlu1 %3025  ;;  %v9373_v29 = vadd.f32 %v1057_v15, %v612_v24  ;;  %v2394_v24 = vmul.f32 %v9382_v28, %v8995_v37 }
 0x2e8   : > { %2680 = vperm.xlu1 %7590, %v2526_v49   ;;  %v614_v49 = vmul.f32 %v9312_v56, %v8327_v3  ;;  %v9338_v3 = vld [vmem:[%s11806_s1 + $0x2] ss:$0 sm:$0xff] }
 0x2e9   : > { %v9305_v16 = vpop.permute.xlu0 %3020  ;;  %4000 = vperm.xlu0 %7589, %v3858_v50   ;;  %v1059_v50 = vmul.f32 %v9317_v53, %v8495_v17  ;;  %v2971_v17 = vld [vmem:[%s8259_s29 + $0xec] sm:$0xff]  ;;  %v1504_v57 = vmul.f32 %v9338_v3, %v8665_v48  ;;  %v1506_v11 = vmul.f32 %v9338_v3, %v8671_v21  ;;  %v1116_v21 = vadd.f32 %v1061_v58, %v616_v25 }
 0x2ea   : > { %v1505_v46 = vmul.f32 %v9338_v3, %v8663_v6  ;;  %v1507_v6 = vmul.f32 %v9338_v3, %v8669_v0  ;;  %v2395_v25 = vmul.f32 %v9382_v28, %v8993_v44 }
 0x2eb   : > { %v9319_v38 = vpop.permute.xlu1 %3460  ;;  %v1114_v63 = vadd.f32 %v1059_v50, %v614_v49  ;;  %v2972_v49 = vld [vmem:[%s8259_s29 + $0xf4] sm:$0xff]  ;;  %v1115_v50 = vadd.f32 %v1060_v7, %v615_v10  ;;  %v1561_v39 = vadd.f32 %v1506_v11, %v1116_v21  ;;  %v2524_v11 = vld [vmem:[%s8259_s29 + $0xc8] sm:$0xff] }
 0x2ec   : > { %2690 = vperm.xlu1 %7590, %v2528_v23   ;;  %v2529_v23 = vld [vmem:[%s8259_s29 + $0xf0] sm:$0xff] }
 0x2ed   : > { %v9321_v9 = vpop.permute.xlu0 %3030  ;;  %2685 = vperm.xlu0 %7589, %v2527_v32   ;;  %v613_v32 = vmul.f32 %v9312_v56, %v8335_v8  ;;  %v1062_v8 = vmul.f32 %v9317_v53, %v8509_v42  ;;  %v1949_v42 = vmul.f32 %v9363_v26, %v8825_v14  ;;  %v1058_v14 = vmul.f32 %v9317_v53, %v8497_v18 }
 0x2ee   : > { %v1559_v15 = vadd.f32 %v1504_v57, %v1114_v63  ;;  %v9402_v63 = vld [vmem:[%s11806_s1 + $0x6] ss:$0 sm:$0xff]  ;;  %v2396_v18 = vmul.f32 %v9382_v28, %v9001_v52  ;;  %v1560_v7 = vadd.f32 %v1505_v46, %v1115_v50  ;;  %v2006_v57 = vadd.f32 %v1951_v33, %v1561_v39 }
 0x2ef   : > { %v9365_v48 = vpop.permute.xlu1 %3470  ;;  %v1117_v58 = vadd.f32 %v1062_v8, %v617_v4  ;;  %v1065_v4 = vmul.f32 %v9317_v53, %v8513_v41  ;;  %v9419_v8 = vld [vmem:[%s11806_s1 + $0x7] ss:$0 sm:$0xff]  ;;  %v3284_v46 = vmul.f32 %v9402_v63, %v9297_v61  ;;  %v1113_v41 = vadd.f32 %v1058_v14, %v613_v32 }
 0x2f0   : > { %3125 = vperm.xlu1 %7590, %v2971_v17   ;;  %v1950_v17 = vmul.f32 %v9363_v26, %v8833_v36  ;;  %v2004_v0 = vadd.f32 %v1949_v42, %v1559_v15  ;;  %v2974_v52 = vld [vmem:[%s8259_s29 + $0x104] sm:$0xff]  ;;  %v2397_v32 = vmul.f32 %v9382_v28, %v8999_v45  ;;  %v3286_v14 = vmul.f32 %v9402_v63, %v9303_v27 }
 0x2f1   : > { %v9367_v12 = vpop.permute.xlu0 %3465  ;;  %2695 = vperm.xlu0 %7589, %v2529_v23   ;;  %v9397_v23 = vld [vmem:[%s11806_s1 + $0x5] ss:$0 sm:$0xff]  ;;  %v1562_v44 = vadd.f32 %v1507_v6, %v1117_v58  ;;  %v3416_v58 = vld [vmem:[%s8259_s29 + $0xed] sm:$0xff] }
 0x2f2   : > { %v2839_v36 = vmul.f32 %v9397_v23, %v9237_v34  ;;  %v1952_v34 = vmul.f32 %v9363_v26, %v8839_v35  ;;  %v2449_v42 = vadd.f32 %v2394_v24, %v2004_v0  ;;  %v2841_v21 = vmul.f32 %v9397_v23, %v9243_v60  ;;  %v9446_v24 = vld [vmem:[%s11806_s1 + $0x8] ss:$0 sm:$0xff]  ;;  %v2525_v6 = vld [vmem:[%s8259_s29 + $0xd0] sm:$0xff] }
 0x2f3   : > { %v9404_v37 = vpop.permute.xlu1 %3005  ;;  %v2005_v33 = vadd.f32 %v1950_v17, %v1560_v7  ;;  %v2451_v35 = vadd.f32 %v2396_v18, %v2006_v57  ;;  %v3729_v60 = vmul.f32 %v9419_v8, %v9319_v38  ;;  %v1120_v38 = vadd.f32 %v1065_v4, %v620_v19 }
 0x2f4   : > { %3135 = vperm.xlu1 %7590, %v2973_v20   ;;  %v2840_v20 = vmul.f32 %v9397_v23, %v9245_v31  ;;  %v2894_v15 = vadd.f32 %v2839_v36, %v2449_v42  ;;  %v3285_v31 = vmul.f32 %v9402_v63, %v9305_v16  ;;  %v2007_v39 = vadd.f32 %v1952_v34, %v1562_v44  ;;  %v3417_v34 = vld [vmem:[%s8259_s29 + $0xf5] sm:$0xff] }
 0x2f5   : > { %v9406_v10 = vpop.permute.xlu0 %3475  ;;  %3130 = vperm.xlu0 %7589, %v2972_v49   ;;  %v2450_v61 = vadd.f32 %v2395_v25, %v2005_v33  ;;  %v2896_v17 = vadd.f32 %v2841_v21, %v2451_v35  ;;  %v2842_v45 = vmul.f32 %v9397_v23, %v9251_v54  ;;  %v3731_v16 = vmul.f32 %v9419_v8, %v9365_v48 }
 0x2f6   : > { %v3339_v0 = vadd.f32 %v3284_v46, %v2894_v15  ;;  %v3730_v27 = vmul.f32 %v9419_v8, %v9367_v12  ;;  %v1503_v19 = vmul.f32 %v9338_v3, %v8657_v47  ;;  %v1502_v54 = vmul.f32 %v9338_v3, %v8659_v59  ;;  %v9466_v12 = vld [vmem:[%s11811_s6] ss:$0 sm:$0xff] }
 0x2f7   : > { %v9431_v49 = vpop.permute.xlu1 %3045  ;;  %v2895_v18 = vadd.f32 %v2840_v20, %v2450_v61  ;;  %v2452_v25 = vadd.f32 %v2397_v32, %v2007_v39  ;;  %v9472_v47 = vmul.f32 %v9317_v53, %v8521_v62  ;;  %v1947_v42 = vmul.f32 %v9363_v26, %v8819_v22 }
 0x2f8   : > { %2670 = vperm.xlu1 %7590, %v2524_v11   ;;  %v3784_v4 = vadd.f32 %v3729_v60, %v3339_v0  ;;  %v3341_v11 = vadd.f32 %v3286_v14, %v2896_v17  ;;  %v3287_v59 = vmul.f32 %v9402_v63, %v9321_v9  ;;  %v3732_v20 = vmul.f32 %v9419_v8, %v9406_v10  ;;  %v2969_v14 = vld [vmem:[%s8259_s29 + $0xdc] sm:$0xff] }
 0x2f9   : > { %v9433_v50 = vpop.permute.xlu0 %3010  ;;  %3140 = vperm.xlu0 %7589, %v2974_v52   ;;  %v3340_v48 = vadd.f32 %v3285_v31, %v2895_v18  ;;  %v3418_v52 = vld [vmem:[%s8259_s29 + $0xfd] sm:$0xff]  ;;  %v2897_v46 = vadd.f32 %v2842_v45, %v2452_v25  ;;  %v1558_v9 = vadd.f32 %v1503_v19, %v1113_v41  ;;  %v1557_v61 = vadd.f32 %v1502_v54, %v9373_v29  ;;  %v3419_v41 = vld [vmem:[%s8259_s29 + $0x105] sm:$0xff] }
 0x2fa   : > { %v3786_v44 = vadd.f32 %v3731_v16, %v3341_v11  ;;  %v1510_v32 = vmul.f32 %v9338_v3, %v8683_v5  ;;  %v2392_v10 = vmul.f32 %v9382_v28, %v8989_v43  ;;  %v1948_v29 = vmul.f32 %v9363_v26, %v8827_v40 }
 0x2fb   : > { %v3906_v36 = vpop.permute.xlu1 %3905  ;;  %v3785_v33 = vadd.f32 %v3730_v27, %v3340_v48  ;;  %v3342_v31 = vadd.f32 %v3287_v59, %v2897_v46  ;;  %v2002_v17 = vadd.f32 %v1947_v42, %v1557_v61  ;;  %v1955_v43 = vmul.f32 %v9363_v26, %v8843_v30  ;;  %v2970_v48 = vld [vmem:[%s8259_s29 + $0xe4] sm:$0xff]  ;;  %v12075_v42 = vld [vmem:[#allocation246_spill] sm:$0xff] }
 0x2fc   : > { %v4174_v57 = vmul.f32 %v9446_v24, %v3906_v36  ;;  %3570 = vperm.xlu1 %7590, %v3416_v58   ;;  %v2837_v5 = vmul.f32 %v9397_v23, %v9231_v2  ;;  %v1565_v40 = vadd.f32 %v1510_v32, %v1120_v38  ;;  %v2393_v30 = vmul.f32 %v9382_v28, %v8987_v13  ;;  %v12076_v46 = vld [vmem:[#allocation244_spill] sm:$0xff] }
 0x2fd   : > { %v9456_v7 = vpop.permute.xlu0 %3050  ;;  %2675 = vperm.xlu0 %7589, %v2525_v6   ;;  %v3787_v45 = vadd.f32 %v3732_v20, %v3342_v31  ;;  %v2447_v19 = vadd.f32 %v2392_v10, %v2002_v17  ;;  %v2400_v2 = vmul.f32 %v9382_v28, %v9013_v55  ;;  %v2003_v38 = vadd.f32 %v1948_v29, %v1558_v9 }
 0x2fe   : > { %v4229_v21 = vadd.f32 %v4174_v57, %v3784_v4  ;;  %v3861_v4 = vld [vmem:[%s8259_s29 + $0xee] sm:$0xff]  ;;  %v3282_v57 = vmul.f32 %v9402_v63, %v9404_v37  ;;  %v2845_v13 = vmul.f32 %v9397_v23, %v12075_v42  ;;  %v3283_v32 = vmul.f32 %v9402_v63, %v9433_v50 }
 0x2ff   : > { %v3916_v35 = vpop.permute.xlu1 %3915  ;;  %v2448_v9 = vadd.f32 %v2393_v30, %v2003_v38 }
 0x300   : > { %v4288_v60 = vadd.f32 %v9466_v12, %v4229_v21  ;;  %v4176_v62 = vmul.f32 %v9446_v24, %v3916_v35  ;;  %3580 = vperm.xlu1 %7590, %v3418_v52   ;;  %v1511_v52 = vmul.f32 %v9338_v3, %v8681_v51  ;;  %v2892_v21 = vadd.f32 %v2837_v5, %v2447_v19  ;;  %v12078_v35 = vld [vmem:[#allocation151_spill] sm:$0xff] }
 0x301   : > { %v3911_v15 = vpop.permute.xlu0 %3910  ;;  %3575 = vperm.xlu0 %7589, %v3417_v34   ;;  %v2010_v34 = vadd.f32 %v1955_v43, %v1565_v40  ;;  %v3864_v40 = vld [vmem:[%s8259_s29 + $0x106] sm:$0xff]  ;;  %v3291_v19 = vmul.f32 %v9402_v63, %v9456_v7 }
 0x302   : > { %v4175_v22 = vmul.f32 %v9446_v24, %v3911_v15  ;;  %v4343_v58 = vmax.f32 %v4288_v60, 0.0  ;;  %v4231_v6 = vadd.f32 %v4176_v62, %v3786_v44  ;;  %v2838_v44 = vmul.f32 %v9397_v23, %v12076_v46 }
 0x303   : > { %v3451_v0 = vpop.permute.xlu1 %3450  ;;  %v1956_v15 = vmul.f32 %v9363_v26, %v12078_v35  ;;  %v2455_v60 = vadd.f32 %v2400_v2, %v2010_v34  ;;  %v3290_v62 = vmul.f32 %v9402_v63, %v9431_v49  ;;  %v3337_v61 = vadd.f32 %v3282_v57, %v2892_v21  ;;  %v2532_v34 = vld [vmem:[%s8259_s29 + $0x108] sm:$0xff] }
 0x304   : > { %v4230_v39 = vadd.f32 %v4175_v22, %v3785_v33  ;;  %4399 = vst.msk [vmem:[#allocation2 + $0x10] sm:$0xff] %vm4396_vm0, %v4343_v58  ;;  %v4290_v16 = vadd.f32 %v9466_v12, %v4231_v6  ;;  %3115 = vperm.xlu1 %7590, %v2969_v14   ;;  %v3727_v37 = vmul.f32 %v9419_v8, %v3451_v0  ;;  %v12077_v33 = vld [vmem:[#allocation261_spill] sm:$0xff]  ;;  %v3863_v22 = vld [vmem:[%s8259_s29 + $0xfe] sm:$0xff] }
 0x305   : > { %v3921_v18 = vpop.permute.xlu0 %3920  ;;  %3585 = vperm.xlu0 %7589, %v3419_v41   ;;  %v1121_v20 = vadd.f32 %v9472_v47, %v12077_v33  ;;  %v3862_v14 = vld [vmem:[%s8259_s29 + $0xf6] sm:$0xff]  ;;  %v2900_v6 = vadd.f32 %v2845_v13, %v2455_v60  ;;  %v2893_v17 = vadd.f32 %v2838_v44, %v2448_v9 }
 0x306   : > { %v4289_v27 = vadd.f32 %v9466_v12, %v4230_v39  ;;  %v4177_v36 = vmul.f32 %v9446_v24, %v3921_v18  ;;  %v4345_v54 = vmax.f32 %v4290_v16, 0.0  ;;  %v12079_v58 = vld [vmem:[#allocation198_spill] sm:$0xff]  ;;  %v3782_v29 = vadd.f32 %v3727_v37, %v3337_v61  ;;  %v12080_v0 = vld [vmem:[#allocation249_spill] sm:$0xff] }
 0x307   : > { %v3491_v59 = vpop.permute.xlu1 %3490  ;;  %v1566_v31 = vadd.f32 %v1511_v52, %v1121_v20  ;;  %v2401_v47 = vmul.f32 %v9382_v28, %v12079_v58  ;;  %v2846_v18 = vmul.f32 %v9397_v23, %v12080_v0  ;;  %v3414_v16 = vld [vmem:[%s8259_s29 + $0xdd] sm:$0xff] }
 0x308   : > { %v4344_v25 = vmax.f32 %v4289_v27, 0.0  ;;  %v4232_v11 = vadd.f32 %v4177_v36, %v3787_v45  ;;  %4401 = vst.msk [vmem:[#allocation2 + $0x20] sm:$0xff] %vm4396_vm0, %v4345_v54  ;;  %4015 = vperm.xlu1 %7590, %v3861_v4   ;;  %v3735_v39 = vmul.f32 %v9419_v8, %v3491_v59  ;;  %v3345_v45 = vadd.f32 %v3290_v62, %v2900_v6  ;;  %v12083_v0 = vld [vmem:[#allocation55_spill] sm:$0xff] }
 0x309   : > { %v3456_v55 = vpop.permute.xlu0 %3455  ;;  %3120 = vperm.xlu0 %7589, %v2970_v48   ;;  %v2011_v5 = vadd.f32 %v1956_v15, %v1566_v31  ;;  %v3338_v27 = vadd.f32 %v3283_v32, %v2893_v17 }
 0x30a   : > { %4400 = vst.msk [vmem:[#allocation2 + $0x18] sm:$0xff] %vm4396_vm0, %v4344_v25  ;;  %v4291_v51 = vadd.f32 %v9466_v12, %v4232_v11  ;;  %v3728_v43 = vmul.f32 %v9419_v8, %v3456_v55  ;;  %v3790_v2 = vadd.f32 %v3735_v39, %v3345_v45  ;;  %v3415_v55 = vld [vmem:[%s8259_s29 + $0xe5] sm:$0xff] }
 0x30b   : > { %v3896_v41 = vpop.permute.xlu1 %3895  ;;  %v2456_v30 = vadd.f32 %v2401_v47, %v2011_v5 }
 0x30c   : > { %v4346_v10 = vmax.f32 %v4291_v51, 0.0  ;;  %v4172_v50 = vmul.f32 %v9446_v24, %v3896_v41  ;;  %4025 = vperm.xlu1 %7590, %v3863_v22   ;;  %v3783_v54 = vadd.f32 %v3728_v43, %v3338_v27  ;;  %v2534_v22 = vld [vmem:[%s8259_s29 + $0x118] sm:$0xff] }
 0x30d   : > { %v3496_v49 = vpop.permute.xlu0 %3495  ;;  %4020 = vperm.xlu0 %7589, %v3862_v14   ;;  %v2901_v52 = vadd.f32 %v2846_v18, %v2456_v30  ;;  %v2533_v14 = vld [vmem:[%s8259_s29 + $0x110] sm:$0xff]  ;;  %v3859_v41 = vld [vmem:[%s8259_s29 + $0xde] sm:$0xff]  ;;  %v1064_v18 = vmul.f32 %v9317_v53, %v12083_v0 }
 0x30e   : > { %4402 = vst.msk [vmem:[#allocation2 + $0x28] sm:$0xff] %vm4396_vm0, %v4346_v10  ;;  %v4227_v36 = vadd.f32 %v4172_v50, %v3782_v29  ;;  %v3736_v38 = vmul.f32 %v9419_v8, %v3496_v49  ;;  %v12081_v49 = vld [vmem:[#allocation54_spill] sm:$0xff]  ;;  %v2535_v29 = vld [vmem:[%s8259_s29 + $0x120] sm:$0xff]  ;;  %v12085_v30 = vld [vmem:[#allocation9_spill] sm:$0xff] }
 0x30f   : > { %v3936_v4 = vpop.permute.xlu1 %3935  ;;  %v3346_v21 = vadd.f32 %v3291_v19, %v2901_v52  ;;  %v1063_v17 = vmul.f32 %v9317_v53, %v12081_v49  ;;  %v12082_v50 = vld [vmem:[#allocation7_spill] sm:$0xff]  ;;  %v623_v19 = vmul.f32 %v9312_v56, %v12085_v30 }
 0x310   : > { %v4286_v25 = vadd.f32 %v9466_v12, %v4227_v36  ;;  %v4180_v11 = vmul.f32 %v9446_v24, %v3936_v4  ;;  %3560 = vperm.xlu1 %7590, %v3414_v16   ;;  %v619_v5 = vmul.f32 %v9312_v56, %v12082_v50  ;;  %v12084_v36 = vld [vmem:[#allocation8_spill] sm:$0xff] }
 0x311   : > { %v3901_v57 = vpop.permute.xlu0 %3900  ;;  %4030 = vperm.xlu0 %7589, %v3864_v40   ;;  %v4481_v42 = vld [vmem:[#allocation2 + $0x10] ss:$2 sm:$0xff]  ;;  %v4537_v46 = vld [vmem:[#allocation2 + $0x11] ss:$2 sm:$0xff]  ;;  %v3791_v60 = vadd.f32 %v3736_v38, %v3346_v21  ;;  %v618_v40 = vmul.f32 %v9312_v56, %v12084_v36  ;;  %v12090_v38 = vld [vmem:[#allocation12_spill] sm:$0xff] }
 0x312   : > { %v4173_v48 = vmul.f32 %v9446_v24, %v3901_v57  ;;  %v4341_v13 = vmax.f32 %v4286_v25, 0.0  ;;  %v4235_v7 = vadd.f32 %v4180_v11, %v3790_v2  ;;  %v4591_v9 = vadd.f32 %v4537_v46, %v4481_v42  ;;  %v12086_v2 = vld [vmem:[#allocation56_spill] sm:$0xff]  ;;  %v12087_v57 = vld [vmem:[#allocation57_spill] sm:$0xff]  ;;  %v12088_v25 = vld [vmem:[#allocation10_spill] sm:$0xff] }
 0x313   : > { %v9550_v51 = vpop.permute.xlu1 %3055  ;;  %v1067_v4 = vmul.f32 %v9317_v53, %v12086_v2  ;;  %v622_v11 = vmul.f32 %v9312_v56, %v12088_v25  ;;  %v12091_v42 = vld [vmem:[#allocation58_spill] sm:$0xff]  ;;  %v12101_v2 = vld [vmem:[#allocation105_spill] sm:$0xff] }
 0x314   : > { %v4228_v59 = vadd.f32 %v4173_v48, %v3783_v54  ;;  %4397 = vst.msk [vmem:[#allocation2] sm:$0xff] %vm4396_vm0, %v4341_v13  ;;  %v4294_v35 = vadd.f32 %v9466_v12, %v4235_v7  ;;  %2710 = vperm.xlu1 %7590, %v2532_v34   ;;  %v1069_v54 = vmul.f32 %v9317_v53, %v12087_v57  ;;  %v12089_v48 = vld [vmem:[#allocation11_spill] sm:$0xff]  ;;  %v12093_v21 = vld [vmem:[#allocation14_spill] sm:$0xff] }
 0x315   : > { %v4483_v44 = vld [vmem:[#allocation2 + $0x20] ss:$2 sm:$0xff]  ;;  %v4539_v37 = vld [vmem:[#allocation2 + $0x21] ss:$2 sm:$0xff]  ;;  %v3941_v33 = vpop.permute.xlu0 %3940  ;;  %3565 = vperm.xlu0 %7589, %v3415_v55   ;;  %v625_v52 = vmul.f32 %v9312_v56, %v12089_v48  ;;  %v624_v34 = vmul.f32 %v9312_v56, %v12090_v38  ;;  %v1068_v13 = vmul.f32 %v9317_v53, %v12091_v42  ;;  %v626_v46 = vmul.f32 %v9312_v56, %v12093_v21  ;;  %v12105_v21 = vld [vmem:[#allocation150_spill] sm:$0xff] }
 0x316   : > { %v9552_v20 = vadd.f32 %v4539_v37, %v4483_v44  ;;  %v4287_v15 = vadd.f32 %v9466_v12, %v4228_v59  ;;  %v4181_v62 = vmul.f32 %v9446_v24, %v3941_v33  ;;  %v4349_v32 = vmax.f32 %v4294_v35, 0.0  ;;  %v2977_v7 = vld [vmem:[%s8259_s29 + $0x11c] sm:$0xff]  ;;  %v12092_v59 = vld [vmem:[#allocation13_spill] sm:$0xff]  ;;  %v3860_v37 = vld [vmem:[%s8259_s29 + $0xe6] sm:$0xff] }
 0x317   : > { %v9561_v58 = vpop.permute.xlu1 %3065  ;;  %v627_v55 = vmul.f32 %v9312_v56, %v12092_v59  ;;  %v1118_v44 = vadd.f32 %v1063_v17, %v618_v40  ;;  %v1119_v33 = vadd.f32 %v1064_v18, %v619_v5  ;;  %v12094_v35 = vld [vmem:[#allocation59_spill] sm:$0xff]  ;;  %v12098_v5 = vld [vmem:[#allocation102_spill] sm:$0xff]  ;;  %v2979_v18 = vld [vmem:[%s8259_s29 + $0x12c] sm:$0xff] }
 0x318   : > { %v4622_v61 = vrot.slane %v9552_v20, 3  ;;  %v4342_v10 = vmax.f32 %v4287_v15, 0.0  ;;  %v4236_v31 = vadd.f32 %v4181_v62, %v3791_v60  ;;  %4405 = vst.msk [vmem:[#allocation2 + $0x40] sm:$0xff] %vm4396_vm0, %v4349_v32  ;;  %2720 = vperm.xlu1 %7590, %v2534_v22   ;;  %v1071_v15 = vmul.f32 %v9317_v53, %v12094_v35  ;;  %v12095_v60 = vld [vmem:[#allocation60_spill] sm:$0xff]  ;;  %v12103_v38 = vld [vmem:[#allocation107_spill] sm:$0xff] }
 0x319   : > { %v9563_v47 = vpop.permute.xlu0 %3060  ;;  %2715 = vperm.xlu0 %7589, %v2533_v14   ;;  %v1070_v62 = vmul.f32 %v9317_v53, %v12095_v60  ;;  %v4621_v22 = vrot.slane %v4591_v9, 3  ;;  %v12100_v40 = vld [vmem:[#allocation104_spill] sm:$0xff] }
 0x31a   : > { %v4627_v6 = vadd.f32 %v4622_v61, %v4591_v9  ;;  %4398 = vst.msk [vmem:[#allocation2 + $0x8] sm:$0xff] %vm4396_vm0, %v4342_v10  ;;  %v4295_v39 = vadd.f32 %v9466_v12, %v4236_v31  ;;  %v1508_v9 = vmul.f32 %v9338_v3, %v12098_v5  ;;  %v1512_v30 = vmul.f32 %v9338_v3, %v12100_v40  ;;  %v2978_v57 = vld [vmem:[%s8259_s29 + $0x124] sm:$0xff]  ;;  %v2980_v5 = vld [vmem:[%s8259_s29 + $0x134] sm:$0xff] }
 0x31b   : > { %v9576_v16 = vpop.permute.xlu1 %3075  ;;  %v4623_v0 = vsel %vm4620_vm4, %v4621_v22, %v4622_v61  ;;  %v1125_v25 = vadd.f32 %v1070_v62, %v625_v52  ;;  %v1517_v61 = vmul.f32 %v9338_v3, %v12103_v38  ;;  %v12106_v62 = vld [vmem:[#allocation148_spill] sm:$0xff] }
 0x31c   : > { %v4629_v43 = vmul.f32 0.25, %v4627_v6  ;;  %v4350_v45 = vmax.f32 %v4295_v39, 0.0  ;;  %4005 = vperm.xlu1 %7590, %v3859_v41   ;;  %v1122_v6 = vadd.f32 %v1067_v4, %v622_v11  ;;  %v1124_v39 = vadd.f32 %v1069_v54, %v624_v34  ;;  %v12096_v41 = vld [vmem:[#allocation62_spill] sm:$0xff] }
 0x31d   : > { %v9578_v27 = vpop.permute.xlu0 %3070  ;;  %2725 = vperm.xlu0 %7589, %v2535_v29   ;;  %v1072_v49 = vmul.f32 %v9317_v53, %v12096_v41  ;;  %v1123_v29 = vadd.f32 %v1068_v13, %v623_v19  ;;  %v1515_v4 = vmul.f32 %v9338_v3, %v12101_v2  ;;  %v1126_v54 = vadd.f32 %v1071_v15, %v626_v46  ;;  %v12102_v11 = vld [vmem:[#allocation106_spill] sm:$0xff] }
 0x31e   : > { %4737 = vst.msk [vmem:[#allocation3 + $0x26] sm:$0x3] %vm4736_vm3, %v4629_v43  ;;  %v12097_v43 = vld [vmem:[#allocation101_spill] sm:$0xff]  ;;  %v1514_v48 = vmul.f32 %v9338_v3, %v12102_v11  ;;  %v1957_v46 = vmul.f32 %v9363_v26, %v12105_v21  ;;  %v1563_v60 = vadd.f32 %v1508_v9, %v1118_v44  ;;  %v1953_v22 = vmul.f32 %v9363_v26, %v12106_v62  ;;  %v12108_v44 = vld [vmem:[#allocation152_spill] sm:$0xff] }
 0x31f   : > { %4406 = vst.msk [vmem:[#allocation2 + $0x48] sm:$0xff] %vm4396_vm0, %v4350_v45  ;;  %v9608_v14 = vpop.permute.xlu1 %3500  ;;  %v1509_v50 = vmul.f32 %v9338_v3, %v12097_v43  ;;  %v12099_v45 = vld [vmem:[#allocation103_spill] sm:$0xff]  ;;  %v1127_v13 = vadd.f32 %v1072_v49, %v627_v55  ;;  %v2530_v55 = vld [vmem:[%s8259_s29 + $0xf8] sm:$0xff]  ;;  %v1567_v41 = vadd.f32 %v1512_v30, %v1122_v6  ;;  %v1570_v49 = vadd.f32 %v1515_v4, %v1125_v25  ;;  %v12110_v30 = vld [vmem:[#allocation248_spill] sm:$0xff] }
 0x320   : > { %3155 = vperm.xlu1 %7590, %v2977_v7   ;;  %v1513_v36 = vmul.f32 %v9338_v3, %v12099_v45  ;;  %v12104_v7 = vld [vmem:[#allocation108_spill] sm:$0xff]  ;;  %v2008_v2 = vadd.f32 %v1953_v22, %v1563_v60  ;;  %v12111_v4 = vld [vmem:[#allocation154_spill] sm:$0xff] }
 0x321   : > { %v4479_v32 = vld [vmem:[#allocation2] ss:$2 sm:$0xff]  ;;  %v4535_v10 = vld [vmem:[#allocation2 + $0x1] ss:$2 sm:$0xff]  ;;  %v9610_v31 = vpop.permute.xlu0 %3080  ;;  %4010 = vperm.xlu0 %7589, %v3860_v37   ;;  %v1516_v59 = vmul.f32 %v9338_v3, %v12104_v7  ;;  %v9639_v15 = vadd.f32 %v1509_v50, %v1119_v33  ;;  %v1572_v33 = vadd.f32 %v1517_v61, %v1127_v13  ;;  %v1959_v50 = vmul.f32 %v9363_v26, %v12108_v44  ;;  %v12119_v44 = vld [vmem:[#allocation202_spill] sm:$0xff] }
 0x322   : > { %v4590_v17 = vadd.f32 %v4535_v10, %v4479_v32  ;;  %v1568_v10 = vadd.f32 %v1513_v36, %v1123_v29  ;;  %v2012_v45 = vadd.f32 %v1957_v46, %v1567_v41  ;;  %v12109_v36 = vld [vmem:[#allocation153_spill] sm:$0xff]  ;;  %v3292_v13 = vmul.f32 %v9402_v63, %v9550_v51  ;;  %v2531_v7 = vld [vmem:[%s8259_s29 + $0x100] sm:$0xff] }
 0x323   : > { %v9631_v34 = vpop.permute.xlu1 %3035  ;;  %v1571_v6 = vadd.f32 %v1516_v59, %v1126_v54  ;;  %v1958_v40 = vmul.f32 %v9363_v26, %v12109_v36  ;;  %v3422_v54 = vld [vmem:[%s8259_s29 + $0x11d] sm:$0xff]  ;;  %v12114_v59 = vld [vmem:[#allocation149_spill] sm:$0xff]  ;;  %v3737_v41 = vmul.f32 %v9419_v8, %v9608_v14  ;;  %v3293_v14 = vmul.f32 %v9402_v63, %v9563_v47 }
 0x324   : > { %v4626_v19 = vadd.f32 %v4623_v0, %v4590_v17  ;;  %3165 = vperm.xlu1 %7590, %v2979_v18   ;;  %v12107_v17 = vld [vmem:[#allocation200_spill] sm:$0xff]  ;;  %v1569_v0 = vadd.f32 %v1514_v48, %v1124_v39  ;;  %v2847_v39 = vmul.f32 %v9397_v23, %v12110_v30  ;;  %v12113_v48 = vld [vmem:[#allocation199_spill] sm:$0xff]  ;;  %v9676_v21 = vmul.f32 %v9363_v26, %v12114_v59 }
 0x325   : > { %v9633_v42 = vpop.permute.xlu0 %3505  ;;  %3160 = vperm.xlu0 %7589, %v2978_v57   ;;  %v2402_v43 = vmul.f32 %v9382_v28, %v12107_v17  ;;  %v12112_v57 = vld [vmem:[#allocation155_spill] sm:$0xff]  ;;  %v2403_v38 = vmul.f32 %v9382_v28, %v12113_v48  ;;  %v2013_v62 = vadd.f32 %v1958_v40, %v1568_v10  ;;  %v3424_v10 = vld [vmem:[%s8259_s29 + $0x12d] sm:$0xff]  ;;  %v3294_v59 = vmul.f32 %v9402_v63, %v9561_v58 }
 0x326   : > { %v4628_v52 = vmul.f32 0.25, %v4626_v19  ;;  %v4487_v37 = vld [vmem:[#allocation2 + $0x40] ss:$2 sm:$0xff]  ;;  %v4543_v35 = vld [vmem:[#allocation2 + $0x41] ss:$2 sm:$0xff]  ;;  %v1961_v19 = vmul.f32 %v9363_v26, %v12111_v4  ;;  %v1960_v25 = vmul.f32 %v9363_v26, %v12112_v57  ;;  %v2014_v46 = vadd.f32 %v1959_v50, %v1569_v0 }
 0x327   : > { %v9643_v32 = vadd.f32 %v4543_v35, %v4487_v37  ;;  %v9653_v18 = vpop.permute.xlu1 %3510  ;;  %v2457_v61 = vadd.f32 %v2402_v43, %v2012_v45  ;;  %v12116_v51 = vld [vmem:[#allocation251_spill] sm:$0xff]  ;;  %v12117_v43 = vld [vmem:[#allocation197_spill] sm:$0xff]  ;;  %v2404_v50 = vmul.f32 %v9382_v28, %v12119_v44  ;;  %v2458_v36 = vadd.f32 %v2403_v38, %v2013_v62  ;;  %v12124_v62 = vld [vmem:[#allocation252_spill] sm:$0xff] }
 0x328   : > { %4735 = vst.msk [vmem:[#allocation3 + $0x1e] sm:$0xff] %vm4396_vm0, %v4628_v52  ;;  %2700 = vperm.xlu1 %7590, %v2530_v55   ;;  %v12115_v52 = vld [vmem:[#allocation157_spill] sm:$0xff]  ;;  %v2848_v55 = vmul.f32 %v9397_v23, %v12116_v51  ;;  %v2016_v17 = vadd.f32 %v1961_v19, %v1571_v6  ;;  %v2015_v45 = vadd.f32 %v1960_v25, %v1570_v49  ;;  %v3423_v6 = vld [vmem:[%s8259_s29 + $0x125] sm:$0xff] }
 0x329   : > { %v4632_v9 = vrot.slane %v9643_v32, 3  ;;  %v9655_v29 = vpop.permute.xlu0 %3040  ;;  %3170 = vperm.xlu0 %7589, %v2980_v5   ;;  %v2902_v22 = vadd.f32 %v2847_v39, %v2457_v61  ;;  %v2398_v5 = vmul.f32 %v9382_v28, %v12117_v43  ;;  %v12120_v39 = vld [vmem:[#allocation196_spill] sm:$0xff]  ;;  %v3738_v47 = vmul.f32 %v9419_v8, %v9633_v42  ;;  %v3425_v42 = vld [vmem:[%s8259_s29 + $0x135] sm:$0xff]  ;;  %v9933_v32 = vld [vmem:[%s11806_s1 + $0x7] ss:$0 sm:$0xff] }
 0x32a   : > { %v9701_v4 = vmul.f32 %v9382_v28, %v12120_v39  ;;  %v12121_v19 = vld [vmem:[#allocation204_spill] sm:$0xff]  ;;  %v2903_v25 = vadd.f32 %v2848_v55, %v2458_v36  ;;  %v3739_v58 = vmul.f32 %v9419_v8, %v9653_v18  ;;  %v3296_v18 = vmul.f32 %v9402_v63, %v9576_v16 }
 0x32b   : > { %v4637_v11 = vadd.f32 %v4632_v9, %v9552_v20  ;;  %v1962_v20 = vmul.f32 %v9363_v26, %v12115_v52  ;;  %v9680_v35 = vpop.permute.xlu1 %3520  ;;  %v12118_v26 = vld [vmem:[#allocation201_spill] sm:$0xff]  ;;  %v3347_v40 = vadd.f32 %v3292_v13, %v2902_v22  ;;  %v2406_v57 = vmul.f32 %v9382_v28, %v12121_v19 }
 0x32c   : > { %3600 = vperm.xlu1 %7590, %v3422_v54   ;;  %v2405_v0 = vmul.f32 %v9382_v28, %v12118_v26  ;;  %v2453_v61 = vadd.f32 %v2398_v5, %v2008_v2  ;;  %v2975_v52 = vld [vmem:[%s8259_s29 + $0x10c] sm:$0xff]  ;;  %v2851_v22 = vmul.f32 %v9397_v23, %v12124_v62  ;;  %v3348_v51 = vadd.f32 %v3293_v14, %v2903_v25  ;;  %v3867_v14 = vld [vmem:[%s8259_s29 + $0x11e] sm:$0xff] }
 0x32d   : > { %v4639_v37 = vmul.f32 0.25, %v4637_v11  ;;  %v9682_v60 = vpop.permute.xlu0 %3515  ;;  %2705 = vperm.xlu0 %7589, %v2531_v7   ;;  %v2017_v30 = vadd.f32 %v1962_v20, %v1572_v33  ;;  %v12122_v11 = vld [vmem:[#allocation250_spill] sm:$0xff]  ;;  %v3792_v38 = vadd.f32 %v3737_v41, %v3347_v40  ;;  %v2459_v7 = vadd.f32 %v2404_v50, %v2014_v46  ;;  %v12123_v20 = vld [vmem:[#allocation203_spill] sm:$0xff]  ;;  %v12125_v26 = vld [vmem:[#allocation253_spill] sm:$0xff] }
 0x32e   : > { %v2849_v54 = vmul.f32 %v9397_v23, %v12122_v11  ;;  %v2460_v13 = vadd.f32 %v2405_v0, %v2015_v45  ;;  %v2461_v41 = vadd.f32 %v2406_v57, %v2016_v17  ;;  %v2850_v2 = vmul.f32 %v9397_v23, %v12125_v26  ;;  %v12126_v0 = vld [vmem:[#allocation245_spill] sm:$0xff]  ;;  %v12127_v25 = vld [vmem:[#allocation255_spill] sm:$0xff] }
 0x32f   : > { %4739 = vst.msk [vmem:[#allocation3 + $0x26] sm:$0xc0] %vm4738_vm5, %v4639_v37  ;;  %v3946_v48 = vpop.permute.xlu1 %3945  ;;  %v2407_v37 = vmul.f32 %v9382_v28, %v12123_v20  ;;  %v2843_v28 = vmul.f32 %v9397_v23, %v12126_v0  ;;  %v3793_v44 = vadd.f32 %v3738_v47, %v3348_v51  ;;  %v9728_v17 = vld [vmem:[#allocation3 + $0x1e] sm:$0xff]  ;;  %v3295_v19 = vmul.f32 %v9402_v63, %v9578_v27 }
 0x330   : > { %v4182_v33 = vmul.f32 %v9446_v24, %v3946_v48  ;;  %3610 = vperm.xlu1 %7590, %v3424_v10   ;;  %v2904_v43 = vadd.f32 %v2849_v54, %v2459_v7  ;;  %v2906_v39 = vadd.f32 %v2851_v22, %v2461_v41  ;;  %v2976_v54 = vld [vmem:[%s8259_s29 + $0x114] sm:$0xff]  ;;  %v2905_v48 = vadd.f32 %v2850_v2, %v2460_v13  ;;  %v3868_v41 = vld [vmem:[%s8259_s29 + $0x126] sm:$0xff] }
 0x331   : > { %v9707_v49 = vpop.permute.xlu0 %3525  ;;  %3605 = vperm.xlu0 %7589, %v3423_v6   ;;  %v3741_v47 = vmul.f32 %v9419_v8, %v9680_v35  ;;  %v3297_v20 = vmul.f32 %v9402_v63, %v9610_v31  ;;  %v3288_v62 = vmul.f32 %v9402_v63, %v9631_v34  ;;  %v2898_v22 = vadd.f32 %v2843_v28, %v2453_v61  ;;  %v12128_v28 = vld [vmem:[#allocation247_spill] sm:$0xff]  ;;  %v12246_v6 = vld [vmem:[#allocation174_spill] sm:$0xff] }
 0x332   : > { %v4237_v55 = vadd.f32 %v4182_v33, %v3792_v38  ;;  %v3349_v36 = vadd.f32 %v3294_v59, %v2904_v43  ;;  %v2852_v38 = vmul.f32 %v9397_v23, %v12127_v25  ;;  %v3740_v59 = vmul.f32 %v9419_v8, %v9682_v60  ;;  %v3869_v60 = vld [vmem:[%s8259_s29 + $0x12e] sm:$0xff] }
 0x333   : > { %v3481_v46 = vpop.permute.xlu1 %3480  ;;  %v3351_v35 = vadd.f32 %v3296_v18, %v2906_v39  ;;  %v3350_v51 = vadd.f32 %v3295_v19, %v2905_v48  ;;  %v2009_v0 = vadd.f32 %v9676_v21, %v9639_v15  ;;  %v3289_v39 = vmul.f32 %v9402_v63, %v9655_v29  ;;  %v2536_v63 = vld [vmem:[%s8259_s29 + $0x128] sm:$0xff] }
 0x334   : > { %v4296_v50 = vadd.f32 %v9466_v12, %v4237_v55  ;;  %3145 = vperm.xlu1 %7590, %v2975_v52   ;;  %v3794_v16 = vadd.f32 %v3739_v58, %v3349_v36  ;;  %v2462_v52 = vadd.f32 %v2407_v37, %v2017_v30  ;;  %v3742_v30 = vmul.f32 %v9419_v8, %v9707_v49 }
 0x335   : > { %v3951_v5 = vpop.permute.xlu0 %3950  ;;  %3615 = vperm.xlu0 %7589, %v3425_v42   ;;  %v3796_v26 = vadd.f32 %v3741_v47, %v3351_v35  ;;  %v3733_v37 = vmul.f32 %v9419_v8, %v3481_v46  ;;  %v3795_v58 = vadd.f32 %v3740_v59, %v3350_v51  ;;  %v2844_v49 = vmul.f32 %v9397_v23, %v12128_v28 }
 0x336   : > { %v4183_v10 = vmul.f32 %v9446_v24, %v3951_v5  ;;  %v9730_v45 = vld [vmem:[#allocation3 + $0x26] sm:$0xff]  ;;  %v4351_v57 = vmax.f32 %v4296_v50, 0.0  ;;  %v2907_v43 = vadd.f32 %v2852_v38, %v2462_v52  ;;  %v3420_v50 = vld [vmem:[%s8259_s29 + $0x10d] sm:$0xff] }
 0x337   : > { %v5547_v40 = vpack.c.bf16 %v9730_v45, %v9728_v17  ;;  %v3956_v33 = vpop.permute.xlu1 %3955 }
 0x338   : > { %v4238_v11 = vadd.f32 %v4183_v10, %v3793_v44  ;;  %4407 = vst.msk [vmem:[#allocation2 + $0x50] sm:$0xff] %vm4396_vm0, %v4351_v57  ;;  %v4184_v13 = vmul.f32 %v9446_v24, %v3956_v33  ;;  %4045 = vperm.xlu1 %7590, %v3867_v14   ;;  %v3352_v46 = vadd.f32 %v3297_v20, %v2907_v43  ;;  %v3421_v33 = vld [vmem:[%s8259_s29 + $0x115] sm:$0xff]  ;;  %v12131_v43 = vld [vmem:[#allocation64_spill] sm:$0xff] }
 0x339   : > { %7503 = vmatmul.mubr.msk.bf16.vlgmr.msra.gmra.mrb[0].mxu1 %vm4396_vm0, %v5547_v40  ;;  %v3486_v7 = vpop.permute.xlu0 %3485  ;;  %3150 = vperm.xlu0 %7589, %v2976_v54   ;;  %v3343_v44 = vadd.f32 %v3288_v62, %v2898_v22  ;;  %v3870_v40 = vld [vmem:[%s8259_s29 + $0x136] sm:$0xff]  ;;  %v2454_v14 = vadd.f32 %v9701_v4, %v2009_v0 }
 0x33a   : > { %v4297_v27 = vadd.f32 %v9466_v12, %v4238_v11  ;;  %7506 = vmatprep.mubr.msk.bf16.mxu1 %vm8197_vm1, %v12053_v1  ;;  %v4239_v42 = vadd.f32 %v4184_v13, %v3794_v16  ;;  %v3797_v19 = vadd.f32 %v3742_v30, %v3352_v46  ;;  %v3734_v25 = vmul.f32 %v9419_v8, %v3486_v7  ;;  %v2538_v20 = vld [vmem:[%s8259_s29 + $0x138] sm:$0xff]  ;;  %v12129_v62 = vld [vmem:[#allocation61_spill] sm:$0xff] }
 0x33b   : > { %v3966_v2 = vpop.permute.xlu1 %3965  ;;  %v3788_v57 = vadd.f32 %v3733_v37, %v3343_v44  ;;  %v2899_v4 = vadd.f32 %v2844_v49, %v2454_v14  ;;  %v12135_v0 = vld [vmem:[#allocation66_spill] sm:$0xff]  ;;  %v9816_v49 = vld [vmem:[%s11806_s1] ss:$0 sm:$0xff]  ;;  %v12136_v46 = vld [vmem:[#allocation17_spill] sm:$0xff] }
 0x33c   : > { %v4352_v55 = vmax.f32 %v4297_v27, 0.0  ;;  %v4298_v34 = vadd.f32 %v9466_v12, %v4239_v42  ;;  %v4186_v61 = vmul.f32 %v9446_v24, %v3966_v2  ;;  %4055 = vperm.xlu1 %7590, %v3869_v60   ;;  %v1073_v60 = vmul.f32 %v9317_v53, %v12129_v62  ;;  %v12130_v42 = vld [vmem:[#allocation63_spill] sm:$0xff]  ;;  %v12137_v44 = vld [vmem:[#allocation18_spill] sm:$0xff]  ;;  %v12145_v62 = vld [vmem:[#allocation113_spill] sm:$0xff] }
 0x33d   : > { %v3961_v31 = vpop.permute.xlu0 %3960  ;;  %4050 = vperm.xlu0 %7589, %v3868_v41   ;;  %v3344_v59 = vadd.f32 %v3289_v39, %v2899_v4  ;;  %v1075_v41 = vmul.f32 %v9317_v53, %v12130_v42  ;;  %v1076_v28 = vmul.f32 %v9317_v53, %v12135_v0  ;;  %v12139_v14 = vld [vmem:[#allocation19_spill] sm:$0xff]  ;;  %v12147_v42 = vld [vmem:[#allocation156_spill] sm:$0xff] }
 0x33e   : > { %4408 = vst.msk [vmem:[#allocation2 + $0x58] sm:$0xff] %vm4396_vm0, %v4352_v55  ;;  %v4185_v5 = vmul.f32 %v9446_v24, %v3961_v31  ;;  %v4353_v10 = vmax.f32 %v4298_v34, 0.0  ;;  %v4241_v36 = vadd.f32 %v4186_v61, %v3796_v26  ;;  %v2537_v55 = vld [vmem:[%s8259_s29 + $0x130] sm:$0xff]  ;;  %v1074_v26 = vmul.f32 %v9317_v53, %v12131_v43 }
 0x33f   : > { %v3926_v15 = vpop.permute.xlu1 %3925  ;;  %v3789_v7 = vadd.f32 %v3734_v25, %v3344_v59  ;;  %v12134_v61 = vld [vmem:[#allocation65_spill] sm:$0xff]  ;;  %v633_v39 = vmul.f32 %v9816_v49, %v12139_v14 }
 0x340   : > { %v4240_v18 = vadd.f32 %v4185_v5, %v3795_v58  ;;  %4409 = vst.msk [vmem:[#allocation2 + $0x60] sm:$0xff] %vm4396_vm0, %v4353_v10  ;;  %v4300_v23 = vadd.f32 %v9466_v12, %v4241_v36  ;;  %v4178_v54 = vmul.f32 %v9446_v24, %v3926_v15  ;;  %3590 = vperm.xlu1 %7590, %v3420_v50   ;;  %v12133_v58 = vld [vmem:[#allocation16_spill] sm:$0xff] }
 0x341   : > { %v3971_v21 = vpop.permute.xlu0 %3970  ;;  %4060 = vperm.xlu0 %7589, %v3870_v40   ;;  %v628_v34 = vmul.f32 %v9312_v56, %v12133_v58  ;;  %v1077_v5 = vmul.f32 %v9317_v53, %v12134_v61  ;;  %v630_v50 = vmul.f32 %v9816_v49, %v12137_v44  ;;  %v9825_v53 = vld [vmem:[%s11806_s1 + $0x1] ss:$0 sm:$0xff]  ;;  %v12138_v10 = vld [vmem:[#allocation68_spill] sm:$0xff] }
 0x342   : > { %v4299_v11 = vadd.f32 %v9466_v12, %v4240_v18  ;;  %v4187_v48 = vmul.f32 %v9446_v24, %v3971_v21  ;;  %v4355_v29 = vmax.f32 %v4300_v23, 0.0  ;;  %v4233_v16 = vadd.f32 %v4178_v54, %v3788_v57  ;;  %v2540_v40 = vld [vmem:[%s8259_s29 + $0x148] sm:$0xff]  ;;  %v12141_v21 = vld [vmem:[#allocation109_spill] sm:$0xff] }
 0x343   : > { %v9784_v27 = vpop.permute.xlu1 %3085  ;;  %v1078_v36 = vmul.f32 %v9825_v53, %v12138_v10  ;;  %v1128_v15 = vadd.f32 %v1073_v60, %v628_v34  ;;  %v1519_v23 = vmul.f32 %v9338_v3, %v12141_v21  ;;  %v1130_v4 = vadd.f32 %v1075_v41, %v630_v50  ;;  %v3865_v43 = vld [vmem:[%s8259_s29 + $0x10e] sm:$0xff] }
 0x344   : > { %v4354_v38 = vmax.f32 %v4299_v11, 0.0  ;;  %v4242_v47 = vadd.f32 %v4187_v48, %v3797_v19  ;;  %4411 = vst.msk [vmem:[#allocation2 + $0x70] sm:$0xff] %vm4396_vm0, %v4355_v29  ;;  %v4292_v52 = vadd.f32 %v9466_v12, %v4233_v16  ;;  %2730 = vperm.xlu1 %7590, %v2536_v63   ;;  %v12140_v19 = vld [vmem:[#allocation20_spill] sm:$0xff]  ;;  %v2539_v48 = vld [vmem:[%s8259_s29 + $0x140] sm:$0xff]  ;;  %v12142_v63 = vld [vmem:[#allocation110_spill] sm:$0xff] }
 0x345   : > { %v3931_v13 = vpop.permute.xlu0 %3930  ;;  %3595 = vperm.xlu0 %7589, %v3421_v33   ;;  %v632_v57 = vmul.f32 %v9816_v49, %v12140_v19  ;;  %v4489_v11 = vld [vmem:[#allocation2 + $0x50] ss:$2 sm:$0xff]  ;;  %v4545_v54 = vld [vmem:[#allocation2 + $0x51] ss:$2 sm:$0xff] }
 0x346   : > { %4410 = vst.msk [vmem:[#allocation2 + $0x68] sm:$0xff] %vm4396_vm0, %v4354_v38  ;;  %v4301_v8 = vadd.f32 %v9466_v12, %v4242_v47  ;;  %v4179_v35 = vmul.f32 %v9446_v24, %v3931_v13  ;;  %v4347_v22 = vmax.f32 %v4292_v52, 0.0  ;;  %v12132_v24 = vld [vmem:[#allocation15_spill] sm:$0xff]  ;;  %v2541_v34 = vld [vmem:[%s8259_s29 + $0x150] sm:$0xff] }
 0x347   : > { %v9799_v37 = vpop.permute.xlu1 %3095  ;;  %v629_v31 = vmul.f32 %v9312_v56, %v12132_v24  ;;  %v631_v56 = vmul.f32 %v9816_v49, %v12136_v46  ;;  %v1132_v59 = vadd.f32 %v1077_v5, %v632_v57  ;;  %v12143_v52 = vld [vmem:[#allocation111_spill] sm:$0xff] }
 0x348   : > { %v4356_v51 = vmax.f32 %v4301_v8, 0.0  ;;  %v4234_v30 = vadd.f32 %v4179_v35, %v3789_v7  ;;  %4403 = vst.msk [vmem:[#allocation2 + $0x30] sm:$0xff] %vm4396_vm0, %v4347_v22  ;;  %2740 = vperm.xlu1 %7590, %v2538_v20   ;;  %v12144_v7 = vld [vmem:[#allocation112_spill] sm:$0xff]  ;;  %v1133_v20 = vadd.f32 %v1078_v36, %v633_v39  ;;  %v12146_v22 = vld [vmem:[#allocation114_spill] sm:$0xff]  ;;  %v12149_v5 = vld [vmem:[#allocation159_spill] sm:$0xff] }
 0x349   : > { %v9801_v2 = vpop.permute.xlu0 %3090  ;;  %2735 = vperm.xlu0 %7589, %v2537_v55   ;;  %v1129_v25 = vadd.f32 %v1074_v26, %v629_v31  ;;  %v1131_v13 = vadd.f32 %v1076_v28, %v631_v56  ;;  %v9860_v55 = vld [vmem:[%s11806_s1 + $0x3] ss:$0 sm:$0xff]  ;;  %v4595_v31 = vadd.f32 %v4545_v54, %v4489_v11  ;;  %v12150_v28 = vld [vmem:[#allocation160_spill] sm:$0xff]  ;;  %v12151_v56 = vld [vmem:[#allocation161_spill] sm:$0xff] }
 0x34a   : > { %4412 = vst.msk [vmem:[#allocation2 + $0x78] sm:$0xff] %vm4396_vm0, %v4356_v51  ;;  %v4293_v18 = vadd.f32 %v9466_v12, %v4234_v30  ;;  %v9841_v12 = vld [vmem:[%s11806_s1 + $0x2] ss:$0 sm:$0xff]  ;;  %v1963_v41 = vmul.f32 %v9860_v55, %v12147_v42  ;;  %v12148_v30 = vld [vmem:[#allocation158_spill] sm:$0xff]  ;;  %v1964_v0 = vmul.f32 %v9860_v55, %v12149_v5  ;;  %v1967_v46 = vmul.f32 %v9860_v55, %v12150_v28  ;;  %v9886_v11 = vld [vmem:[%s11806_s1 + $0x4] ss:$0 sm:$0xff] }
 0x34b   : > { %v1518_v29 = vmul.f32 %v9841_v12, %v12142_v63  ;;  %v9845_v33 = vpop.permute.xlu1 %3105  ;;  %v1521_v8 = vmul.f32 %v9841_v12, %v12143_v52  ;;  %v1520_v35 = vmul.f32 %v9841_v12, %v12144_v7  ;;  %v1523_v60 = vmul.f32 %v9841_v12, %v12145_v62  ;;  %v12152_v39 = vld [vmem:[#allocation163_spill] sm:$0xff]  ;;  %v12153_v54 = vld [vmem:[#allocation206_spill] sm:$0xff]  ;;  %v12154_v52 = vld [vmem:[#allocation205_spill] sm:$0xff] }
 0x34c   : > { %v4348_v47 = vmax.f32 %v4293_v18, 0.0  ;;  %2750 = vperm.xlu1 %7590, %v2540_v40   ;;  %v1522_v51 = vmul.f32 %v9841_v12, %v12146_v22  ;;  %v1574_v26 = vadd.f32 %v1519_v23, %v1129_v25  ;;  %v1965_v24 = vmul.f32 %v9860_v55, %v12148_v30  ;;  %v2981_v25 = vld [vmem:[%s8259_s29 + $0x13c] sm:$0xff]  ;;  %v9903_v22 = vld [vmem:[%s11806_s1 + $0x5] ss:$0 sm:$0xff]  ;;  %v2983_v5 = vld [vmem:[%s8259_s29 + $0x14c] sm:$0xff] }
 0x34d   : > { %v4491_v38 = vld [vmem:[#allocation2 + $0x60] ss:$2 sm:$0xff]  ;;  %v4547_v16 = vld [vmem:[#allocation2 + $0x61] ss:$2 sm:$0xff]  ;;  %v9847_v3 = vpop.permute.xlu0 %3100  ;;  %2745 = vperm.xlu0 %7589, %v2539_v48   ;;  %v1573_v61 = vadd.f32 %v1518_v29, %v1128_v15  ;;  %v1966_v44 = vmul.f32 %v9860_v55, %v12151_v56  ;;  %v1576_v40 = vadd.f32 %v1521_v8, %v1131_v13  ;;  %v1575_v14 = vadd.f32 %v1520_v35, %v1130_v4  ;;  %v12158_v28 = vld [vmem:[#allocation210_spill] sm:$0xff] }
 0x34e   : > { %4404 = vst.msk [vmem:[#allocation2 + $0x38] sm:$0xff] %vm4396_vm0, %v4348_v47  ;;  %v9868_v58 = vadd.f32 %v4547_v16, %v4491_v38  ;;  %v1968_v19 = vmul.f32 %v9860_v55, %v12152_v39  ;;  %v1578_v15 = vadd.f32 %v1523_v60, %v1133_v20  ;;  %v1577_v21 = vadd.f32 %v1522_v51, %v1132_v59  ;;  %v3866_v16 = vld [vmem:[%s8259_s29 + $0x116] sm:$0xff]  ;;  %v12155_v62 = vld [vmem:[#allocation207_spill] sm:$0xff] }
 0x34f   : > { %v3531_v36 = vpop.permute.xlu1 %3530  ;;  %v2018_v23 = vadd.f32 %v1963_v41, %v1573_v61  ;;  %v2408_v48 = vmul.f32 %v9886_v11, %v12153_v54  ;;  %v2020_v4 = vadd.f32 %v1965_v24, %v1575_v14  ;;  %v4633_v63 = vrot.slane %v4595_v31, 3  ;;  %v12156_v51 = vld [vmem:[#allocation254_spill] sm:$0xff]  ;;  %v12157_v24 = vld [vmem:[#allocation208_spill] sm:$0xff]  ;;  %v9918_v56 = vld [vmem:[%s11806_s1 + $0x6] ss:$0 sm:$0xff] }
 0x350   : > { %4035 = vperm.xlu1 %7590, %v3865_v43   ;;  %v4644_v29 = vrot.slane %v9868_v58, 3  ;;  %v2019_v47 = vadd.f32 %v1964_v0, %v1574_v26  ;;  %v2022_v59 = vadd.f32 %v1967_v46, %v1577_v21  ;;  %v2021_v13 = vadd.f32 %v1966_v44, %v1576_v40  ;;  %v12159_v14 = vld [vmem:[#allocation256_spill] sm:$0xff] }
 0x351   : > { %v4493_v50 = vld [vmem:[#allocation2 + $0x70] ss:$2 sm:$0xff]  ;;  %v4549_v10 = vld [vmem:[#allocation2 + $0x71] ss:$2 sm:$0xff]  ;;  %v9877_v18 = vpop.permute.xlu0 %3110  ;;  %2755 = vperm.xlu0 %7589, %v2541_v34   ;;  %v2409_v8 = vmul.f32 %v9886_v11, %v12154_v52  ;;  %v9896_v20 = vadd.f32 %v1968_v19, %v1578_v15  ;;  %v2411_v60 = vmul.f32 %v9886_v11, %v12155_v62  ;;  %v2853_v42 = vmul.f32 %v9903_v22, %v12156_v51 }
 0x352   : > { %v9881_v57 = vadd.f32 %v4549_v10, %v4493_v50  ;;  %v2463_v30 = vadd.f32 %v2408_v48, %v2018_v23  ;;  %v2410_v34 = vmul.f32 %v9886_v11, %v12157_v24  ;;  %v2412_v46 = vmul.f32 %v9886_v11, %v12158_v28  ;;  %v2982_v10 = vld [vmem:[%s8259_s29 + $0x144] sm:$0xff]  ;;  %v12160_v48 = vld [vmem:[#allocation257_spill] sm:$0xff] }
 0x353   : > { %v3541_v7 = vpop.permute.xlu1 %3540  ;;  %v3298_v44 = vmul.f32 %v9918_v56, %v9784_v27  ;;  %v4634_v50 = vsel %vm4620_vm4, %v4632_v9, %v4633_v63  ;;  %v2464_v40 = vadd.f32 %v2409_v8, %v2019_v47  ;;  %v2466_v23 = vadd.f32 %v2411_v60, %v2021_v13  ;;  %v12161_v63 = vld [vmem:[#allocation258_spill] sm:$0xff]  ;;  %v12162_v52 = vld [vmem:[#allocation209_spill] sm:$0xff] }
 0x354   : > { %v4645_v38 = vrot.slane %v9881_v57, 3  ;;  %3175 = vperm.xlu1 %7590, %v2981_v25   ;;  %v2908_v54 = vadd.f32 %v2853_v42, %v2463_v30  ;;  %v2854_v27 = vmul.f32 %v9903_v22, %v12160_v48  ;;  %v3743_v9 = vmul.f32 %v9933_v32, %v3531_v36  ;;  %v2985_v13 = vld [vmem:[%s8259_s29 + $0x15c] sm:$0xff] }
 0x355   : > { %v3536_v35 = vpop.permute.xlu0 %3535  ;;  %v4485_v43 = vld [vmem:[#allocation2 + $0x30] ss:$2 sm:$0xff]  ;;  %v4541_v26 = vld [vmem:[#allocation2 + $0x31] ss:$2 sm:$0xff]  ;;  %4040 = vperm.xlu0 %7589, %v3866_v16   ;;  %v2465_v25 = vadd.f32 %v2410_v34, %v2020_v4  ;;  %v3300_v47 = vmul.f32 %v9918_v56, %v9799_v37  ;;  %v2413_v8 = vmul.f32 %v9886_v11, %v12162_v52  ;;  %v2467_v62 = vadd.f32 %v2412_v46, %v2022_v59  ;;  %v12163_v42 = vld [vmem:[#allocation259_spill] sm:$0xff] }
 0x356   : > { %v4646_v41 = vsel %vm4620_vm4, %v4644_v29, %v4645_v38  ;;  %v4593_v61 = vadd.f32 %v4541_v26, %v4485_v43  ;;  %v2857_v29 = vmul.f32 %v9903_v22, %v12161_v63  ;;  %v3353_v60 = vadd.f32 %v3298_v44, %v2908_v54  ;;  %v2984_v4 = vld [vmem:[%s8259_s29 + $0x154] sm:$0xff]  ;;  %v9957_v34 = vld [vmem:[%s11806_s1 + $0x8] ss:$0 sm:$0xff]  ;;  %v3426_v46 = vld [vmem:[%s8259_s29 + $0x13d] sm:$0xff] }
 0x357   : > { %v4651_v0 = vadd.f32 %v4646_v41, %v4595_v31  ;;  %v2855_v31 = vmul.f32 %v9903_v22, %v12159_v14  ;;  %v3551_v19 = vpop.permute.xlu1 %3550  ;;  %v3299_v36 = vmul.f32 %v9918_v56, %v9801_v2  ;;  %v2856_v41 = vmul.f32 %v9903_v22, %v12163_v42 }
 0x358   : > { %v4638_v39 = vadd.f32 %v4634_v50, %v4593_v61  ;;  %3185 = vperm.xlu1 %7590, %v2983_v5   ;;  %v3302_v37 = vmul.f32 %v9918_v56, %v9845_v33  ;;  %v3745_v43 = vmul.f32 %v9933_v32, %v3541_v7  ;;  %v2909_v59 = vadd.f32 %v2854_v27, %v2464_v40  ;;  %v2986_v40 = vld [vmem:[%s8259_s29 + $0x164] sm:$0xff] }
 0x359   : > { %v3546_v15 = vpop.permute.xlu0 %3545  ;;  %v4653_v21 = vmul.f32 0.25, %v4651_v0  ;;  %3180 = vperm.xlu0 %7589, %v2982_v10   ;;  %v2910_v51 = vadd.f32 %v2855_v31, %v2465_v25  ;;  %v3798_v24 = vadd.f32 %v3743_v9, %v3353_v60  ;;  %v3744_v2 = vmul.f32 %v9933_v32, %v3536_v35  ;;  %v12164_v0 = vld [vmem:[#allocation260_spill] sm:$0xff] }
 0x35a   : > { %v4640_v16 = vmul.f32 0.25, %v4638_v39  ;;  %v2912_v5 = vadd.f32 %v2857_v29, %v2467_v62  ;;  %v2858_v33 = vmul.f32 %v9903_v22, %v12164_v0  ;;  %v3301_v28 = vmul.f32 %v9918_v56, %v9847_v3  ;;  %v9972_v3 = vld [vmem:[%s11811_s6] ss:$0 sm:$0xff]  ;;  %v3428_v29 = vld [vmem:[%s8259_s29 + $0x14d] sm:$0xff]  ;;  %v3429_v0 = vld [vmem:[%s8259_s29 + $0x155] sm:$0xff] }
 0x35b   : > { %4742 = vst.msk [vmem:[#allocation3 + $0x36] sm:$0xf0] %vm4741_vm6, %v4653_v21  ;;  %v3976_v26 = vpop.permute.xlu1 %3975  ;;  %v3355_v7 = vadd.f32 %v3300_v47, %v2910_v51  ;;  %v2468_v35 = vadd.f32 %v2413_v8, %v9896_v20  ;;  %v3354_v44 = vadd.f32 %v3299_v36, %v2909_v59  ;;  %v3747_v50 = vmul.f32 %v9933_v32, %v3551_v19  ;;  %v3427_v8 = vld [vmem:[%s8259_s29 + $0x145] sm:$0xff]  ;;  %v3430_v59 = vld [vmem:[%s8259_s29 + $0x15d] sm:$0xff] }
 0x35c   : > { %4740 = vst.msk [vmem:[#allocation3 + $0x2e] sm:$0xff] %vm4396_vm0, %v4640_v16  ;;  %v4188_v61 = vmul.f32 %v9957_v34, %v3976_v26  ;;  %3195 = vperm.xlu1 %7590, %v2985_v13   ;;  %v2911_v14 = vadd.f32 %v2856_v41, %v2466_v23  ;;  %v3357_v31 = vadd.f32 %v3302_v37, %v2912_v5 }
 0x35d   : > { %v3556_v30 = vpop.permute.xlu0 %3555  ;;  %3190 = vperm.xlu0 %7589, %v2984_v4   ;;  %v3800_v39 = vadd.f32 %v3745_v43, %v3355_v7  ;;  %v3746_v21 = vmul.f32 %v9933_v32, %v3546_v15  ;;  %v3799_v27 = vadd.f32 %v3744_v2, %v3354_v44  ;;  %v2913_v25 = vadd.f32 %v2858_v33, %v2468_v35 }
 0x35e   : > { %v4243_v10 = vadd.f32 %v4188_v61, %v3798_v24  ;;  %v3356_v15 = vadd.f32 %v3301_v28, %v2911_v14  ;;  %v3303_v63 = vmul.f32 %v9918_v56, %v9877_v18  ;;  %v3802_v16 = vadd.f32 %v3747_v50, %v3357_v31  ;;  %v3871_v50 = vld [vmem:[%s8259_s29 + $0x13e] sm:$0xff] }
 0x35f   : > { %v3986_v54 = vpop.permute.xlu1 %3985  ;;  %v3748_v36 = vmul.f32 %v9933_v32, %v3556_v30  ;;  %v3431_v31 = vld [vmem:[%s8259_s29 + $0x165] sm:$0xff] }
 0x360   : > { %v4302_v20 = vadd.f32 %v9972_v3, %v4243_v10  ;;  %v4190_v19 = vmul.f32 %v9957_v34, %v3986_v54  ;;  %3620 = vperm.xlu1 %7590, %v3426_v46   ;;  %v3801_v60 = vadd.f32 %v3746_v21, %v3356_v15  ;;  %v3358_v30 = vadd.f32 %v3303_v63, %v2913_v25 }
 0x361   : > { %v3981_v48 = vpop.permute.xlu0 %3980  ;;  %3200 = vperm.xlu0 %7589, %v2986_v40  }
 0x362   : > { %v4189_v23 = vmul.f32 %v9957_v34, %v3981_v48  ;;  %v9977_v9 = vld [vmem:[#allocation3 + $0x36] sm:$0xff]  ;;  %v4357_v47 = vmax.f32 %v4302_v20, 0.0  ;;  %v4245_v13 = vadd.f32 %v4190_v19, %v3800_v39  ;;  %v3803_v28 = vadd.f32 %v3748_v36, %v3358_v30  ;;  %v3872_v20 = vld [vmem:[%s8259_s29 + $0x146] sm:$0xff] }
 0x363   : > { %v9983_v62 = vld [vmem:[#allocation3 + $0x2e] sm:$0xff]  ;;  %v3996_v4 = vpop.permute.xlu1 %3995  ;;  %v3873_v48 = vld [vmem:[%s8259_s29 + $0x14e] sm:$0xff] }
 0x364   : > { %v4244_v52 = vadd.f32 %v4189_v23, %v3799_v27  ;;  %v5550_v42 = vpack.c.bf16 %v9977_v9, %v9983_v62  ;;  %4413 = vst.msk [vmem:[#allocation2 + $0x80] sm:$0xff] %vm4396_vm0, %v4357_v47  ;;  %v4304_v41 = vadd.f32 %v9972_v3, %v4245_v13  ;;  %v4192_v43 = vmul.f32 %v9957_v34, %v3996_v4  ;;  %v3874_v47 = vld [vmem:[%s8259_s29 + $0x156] sm:$0xff] }
 0x365   : > { %v3991_v51 = vpop.permute.xlu0 %3990  ;;  %3630 = vperm.xlu1 %7590, %v3428_v29   ;;  %3625 = vperm.xlu0 %7589, %v3427_v8   ;;  %v3875_v29 = vld [vmem:[%s8259_s29 + $0x15e] sm:$0xff] }
 0x366   : > { %v4303_v37 = vadd.f32 %v9972_v3, %v4244_v52  ;;  %v4191_v26 = vmul.f32 %v9957_v34, %v3991_v51  ;;  %7507 = vmatmul.mubr.msk.bf16.gmra.mrb[4].mxu1 %vm4396_vm0, %v5550_v42  ;;  %v4359_v24 = vmax.f32 %v4304_v41, 0.0  ;;  %v4247_v61 = vadd.f32 %v4192_v43, %v3802_v16  ;;  %v2542_v51 = vld [vmem:[%s8259_s29 + $0x158] sm:$0xff]  ;;  %v3876_v41 = vld [vmem:[%s8259_s29 + $0x166] sm:$0xff] }
 0x367   : > { %7510 = vmatprep.mubr.msk.bf16.mxu1 %vm8197_vm1, %v12053_v1  ;;  %v10000_v33 = vpop.permute.xlu1 %2680 }
 0x368   : > { %v4358_v2 = vmax.f32 %v4303_v37, 0.0  ;;  %v4246_v5 = vadd.f32 %v4191_v26, %v3801_v60  ;;  %4415 = vst.msk [vmem:[#allocation2 + $0x90] sm:$0xff] %vm4396_vm0, %v4359_v24  ;;  %v4306_v46 = vadd.f32 %v9972_v3, %v4247_v61  ;;  %v12165_v37 = vld [vmem:[#allocation69_spill] sm:$0xff]  ;;  %v12167_v61 = vld [vmem:[#allocation118_spill] sm:$0xff] }
 0x369   : > { %v4001_v7 = vpop.permute.xlu0 %4000  ;;  %3640 = vperm.xlu1 %7590, %v3430_v59   ;;  %3635 = vperm.xlu0 %7589, %v3429_v0   ;;  %v1081_v43 = vmul.f32 %v9825_v53, %v12165_v37  ;;  %v2544_v0 = vld [vmem:[%s8259_s29 + $0x168] sm:$0xff] }
 0x36a   : > { %4414 = vst.msk [vmem:[#allocation2 + $0x88] sm:$0xff] %vm4396_vm0, %v4358_v2  ;;  %v4305_v35 = vadd.f32 %v9972_v3, %v4246_v5  ;;  %v4193_v44 = vmul.f32 %v9957_v34, %v4001_v7  ;;  %v4361_v10 = vmax.f32 %v4306_v46, 0.0  ;;  %v1526_v5 = vmul.f32 %v9841_v12, %v12167_v61  ;;  %v2543_v46 = vld [vmem:[%s8259_s29 + $0x160] sm:$0xff] }
 0x36b   : > { %v10009_v39 = vpop.permute.xlu1 %2690 }
 0x36c   : > { %v4360_v40 = vmax.f32 %v4305_v35, 0.0  ;;  %v4248_v14 = vadd.f32 %v4193_v44, %v3803_v28  ;;  %4417 = vst.msk [vmem:[#allocation2 + $0xa0] sm:$0xff] %vm4396_vm0, %v4361_v10  ;;  %v12168_v10 = vld [vmem:[#allocation71_spill] sm:$0xff] }
 0x36d   : > { %v10011_v21 = vpop.permute.xlu0 %2685  ;;  %4065 = vperm.xlu1 %7590, %v3871_v50   ;;  %3645 = vperm.xlu0 %7589, %v3431_v31  }
 0x36e   : > { %4416 = vst.msk [vmem:[#allocation2 + $0x98] sm:$0xff] %vm4396_vm0, %v4360_v40  ;;  %v4307_v54 = vadd.f32 %v9972_v3, %v4248_v14  ;;  %v1083_v40 = vmul.f32 %v9825_v53, %v12168_v10  ;;  %v12169_v14 = vld [vmem:[#allocation164_spill] sm:$0xff]  ;;  %v12179_v10 = vld [vmem:[#allocation119_spill] sm:$0xff] }
 0x36f   : > { %v10018_v25 = vpop.permute.xlu1 %3125  ;;  %v1971_v31 = vmul.f32 %v9860_v55, %v12169_v14  ;;  %v1529_v14 = vmul.f32 %v9841_v12, %v12179_v10 }
 0x370   : > { %v4362_v27 = vmax.f32 %v4307_v54, 0.0 }
 0x371   : > { %v4495_v19 = vld [vmem:[#allocation2 + $0x80] ss:$2 sm:$0xff]  ;;  %v4551_v23 = vld [vmem:[#allocation2 + $0x81] ss:$2 sm:$0xff]  ;;  %v10020_v15 = vpop.permute.xlu0 %2695  ;;  %4075 = vperm.xlu1 %7590, %v3873_v48   ;;  %4070 = vperm.xlu0 %7589, %v3872_v20  }
 0x372   : > { %v4598_v63 = vadd.f32 %v4551_v23, %v4495_v19  ;;  %4418 = vst.msk [vmem:[#allocation2 + $0xa8] sm:$0xff] %vm4396_vm0, %v4362_v27  ;;  %v12170_v27 = vld [vmem:[#allocation26_spill] sm:$0xff]  ;;  %v12171_v19 = vld [vmem:[#allocation72_spill] sm:$0xff] }
 0x373   : > { %v10025_v8 = vpop.permute.xlu1 %3135  ;;  %v638_v20 = vmul.f32 %v9816_v49, %v12170_v27  ;;  %v1082_v23 = vmul.f32 %v9825_v53, %v12171_v19  ;;  %v3306_v19 = vmul.f32 %v9918_v56, %v10018_v25 }
 0x374   : > { %v4647_v16 = vrot.slane %v4598_v63, 3 }
 0x375   : > { %v4497_v13 = vld [vmem:[#allocation2 + $0x90] ss:$2 sm:$0xff]  ;;  %v4553_v52 = vld [vmem:[#allocation2 + $0x91] ss:$2 sm:$0xff]  ;;  %v10027_v60 = vpop.permute.xlu0 %3130  ;;  %4085 = vperm.xlu1 %7590, %v3875_v29   ;;  %4080 = vperm.xlu0 %7589, %v3874_v47  }
 0x376   : > { %v4648_v36 = vsel %vm4620_vm4, %v4645_v38, %v4647_v16  ;;  %v4599_v42 = vadd.f32 %v4553_v52, %v4497_v13  ;;  %v2987_v16 = vld [vmem:[%s8259_s29 + $0x16c] sm:$0xff] }
 0x377   : > { %v4652_v4 = vadd.f32 %v4648_v36, %v9868_v58  ;;  %v10037_v59 = vpop.permute.xlu1 %2670  ;;  %v12166_v58 = vld [vmem:[#allocation24_spill] sm:$0xff]  ;;  %v12173_v36 = vld [vmem:[#allocation214_spill] sm:$0xff] }
 0x378   : > { %v636_v2 = vmul.f32 %v9816_v49, %v12166_v58  ;;  %v4657_v7 = vrot.slane %v4599_v42, 3  ;;  %v12172_v13 = vld [vmem:[#allocation120_spill] sm:$0xff] }
 0x379   : > { %v4499_v26 = vld [vmem:[#allocation2 + $0xa0] ss:$2 sm:$0xff]  ;;  %v4555_v30 = vld [vmem:[#allocation2 + $0xa1] ss:$2 sm:$0xff]  ;;  %v10039_v57 = vpop.permute.xlu0 %3140  ;;  %v4654_v38 = vmul.f32 0.25, %v4652_v4  ;;  %2760 = vperm.xlu1 %7590, %v2542_v51   ;;  %4090 = vperm.xlu0 %7589, %v3876_v41   ;;  %v1528_v52 = vmul.f32 %v9841_v12, %v12172_v13  ;;  %v2416_v4 = vmul.f32 %v9886_v11, %v12173_v36  ;;  %v2545_v41 = vld [vmem:[%s8259_s29 + $0x170] sm:$0xff] }
 0x37a   : > { %v4600_v24 = vadd.f32 %v4555_v30, %v4499_v26  ;;  %v1136_v35 = vadd.f32 %v1081_v43, %v636_v2  ;;  %v12175_v43 = vld [vmem:[#allocation74_spill] sm:$0xff]  ;;  %v12176_v30 = vld [vmem:[#allocation117_spill] sm:$0xff]  ;;  %v1138_v2 = vadd.f32 %v1083_v40, %v638_v20 }
 0x37b   : > { %4743 = vst.msk [vmem:[#allocation3 + $0x3e] sm:$0x3f] %vm4451_vm7, %v4654_v38  ;;  %v3571_v44 = vpop.permute.xlu1 %3570  ;;  %v1084_v26 = vmul.f32 %v9825_v53, %v12175_v43  ;;  %v1527_v38 = vmul.f32 %v9841_v12, %v12176_v30  ;;  %v12183_v36 = vld [vmem:[#allocation213_spill] sm:$0xff]  ;;  %v2862_v30 = vmul.f32 %v9903_v22, %v10011_v21 }
 0x37c   : > { %v4658_v28 = vrot.slane %v4600_v24, 3  ;;  %v1581_v29 = vadd.f32 %v1526_v5, %v1136_v35  ;;  %v12177_v5 = vld [vmem:[#allocation166_spill] sm:$0xff]  ;;  %v3751_v25 = vmul.f32 %v9933_v32, %v3571_v44 }
 0x37d   : > { %v10048_v50 = vpop.permute.xlu0 %2675  ;;  %2770 = vperm.xlu1 %7590, %v2544_v0   ;;  %2765 = vperm.xlu0 %7589, %v2543_v46   ;;  %v1973_v0 = vmul.f32 %v9860_v55, %v12177_v5  ;;  %v2990_v5 = vld [vmem:[%s8259_s29 + $0x184] sm:$0xff] }
 0x37e   : > { %v4659_v54 = vsel %vm4620_vm4, %v4657_v7, %v4658_v28  ;;  %v4663_v48 = vadd.f32 %v4658_v28, %v4599_v42  ;;  %v12174_v42 = vld [vmem:[#allocation23_spill] sm:$0xff]  ;;  %v2026_v61 = vadd.f32 %v1971_v31, %v1581_v29  ;;  %v2861_v7 = vmul.f32 %v9903_v22, %v10000_v33  ;;  %v12178_v28 = vld [vmem:[#allocation25_spill] sm:$0xff]  ;;  %v12181_v33 = vld [vmem:[#allocation216_spill] sm:$0xff] }
 0x37f   : > { %v4662_v47 = vadd.f32 %v4659_v54, %v4598_v63  ;;  %v637_v37 = vmul.f32 %v9816_v49, %v12174_v42  ;;  %v3581_v63 = vpop.permute.xlu1 %3580  ;;  %v639_v46 = vmul.f32 %v9816_v49, %v12178_v28  ;;  %v12180_v54 = vld [vmem:[#allocation167_spill] sm:$0xff]  ;;  %v2418_v20 = vmul.f32 %v9886_v11, %v12181_v33  ;;  %v2988_v29 = vld [vmem:[%s8259_s29 + $0x174] sm:$0xff] }
 0x380   : > { %v4665_v51 = vmul.f32 0.25, %v4663_v48  ;;  %v1972_v40 = vmul.f32 %v9860_v55, %v12180_v54  ;;  %v2989_v31 = vld [vmem:[%s8259_s29 + $0x17c] sm:$0xff]  ;;  %v1583_v48 = vadd.f32 %v1528_v52, %v1138_v2  ;;  %v2471_v27 = vadd.f32 %v2416_v4, %v2026_v61 }
 0x381   : > { %v3576_v24 = vpop.permute.xlu0 %3575  ;;  %v4664_v58 = vmul.f32 0.25, %v4662_v47  ;;  %3205 = vperm.xlu1 %7590, %v2987_v16   ;;  %v1137_v35 = vadd.f32 %v1082_v23, %v637_v37  ;;  %2775 = vperm.xlu0 %7589, %v2545_v41   ;;  %v1139_v23 = vadd.f32 %v1084_v26, %v639_v46  ;;  %v12182_v47 = vld [vmem:[#allocation169_spill] sm:$0xff]  ;;  %v2863_v42 = vmul.f32 %v9903_v22, %v10009_v39  ;;  %v12184_v39 = vld [vmem:[#allocation215_spill] sm:$0xff] }
 0x382   : > { %4746 = vst.msk [vmem:[#allocation3 + $0x4e] sm:$0xf] %vm4477_vm2, %v4665_v51  ;;  %v1974_v13 = vmul.f32 %v9860_v55, %v12182_v47  ;;  %v2417_v51 = vmul.f32 %v9886_v11, %v12183_v36  ;;  %v2028_v52 = vadd.f32 %v1973_v0, %v1583_v48  ;;  %v2916_v4 = vadd.f32 %v2861_v7, %v2471_v27 }
 0x383   : > { %4745 = vst.msk [vmem:[#allocation3 + $0x46] sm:$0xfc] %vm4744_vm8, %v4664_v58  ;;  %v1582_v16 = vadd.f32 %v1527_v38, %v1137_v35  ;;  %v10093_v41 = vpop.permute.xlu1 %3115  ;;  %v1584_v43 = vadd.f32 %v1529_v14, %v1139_v23  ;;  %v3432_v38 = vld [vmem:[%s8259_s29 + $0x16d] sm:$0xff]  ;;  %v3308_v61 = vmul.f32 %v9918_v56, %v10025_v8  ;;  %v2419_v44 = vmul.f32 %v9886_v11, %v12184_v39  ;;  %v10112_v8 = vld [vmem:[#allocation3 + $0x3e] sm:$0xff]  ;;  %v12186_v23 = vld [vmem:[#allocation67_spill] sm:$0xff] }
 0x384   : > { %v2473_v58 = vadd.f32 %v2418_v20, %v2028_v52  ;;  %v3361_v2 = vadd.f32 %v3306_v19, %v2916_v4  ;;  %v3307_v28 = vmul.f32 %v9918_v56, %v10027_v60  ;;  %v3753_v10 = vmul.f32 %v9933_v32, %v3581_v63  ;;  %12185 = vst [vmem:[#allocation246_spill] sm:$0xff] %v10112_v8  ;;  %v3434_v63 = vld [vmem:[%s8259_s29 + $0x17d] sm:$0xff]  ;;  %v3433_v19 = vld [vmem:[%s8259_s29 + $0x175] sm:$0xff] }
 0x385   : > { %v3586_v37 = vpop.permute.xlu0 %3585  ;;  %3215 = vperm.xlu1 %7590, %v2989_v31   ;;  %v2027_v26 = vadd.f32 %v1972_v40, %v1582_v16  ;;  %3210 = vperm.xlu0 %7589, %v2988_v29   ;;  %v2029_v0 = vadd.f32 %v1974_v13, %v1584_v43  ;;  %v2864_v48 = vmul.f32 %v9903_v22, %v10020_v15  ;;  %v12245_v29 = vld [vmem:[#allocation132_spill] sm:$0xff] }
 0x386   : > { %v2918_v35 = vadd.f32 %v2863_v42, %v2473_v58  ;;  %v3806_v21 = vadd.f32 %v3751_v25, %v3361_v2  ;;  %v3752_v60 = vmul.f32 %v9933_v32, %v3576_v24  ;;  %v1079_v16 = vmul.f32 %v9825_v53, %v12186_v23  ;;  %v12188_v58 = vld [vmem:[#allocation116_spill] sm:$0xff]  ;;  %v3878_v23 = vld [vmem:[%s8259_s29 + $0x176] sm:$0xff] }
 0x387   : > { %v2472_v7 = vadd.f32 %v2417_v51, %v2027_v26  ;;  %v4016_v46 = vpop.permute.xlu1 %4015  ;;  %v2474_v47 = vadd.f32 %v2419_v44, %v2029_v0  ;;  %v3309_v15 = vmul.f32 %v9918_v56, %v10039_v57  ;;  %v3754_v43 = vmul.f32 %v9933_v32, %v3586_v37  ;;  %v3877_v26 = vld [vmem:[%s8259_s29 + $0x16e] sm:$0xff]  ;;  %v3435_v0 = vld [vmem:[%s8259_s29 + $0x185] sm:$0xff]  ;;  %v12189_v37 = vld [vmem:[#allocation162_spill] sm:$0xff] }
 0x388   : > { %v4196_v14 = vmul.f32 %v9957_v34, %v4016_v46  ;;  %v3363_v33 = vadd.f32 %v3308_v61, %v2918_v35  ;;  %v1524_v2 = vmul.f32 %v9841_v12, %v12188_v58  ;;  %v1969_v46 = vmul.f32 %v9860_v55, %v12189_v37 }
 0x389   : > { %v10110_v54 = vpop.permute.xlu0 %3120  ;;  %3650 = vperm.xlu1 %7590, %v3432_v38   ;;  %v2917_v31 = vadd.f32 %v2862_v30, %v2472_v7  ;;  %3220 = vperm.xlu0 %7589, %v2990_v5   ;;  %v2919_v42 = vadd.f32 %v2864_v48, %v2474_v47  ;;  %v12187_v30 = vld [vmem:[#allocation22_spill] sm:$0xff]  ;;  %v3304_v58 = vmul.f32 %v9918_v56, %v10093_v41 }
 0x38a   : > { %v10114_v40 = vld [vmem:[#allocation3 + $0x46] sm:$0xff]  ;;  %v4251_v20 = vadd.f32 %v4196_v14, %v3806_v21  ;;  %v3808_v36 = vadd.f32 %v3753_v10, %v3363_v33  ;;  %v634_v38 = vmul.f32 %v9816_v49, %v12187_v30  ;;  %v12191_v33 = vld [vmem:[#allocation212_spill] sm:$0xff] }
 0x38b   : > { %v5553_v27 = vpack.c.bf16 %v10114_v40, %v10112_v8  ;;  %v3362_v13 = vadd.f32 %v3307_v28, %v2917_v31  ;;  %v4026_v24 = vpop.permute.xlu1 %4025  ;;  %v3364_v7 = vadd.f32 %v3309_v15, %v2919_v42  ;;  %v12190_v10 = vld [vmem:[#allocation70_spill] sm:$0xff]  ;;  %v2548_v30 = vld [vmem:[%s8259_s29 + $0x188] sm:$0xff] }
 0x38c   : > { %v4310_v51 = vadd.f32 %v9972_v3, %v4251_v20  ;;  %v4198_v52 = vmul.f32 %v9957_v34, %v4026_v24  ;;  %v1134_v28 = vadd.f32 %v1079_v16, %v634_v38  ;;  %v1080_v14 = vmul.f32 %v9825_v53, %v12190_v10  ;;  %v12192_v16 = vld [vmem:[#allocation21_spill] sm:$0xff]  ;;  %v2550_v41 = vld [vmem:[%s8259_s29 + $0x198] sm:$0xff]  ;;  %v10545_v8 = vld [vmem:[#allocation3 + $0x10] sm:$0xff] }
 0x38d   : > { %7511 = vmatmul.mubr.msk.bf16.gmra.mrb[8].mxu1 %vm4396_vm0, %v5553_v27  ;;  %v4021_v4 = vpop.permute.xlu0 %4020  ;;  %3660 = vperm.xlu1 %7590, %v3434_v63   ;;  %v3807_v25 = vadd.f32 %v3752_v60, %v3362_v13  ;;  %v3809_v31 = vadd.f32 %v3754_v43, %v3364_v7  ;;  %v3879_v27 = vld [vmem:[%s8259_s29 + $0x17e] sm:$0xff]  ;;  %v2414_v20 = vmul.f32 %v9886_v11, %v12191_v33  ;;  %v12194_v43 = vld [vmem:[#allocation165_spill] sm:$0xff] }
 0x38e   : > { %7514 = vmatprep.mubr.msk.bf16.mxu1 %vm8197_vm1, %v12053_v1  ;;  %v4197_v57 = vmul.f32 %v9957_v34, %v4021_v4  ;;  %3655 = vperm.xlu0 %7589, %v3433_v19   ;;  %v4365_v61 = vmax.f32 %v4310_v51, 0.0  ;;  %v4253_v5 = vadd.f32 %v4198_v52, %v3808_v36  ;;  %v1579_v63 = vadd.f32 %v1524_v2, %v1134_v28  ;;  %v12193_v13 = vld [vmem:[#allocation115_spill] sm:$0xff]  ;;  %v2549_v10 = vld [vmem:[%s8259_s29 + $0x190] sm:$0xff] }
 0x38f   : > { %v3561_v44 = vpop.permute.xlu1 %3560  ;;  %v635_v47 = vmul.f32 %v9816_v49, %v12192_v16  ;;  %v1525_v15 = vmul.f32 %v9841_v12, %v12193_v13  ;;  %v2859_v4 = vmul.f32 %v9903_v22, %v10037_v59  ;;  %v3880_v59 = vld [vmem:[%s8259_s29 + $0x186] sm:$0xff]  ;;  %v2993_v33 = vld [vmem:[%s8259_s29 + $0x19c] sm:$0xff] }
 0x390   : > { %v4252_v39 = vadd.f32 %v4197_v57, %v3807_v25  ;;  %4421 = vst.msk [vmem:[#allocation2 + $0xc0] sm:$0xff] %vm4396_vm0, %v4365_v61  ;;  %v4312_v35 = vadd.f32 %v9972_v3, %v4253_v5  ;;  %v2024_v52 = vadd.f32 %v1969_v46, %v1579_v63  ;;  %v1970_v57 = vmul.f32 %v9860_v55, %v12194_v43  ;;  %v12195_v61 = vld [vmem:[#allocation211_spill] sm:$0xff] }
 0x391   : > { %v4031_v21 = vpop.permute.xlu0 %4030  ;;  %4095 = vperm.xlu1 %7590, %v3877_v26   ;;  %v1135_v25 = vadd.f32 %v1080_v14, %v635_v47  ;;  %v2415_v5 = vmul.f32 %v9886_v11, %v12195_v61  ;;  %v3749_v28 = vmul.f32 %v9933_v32, %v3561_v44 }
 0x392   : > { %v4311_v48 = vadd.f32 %v9972_v3, %v4252_v39  ;;  %v4199_v60 = vmul.f32 %v9957_v34, %v4031_v21  ;;  %3665 = vperm.xlu0 %7589, %v3435_v0   ;;  %v4367_v19 = vmax.f32 %v4312_v35, 0.0  ;;  %v2469_v38 = vadd.f32 %v2414_v20, %v2024_v52 }
 0x393   : > { %v10158_v51 = vpop.permute.xlu1 %2710  ;;  %v1580_v2 = vadd.f32 %v1525_v15, %v1135_v25  ;;  %v2860_v35 = vmul.f32 %v9903_v22, %v10048_v50  ;;  %v2995_v25 = vld [vmem:[%s8259_s29 + $0x1ac] sm:$0xff] }
 0x394   : > { %v4366_v24 = vmax.f32 %v4311_v48, 0.0  ;;  %v4254_v36 = vadd.f32 %v4199_v60, %v3809_v31  ;;  %4423 = vst.msk [vmem:[#allocation2 + $0xd0] sm:$0xff] %vm4396_vm0, %v4367_v19  ;;  %v2914_v39 = vadd.f32 %v2859_v4, %v2469_v38  ;;  %v3305_v31 = vmul.f32 %v9918_v56, %v10110_v54  ;;  %v2551_v19 = vld [vmem:[%s8259_s29 + $0x1a0] sm:$0xff] }
 0x395   : > { %v3566_v42 = vpop.permute.xlu0 %3565  ;;  %4105 = vperm.xlu1 %7590, %v3879_v27   ;;  %v2025_v46 = vadd.f32 %v1970_v57, %v1580_v2  ;;  %v2994_v57 = vld [vmem:[%s8259_s29 + $0x1a4] sm:$0xff] }
 0x396   : > { %4422 = vst.msk [vmem:[#allocation2 + $0xc8] sm:$0xff] %vm4396_vm0, %v4366_v24  ;;  %v4313_v26 = vadd.f32 %v9972_v3, %v4254_v36  ;;  %4100 = vperm.xlu0 %7589, %v3878_v23   ;;  %v3359_v21 = vadd.f32 %v3304_v58, %v2914_v39  ;;  %v3750_v63 = vmul.f32 %v9933_v32, %v3566_v42 }
 0x397   : > { %v10173_v7 = vpop.permute.xlu1 %2720  ;;  %v2470_v14 = vadd.f32 %v2415_v5, %v2025_v46  ;;  %v2546_v5 = vld [vmem:[%s8259_s29 + $0x178] sm:$0xff] }
 0x398   : > { %v4368_v0 = vmax.f32 %v4313_v26, 0.0  ;;  %v3804_v48 = vadd.f32 %v3749_v28, %v3359_v21 }
 0x399   : > { %v10176_v37 = vpop.permute.xlu0 %2715  ;;  %2790 = vperm.xlu1 %7590, %v2548_v30   ;;  %v2915_v50 = vadd.f32 %v2860_v35, %v2470_v14  ;;  %v12196_v35 = vld [vmem:[#allocation75_spill] sm:$0xff]  ;;  %v12197_v14 = vld [vmem:[#allocation30_spill] sm:$0xff] }
 0x39a   : > { %4424 = vst.msk [vmem:[#allocation2 + $0xd8] sm:$0xff] %vm4396_vm0, %v4368_v0  ;;  %4110 = vperm.xlu0 %7589, %v3880_v59   ;;  %v2996_v0 = vld [vmem:[%s8259_s29 + $0x1b4] sm:$0xff] }
 0x39b   : > { %v4006_v44 = vpop.permute.xlu1 %4005  ;;  %v3360_v23 = vadd.f32 %v3305_v31, %v2915_v50  ;;  %v642_v31 = vmul.f32 %v9816_v49, %v12197_v14  ;;  %v12199_v50 = vld [vmem:[#allocation77_spill] sm:$0xff] }
 0x39c   : > { %v4194_v60 = vmul.f32 %v9957_v34, %v4006_v44  ;;  %v12198_v44 = vld [vmem:[#allocation124_spill] sm:$0xff] }
 0x39d   : > { %v10186_v27 = vpop.permute.xlu0 %2725  ;;  %2800 = vperm.xlu1 %7590, %v2550_v41   ;;  %v4503_v16 = vld [vmem:[#allocation2 + $0xc0] ss:$2 sm:$0xff]  ;;  %v4559_v54 = vld [vmem:[#allocation2 + $0xc1] ss:$2 sm:$0xff]  ;;  %v3805_v4 = vadd.f32 %v3750_v63, %v3360_v23  ;;  %v1087_v41 = vmul.f32 %v9825_v53, %v12196_v35  ;;  %v1089_v63 = vmul.f32 %v9825_v53, %v12199_v50  ;;  %v2867_v50 = vmul.f32 %v9903_v22, %v10158_v51 }
 0x39e   : > { %2795 = vperm.xlu0 %7589, %v2549_v10   ;;  %v4249_v20 = vadd.f32 %v4194_v60, %v3804_v48  ;;  %v10199_v26 = vadd.f32 %v4559_v54, %v4503_v16  ;;  %v2554_v10 = vld [vmem:[%s8259_s29 + $0x1b8] sm:$0xff]  ;;  %v1532_v48 = vmul.f32 %v9841_v12, %v12198_v44  ;;  %v2547_v60 = vld [vmem:[%s8259_s29 + $0x180] sm:$0xff]  ;;  %v12209_v44 = vld [vmem:[#allocation172_spill] sm:$0xff] }
 0x39f   : > { %v10191_v47 = vpop.permute.xlu1 %3155  ;;  %v1142_v23 = vadd.f32 %v1087_v41, %v642_v31  ;;  %v12201_v16 = vld [vmem:[#allocation170_spill] sm:$0xff] }
 0x3a0   : > { %v4308_v24 = vadd.f32 %v9972_v3, %v4249_v20  ;;  %v1977_v54 = vmul.f32 %v9860_v55, %v12201_v16  ;;  %v12210_v16 = vld [vmem:[#allocation173_spill] sm:$0xff] }
 0x3a1   : > { %v4505_v13 = vld [vmem:[#allocation2 + $0xd0] ss:$2 sm:$0xff]  ;;  %v4561_v15 = vld [vmem:[#allocation2 + $0xd1] ss:$2 sm:$0xff]  ;;  %v4011_v36 = vpop.permute.xlu0 %4010  ;;  %3235 = vperm.xlu1 %7590, %v2993_v33  }
 0x3a2   : > { %v10194_v52 = vadd.f32 %v4561_v15, %v4505_v13  ;;  %v4195_v42 = vmul.f32 %v9957_v34, %v4011_v36  ;;  %2805 = vperm.xlu0 %7589, %v2551_v19   ;;  %v4363_v43 = vmax.f32 %v4308_v24, 0.0  ;;  %v12200_v33 = vld [vmem:[#allocation78_spill] sm:$0xff]  ;;  %v12202_v15 = vld [vmem:[#allocation29_spill] sm:$0xff]  ;;  %v12203_v36 = vld [vmem:[#allocation32_spill] sm:$0xff] }
 0x3a3   : > { %v10202_v58 = vpop.permute.xlu1 %3165  ;;  %v1088_v20 = vmul.f32 %v9825_v53, %v12200_v33  ;;  %v643_v24 = vmul.f32 %v9816_v49, %v12202_v15  ;;  %v1978_v15 = vmul.f32 %v9860_v55, %v12210_v16 }
 0x3a4   : > { %v4669_v30 = vrot.slane %v10194_v52, 3  ;;  %v4250_v38 = vadd.f32 %v4195_v42, %v3805_v4  ;;  %4419 = vst.msk [vmem:[#allocation2 + $0xb0] sm:$0xff] %vm4396_vm0, %v4363_v43  ;;  %v644_v4 = vmul.f32 %v9816_v49, %v12203_v36  ;;  %v12204_v42 = vld [vmem:[#allocation80_spill] sm:$0xff]  ;;  %v12205_v43 = vld [vmem:[#allocation126_spill] sm:$0xff] }
 0x3a5   : > { %v10205_v59 = vpop.permute.xlu0 %3160  ;;  %3245 = vperm.xlu1 %7590, %v2995_v25   ;;  %v1090_v25 = vmul.f32 %v9825_v53, %v12204_v42  ;;  %v1143_v41 = vadd.f32 %v1088_v20, %v643_v24  ;;  %v3312_v42 = vmul.f32 %v9918_v56, %v10191_v47  ;;  %v2869_v47 = vmul.f32 %v9903_v22, %v10173_v7  ;;  %v3441_v7 = vld [vmem:[%s8259_s29 + $0x1b5] sm:$0xff] }
 0x3a6   : > { %v4674_v2 = vadd.f32 %v4669_v30, %v10199_v26  ;;  %v4309_v61 = vadd.f32 %v9972_v3, %v4250_v38  ;;  %3240 = vperm.xlu0 %7589, %v2994_v57   ;;  %v1534_v57 = vmul.f32 %v9841_v12, %v12205_v43  ;;  %v3438_v38 = vld [vmem:[%s8259_s29 + $0x19d] sm:$0xff]  ;;  %v1144_v35 = vadd.f32 %v1089_v63, %v644_v4  ;;  %v3439_v43 = vld [vmem:[%s8259_s29 + $0x1a5] sm:$0xff] }
 0x3a7   : > { %v10213_v28 = vpop.permute.xlu1 %2700  ;;  %v12211_v4 = vld [vmem:[#allocation222_spill] sm:$0xff] }
 0x3a8   : > { %v4364_v39 = vmax.f32 %v4309_v61, 0.0  ;;  %v4676_v46 = vmul.f32 0.25, %v4674_v2  ;;  %v1587_v2 = vadd.f32 %v1532_v48, %v1142_v23  ;;  %v12206_v61 = vld [vmem:[#allocation220_spill] sm:$0xff]  ;;  %v4668_v48 = vrot.slane %v10199_v26, 3 }
 0x3a9   : > { %v10217_v21 = vpop.permute.xlu0 %3170  ;;  %2780 = vperm.xlu1 %7590, %v2546_v5   ;;  %v2422_v5 = vmul.f32 %v9886_v11, %v12206_v61  ;;  %v1589_v20 = vadd.f32 %v1534_v57, %v1144_v35  ;;  %v2424_v26 = vmul.f32 %v9886_v11, %v12211_v4  ;;  %v12212_v57 = vld [vmem:[#allocation125_spill] sm:$0xff] }
 0x3aa   : > { %4420 = vst.msk [vmem:[#allocation2 + $0xb8] sm:$0xff] %vm4396_vm0, %v4364_v39  ;;  %3250 = vperm.xlu0 %7589, %v2996_v0   ;;  %v2555_v0 = vld [vmem:[%s8259_s29 + $0x1c0] sm:$0xff]  ;;  %v2032_v31 = vadd.f32 %v1977_v54, %v1587_v2  ;;  %v3440_v54 = vld [vmem:[%s8259_s29 + $0x1ad] sm:$0xff]  ;;  %v4670_v51 = vsel %vm4620_vm4, %v4668_v48, %v4669_v30 }
 0x3ab   : > { %4748 = vst.msk [vmem:[#allocation3 + $0x5e] sm:$0x3] %vm4736_vm3, %v4676_v46  ;;  %v3601_v19 = vpop.permute.xlu1 %3600  ;;  %v12207_v39 = vld [vmem:[#allocation31_spill] sm:$0xff] }
 0x3ac   : > { %v645_v46 = vmul.f32 %v9816_v49, %v12207_v39  ;;  %v2477_v36 = vadd.f32 %v2422_v5, %v2032_v31  ;;  %v12213_v2 = vld [vmem:[#allocation219_spill] sm:$0xff]  ;;  %v3757_v30 = vmul.f32 %v9933_v32, %v3601_v19 }
 0x3ad   : > { %v10233_v13 = vpop.permute.xlu0 %2705  ;;  %2820 = vperm.xlu1 %7590, %v2554_v10   ;;  %v12208_v10 = vld [vmem:[#allocation123_spill] sm:$0xff]  ;;  %v2423_v61 = vmul.f32 %v9886_v11, %v12213_v2 }
 0x3ae   : > { %2785 = vperm.xlu0 %7589, %v2547_v60   ;;  %v1533_v14 = vmul.f32 %v9841_v12, %v12208_v10  ;;  %v1979_v60 = vmul.f32 %v9860_v55, %v12209_v44  ;;  %v1145_v63 = vadd.f32 %v1090_v25, %v645_v46  ;;  %v2922_v46 = vadd.f32 %v2867_v50, %v2477_v36  ;;  %v12214_v10 = vld [vmem:[#allocation175_spill] sm:$0xff]  ;;  %v2991_v44 = vld [vmem:[%s8259_s29 + $0x18c] sm:$0xff] }
 0x3af   : > { %v3611_v53 = vpop.permute.xlu1 %3610  ;;  %v3314_v50 = vmul.f32 %v9918_v56, %v10202_v58 }
 0x3b0   : > { %v1588_v25 = vadd.f32 %v1533_v14, %v1143_v41  ;;  %v2034_v39 = vadd.f32 %v1979_v60, %v1589_v20  ;;  %v2868_v14 = vmul.f32 %v9903_v22, %v10176_v37  ;;  %v3367_v60 = vadd.f32 %v3312_v42, %v2922_v46  ;;  %v3883_v46 = vld [vmem:[%s8259_s29 + $0x19e] sm:$0xff] }
 0x3b1   : > { %v4501_v33 = vld [vmem:[#allocation2 + $0xb0] ss:$2 sm:$0xff]  ;;  %v4557_v23 = vld [vmem:[#allocation2 + $0xb1] ss:$2 sm:$0xff]  ;;  %v3606_v49 = vpop.permute.xlu0 %3605  ;;  %3680 = vperm.xlu1 %7590, %v3438_v38   ;;  %v1535_v38 = vmul.f32 %v9841_v12, %v12212_v57  ;;  %v1980_v12 = vmul.f32 %v9860_v55, %v12214_v10  ;;  %v3313_v55 = vmul.f32 %v9918_v56, %v10205_v59 }
 0x3b2   : > { %v4601_v24 = vadd.f32 %v4557_v23, %v4501_v33  ;;  %2825 = vperm.xlu0 %7589, %v2555_v0   ;;  %v2033_v41 = vadd.f32 %v1978_v15, %v1588_v25  ;;  %v2479_v48 = vadd.f32 %v2424_v26, %v2034_v39  ;;  %v12215_v23 = vld [vmem:[#allocation221_spill] sm:$0xff]  ;;  %v3812_v15 = vadd.f32 %v3757_v30, %v3367_v60 }
 0x3b3   : > { %v10271_v0 = vpop.permute.xlu1 %3145  ;;  %v1590_v33 = vadd.f32 %v1535_v38, %v1145_v63  ;;  %v2425_v20 = vmul.f32 %v9886_v11, %v12215_v23  ;;  %v2870_v11 = vmul.f32 %v9903_v22, %v10186_v27  ;;  %v3758_v4 = vmul.f32 %v9933_v32, %v3606_v49  ;;  %v2999_v59 = vld [vmem:[%s8259_s29 + $0x1cc] sm:$0xff] }
 0x3b4   : > { %v4673_v5 = vadd.f32 %v4670_v51, %v4601_v24  ;;  %v2478_v19 = vadd.f32 %v2423_v61, %v2033_v41  ;;  %v2924_v16 = vadd.f32 %v2869_v47, %v2479_v48  ;;  %v3759_v24 = vmul.f32 %v9933_v32, %v3611_v53  ;;  %v2992_v51 = vld [vmem:[%s8259_s29 + $0x194] sm:$0xff] }
 0x3b5   : > { %v3616_v35 = vpop.permute.xlu0 %3615  ;;  %3690 = vperm.xlu1 %7590, %v3440_v54   ;;  %v2035_v63 = vadd.f32 %v1980_v12, %v1590_v33  ;;  %v3315_v25 = vmul.f32 %v9918_v56, %v10217_v21  ;;  %v3000_v41 = vld [vmem:[%s8259_s29 + $0x1d4] sm:$0xff]  ;;  %v10306_v56 = vld [vmem:[#allocation3 + $0x4e] sm:$0xff] }
 0x3b6   : > { %v4675_v31 = vmul.f32 0.25, %v4673_v5  ;;  %3685 = vperm.xlu0 %7589, %v3439_v43   ;;  %v2923_v36 = vadd.f32 %v2868_v14, %v2478_v19  ;;  %v3369_v26 = vadd.f32 %v3314_v50, %v2924_v16  ;;  %v3760_v5 = vmul.f32 %v9933_v32, %v3616_v35  ;;  %12216 = vst [vmem:[#allocation244_spill] sm:$0xff] %v10306_v56  ;;  %v10317_v32 = vld [vmem:[%s11806_s1 + $0x1] ss:$0 sm:$0xff]  ;;  %v12218_v35 = vld [vmem:[#allocation73_spill] sm:$0xff] }
 0x3b7   : > { %v4046_v37 = vpop.permute.xlu1 %4045  ;;  %v2480_v43 = vadd.f32 %v2425_v20, %v2035_v63  ;;  %v3885_v23 = vld [vmem:[%s8259_s29 + $0x1ae] sm:$0xff]  ;;  %v10332_v20 = vld [vmem:[%s11806_s1] ss:$0 sm:$0xff]  ;;  %v10339_v16 = vld [vmem:[%s11806_s1 + $0x2] ss:$0 sm:$0xff] }
 0x3b8   : > { %4747 = vst.msk [vmem:[#allocation3 + $0x56] sm:$0xff] %vm4396_vm0, %v4675_v31  ;;  %v4202_v58 = vmul.f32 %v9957_v34, %v4046_v37  ;;  %v3368_v53 = vadd.f32 %v3313_v55, %v2923_v36  ;;  %v3814_v38 = vadd.f32 %v3759_v24, %v3369_v26  ;;  %v12219_v55 = vld [vmem:[#allocation28_spill] sm:$0xff]  ;;  %v12244_v50 = vld [vmem:[#allocation131_spill] sm:$0xff] }
 0x3b9   : > { %v10291_v54 = vpop.permute.xlu0 %3150  ;;  %3225 = vperm.xlu1 %7590, %v2991_v44   ;;  %v2925_v49 = vadd.f32 %v2870_v11, %v2480_v43  ;;  %v1085_v44 = vmul.f32 %v10317_v32, %v12218_v35  ;;  %v640_v37 = vmul.f32 %v10332_v20, %v12219_v55  ;;  %v12221_v26 = vld [vmem:[#allocation168_spill] sm:$0xff]  ;;  %v12227_v55 = vld [vmem:[#allocation217_spill] sm:$0xff] }
 0x3ba   : > { %3695 = vperm.xlu0 %7589, %v3441_v7   ;;  %v4257_v42 = vadd.f32 %v4202_v58, %v3812_v15  ;;  %v3813_v61 = vadd.f32 %v3758_v4, %v3368_v53  ;;  %v12220_v15 = vld [vmem:[#allocation122_spill] sm:$0xff]  ;;  %v3884_v58 = vld [vmem:[%s8259_s29 + $0x1a6] sm:$0xff] }
 0x3bb   : > { %v4056_v57 = vpop.permute.xlu1 %4055  ;;  %v3370_v10 = vadd.f32 %v3315_v25, %v2925_v49  ;;  %v1140_v4 = vadd.f32 %v1085_v44, %v640_v37  ;;  %v12222_v43 = vld [vmem:[#allocation76_spill] sm:$0xff]  ;;  %v3886_v49 = vld [vmem:[%s8259_s29 + $0x1b6] sm:$0xff]  ;;  %v12226_v44 = vld [vmem:[#allocation171_spill] sm:$0xff] }
 0x3bc   : > { %v4316_v2 = vadd.f32 %v9972_v3, %v4257_v42  ;;  %v4204_v22 = vmul.f32 %v9957_v34, %v4056_v57  ;;  %v1086_v53 = vmul.f32 %v10317_v32, %v12222_v43  ;;  %v3436_v57 = vld [vmem:[%s8259_s29 + $0x18d] sm:$0xff] }
 0x3bd   : > { %v4051_v27 = vpop.permute.xlu0 %4050  ;;  %3265 = vperm.xlu1 %7590, %v2999_v59   ;;  %v3815_v7 = vadd.f32 %v3760_v5, %v3370_v10  ;;  %v10351_v59 = vld [vmem:[%s11806_s1 + $0x3] ss:$0 sm:$0xff]  ;;  %v10378_v10 = vld [vmem:[%s11806_s1 + $0x5] ss:$0 sm:$0xff]  ;;  %v2556_v43 = vld [vmem:[%s8259_s29 + $0x1c8] sm:$0x3f] }
 0x3be   : > { %v4203_v39 = vmul.f32 %v9957_v34, %v4051_v27  ;;  %3230 = vperm.xlu0 %7589, %v2992_v51   ;;  %v4371_v47 = vmax.f32 %v4316_v2, 0.0  ;;  %v4259_v30 = vadd.f32 %v4204_v22, %v3814_v38  ;;  %v1975_v42 = vmul.f32 %v10351_v59, %v12221_v26  ;;  %v10364_v2 = vld [vmem:[%s11806_s1 + $0x4] ss:$0 sm:$0xff]  ;;  %v12223_v22 = vld [vmem:[#allocation218_spill] sm:$0xff] }
 0x3bf   : > { %v10308_v21 = vld [vmem:[#allocation3 + $0x56] sm:$0xff]  ;;  %v10310_v14 = vpop.permute.xlu1 %3590  ;;  %v2420_v27 = vmul.f32 %v10364_v2, %v12223_v22  ;;  %v2421_v37 = vmul.f32 %v10364_v2, %v12227_v55  ;;  %v2866_v26 = vmul.f32 %v10378_v10, %v10233_v13  ;;  %v10421_v13 = vld [vmem:[%s11806_s1 + $0x8] ss:$0 sm:$0xff] }
 0x3c0   : > { %12217 = vst [vmem:[#allocation261_spill] sm:$0xff] %v10308_v21  ;;  %v4258_v12 = vadd.f32 %v4203_v39, %v3813_v61  ;;  %v5556_v31 = vpack.c.bf16 %v10308_v21, %v10306_v56  ;;  %4427 = vst.msk [vmem:[#allocation2 + $0xf0] sm:$0xff] %vm4396_vm0, %v4371_v47  ;;  %v4318_v48 = vadd.f32 %v9972_v3, %v4259_v30  ;;  %v12224_v61 = vld [vmem:[#allocation27_spill] sm:$0xff]  ;;  %v12225_v39 = vld [vmem:[#allocation121_spill] sm:$0xff] }
 0x3c1   : > { %v4061_v60 = vpop.permute.xlu0 %4060  ;;  %4125 = vperm.xlu1 %7590, %v3883_v46   ;;  %v641_v5 = vmul.f32 %v10332_v20, %v12224_v61  ;;  %v1531_v46 = vmul.f32 %v10339_v16, %v12225_v39  ;;  %v3891_v56 = vld [vmem:[%s8259_s29 + $0x1de] sm:$0x3f] }
 0x3c2   : > { %v4317_v33 = vadd.f32 %v9972_v3, %v4258_v12  ;;  %v4205_v19 = vmul.f32 %v9957_v34, %v4061_v60  ;;  %3270 = vperm.xlu0 %7589, %v3000_v41   ;;  %7515 = vmatmul.mubr.msk.bf16.gmra.mrb[12].mxu1 %vm4396_vm0, %v5556_v31  ;;  %v1530_v34 = vmul.f32 %v10339_v16, %v12220_v15  ;;  %v4373_v24 = vmax.f32 %v4318_v48, 0.0  ;;  %v3444_v60 = vld [vmem:[%s8259_s29 + $0x1cd] sm:$0xff] }
 0x3c3   : > { %7518 = vmatprep.mubr.msk.bf16.mxu1 %vm8197_vm1, %v12053_v1  ;;  %v10346_v11 = vpop.permute.xlu1 %2730  ;;  %v2865_v12 = vmul.f32 %v10378_v10, %v10213_v28  ;;  %v1141_v35 = vadd.f32 %v1086_v53, %v641_v5  ;;  %v1976_v48 = vmul.f32 %v10351_v59, %v12226_v44 }
 0x3c4   : > { %v4372_v63 = vmax.f32 %v4317_v33, 0.0  ;;  %v4260_v36 = vadd.f32 %v4205_v19, %v3815_v7  ;;  %4429 = vst.msk [vmem:[#allocation2 + $0x100] sm:$0xff] %vm4396_vm0, %v4373_v24  ;;  %v1585_v38 = vadd.f32 %v1530_v34, %v1140_v4  ;;  %v10391_v33 = vld [vmem:[%s11806_s1 + $0x6] ss:$0 sm:$0xff]  ;;  %v3437_v19 = vld [vmem:[%s8259_s29 + $0x195] sm:$0xff] }
 0x3c5   : > { %v3596_v51 = vpop.permute.xlu0 %3595  ;;  %4135 = vperm.xlu1 %7590, %v3885_v23   ;;  %v3310_v28 = vmul.f32 %v10391_v33, %v10271_v0  ;;  %v1586_v23 = vadd.f32 %v1531_v46, %v1141_v35  ;;  %v3882_v46 = vld [vmem:[%s8259_s29 + $0x196] sm:$0xff] }
 0x3c6   : > { %4428 = vst.msk [vmem:[#allocation2 + $0xf8] sm:$0xff] %vm4396_vm0, %v4372_v63  ;;  %v4319_v25 = vadd.f32 %v9972_v3, %v4260_v36  ;;  %4130 = vperm.xlu0 %7589, %v3884_v58   ;;  %v2030_v41 = vadd.f32 %v1975_v42, %v1585_v38  ;;  %v10403_v63 = vld [vmem:[%s11806_s1 + $0x7] ss:$0 sm:$0xff]  ;;  %v3311_v38 = vmul.f32 %v10391_v33, %v10291_v54 }
 0x3c7   : > { %v10373_v30 = vpop.permute.xlu1 %2740  ;;  %v3755_v0 = vmul.f32 %v10403_v63, %v10310_v14  ;;  %v2031_v4 = vadd.f32 %v1976_v48, %v1586_v23  ;;  %v3756_v54 = vmul.f32 %v10403_v63, %v3596_v51  ;;  %v3890_v51 = vld [vmem:[%s8259_s29 + $0x1d6] sm:$0xff] }
 0x3c8   : > { %v4374_v47 = vmax.f32 %v4319_v25, 0.0  ;;  %v2475_v7 = vadd.f32 %v2420_v27, %v2030_v41  ;;  %v3445_v25 = vld [vmem:[%s8259_s29 + $0x1d5] sm:$0xff] }
 0x3c9   : > { %v10382_v31 = vpop.permute.xlu0 %2735  ;;  %3670 = vperm.xlu1 %7590, %v3436_v57   ;;  %v2476_v57 = vadd.f32 %v2421_v37, %v2031_v4  ;;  %v3881_v41 = vld [vmem:[%s8259_s29 + $0x18e] sm:$0xff] }
 0x3ca   : > { %4430 = vst.msk [vmem:[#allocation2 + $0x108] sm:$0xff] %vm4396_vm0, %v4374_v47  ;;  %4140 = vperm.xlu0 %7589, %v3886_v49   ;;  %v2920_v34 = vadd.f32 %v2865_v12, %v2475_v7 }
 0x3cb   : > { %v10398_v15 = vpop.permute.xlu1 %2750  ;;  %v2921_v5 = vadd.f32 %v2866_v26, %v2476_v57  ;;  %v2552_v26 = vld [vmem:[%s8259_s29 + $0x1a8] sm:$0xff] }
 0x3cc   : > { %v3365_v53 = vadd.f32 %v3310_v28, %v2920_v34 }
 0x3cd   : > { %v4509_v24 = vld [vmem:[#allocation2 + $0xf0] ss:$2 sm:$0xff]  ;;  %v4565_v58 = vld [vmem:[#allocation2 + $0xf1] ss:$2 sm:$0xff]  ;;  %v10407_v36 = vpop.permute.xlu0 %2745  ;;  %3710 = vperm.xlu1 %7590, %v3444_v60   ;;  %v3366_v12 = vadd.f32 %v3311_v38, %v2921_v5  ;;  %v12232_v38 = vld [vmem:[#allocation36_spill] sm:$0xff] }
 0x3ce   : > { %v10411_v42 = vadd.f32 %v4565_v58, %v4509_v24  ;;  %3675 = vperm.xlu0 %7589, %v3437_v19   ;;  %v3810_v27 = vadd.f32 %v3755_v0, %v3365_v53  ;;  %v3889_v19 = vld [vmem:[%s8259_s29 + $0x1ce] sm:$0xff]  ;;  %v12229_v24 = vld [vmem:[#allocation79_spill] sm:$0xff] }
 0x3cf   : > { %v4036_v22 = vpop.permute.xlu1 %4035  ;;  %v3811_v7 = vadd.f32 %v3756_v54, %v3366_v12  ;;  %v1091_v58 = vmul.f32 %v10317_v32, %v12229_v24  ;;  %v10451_v0 = vld [vmem:[%s11811_s6] ss:$0 sm:$0xff] }
 0x3d0   : > { %v11815_v14 = vrot.slane %v10411_v42, 3  ;;  %v4200_v49 = vmul.f32 %v10421_v13, %v4036_v22  ;;  %v648_v22 = vmul.f32 %v10332_v20, %v12232_v38  ;;  %v3001_v5 = vld [vmem:[%s8259_s29 + $0x1dc] sm:$0x3f] }
 0x3d1   : > { %v10424_v61 = vpop.permute.xlu0 %2755  ;;  %2830 = vperm.xlu1 %7590, %v2556_v43   ;;  %v12230_v43 = vld [vmem:[#allocation34_spill] sm:$0xff]  ;;  %v12240_v24 = vld [vmem:[#allocation127_spill] sm:$0xff] }
 0x3d2   : > { %v4684_v39 = vadd.f32 %v11815_v14, %v10194_v52  ;;  %3715 = vperm.xlu0 %7589, %v3445_v25   ;;  %v4255_v47 = vadd.f32 %v4200_v49, %v3810_v27  ;;  %v646_v53 = vmul.f32 %v10332_v20, %v12230_v43  ;;  %v12231_v25 = vld [vmem:[#allocation35_spill] sm:$0xff]  ;;  %v12233_v27 = vld [vmem:[#allocation82_spill] sm:$0xff]  ;;  %v1537_v43 = vmul.f32 %v10339_v16, %v12240_v24  ;;  %v12248_v14 = vld [vmem:[#allocation177_spill] sm:$0xff] }
 0x3d3   : > { %v10432_v44 = vpop.permute.xlu1 %3175  ;;  %v649_v57 = vmul.f32 %v10332_v20, %v12231_v25  ;;  %v1092_v49 = vmul.f32 %v10317_v32, %v12233_v27  ;;  %v1541_v24 = vmul.f32 %v10339_v16, %v12244_v50 }
 0x3d4   : > { %v4686_v35 = vmul.f32 0.25, %v4684_v39  ;;  %v4314_v48 = vadd.f32 %v9972_v3, %v4255_v47  ;;  %v12228_v3 = vld [vmem:[#allocation33_spill] sm:$0xff]  ;;  %v1146_v38 = vadd.f32 %v1091_v58, %v646_v53  ;;  %v1540_v58 = vmul.f32 %v10339_v16, %v12245_v29 }
 0x3d5   : > { %v4041_v60 = vpop.permute.xlu0 %4040  ;;  %4120 = vperm.xlu1 %7590, %v3882_v46   ;;  %v647_v34 = vmul.f32 %v10332_v20, %v12228_v3  ;;  %v12234_v39 = vld [vmem:[#allocation81_spill] sm:$0xff]  ;;  %v12235_v46 = vld [vmem:[#allocation83_spill] sm:$0xff]  ;;  %v1982_v29 = vmul.f32 %v10351_v59, %v12248_v14 }
 0x3d6   : > { %4749 = vst.msk [vmem:[#allocation3 + $0x5e] sm:$0xc0] %vm4738_vm5, %v4686_v35  ;;  %v4201_v52 = vmul.f32 %v10421_v13, %v4041_v60  ;;  %4115 = vperm.xlu0 %7589, %v3881_v41   ;;  %v4369_v28 = vmax.f32 %v4314_v48, 0.0  ;;  %v1093_v54 = vmul.f32 %v10317_v32, %v12234_v39  ;;  %v1095_v47 = vmul.f32 %v10317_v32, %v12235_v46  ;;  %v12236_v41 = vld [vmem:[#allocation84_spill] sm:$0xff]  ;;  %v12242_v39 = vld [vmem:[#allocation129_spill] sm:$0xff] }
 0x3d7   : > { %v10439_v55 = vpop.permute.xlu1 %3185  ;;  %v1094_v12 = vmul.f32 %v10317_v32, %v12236_v41  ;;  %v4511_v35 = vld [vmem:[#allocation2 + $0x100] ss:$2 sm:$0xff]  ;;  %v4567_v48 = vld [vmem:[#allocation2 + $0x101] ss:$2 sm:$0xff]  ;;  %v1539_v46 = vmul.f32 %v10339_v16, %v12242_v39  ;;  %v12243_v41 = vld [vmem:[#allocation130_spill] sm:$0xff] }
 0x3d8   : > { %v4256_v23 = vadd.f32 %v4201_v52, %v3811_v7  ;;  %4425 = vst.msk [vmem:[#allocation2 + $0xe0] sm:$0xff] %vm4396_vm0, %v4369_v28  ;;  %v12237_v52 = vld [vmem:[#allocation37_spill] sm:$0xff]  ;;  %v12238_v28 = vld [vmem:[#allocation38_spill] sm:$0xff] }
 0x3d9   : > { %v10442_v37 = vpop.permute.xlu0 %3180  ;;  %4160 = vperm.xlu1 %7590, %v3890_v51   ;;  %v651_v51 = vmul.f32 %v10332_v20, %v12237_v52  ;;  %v1538_v52 = vmul.f32 %v10339_v16, %v12243_v41  ;;  %v2553_v53 = vld [vmem:[%s8259_s29 + $0x1b0] sm:$0xff]  ;;  %v1149_v18 = vadd.f32 %v1094_v12, %v649_v57  ;;  %v1981_v41 = vmul.f32 %v10351_v59, %v12246_v6  ;;  %v12249_v57 = vld [vmem:[#allocation179_spill] sm:$0xff] }
 0x3da   : > { %v4315_v4 = vadd.f32 %v10451_v0, %v4256_v23  ;;  %4155 = vperm.xlu0 %7589, %v3889_v19   ;;  %v650_v19 = vmul.f32 %v10332_v20, %v12238_v28  ;;  %v12239_v23 = vld [vmem:[#allocation86_spill] sm:$0xff]  ;;  %v1984_v12 = vmul.f32 %v10351_v59, %v12249_v57  ;;  %v2998_v6 = vld [vmem:[%s8259_s29 + $0x1c4] sm:$0xff] }
 0x3db   : > { %v10470_v7 = vpop.permute.xlu1 %3195  ;;  %v1096_v3 = vmul.f32 %v10317_v32, %v12239_v23  ;;  %v3446_v28 = vld [vmem:[%s8259_s29 + $0x1dd] sm:$0x3f]  ;;  %v1147_v23 = vadd.f32 %v1092_v49, %v647_v34  ;;  %v12247_v49 = vld [vmem:[#allocation176_spill] sm:$0xff] }
 0x3dc   : > { %v4370_v60 = vmax.f32 %v4315_v4, 0.0  ;;  %v12241_v4 = vld [vmem:[#allocation128_spill] sm:$0xff]  ;;  %v1150_v39 = vadd.f32 %v1095_v47, %v650_v19  ;;  %v1983_v50 = vmul.f32 %v10351_v59, %v12247_v49  ;;  %v12251_v49 = vld [vmem:[#allocation178_spill] sm:$0xff]  ;;  %v8093_v57 = vld [vmem:[%s11807_s2 + $0x40] sm:$0xff]  }
 0x3dd   : > { %v10480_v25 = vpop.permute.xlu0 %3190  ;;  %2810 = vperm.xlu1 %7590, %v2552_v26   ;;  %v1536_v27 = vmul.f32 %v10339_v16, %v12241_v4  ;;  %v10494_v26 = vadd.f32 %v4567_v48, %v4511_v35  ;;  %v1148_v4 = vadd.f32 %v1093_v54, %v648_v22  ;;  %v1592_v34 = vadd.f32 %v1537_v43, %v1147_v23  ;;  %v12250_v19 = vld [vmem:[#allocation224_spill] sm:$0xff]  ;;  %v2997_v23 = vld [vmem:[%s8259_s29 + $0x1bc] sm:$0xff] }
 0x3de   : > { %4426 = vst.msk [vmem:[#allocation2 + $0xe8] sm:$0xff] %vm4396_vm0, %v4370_v60  ;;  %3275 = vperm.xlu0 %7589, %v3001_v5   ;;  %v1151_v5 = vadd.f32 %v1096_v3, %v651_v51  ;;  %v1594_v54 = vadd.f32 %v1539_v46, %v1149_v18  ;;  %v1595_v51 = vadd.f32 %v1540_v58, %v1150_v39 }
 0x3df   : > { %v3621_v60 = vpop.permute.xlu1 %3620  ;;  %v1591_v22 = vadd.f32 %v1536_v27, %v1146_v38  ;;  %v1593_v47 = vadd.f32 %v1538_v52, %v1148_v4  ;;  %v2426_v3 = vmul.f32 %v10364_v2, %v12250_v19  ;;  %v4680_v43 = vrot.slane %v10494_v26, 3  ;;  %v12252_v38 = vld [vmem:[#allocation181_spill] sm:$0xff]  ;;  %v12253_v27 = vld [vmem:[#allocation223_spill] sm:$0xff]  ;;  %7328 = vmatprep.subr.bf16.mxu0 %v8093_v57 }
 0x3e0   : > { %v1596_v48 = vadd.f32 %v1541_v24, %v1151_v5  ;;  %v1986_v18 = vmul.f32 %v10351_v59, %v12252_v38  ;;  %v2427_v46 = vmul.f32 %v10364_v2, %v12253_v27  ;;  %v2037_v58 = vadd.f32 %v1982_v29, %v1592_v34  ;;  %v8094_v38 = vld [vmem:[%s11807_s2] sm:$0xff]  }
 0x3e1   : > { %v10503_v35 = vpop.permute.xlu0 %3200  ;;  %3720 = vperm.xlu1 %7590, %v3446_v28   ;;  %v2036_v14 = vadd.f32 %v1981_v41, %v1591_v22  ;;  %v1985_v28 = vmul.f32 %v10351_v59, %v12251_v49  ;;  %v2038_v24 = vadd.f32 %v1983_v50, %v1593_v47  ;;  %v2871_v39 = vmul.f32 %v10378_v10, %v10346_v11  ;;  %v12255_v49 = vld [vmem:[#allocation226_spill] sm:$0xff]  ;;  %v12256_v50 = vld [vmem:[#allocation227_spill] sm:$0xff] }
 0x3e2   : > { %2815 = vperm.xlu0 %7589, %v2553_v53   ;;  %v12254_v53 = vld [vmem:[#allocation225_spill] sm:$0xff]  ;;  %v2039_v19 = vadd.f32 %v1984_v12, %v1594_v54  ;;  %v2428_v34 = vmul.f32 %v10364_v2, %v12255_v49  ;;  %v2431_v29 = vmul.f32 %v10364_v2, %v12256_v50  ;;  %v3442_v11 = vld [vmem:[%s8259_s29 + $0x1bd] sm:$0xff]  ;;  %v3316_v54 = vmul.f32 %v10391_v33, %v10432_v44 }
 0x3e3   : > { %v2429_v4 = vmul.f32 %v10364_v2, %v12254_v53  ;;  %v2481_v27 = vadd.f32 %v2426_v3, %v2036_v14  ;;  %v12258_v12 = vrot.slane %v10411_v42, 3  ;;  %v10547_v3 = vld [vmem:[#allocation3 + $0x18] sm:$0xff]  ;;  %7329 = vmatpush3.bf16.msra.mxu0 %v8094_v38  ;;  %v2873_v42 = vmul.f32 %v10378_v10, %v10373_v30  ;;  %v3887_v30 = vld [vmem:[%s8259_s29 + $0x1be] sm:$0xff] }
 0x3e4   : > { %v10518_v52 = vpop.permute.xlu1 %3630  ;;  %v3761_v44 = vmul.f32 %v10403_v63, %v3621_v60  ;;  %v8096_v60 = vld [vmem:[%s11807_s2 + $0x8] sm:$0xff]  }
 0x3e5   : > { %v4507_v41 = vld [vmem:[#allocation2 + $0xe0] ss:$2 sm:$0xff]  ;;  %v4563_v5 = vld [vmem:[#allocation2 + $0xe1] ss:$2 sm:$0xff]  ;;  %v10524_v22 = vpop.permute.xlu0 %3625  ;;  %3260 = vperm.xlu1 %7590, %v2998_v6   ;;  %v4681_v49 = vsel %vm4620_vm4, %v12258_v12, %v4680_v43  ;;  %v2484_v14 = vadd.f32 %v2429_v4, %v2039_v19  ;;  %v3318_v19 = vmul.f32 %v10391_v33, %v10439_v55  ;;  %v3317_v55 = vmul.f32 %v10391_v33, %v10442_v37 }
 0x3e6   : > { %v4604_v47 = vadd.f32 %v4563_v5, %v4507_v41  ;;  %3255 = vperm.xlu0 %7589, %v2997_v23   ;;  %v12257_v6 = vld [vmem:[#allocation228_spill] sm:$0xff]  ;;  %v2040_v41 = vadd.f32 %v1985_v28, %v1595_v51  ;;  %v2041_v23 = vadd.f32 %v1986_v18, %v1596_v48  ;;  %v2482_v5 = vadd.f32 %v2427_v46, %v2037_v58  ;;  %v10552_v48 = vld [vmem:[#allocation3 + $0x1c] sm:$0xff]  ;;  %v10554_v51 = vld [vmem:[#allocation3 + $0x24] sm:$0xff] }
 0x3e7   : > { %v2430_v53 = vmul.f32 %v10364_v2, %v12257_v6  ;;  %v2926_v6 = vadd.f32 %v2871_v39, %v2481_v27  ;;  %v8095_v28 = vld [vmem:[%s11807_s2 + $0x48] sm:$0xff]   ;;  %v2483_v18 = vadd.f32 %v2428_v34, %v2038_v24  ;;  %v2872_v58 = vmul.f32 %v10378_v10, %v10382_v31  ;;  %v10570_v34 = vld [vmem:[#allocation3 + $0x1] sm:$0xff] }
 0x3e8   : > { %v4685_v50 = vadd.f32 %v4681_v49, %v4604_v47  ;;  %v3641_v21 = vpop.permute.xlu1 %3640  ;;  %v2486_v46 = vadd.f32 %v2431_v29, %v2041_v23  ;;  %v3443_v47 = vld [vmem:[%s8259_s29 + $0x1c5] sm:$0xff]  ;;  %v7591_v24 = vpack.i.bf16 %v10547_v3, %v10545_v8  ;;  %7330 = vmatprep.subr.bf16.mxu0 %v8095_v28  ;;  %v2874_v31 = vmul.f32 %v10378_v10, %v10407_v36  ;;  %v8097_v36 = vld [vmem:[%s11807_s2 + $0x50] sm:$0xff]  }
 0x3e9   : > { %v3636_v43 = vpop.permute.xlu0 %3635  ;;  %3700 = vperm.xlu1 %7590, %v3442_v11   ;;  %v2485_v39 = vadd.f32 %v2430_v53, %v2040_v41  ;;  %v3371_v57 = vadd.f32 %v3316_v54, %v2926_v6  ;;  %v10572_v29 = vld [vmem:[#allocation3 + $0x9] sm:$0xff]  ;;  %v7601_v8 = vpack.i.bf16 %v10554_v51, %v10552_v48  ;;  %7331 = vmatpush3.bf16.msra.mxu0 %v8096_v60 }
 0x3ea   : > { %v4687_v4 = vmul.f32 0.25, %v4685_v50  ;;  %4165 = vperm.xlu0 %7589, %v3891_v56   ;;  %v2875_v56 = vmul.f32 %v10378_v10, %v10398_v15  ;;  %v2928_v38 = vadd.f32 %v2873_v42, %v2483_v18  ;;  %v3763_v53 = vmul.f32 %v10403_v63, %v10518_v52  ;;  %v8098_v52 = vld [vmem:[%s11807_s2 + $0x10] sm:$0xff]   ;;  %v10603_v6 = vld [vmem:[#allocation3 + $0x2] sm:$0xff]  ;;  %7332 = vmatprep.subr.bf16.mxu0 %v8097_v36 }
 0x3eb   : > { %v3816_v27 = vadd.f32 %v3761_v44, %v3371_v57  ;;  %v2927_v37 = vadd.f32 %v2872_v58, %v2482_v5  ;;  %v3320_v12 = vmul.f32 %v10391_v33, %v10470_v7  ;;  %v3762_v49 = vmul.f32 %v10403_v63, %v10524_v22  ;;  %v3888_v7 = vld [vmem:[%s8259_s29 + $0x1c6] sm:$0xff]  ;;  %s8198_s29 = smov 32  }
 0x3ec   : > { %4750 = vst.msk [vmem:[#allocation3 + $0x66] sm:$0xff] %vm4396_vm0, %v4687_v4  ;;  %v4066_v11 = vpop.permute.xlu1 %4065  ;;  %v7596_v41 = vpack.i.bf16 %v10572_v29, %v10570_v34  ;;  %v2876_v23 = vmul.f32 %v10378_v10, %v10424_v61  ;;  %v3373_v50 = vadd.f32 %v3318_v19, %v2928_v38  ;;  %v3319_v5 = vmul.f32 %v10391_v33, %v10480_v25  ;;  %v10605_v22 = vld [vmem:[#allocation3 + $0xa] sm:$0xff]  ;;  %v10621_v34 = vld [vmem:[#allocation3 + $0x5e] sm:$0xff] }
 0x3ed   : > { %v4206_v15 = vmul.f32 %v10421_v13, %v4066_v11  ;;  %v3646_v54 = vpop.permute.xlu0 %3645  ;;  %4145 = vperm.xlu1 %7590, %v3887_v30   ;;  %v2930_v42 = vadd.f32 %v2875_v56, %v2485_v39  ;;  %v2929_v44 = vadd.f32 %v2874_v31, %v2484_v14  ;;  %v3372_v48 = vadd.f32 %v3317_v55, %v2927_v37  ;;  %v8099_v14 = vld [vmem:[%s11807_s2 + $0x58] sm:$0xff]  }
 0x3ee   : > { %3705 = vperm.xlu0 %7589, %v3443_v47   ;;  %v3765_v51 = vmul.f32 %v10403_v63, %v3641_v21  ;;  %7333 = vmatpush3.bf16.msra.mxu0 %v8098_v52  ;;  %v3818_v18 = vadd.f32 %v3763_v53, %v3373_v50  ;;  %v3764_v61 = vmul.f32 %v10403_v63, %v3636_v43  ;;  %v8100_v39 = vld [vmem:[%s11807_s2 + $0x18] sm:$0xff]  }
 0x3ef   : > { %v4261_v3 = vadd.f32 %v4206_v15, %v3816_v27  ;;  %v3375_v30 = vadd.f32 %v3320_v12, %v2930_v42  ;;  %v3817_v60 = vadd.f32 %v3762_v49, %v3372_v48  ;;  %v7606_v43 = vpack.i.bf16 %v10605_v22, %v10603_v6  ;;  %7334 = vmatprep.subr.bf16.mxu0 %v8099_v14  ;;  %v4890_v27 = vld [vmem:[#allocation3 + $0x25] sm:$0xff]  ;;  %v4889_v52 = vld [vmem:[#allocation3 + $0x1d] sm:$0xff]  ;;  %v8104_v14 = vld [vmem:[%s11807_s2 + $0x28] sm:$0xff]  }
 0x3f0   : > { %v4076_v28 = vpop.permute.xlu1 %4075  ;;  %v2931_v57 = vadd.f32 %v2876_v23, %v2486_v46  ;;  %v3374_v19 = vadd.f32 %v3319_v5, %v2929_v44  ;;  %v3321_v56 = vmul.f32 %v10391_v33, %v10503_v35  ;;  %v3766_v37 = vmul.f32 %v10403_v63, %v3646_v54  ;;  %v8101_v23 = vld [vmem:[%s11807_s2 + $0x60] sm:$0xff]  }
 0x3f1   : > { %v4320_v58 = vadd.f32 %v10451_v0, %v4261_v3  ;;  %v4208_v25 = vmul.f32 %v10421_v13, %v4076_v28  ;;  %v4071_v4 = vpop.permute.xlu0 %4070  ;;  %7592 = vrot.lane.b32.xlu1 %v7591_v24, %s8198_s29  ;;  %v3820_v31 = vadd.f32 %v3765_v51, %v3375_v30  ;;  %v7611_v54 = vpack.i.bf16 %v4890_v27, %v4889_v52  ;;  %v4823_v3 = vld [vmem:[#allocation3 + $0xe] sm:$0xff] }
 0x3f2   : > { %v4207_v21 = vmul.f32 %v10421_v13, %v4071_v4  ;;  %4150 = vperm.xlu0 %7589, %v3888_v7   ;;  %7335 = vmatpush3.bf16.msra.mxu0 %v8100_v39  ;;  %v3819_v46 = vadd.f32 %v3764_v61, %v3374_v19  ;;  %v4824_v7 = vld [vmem:[#allocation3 + $0x16] sm:$0xff]  ;;  %v4765_v44 = vld [vmem:[#allocation3 + $0x28] sm:$0xff] }
 0x3f3   : > { %v4375_v47 = vmax.f32 %v4320_v58, 0.0  ;;  %v4263_v24 = vadd.f32 %v4208_v25, %v3818_v18  ;;  %v10623_v29 = vld [vmem:[#allocation3 + $0x66] sm:$0xff]  ;;  %7336 = vmatprep.subr.bf16.mxu0 %v8101_v23  ;;  %v8103_v28 = vld [vmem:[%s11807_s2 + $0x68] sm:$0xff]   ;;  %v7616_v4 = vpack.i.bf16 %v4824_v7, %v4823_v3 }
 0x3f4   : > { %v4262_v55 = vadd.f32 %v4207_v21, %v3817_v60  ;;  %v4086_v11 = vpop.permute.xlu1 %4085  ;;  %v5559_v38 = vpack.c.bf16 %v10623_v29, %v10621_v34  ;;  %v7766_v35 = vpack.i.bf16 %v10623_v29, %v10621_v34  ;;  %v4764_v25 = vld [vmem:[#allocation3 + $0x20] sm:$0xff]  ;;  %v4870_v19 = vld [vmem:[#allocation3 + $0x2c] sm:$0xff]  ;;  %v4892_v52 = vld [vmem:[#allocation3 + $0x35] sm:$0xff] }
 0x3f5   : > { %4431 = vst.msk [vmem:[#allocation2 + $0x110] sm:$0xff] %vm4396_vm0, %v4375_v47  ;;  %v4322_v53 = vadd.f32 %v10451_v0, %v4263_v24  ;;  %v4210_v15 = vmul.f32 %v10421_v13, %v4086_v11  ;;  %v4081_v36 = vpop.permute.xlu0 %4080  ;;  %7602 = vrot.lane.b32.xlu1 %v7601_v8, %s8199_s30  ;;  %v8102_v8 = vld [vmem:[%s11807_s2 + $0x20] sm:$0xff]   ;;  %v7621_v60 = vpack.i.bf16 %v4765_v44, %v4764_v25  ;;  %v4871_v47 = vld [vmem:[#allocation3 + $0x34] sm:$0xff]  ;;  %v8107_v25 = vld [vmem:[%s11807_s2 + $0x78] sm:$0xff]  }
 0x3f6   : > { %v4321_v12 = vadd.f32 %v10451_v0, %v4262_v55  ;;  %v4209_v49 = vmul.f32 %v10421_v13, %v4081_v36  ;;  %7597 = vrot.lane.b32.xlu0 %v7596_v41, %s8198_s29  ;;  %7519 = vmatmul.mubr.msk.bf16.gmra.mrb[16].mxu1 %vm4396_vm0, %v5559_v38  ;;  %v3376_v41 = vadd.f32 %v3321_v56, %v2931_v57  ;;  %v4784_v56 = vld [vmem:[#allocation3 + $0x19] sm:$0xff] }
 0x3f7   : > { %v4377_v50 = vmax.f32 %v4322_v53, 0.0  ;;  %v4265_v5 = vadd.f32 %v4210_v15, %v3820_v31  ;;  %7522 = vmatprep.mubr.msk.bf16.mxu1 %vm8197_vm1, %v12053_v1  ;;  %7337 = vmatpush3.bf16.msra.mxu0 %v8102_v8  ;;  %v8105_v31 = vld [vmem:[%s11807_s2 + $0x70] sm:$0xff]   ;;  %v12260_v53 = vld [vmem:[#allocation87_spill] sm:$0xff] }
 0x3f8   : > { %v4376_v6 = vmax.f32 %v4321_v12, 0.0  ;;  %v4264_v22 = vadd.f32 %v4209_v49, %v3819_v46  ;;  %v10648_v42 = vpop.permute.xlu1 %2760  ;;  %v3821_v18 = vadd.f32 %v3766_v37, %v3376_v41  ;;  %7338 = vmatprep.subr.bf16.mxu0 %v8103_v28  ;;  %v8106_v11 = vld [vmem:[%s11807_s2 + $0x30] sm:$0xff]   ;;  %v7631_v46 = vpack.i.bf16 %v4871_v47, %v4870_v19  ;;  %v4891_v49 = vld [vmem:[#allocation3 + $0x2d] sm:$0xff] }
 0x3f9   : > { %4433 = vst.msk [vmem:[#allocation2 + $0x120] sm:$0xff] %vm4396_vm0, %v4377_v50  ;;  %v4324_v48 = vadd.f32 %v10451_v0, %v4265_v5  ;;  %v4091_v51 = vpop.permute.xlu0 %4090  ;;  %7612 = vrot.lane.b32.xlu1 %v7611_v54, %s8200_s12  ;;  %v12259_v38 = vld [vmem:[#allocation85_spill] sm:$0xff]  ;;  %v1099_v15 = vmul.f32 %v10317_v32, %v12260_v53  ;;  %v12261_v8 = vld [vmem:[#allocation39_spill] sm:$0xff]  ;;  %v12262_v5 = vld [vmem:[#allocation40_spill] sm:$0xff] }
 0x3fa   : > { %4432 = vst.msk [vmem:[#allocation2 + $0x118] sm:$0xff] %vm4396_vm0, %v4376_v6  ;;  %v4323_v61 = vadd.f32 %v10451_v0, %v4264_v22  ;;  %v4211_v58 = vmul.f32 %v10421_v13, %v4091_v51  ;;  %7607 = vrot.lane.b32.xlu0 %v7606_v43, %s8199_s30  ;;  %v4783_v43 = vld [vmem:[#allocation3 + $0x11] sm:$0xff]  ;;  %v1097_v27 = vmul.f32 %v10317_v32, %v12259_v38  ;;  %v4805_v6 = vld [vmem:[#allocation3 + $0x1a] sm:$0xff] }
 0x3fb   : > { %v4379_v30 = vmax.f32 %v4324_v48, 0.0  ;;  %7339 = vmatpush3.bf16.msra.mxu0 %v8104_v14  ;;  %v7626_v12 = vpack.i.bf16 %v4784_v56, %v4783_v43  ;;  %v4804_v23 = vld [vmem:[#allocation3 + $0x12] sm:$0xff]  ;;  %v653_v50 = vmul.f32 %v10332_v20, %v12261_v8  ;;  %v652_v54 = vmul.f32 %v10332_v20, %v12262_v5  ;;  %v12264_v48 = vld [vmem:[#allocation42_spill] sm:$0xff] }
 0x3fc   : > { %v4378_v21 = vmax.f32 %v4323_v61, 0.0  ;;  %v4266_v39 = vadd.f32 %v4211_v58, %v3821_v18  ;;  %v10663_v57 = vpop.permute.xlu1 %2770  ;;  %7340 = vmatprep.subr.bf16.mxu0 %v8105_v31  ;;  %v12263_v22 = vld [vmem:[#allocation41_spill] sm:$0xff]  ;;  %v654_v51 = vmul.f32 %v10332_v20, %v12264_v48  ;;  %v12265_v28 = vld [vmem:[#allocation88_spill] sm:$0xff]  ;;  %v12266_v61 = vld [vmem:[#allocation90_spill] sm:$0xff]  ;;  %v7636_v31 = vpack.i.bf16 %v4805_v6, %v4804_v23 }
 0x3fd   : > { %4435 = vst.msk [vmem:[#allocation2 + $0x130] sm:$0xff] %vm4396_vm0, %v4379_v30  ;;  %v10666_v24 = vpop.permute.xlu0 %2765  ;;  %7622 = vrot.lane.b32.xlu1 %v7621_v60, %s8198_s29  ;;  %v655_v44 = vmul.f32 %v10332_v20, %v12263_v22  ;;  %v1098_v18 = vmul.f32 %v10317_v32, %v12265_v28  ;;  %v1100_v58 = vmul.f32 %v10317_v32, %v12266_v61  ;;  %v12267_v20 = vld [vmem:[#allocation134_spill] sm:$0xff]  ;;  %v12268_v60 = vld [vmem:[#allocation136_spill] sm:$0xff]  ;;  %v12269_v19 = vld [vmem:[#allocation133_spill] sm:$0xff] }
 0x3fe   : > { %4434 = vst.msk [vmem:[#allocation2 + $0x128] sm:$0xff] %vm4396_vm0, %v4378_v21  ;;  %v4325_v55 = vadd.f32 %v10451_v0, %v4266_v39  ;;  %7617 = vrot.lane.b32.xlu0 %v7616_v4, %s8200_s12  ;;  %v8108_v4 = vld [vmem:[%s11807_s2 + $0x38] sm:$0xff]   ;;  %v1152_v14 = vadd.f32 %v1097_v27, %v652_v54  ;;  %v1542_v30 = vmul.f32 %v10339_v16, %v12267_v20  ;;  %v12271_v27 = vld [vmem:[#allocation180_spill] sm:$0xff]  ;;  %v12274_v48 = vld [vmem:[#allocation183_spill] sm:$0xff] }
 0x3ff   : > { %7341 = vmatpush3.bf16.msra.mxu0 %v8106_v11  ;;  %v1544_v21 = vmul.f32 %v10339_v16, %v12268_v60  ;;  %v7641_v32 = vpack.i.bf16 %v4892_v52, %v4891_v49  ;;  %v1154_v39 = vadd.f32 %v1099_v15, %v654_v51  ;;  %v1543_v47 = vmul.f32 %v10339_v16, %v12269_v19  ;;  %v12270_v11 = vld [vmem:[#allocation135_spill] sm:$0xff]  ;;  %v12272_v53 = vld [vmem:[#allocation182_spill] sm:$0xff]  ;;  %v4766_v5 = vld [vmem:[#allocation3 + $0x30] sm:$0xff] }
 0x400   : > { %v4380_v36 = vmax.f32 %v4325_v55, 0.0  ;;  %v10682_v37 = vpop.permute.xlu1 %3205  ;;  %v4767_v55 = vld [vmem:[#allocation3 + $0x38] sm:$0xff]  ;;  %7342 = vmatprep.subr.bf16.mxu0 %v8107_v25  ;;  %v1545_v38 = vmul.f32 %v10339_v16, %v12270_v11  ;;  %v1153_v52 = vadd.f32 %v1098_v18, %v653_v50  ;;  %v1155_v23 = vadd.f32 %v1100_v58, %v655_v44  ;;  %v4873_v18 = vld [vmem:[#allocation3 + $0x44] sm:$0xff] }
 0x401   : > { %v4513_v3 = vld [vmem:[#allocation2 + $0x110] ss:$2 sm:$0xff]  ;;  %v4569_v7 = vld [vmem:[#allocation2 + $0x111] ss:$2 sm:$0xff]  ;;  %v10688_v41 = vpop.permute.xlu0 %2775  ;;  %7632 = vrot.lane.b32.xlu1 %v7631_v46, %s8199_s30  ;;  %v1987_v46 = vmul.f32 %v10351_v59, %v12271_v27  ;;  %v1597_v16 = vadd.f32 %v1542_v30, %v1152_v14  ;;  %v1599_v54 = vadd.f32 %v1544_v21, %v1154_v39  ;;  %v7651_v6 = vpack.i.bf16 %v4767_v55, %v4766_v5  ;;  %v4786_v60 = vld [vmem:[#allocation3 + $0x29] sm:$0xff] }
 0x402   : > { %4436 = vst.msk [vmem:[#allocation2 + $0x138] sm:$0xff] %vm4396_vm0, %v4380_v36  ;;  %7627 = vrot.lane.b32.xlu0 %v7626_v12, %s8198_s29  ;;  %v10713_v43 = vadd.f32 %v4569_v7, %v4513_v3  ;;  %v1989_v36 = vmul.f32 %v10351_v59, %v12272_v53  ;;  %v12273_v3 = vld [vmem:[#allocation230_spill] sm:$0xff]  ;;  %v1598_v22 = vadd.f32 %v1543_v47, %v1153_v52  ;;  %v12275_v21 = vld [vmem:[#allocation229_spill] sm:$0xff]  ;;  %v12276_v39 = vld [vmem:[#allocation232_spill] sm:$0xff] }
 0x403   : > { %7343 = vmatpush3.bf16.msra.mxu0 %v8108_v4  ;;  %v2432_v7 = vmul.f32 %v10364_v2, %v12273_v3  ;;  %v1988_v51 = vmul.f32 %v10351_v59, %v12274_v48  ;;  %v1600_v61 = vadd.f32 %v1545_v38, %v1155_v23  ;;  %v2042_v58 = vadd.f32 %v1987_v46, %v1597_v16  ;;  %v4872_v55 = vld [vmem:[#allocation3 + $0x3c] sm:$0xff] }
 0x404   : > { %v10715_v56 = vpop.permute.xlu1 %3215  ;;  %7546 = vmatprep.subr.bf16.mxu0 %v12053_v1  ;;  %v4691_v28 = vrot.slane %v10713_v43, 3  ;;  %v2044_v25 = vadd.f32 %v1989_v36, %v1599_v54  ;;  %v2877_v4 = vmul.f32 %v10378_v10, %v10648_v42  ;;  %v2434_v19 = vmul.f32 %v10364_v2, %v12276_v39  ;;  %v4785_v53 = vld [vmem:[#allocation3 + $0x21] sm:$0xff]  ;;  %v12278_v5 = vld [vmem:[#allocation185_spill] sm:$0xff] }
 0x405   : > { %v4515_v15 = vld [vmem:[#allocation2 + $0x120] ss:$2 sm:$0xff]  ;;  %v4571_v12 = vld [vmem:[#allocation2 + $0x121] ss:$2 sm:$0xff]  ;;  %v10723_v49 = vpop.permute.xlu0 %3210  ;;  %7642 = vrot.lane.b32.xlu1 %v7641_v32, %s8200_s12  ;;  %v2433_v32 = vmul.f32 %v10364_v2, %v12275_v21  ;;  %v12277_v42 = vpack.i.bf16 %v9730_v45, %v9728_v17  ;;  %v2487_v11 = vadd.f32 %v2432_v7, %v2042_v58  ;;  %v3322_v38 = vmul.f32 %v10391_v33, %v10682_v37 }
 0x406   : > { %v4608_v8 = vadd.f32 %v4571_v12, %v4515_v15  ;;  %7637 = vrot.lane.b32.xlu0 %v7636_v31, %s8199_s30  ;;  %v7661_v46 = vpack.i.bf16 %v4873_v18, %v4872_v55  ;;  %v2043_v15 = vadd.f32 %v1988_v51, %v1598_v22  ;;  %v2879_v52 = vmul.f32 %v10378_v10, %v10663_v57 }
 0x407   : > { %v7656_v45 = vpack.i.bf16 %v4786_v60, %v4785_v53  ;;  %v1990_v16 = vmul.f32 %v10351_v59, %v12278_v5  ;;  %v2932_v37 = vadd.f32 %v2877_v4, %v2487_v11  ;;  %v2489_v48 = vadd.f32 %v2434_v19, %v2044_v25  ;;  %v4893_v59 = vld [vmem:[#allocation3 + $0x3d] sm:$0xff]  ;;  %v12279_v25 = vld [vmem:[#allocation231_spill] sm:$0xff] }
 0x408   : > { %v4692_v50 = vrot.slane %v4608_v8, 3  ;;  %v3651_v44 = vpop.permute.xlu1 %3650  ;;  %v4894_v8 = vld [vmem:[#allocation3 + $0x45] sm:$0xff]  ;;  %v2488_v22 = vadd.f32 %v2433_v32, %v2043_v15  ;;  %v2878_v51 = vmul.f32 %v10378_v10, %v10666_v24  ;;  %v3324_v58 = vmul.f32 %v10391_v33, %v10715_v56 }
 0x409   : > { %v4517_v14 = vld [vmem:[#allocation2 + $0x130] ss:$2 sm:$0xff]  ;;  %v4573_v20 = vld [vmem:[#allocation2 + $0x131] ss:$2 sm:$0xff]  ;;  %v10735_v30 = vpop.permute.xlu0 %3220  ;;  %7652 = vrot.lane.b32.xlu1 %v7651_v6, %s8198_s29  ;;  %v3767_v54 = vmul.f32 %v10403_v63, %v3651_v44  ;;  %v3377_v18 = vadd.f32 %v3322_v38, %v2932_v37  ;;  %v7671_v4 = vpack.i.bf16 %v4894_v8, %v4893_v59  ;;  %v3323_v24 = vmul.f32 %v10391_v33, %v10723_v49  ;;  %v4769_v32 = vld [vmem:[#allocation3 + $0x48] sm:$0xff] }
 0x40a   : > { %v4693_v47 = vsel %vm4620_vm4, %v4691_v28, %v4692_v50  ;;  %v10743_v31 = vadd.f32 %v4573_v20, %v4517_v14  ;;  %7647 = vrot.lane.b32.xlu0 %v12277_v42, %s8200_s12  ;;  %v4806_v14 = vld [vmem:[#allocation3 + $0x22] sm:$0xff]  ;;  %v2934_v20 = vadd.f32 %v2879_v52, %v2489_v48  ;;  %v2045_v42 = vadd.f32 %v1990_v16, %v1600_v61  ;;  %v4875_v52 = vld [vmem:[#allocation3 + $0x54] sm:$0xff] }
 0x40b   : > { %v4698_v36 = vadd.f32 %v4693_v47, %v10494_v26  ;;  %v4807_v26 = vld [vmem:[#allocation3 + $0x2a] sm:$0xff]  ;;  %v3822_v39 = vadd.f32 %v3767_v54, %v3377_v18  ;;  %v2933_v55 = vadd.f32 %v2878_v51, %v2488_v22  ;;  %v4768_v49 = vld [vmem:[#allocation3 + $0x40] sm:$0xff] }
 0x40c   : > { %v10751_v27 = vpop.f32.mrb[0].mxu1  ;;  %v4694_v12 = vrot.slane %v10743_v31, 3  ;;  %v3661_v17 = vpop.permute.xlu1 %3660  ;;  %v7666_v21 = vpack.i.bf16 %v4807_v26, %v4806_v14  ;;  %v3379_v38 = vadd.f32 %v3324_v58, %v2934_v20  ;;  %v7681_v53 = vpack.i.bf16 %v4769_v32, %v4768_v49  ;;  %v4895_v14 = vld [vmem:[#allocation3 + $0x4d] sm:$0xff]  ;;  %v4789_v49 = vld [vmem:[#allocation3 + $0x41] sm:$0xff] }
 0x40d   : > { %v7504_v23 = vpop.f32.mrb[1].mxu1  ;;  %v3656_v7 = vpop.permute.xlu0 %3655  ;;  %7662 = vrot.lane.b32.xlu1 %v7661_v46, %s8199_s30  ;;  %v4700_v6 = vmul.f32 0.25, %v4698_v36  ;;  %v3378_v15 = vadd.f32 %v3323_v24, %v2933_v55  ;;  %v4808_v24 = vld [vmem:[#allocation3 + $0x32] sm:$0xff] }
 0x40e   : > { %v10760_v3 = vpop.f32.mrb[2].mxu1  ;;  %v4695_v57 = vsel %vm4620_vm4, %v4692_v50, %v4694_v12  ;;  %7657 = vrot.lane.b32.xlu0 %v7656_v45, %s8198_s29  ;;  %v2435_v50 = vmul.f32 %v10364_v2, %v12279_v25  ;;  %v2880_v2 = vmul.f32 %v10378_v10, %v10688_v41  ;;  %v3768_v11 = vmul.f32 %v10403_v63, %v3656_v7  ;;  %v4788_v45 = vld [vmem:[#allocation3 + $0x39] sm:$0xff] }
 0x40f   : > { %v7505_v28 = vpop.f32.mrb[3].mxu1  ;;  %v4699_v44 = vadd.f32 %v4695_v57, %v10713_v43  ;;  %4751 = vst.msk [vmem:[#allocation3 + $0x6e] sm:$0xf0] %vm4741_vm6, %v4700_v6  ;;  %v3769_v43 = vmul.f32 %v10403_v63, %v3661_v17  ;;  %v3325_v12 = vmul.f32 %v10391_v33, %v10735_v30  ;;  %v12280_v33 = vpack.i.bf16 %v9977_v9, %v9983_v62  ;;  %v4874_v30 = vld [vmem:[#allocation3 + $0x4c] sm:$0xff]  ;;  %v4809_v9 = vld [vmem:[#allocation3 + $0x3a] sm:$0xff] }
 0x410   : > { %v4096_v60 = vpop.permute.xlu1 %4095  ;;  %v2490_v36 = vadd.f32 %v2435_v50, %v2045_v42  ;;  %v3823_v5 = vadd.f32 %v3768_v11, %v3378_v15  ;;  %v7691_v26 = vpack.i.bf16 %v4875_v52, %v4874_v30  ;;  %v4787_v6 = vld [vmem:[#allocation3 + $0x31] sm:$0xff]  ;;  %v4810_v52 = vld [vmem:[#allocation3 + $0x42] sm:$0xff] }
 0x411   : > { %v4212_v19 = vmul.f32 %v10421_v13, %v4096_v60  ;;  %v3666_v56 = vpop.permute.xlu0 %3665  ;;  %7672 = vrot.lane.b32.xlu1 %v7671_v4, %s8200_s12  ;;  %v4701_v47 = vmul.f32 0.25, %v4699_v44  ;;  %v3824_v23 = vadd.f32 %v3769_v43, %v3379_v38  ;;  %v7686_v51 = vpack.i.bf16 %v4788_v45, %v4787_v6  ;;  %v4896_v28 = vld [vmem:[#allocation3 + $0x55] sm:$0xff]  ;;  %v4790_v38 = vld [vmem:[#allocation3 + $0x49] sm:$0xff]  ;;  %v4897_v45 = vld [vmem:[#allocation3 + $0x5d] sm:$0xff] }
 0x412   : > { %7667 = vrot.lane.b32.xlu0 %v7666_v21, %s8199_s30  ;;  %v2935_v8 = vadd.f32 %v2880_v2, %v2490_v36  ;;  %v3770_v16 = vmul.f32 %v10403_v63, %v3666_v56  ;;  %v7701_v20 = vpack.i.bf16 %v4896_v28, %v4895_v14  ;;  %v4770_v43 = vld [vmem:[#allocation3 + $0x50] sm:$0xff]  ;;  %v4877_v2 = vld [vmem:[#allocation3 + $0x64] sm:$0xff] }
 0x413   : > { %v4267_v46 = vadd.f32 %v4212_v19, %v3822_v39  ;;  %4752 = vst.msk [vmem:[#allocation3 + $0x76] sm:$0x3f] %vm4451_vm7, %v4701_v47  ;;  %v7696_v39 = vpack.i.bf16 %v4809_v9, %v4808_v24  ;;  %v4792_v9 = vld [vmem:[#allocation3 + $0x59] sm:$0xff]  ;;  %v12284_v14 = vld [vmem:[#allocation244_spill] sm:$0xff] }
 0x414   : > { %v4106_v61 = vpop.permute.xlu1 %4105  ;;  %v3380_v22 = vadd.f32 %v3325_v12, %v2935_v8  ;;  %v7716_v12 = vpack.i.bf16 %v4790_v38, %v4789_v49  ;;  %v4812_v38 = vld [vmem:[#allocation3 + $0x52] sm:$0xff] }
 0x415   : > { %v4326_v10 = vadd.f32 %v10451_v0, %v4267_v46  ;;  %v4214_v41 = vmul.f32 %v10421_v13, %v4106_v61  ;;  %v4101_v17 = vpop.permute.xlu0 %4100  ;;  %7682 = vrot.lane.b32.xlu1 %v7681_v53, %s8198_s29  ;;  %v4876_v53 = vld [vmem:[#allocation3 + $0x5c] sm:$0xff]  ;;  %v4898_v61 = vld [vmem:[#allocation3 + $0x65] sm:$0xff] }
 0x416   : > { %v4213_v37 = vmul.f32 %v10421_v13, %v4101_v17  ;;  %7677 = vrot.lane.b32.xlu0 %v12280_v33, %s8200_s12  ;;  %v3825_v62 = vadd.f32 %v3770_v16, %v3380_v22  ;;  %v10802_v58 = vld [vmem:[#allocation3 + $0x6e] sm:$0xff]  ;;  %v7721_v36 = vpack.i.bf16 %v4877_v2, %v4876_v53  ;;  %v7731_v8 = vpack.i.bf16 %v4898_v61, %v4897_v45 }
 0x417   : > { %v4381_v54 = vmax.f32 %v4326_v10, 0.0  ;;  %v4269_v7 = vadd.f32 %v4214_v41, %v3824_v23  ;;  %v4811_v17 = vld [vmem:[#allocation3 + $0x4a] sm:$0xff] }
 0x418   : > { %v4268_v48 = vadd.f32 %v4213_v37, %v3823_v5  ;;  %v10794_v57 = vpop.permute.xlu1 %2790  ;;  %v7726_v16 = vpack.i.bf16 %v4811_v17, %v4810_v52  ;;  %v4772_v37 = vld [vmem:[#allocation3 + $0x60] sm:$0xff]  ;;  %v4773_v33 = vld [vmem:[#allocation3 + $0x68] sm:$0xff]  ;;  %v12288_v53 = vld [vmem:[#allocation44_spill] sm:$0xff] }
 0x419   : > { %4437 = vst.msk [vmem:[#allocation2 + $0x140] sm:$0xff] %vm4396_vm0, %v4381_v54  ;;  %v4328_v63 = vadd.f32 %v10451_v0, %v4269_v7  ;;  %v4111_v59 = vpop.permute.xlu0 %4110  ;;  %7692 = vrot.lane.b32.xlu1 %v7691_v26, %s8199_s30  ;;  %v7741_v6 = vpack.i.bf16 %v4773_v33, %v4772_v37  ;;  %v12287_v2 = vld [vmem:[#allocation43_spill] sm:$0xff]  ;;  %v12290_v52 = vld [vmem:[#allocation46_spill] sm:$0xff]  ;;  %v12291_v17 = vld [vmem:[#allocation140_spill] sm:$0xff] }
 0x41a   : > { %v4327_v44 = vadd.f32 %v10451_v0, %v4268_v48  ;;  %v4215_v18 = vmul.f32 %v10421_v13, %v4111_v59  ;;  %7687 = vrot.lane.b32.xlu0 %v7686_v51, %s8198_s29  ;;  %v10804_v4 = vld [vmem:[#allocation3 + $0x76] sm:$0xff] }
 0x41b   : > { %v4383_v25 = vmax.f32 %v4328_v63, 0.0  ;;  %v5562_v50 = vpack.c.bf16 %v10804_v4, %v10802_v58  ;;  %v4771_v13 = vld [vmem:[#allocation3 + $0x58] sm:$0xff] }
 0x41c   : > { %v4382_v60 = vmax.f32 %v4327_v44, 0.0  ;;  %v4270_v21 = vadd.f32 %v4215_v18, %v3825_v62  ;;  %v10808_v32 = vpop.permute.xlu1 %2800  ;;  %v7711_v47 = vpack.i.bf16 %v4771_v13, %v4770_v43  ;;  %v4879_v28 = vld [vmem:[#allocation3 + $0x74] sm:$0xff] }
 0x41d   : > { %4439 = vst.msk [vmem:[#allocation2 + $0x150] sm:$0xff] %vm4396_vm0, %v4383_v25  ;;  %7523 = vmatmul.mubr.msk.bf16.gmra.mrb[20].mxu1 %vm4396_vm0, %v5562_v50  ;;  %v10812_v19 = vpop.permute.xlu0 %2795  ;;  %7702 = vrot.lane.b32.xlu1 %v7701_v20, %s8200_s12  ;;  %v4791_v59 = vld [vmem:[#allocation3 + $0x51] sm:$0xff] }
 0x41e   : > { %4438 = vst.msk [vmem:[#allocation2 + $0x148] sm:$0xff] %vm4396_vm0, %v4382_v60  ;;  %v4329_v56 = vadd.f32 %v10451_v0, %v4270_v21  ;;  %7697 = vrot.lane.b32.xlu0 %v7696_v39, %s8199_s30  ;;  %7526 = vmatprep.mubr.msk.bf16.mxu1 %vm8197_vm1, %v12053_v1  ;;  %v12281_v0 = vld [vmem:[#allocation246_spill] sm:$0xff]  ;;  %v12283_v18 = vld [vmem:[#allocation261_spill] sm:$0xff]  ;;  %v4878_v50 = vld [vmem:[#allocation3 + $0x6c] sm:$0xff] }
 0x41f   : > { %v12282_v46 = vpack.i.bf16 %v10114_v40, %v12281_v0  ;;  %v12285_v25 = vpack.i.bf16 %v12283_v18, %v12284_v14  ;;  %v7751_v20 = vpack.i.bf16 %v4879_v28, %v4878_v50  ;;  %v10856_v60 = vld [vmem:[%s11806_s1 + $0x1] ss:$0 sm:$0xff]  ;;  %v4813_v0 = vld [vmem:[#allocation3 + $0x5a] sm:$0xff]  ;;  %v10899_v28 = vld [vmem:[%s11806_s1 + $0x3] ss:$0 sm:$0xff] }
 0x420   : > { %v4384_v42 = vmax.f32 %v4329_v56, 0.0  ;;  %v10820_v55 = vpop.permute.xlu1 %3235  ;;  %v12286_v21 = vld [vmem:[#allocation91_spill] sm:$0xff]  ;;  %v7746_v56 = vpack.i.bf16 %v4792_v9, %v4791_v59  ;;  %v12293_v37 = vld [vmem:[#allocation89_spill] sm:$0xff]  ;;  %v12296_v59 = vld [vmem:[#allocation186_spill] sm:$0xff] }
 0x421   : > { %v10822_v11 = vpop.permute.xlu0 %2805  ;;  %7712 = vrot.lane.b32.xlu1 %v7711_v47, %s8198_s29  ;;  %v1103_v39 = vmul.f32 %v10856_v60, %v12286_v21  ;;  %v4900_v47 = vld [vmem:[#allocation3 + $0x75] sm:$0xff]  ;;  %v1101_v33 = vmul.f32 %v10856_v60, %v12293_v37  ;;  %v1993_v9 = vmul.f32 %v10899_v28, %v12296_v59 }
 0x422   : > { %4440 = vst.msk [vmem:[#allocation2 + $0x158] sm:$0xff] %vm4396_vm0, %v4384_v42  ;;  %7707 = vrot.lane.b32.xlu0 %v12282_v46, %s8200_s12  ;;  %v10865_v42 = vld [vmem:[%s11806_s1] ss:$0 sm:$0xff]  ;;  %v4774_v18 = vld [vmem:[#allocation3 + $0x70] sm:$0xff]  ;;  %v4775_v14 = vld [vmem:[#allocation3 + $0x78] sm:$0xff] }
 0x423   : > { %v12299_v21 = vld [vmem:[#allocation92_spill] sm:$0xff]  ;;  %v7771_v37 = vpack.i.bf16 %v4775_v14, %v4774_v18  ;;  %v12308_v14 = vld [vmem:[#allocation189_spill] sm:$0xff] }
 0x424   : > { %v10830_v15 = vpop.permute.xlu1 %3245  ;;  %v12306_v59 = vld [vmem:[#allocation188_spill] sm:$0xff] }
 0x425   : > { %v4519_v23 = vld [vmem:[#allocation2 + $0x140] ss:$2 sm:$0xff]  ;;  %v4575_v10 = vld [vmem:[#allocation2 + $0x141] ss:$2 sm:$0xff]  ;;  %v10832_v41 = vpop.permute.xlu0 %3240  ;;  %7722 = vrot.lane.b32.xlu1 %v7721_v36, %s8199_s30  ;;  %v656_v36 = vmul.f32 %v10865_v42, %v12288_v53 }
 0x426   : > { %7717 = vrot.lane.b32.xlu0 %v7716_v12, %s8198_s29  ;;  %v4610_v40 = vadd.f32 %v4575_v10, %v4519_v23  ;;  %v12289_v12 = vld [vmem:[#allocation45_spill] sm:$0xff]  ;;  %v658_v23 = vmul.f32 %v10865_v42, %v12290_v52  ;;  %v10881_v10 = vld [vmem:[%s11806_s1 + $0x2] ss:$0 sm:$0xff]  ;;  %v12303_v52 = vld [vmem:[#allocation236_spill] sm:$0xff] }
 0x427   : > { %v659_v61 = vmul.f32 %v10865_v42, %v12289_v12  ;;  %v1548_v45 = vmul.f32 %v10881_v10, %v12291_v17  ;;  %v10925_v12 = vld [vmem:[%s11806_s1 + $0x4] ss:$0 sm:$0xff]  ;;  %v12304_v17 = vld [vmem:[#allocation52_spill] sm:$0xff] }
 0x428   : > { %v10836_v5 = vpop.permute.xlu1 %2780  ;;  %v4704_v22 = vrot.slane %v4610_v40, 3 }
 0x429   : > { %v4521_v30 = vld [vmem:[#allocation2 + $0x150] ss:$2 sm:$0xff]  ;;  %v4577_v54 = vld [vmem:[#allocation2 + $0x151] ss:$2 sm:$0xff]  ;;  %v10838_v7 = vpop.permute.xlu0 %3250  ;;  %7732 = vrot.lane.b32.xlu1 %v7731_v8, %s8200_s12  ;;  %v4899_v8 = vld [vmem:[#allocation3 + $0x6d] sm:$0xff] }
 0x42a   : > { %v4611_v26 = vadd.f32 %v4577_v54, %v4521_v30  ;;  %7727 = vrot.lane.b32.xlu0 %v7726_v16, %s8199_s30  ;;  %v12294_v30 = vld [vmem:[#allocation93_spill] sm:$0xff] }
 0x42b   : > { %v1105_v54 = vmul.f32 %v10856_v60, %v12294_v30 }
 0x42c   : > { %v4705_v48 = vrot.slane %v4611_v26, 3  ;;  %v10842_v51 = vpop.permute.xlu1 %2820  ;;  %v7761_v26 = vpack.i.bf16 %v4900_v47, %v4899_v8  ;;  %v10932_v8 = vmul.f32 %v10865_v42, %v12304_v17 }
 0x42d   : > { %v10844_v63 = vpop.permute.xlu0 %2785  ;;  %7742 = vrot.lane.b32.xlu1 %v7741_v6, %s8198_s29  ;;  %v1158_v6 = vadd.f32 %v1103_v39, %v658_v23  ;;  %v1102_v39 = vmul.f32 %v10856_v60, %v12299_v21  ;;  %v2438_v23 = vmul.f32 %v10925_v12, %v12303_v52  ;;  %v12309_v52 = vld [vmem:[#allocation238_spill] sm:$0xff] }
 0x42e   : > { %v4706_v62 = vsel %vm4620_vm4, %v4704_v22, %v4705_v48  ;;  %v4710_v44 = vadd.f32 %v4705_v48, %v4610_v40  ;;  %7737 = vrot.lane.b32.xlu0 %v12285_v25, %s8200_s12  ;;  %v12292_v40 = vld [vmem:[#allocation47_spill] sm:$0xff]  ;;  %v12295_v22 = vld [vmem:[#allocation94_spill] sm:$0xff]  ;;  %v12297_v25 = vld [vmem:[#allocation48_spill] sm:$0xff]  ;;  %v2440_v17 = vmul.f32 %v10925_v12, %v12309_v52 }
 0x42f   : > { %v4709_v24 = vadd.f32 %v4706_v62, %v10743_v31  ;;  %v657_v31 = vmul.f32 %v10865_v42, %v12287_v2  ;;  %v661_v16 = vmul.f32 %v10865_v42, %v12292_v40  ;;  %v1104_v48 = vmul.f32 %v10856_v60, %v12295_v22  ;;  %v12301_v2 = vld [vmem:[#allocation139_spill] sm:$0xff] }
 0x430   : > { %v4712_v43 = vmul.f32 0.25, %v4710_v44  ;;  %v10860_v13 = vpop.permute.xlu1 %3680  ;;  %v7756_v44 = vpack.i.bf16 %v4813_v0, %v4812_v38  ;;  %v660_v50 = vmul.f32 %v10865_v42, %v12297_v25  ;;  %v1549_v38 = vmul.f32 %v10881_v10, %v12301_v2  ;;  %v10992_v52 = vld [vmem:[%s11806_s1 + $0x7] ss:$0 sm:$0xff] }
 0x431   : > { %v10869_v49 = vpop.permute.xlu0 %2825  ;;  %7752 = vrot.lane.b32.xlu1 %v7751_v20, %s8199_s30  ;;  %v4711_v46 = vmul.f32 0.25, %v4709_v24  ;;  %v12298_v20 = vld [vmem:[#allocation51_spill] sm:$0xff]  ;;  %v1603_v0 = vadd.f32 %v1548_v45, %v1158_v6  ;;  %v10934_v40 = vadd.f32 %v1101_v33, %v656_v36  ;;  %v1159_v30 = vadd.f32 %v1104_v48, %v659_v61 }
 0x432   : > { %4754 = vst.msk [vmem:[#allocation3 + $0x86] sm:$0xf] %vm4477_vm2, %v4712_v43  ;;  %7747 = vrot.lane.b32.xlu0 %v7746_v56, %s8198_s29  ;;  %v10909_v24 = vmul.f32 %v10865_v42, %v12298_v20  ;;  %v12300_v43 = vld [vmem:[#allocation96_spill] sm:$0xff]  ;;  %v1160_v45 = vadd.f32 %v1105_v54, %v660_v50  ;;  %v1995_v25 = vmul.f32 %v10899_v28, %v12306_v59  ;;  %v10951_v36 = vld [vmem:[%s11806_s1 + $0x5] ss:$0 sm:$0xff] }
 0x433   : > { %4753 = vst.msk [vmem:[#allocation3 + $0x7e] sm:$0xfc] %vm4744_vm8, %v4711_v46  ;;  %v1106_v56 = vmul.f32 %v10856_v60, %v12300_v43  ;;  %v12302_v46 = vld [vmem:[#allocation142_spill] sm:$0xff]  ;;  %v2048_v22 = vadd.f32 %v1993_v9, %v1603_v0  ;;  %v10942_v21 = vadd.f32 %v1102_v39, %v657_v31  ;;  %v12307_v43 = vld [vmem:[#allocation97_spill] sm:$0xff]  ;;  %v2883_v61 = vmul.f32 %v10951_v36, %v10794_v57  ;;  %v4794_v48 = vld [vmem:[#allocation3 + $0x69] sm:$0xff] }
 0x434   : > { %v10903_v62 = vpop.permute.xlu1 %3690  ;;  %v1550_v53 = vmul.f32 %v10881_v10, %v12302_v46  ;;  %v10946_v2 = vmul.f32 %v10856_v60, %v12307_v43  ;;  %v1604_v9 = vadd.f32 %v1549_v38, %v1159_v30  ;;  %v1994_v50 = vmul.f32 %v10899_v28, %v12308_v14  ;;  %v10975_v38 = vld [vmem:[%s11806_s1 + $0x6] ss:$0 sm:$0xff] }
 0x435   : > { %v10915_v47 = vpop.permute.xlu0 %3685  ;;  %7762 = vrot.lane.b32.xlu1 %v7761_v26, %s8200_s12  ;;  %v12305_v26 = vld [vmem:[#allocation141_spill] sm:$0xff]  ;;  %v2493_v39 = vadd.f32 %v2438_v23, %v2048_v22 }
 0x436   : > { %7757 = vrot.lane.b32.xlu0 %v7756_v44, %s8199_s30  ;;  %v1551_v6 = vmul.f32 %v10881_v10, %v12305_v26  ;;  %v1161_v44 = vadd.f32 %v1106_v56, %v661_v16  ;;  %v4793_v16 = vld [vmem:[#allocation3 + $0x61] sm:$0xff]  ;;  %v1605_v18 = vadd.f32 %v1550_v53, %v1160_v45  ;;  %v3328_v53 = vmul.f32 %v10975_v38, %v10820_v55 }
 0x437   : > { %v7776_v59 = vpack.i.bf16 %v4794_v48, %v4793_v16  ;;  %v2885_v55 = vmul.f32 %v10951_v36, %v10808_v32  ;;  %v4815_v16 = vld [vmem:[#allocation3 + $0x6a] sm:$0xff] }
 0x438   : > { %v10940_v20 = vpop.permute.xlu1 %3225  ;;  %v2050_v45 = vadd.f32 %v1995_v25, %v1605_v18  ;;  %v12311_v48 = vld [vmem:[#allocation191_spill] sm:$0xff]  ;;  %v2884_v18 = vmul.f32 %v10951_v36, %v10812_v19 }
 0x439   : > { %v10955_v33 = vpop.f32.mrb[4].mxu1  ;;  %v10957_v54 = vpop.permute.xlu0 %3695  ;;  %7772 = vrot.lane.b32.xlu1 %v7771_v37, %s8198_s29  ;;  %v10960_v31 = vld [vmem:[#allocation3 + $0x86] sm:$0xff]  ;;  %v1996_v32 = vmul.f32 %v10899_v28, %v12311_v48  ;;  %v3775_v48 = vmul.f32 %v10992_v52, %v10903_v62  ;;  %v1164_v62 = vadd.f32 %v10946_v2, %v10932_v8 }
 0x43a   : > { %v7508_v56 = vpop.f32.mrb[5].mxu1  ;;  %7767 = vrot.lane.b32.xlu0 %v7766_v35, %s8200_s12  ;;  %v10968_v57 = vld [vmem:[#allocation3 + $0x7e] sm:$0xff]  ;;  %v1606_v35 = vadd.f32 %v1551_v6, %v1161_v44  ;;  %v12310_v37 = vld [vmem:[#allocation235_spill] sm:$0xff]  ;;  %v3773_v6 = vmul.f32 %v10992_v52, %v10860_v13  ;;  %v2495_v13 = vadd.f32 %v2440_v17, %v2050_v45  ;;  %v11018_v17 = vld [vmem:[%s11806_s1 + $0x8] ss:$0 sm:$0xff] }
 0x43b   : > { %v4880_v0 = vld [vmem:[#allocation3 + $0x7c] sm:$0xff]  ;;  %v4881_v46 = vld [vmem:[#allocation3 + $0x84] sm:$0xff]  ;;  %v10979_v23 = vpop.f32.mrb[6].mxu1  ;;  %v5565_v34 = vpack.c.bf16 %v10960_v31, %v10968_v57  ;;  %v2439_v30 = vmul.f32 %v10925_v12, %v12310_v37  ;;  %v2938_v56 = vadd.f32 %v2883_v61, %v2493_v39  ;;  %v2049_v61 = vadd.f32 %v1994_v50, %v1604_v9 }
 0x43c   : > { %v7781_v29 = vpack.i.bf16 %v4881_v46, %v4880_v0  ;;  %v7509_v26 = vpop.f32.mrb[7].mxu1  ;;  %v10985_v22 = vpop.permute.xlu1 %3265  ;;  %v4901_v43 = vld [vmem:[#allocation3 + $0x7d] sm:$0xff]  ;;  %v4902_v14 = vld [vmem:[#allocation3 + $0x85] sm:$0xff]  ;;  %v3330_v0 = vmul.f32 %v10975_v38, %v10830_v15  ;;  %v3329_v50 = vmul.f32 %v10975_v38, %v10832_v41  ;;  %v2051_v45 = vadd.f32 %v1996_v32, %v1606_v35 }
 0x43d   : > { %7527 = vmatmul.mubr.msk.bf16.gmra.mrb[24].mxu1 %vm4396_vm0, %v5565_v34  ;;  %v10997_v25 = vpop.permute.xlu0 %3230  ;;  %v4814_v44 = vld [vmem:[#allocation3 + $0x62] sm:$0xff]  ;;  %v3383_v39 = vadd.f32 %v3328_v53, %v2938_v56  ;;  %v7791_v46 = vpack.i.bf16 %v4902_v14, %v4901_v43  ;;  %v2494_v34 = vadd.f32 %v2439_v30, %v2049_v61  ;;  %v2940_v26 = vadd.f32 %v2885_v55, %v2495_v13  ;;  %v12313_v14 = vld [vmem:[#allocation100_spill] sm:$0xff] }
 0x43e   : > { %7782 = vrot.lane.b32.xlu1 %v7781_v29, %s8199_s30  ;;  %7777 = vrot.lane.b32.xlu0 %v7776_v59, %s8198_s29  ;;  %v12312_v29 = vld [vmem:[#allocation237_spill] sm:$0xff]  ;;  %v7786_v19 = vpack.i.bf16 %v4815_v16, %v4814_v44  ;;  %v2886_v30 = vmul.f32 %v10951_v36, %v10822_v11  ;;  %v3774_v43 = vmul.f32 %v10992_v52, %v10915_v47  ;;  %v11042_v8 = vld [vmem:[%s11811_s6] ss:$0 sm:$0xff] }
 0x43f   : > { %7530 = vmatprep.mubr.msk.bf16.mxu1 %vm8197_vm1, %v12053_v1  ;;  %v2441_v9 = vmul.f32 %v10925_v12, %v12312_v29  ;;  %v3828_v59 = vadd.f32 %v3773_v6, %v3383_v39  ;;  %v2939_v41 = vadd.f32 %v2884_v18, %v2494_v34  ;;  %v1110_v56 = vmul.f32 %v10856_v60, %v12313_v14  ;;  %v12314_v47 = vld [vmem:[#allocation137_spill] sm:$0xff]  ;;  %v12315_v29 = vld [vmem:[#allocation138_spill] sm:$0xff]  ;;  %v12318_v14 = vld [vmem:[#allocation187_spill] sm:$0xff] }
 0x440   : > { %v4126_v37 = vpop.permute.xlu1 %4125  ;;  %v3385_v55 = vadd.f32 %v3330_v0, %v2940_v26  ;;  %v3331_v35 = vmul.f32 %v10975_v38, %v10838_v7  ;;  %v7796_v11 = vpack.i.bf16 %v10804_v4, %v10802_v58  ;;  %v1547_v32 = vmul.f32 %v10881_v10, %v12314_v47  ;;  %v4796_v0 = vld [vmem:[#allocation3 + $0x79] sm:$0xff] }
 0x441   : > { %v4218_v15 = vmul.f32 %v11018_v17, %v4126_v37  ;;  %v11021_v53 = vpop.permute.xlu0 %3270  ;;  %v2496_v44 = vadd.f32 %v2441_v9, %v2051_v45  ;;  %v3384_v16 = vadd.f32 %v3329_v50, %v2939_v41  ;;  %v3776_v58 = vmul.f32 %v10992_v52, %v10957_v54  ;;  %v12316_v26 = vld [vmem:[#allocation145_spill] sm:$0xff] }
 0x442   : > { %7792 = vrot.lane.b32.xlu1 %v7791_v46, %s8200_s12  ;;  %7787 = vrot.lane.b32.xlu0 %v7786_v19, %s8199_s30  ;;  %v3830_v18 = vadd.f32 %v3775_v48, %v3385_v55  ;;  %v1165_v34 = vadd.f32 %v1110_v56, %v10909_v24  ;;  %v1546_v9 = vmul.f32 %v10881_v10, %v12315_v29  ;;  %v4795_v19 = vld [vmem:[#allocation3 + $0x71] sm:$0xff] }
 0x443   : > { %v4273_v6 = vadd.f32 %v4218_v15, %v3828_v59  ;;  %v2941_v7 = vadd.f32 %v2886_v30, %v2496_v44  ;;  %v3829_v46 = vadd.f32 %v3774_v43, %v3384_v16  ;;  %v1555_v59 = vmul.f32 %v10881_v10, %v12316_v26  ;;  %v12317_v30 = vld [vmem:[#allocation184_spill] sm:$0xff]  ;;  %v12319_v44 = vld [vmem:[#allocation146_spill] sm:$0xff]  ;;  %v12320_v47 = vld [vmem:[#allocation233_spill] sm:$0xff] }
 0x444   : > { %v4136_v61 = vpop.permute.xlu1 %4135  ;;  %v7806_v41 = vpack.i.bf16 %v4796_v0, %v4795_v19  ;;  %v1602_v54 = vadd.f32 %v1547_v32, %v10942_v21  ;;  %v1991_v43 = vmul.f32 %v10899_v28, %v12317_v30  ;;  %v1992_v24 = vmul.f32 %v10899_v28, %v12318_v14  ;;  %v12324_v30 = vld [vmem:[#allocation241_spill] sm:$0xff] }
 0x445   : > { %v4332_v2 = vadd.f32 %v11042_v8, %v4273_v6  ;;  %v4220_v13 = vmul.f32 %v11018_v17, %v4136_v61  ;;  %v4131_v39 = vpop.permute.xlu0 %4130  ;;  %v3386_v48 = vadd.f32 %v3331_v35, %v2941_v7  ;;  %v4817_v6 = vld [vmem:[#allocation3 + $0x7a] sm:$0xff]  ;;  %v1554_v16 = vmul.f32 %v10881_v10, %v12319_v44 }
 0x446   : > { %v4219_v4 = vmul.f32 %v11018_v17, %v4131_v39  ;;  %7797 = vrot.lane.b32.xlu0 %v7796_v11, %s8200_s12  ;;  %v1601_v11 = vadd.f32 %v1546_v9, %v10934_v40  ;;  %v2437_v32 = vmul.f32 %v10925_v12, %v12320_v47  ;;  %v4816_v39 = vld [vmem:[#allocation3 + $0x72] sm:$0xff]  ;;  %v1610_v0 = vadd.f32 %v1555_v59, %v1165_v34 }
 0x447   : > { %v4387_v50 = vmax.f32 %v4332_v2, 0.0  ;;  %v4275_v37 = vadd.f32 %v4220_v13, %v3830_v18  ;;  %v3831_v35 = vadd.f32 %v3776_v58, %v3386_v48  ;;  %v12321_v18 = vld [vmem:[#allocation234_spill] sm:$0xff]  ;;  %v2882_v40 = vmul.f32 %v10951_v36, %v10844_v63  ;;  %v12323_v48 = vld [vmem:[#allocation192_spill] sm:$0xff] }
 0x448   : > { %v4274_v15 = vadd.f32 %v4219_v4, %v3829_v46  ;;  %v3671_v45 = vpop.permute.xlu1 %3670  ;;  %v2436_v2 = vmul.f32 %v10925_v12, %v12321_v18  ;;  %v7816_v4 = vpack.i.bf16 %v4817_v6, %v4816_v39  ;;  %v2046_v29 = vadd.f32 %v1991_v43, %v1601_v11  ;;  %v12325_v43 = vld [vmem:[#allocation242_spill] sm:$0xff] }
 0x449   : > { %4443 = vst.msk [vmem:[#allocation2 + $0x170] sm:$0xff] %vm4396_vm0, %v4387_v50  ;;  %v4334_v56 = vadd.f32 %v11042_v8, %v4275_v37  ;;  %v4141_v55 = vpop.permute.xlu0 %4140  ;;  %v2047_v50 = vadd.f32 %v1992_v24, %v1602_v54  ;;  %v12322_v37 = vld [vmem:[#allocation195_spill] sm:$0xff]  ;;  %v1609_v26 = vadd.f32 %v1554_v16, %v1164_v62  ;;  %v2881_v34 = vmul.f32 %v10951_v36, %v10836_v5 }
 0x44a   : > { %v4333_v61 = vadd.f32 %v11042_v8, %v4274_v15  ;;  %v4221_v21 = vmul.f32 %v11018_v17, %v4141_v55  ;;  %7807 = vrot.lane.b32.xlu0 %v7806_v41, %s8198_s29  ;;  %v2000_v19 = vmul.f32 %v10899_v28, %v12322_v37  ;;  %v1999_v15 = vmul.f32 %v10899_v28, %v12323_v48 }
 0x44b   : > { %v4389_v13 = vmax.f32 %v4334_v56, 0.0  ;;  %v2492_v41 = vadd.f32 %v2437_v32, %v2047_v50  ;;  %v2491_v54 = vadd.f32 %v2436_v2, %v2046_v29  ;;  %v2445_v63 = vmul.f32 %v10925_v12, %v12324_v30 }
 0x44c   : > { %v4388_v7 = vmax.f32 %v4333_v61, 0.0  ;;  %v4276_v46 = vadd.f32 %v4221_v21, %v3831_v35  ;;  %v3711_v58 = vpop.permute.xlu1 %3710  ;;  %v3327_v62 = vmul.f32 %v10975_v38, %v10997_v25  ;;  %v2444_v14 = vmul.f32 %v10925_v12, %v12325_v43 }
 0x44d   : > { %4445 = vst.msk [vmem:[#allocation2 + $0x180] sm:$0xff] %vm4396_vm0, %v4389_v13  ;;  %v3676_v9 = vpop.permute.xlu0 %3675  ;;  %v3326_v5 = vmul.f32 %v10975_v38, %v10940_v20  ;;  %v7826_v55 = vpack.i.bf16 %v10960_v31, %v10968_v57  ;;  %v2055_v6 = vadd.f32 %v2000_v19, %v1610_v0  ;;  %v2937_v44 = vadd.f32 %v2882_v40, %v2492_v41 }
 0x44e   : > { %4444 = vst.msk [vmem:[#allocation2 + $0x178] sm:$0xff] %vm4396_vm0, %v4388_v7  ;;  %v4335_v59 = vadd.f32 %v11042_v8, %v4276_v46  ;;  %7817 = vrot.lane.b32.xlu0 %v7816_v4, %s8199_s30  ;;  %v2890_v16 = vmul.f32 %v10951_v36, %v10869_v49  ;;  %v3772_v35 = vmul.f32 %v10992_v52, %v3676_v9  ;;  %v12326_v9 = vld [vmem:[#allocation99_spill] sm:$0xff] }
 0x44f   : > { %v2054_v61 = vadd.f32 %v1999_v15, %v1609_v26  ;;  %v2936_v21 = vadd.f32 %v2881_v34, %v2491_v54  ;;  %v2889_v11 = vmul.f32 %v10951_v36, %v10842_v51  ;;  %v3771_v20 = vmul.f32 %v10992_v52, %v3671_v45 }
 0x450   : > { %v4390_v24 = vmax.f32 %v4335_v59, 0.0  ;;  %v11092_v56 = vpop.permute.xlu1 %2830  ;;  %v2500_v31 = vadd.f32 %v2445_v63, %v2055_v6  ;;  %v3382_v57 = vadd.f32 %v3327_v62, %v2937_v44  ;;  %v3335_v47 = vmul.f32 %v10975_v38, %v11021_v53 }
 0x451   : > { %v3716_v25 = vpop.permute.xlu0 %3715  ;;  %v2499_v49 = vadd.f32 %v2444_v14, %v2054_v61  ;;  %v3381_v32 = vadd.f32 %v3326_v5, %v2936_v21  ;;  %v3334_v18 = vmul.f32 %v10975_v38, %v10985_v22  ;;  %v3779_v4 = vmul.f32 %v10992_v52, %v3711_v58  ;;  %v12327_v14 = vld [vmem:[#allocation53_spill] sm:$0xff] }
 0x452   : > { %4446 = vst.msk [vmem:[#allocation2 + $0x188] sm:$0xff] %vm4396_vm0, %v4390_v24  ;;  %7827 = vrot.lane.b32.xlu0 %v7826_v55, %s8200_s12  ;;  %v2945_v13 = vadd.f32 %v2890_v16, %v2500_v31  ;;  %v3827_v39 = vadd.f32 %v3772_v35, %v3382_v57  ;;  %v3780_v51 = vmul.f32 %v10992_v52, %v3716_v25  ;;  %v12328_v24 = vld [vmem:[#allocation147_spill] sm:$0xff] }
 0x453   : > { %v2944_v7 = vadd.f32 %v2889_v11, %v2499_v49  ;;  %v3826_v46 = vadd.f32 %v3771_v20, %v3381_v32  ;;  %v1111_v26 = vmul.f32 %v10856_v60, %v12326_v9  ;;  %v666_v5 = vmul.f32 %v10865_v42, %v12327_v14  ;;  %v12329_v11 = vld [vmem:[#allocation95_spill] sm:$0xff]  ;;  %v12330_v49 = vld [vmem:[#allocation194_spill] sm:$0xff]  ;;  %v12338_v14 = vld [vmem:[#allocation240_spill] sm:$0xff] }
 0x454   : > { %v4121_v2 = vpop.permute.xlu1 %4120  ;;  %v3390_v53 = vadd.f32 %v3335_v47, %v2945_v13  ;;  %v1556_v55 = vmul.f32 %v10881_v10, %v12328_v24  ;;  %v1107_v20 = vmul.f32 %v10856_v60, %v12329_v11  ;;  %v2001_v32 = vmul.f32 %v10899_v28, %v12330_v49  ;;  %v12331_v13 = vld [vmem:[#allocation50_spill] sm:$0xff] }
 0x455   : > { %v4217_v45 = vmul.f32 %v11018_v17, %v4121_v2  ;;  %v4116_v0 = vpop.permute.xlu0 %4115  ;;  %v3389_v37 = vadd.f32 %v3334_v18, %v2944_v7  ;;  %v4525_v19 = vld [vmem:[#allocation2 + $0x170] ss:$2 sm:$0xff]  ;;  %v4581_v48 = vld [vmem:[#allocation2 + $0x171] ss:$2 sm:$0xff]  ;;  %v1166_v47 = vadd.f32 %v1111_v26, %v666_v5  ;;  %v2442_v5 = vmul.f32 %v10925_v12, %v12338_v14 }
 0x456   : > { %v4216_v29 = vmul.f32 %v11018_v17, %v4116_v0  ;;  %v3835_v59 = vadd.f32 %v3780_v51, %v3390_v53  ;;  %v4613_v16 = vadd.f32 %v4581_v48, %v4525_v19  ;;  %v12332_v51 = vld [vmem:[#allocation98_spill] sm:$0xff]  ;;  %v12333_v0 = vld [vmem:[#allocation144_spill] sm:$0xff]  ;;  %v12334_v53 = vld [vmem:[#allocation243_spill] sm:$0xff] }
 0x457   : > { %v4272_v50 = vadd.f32 %v4217_v45, %v3827_v39  ;;  %v3834_v63 = vadd.f32 %v3779_v4, %v3389_v37  ;;  %v662_v39 = vmul.f32 %v10865_v42, %v12331_v13  ;;  %v1108_v45 = vmul.f32 %v10856_v60, %v12332_v51  ;;  %v12335_v26 = vld [vmem:[#allocation190_spill] sm:$0xff] }
 0x458   : > { %v4271_v40 = vadd.f32 %v4216_v29, %v3826_v46  ;;  %v4161_v22 = vpop.permute.xlu1 %4160  ;;  %v1552_v7 = vmul.f32 %v10881_v10, %v12333_v0  ;;  %v1611_v29 = vadd.f32 %v1556_v55, %v1166_v47  ;;  %v1997_v48 = vmul.f32 %v10899_v28, %v12335_v26 }
 0x459   : > { %v4527_v15 = vld [vmem:[#allocation2 + $0x180] ss:$2 sm:$0xff]  ;;  %v4583_v34 = vld [vmem:[#allocation2 + $0x181] ss:$2 sm:$0xff]  ;;  %v4331_v41 = vadd.f32 %v11042_v8, %v4272_v50  ;;  %v4225_v54 = vmul.f32 %v11018_v17, %v4161_v22  ;;  %v4156_v58 = vpop.permute.xlu0 %4155  ;;  %v2446_v50 = vmul.f32 %v10925_v12, %v12334_v53  ;;  %v1162_v9 = vadd.f32 %v1107_v20, %v662_v39 }
 0x45a   : > { %v11116_v30 = vadd.f32 %v4583_v34, %v4527_v15  ;;  %v4330_v62 = vadd.f32 %v11042_v8, %v4271_v40  ;;  %v4224_v43 = vmul.f32 %v11018_v17, %v4156_v58  ;;  %v12336_v34 = vld [vmem:[#allocation49_spill] sm:$0xff]  ;;  %v12340_v39 = vld [vmem:[#allocation239_spill] sm:$0xff] }
 0x45b   : > { %v4386_v6 = vmax.f32 %v4331_v41, 0.0  ;;  %v4280_v44 = vadd.f32 %v4225_v54, %v3835_v59  ;;  %v663_v59 = vmul.f32 %v10865_v42, %v12336_v34  ;;  %v2056_v41 = vadd.f32 %v2001_v32, %v1611_v29 }
 0x45c   : > { %v4716_v35 = vrot.slane %v11116_v30, 3  ;;  %v4385_v25 = vmax.f32 %v4330_v62, 0.0  ;;  %v4279_v61 = vadd.f32 %v4224_v43, %v3834_v63  ;;  %v2811_v21 = vpop.permute.xlu1 %2810  ;;  %v2891_v54 = vmul.f32 %v10951_v36, %v11092_v56  ;;  %v12337_v63 = vld [vmem:[#allocation143_spill] sm:$0xff] }
 0x45d   : > { %4442 = vst.msk [vmem:[#allocation2 + $0x168] sm:$0xff] %vm4396_vm0, %v4386_v6  ;;  %v4339_v31 = vadd.f32 %v11042_v8, %v4280_v44  ;;  %v3276_v57 = vpop.permute.xlu0 %3275  ;;  %v1553_v62 = vmul.f32 %v10881_v10, %v12337_v63  ;;  %v1607_v43 = vadd.f32 %v1552_v7, %v1162_v9  ;;  %v1163_v24 = vadd.f32 %v1108_v45, %v663_v59 }
 0x45e   : > { %v4721_v18 = vadd.f32 %v4716_v35, %v4613_v16  ;;  %4441 = vst.msk [vmem:[#allocation2 + $0x160] sm:$0xff] %vm4396_vm0, %v4385_v25  ;;  %v4338_v2 = vadd.f32 %v11042_v8, %v4279_v61  ;;  %v2501_v55 = vadd.f32 %v2446_v50, %v2056_v41  ;;  %v3336_v42 = vmul.f32 %v10975_v38, %v3276_v57  ;;  %v12339_v25 = vld [vmem:[#allocation193_spill] sm:$0xff] }
 0x45f   : > { %v4394_v46 = vmax.f32 %v4339_v31, 0.0  ;;  %v2052_v44 = vadd.f32 %v1997_v48, %v1607_v43  ;;  %v1998_v56 = vmul.f32 %v10899_v28, %v12339_v25  ;;  %v4715_v61 = vrot.slane %v4613_v16, 3 }
 0x460   : > { %v11139_v4 = vpop.f32.mrb[8].mxu1  ;;  %v4393_v37 = vmax.f32 %v4338_v2, 0.0  ;;  %v3721_v19 = vpop.permute.xlu1 %3720  ;;  %v4723_v22 = vmul.f32 0.25, %v4721_v18  ;;  %v2887_v31 = vmul.f32 %v10951_v36, %v2811_v21  ;;  %v2946_v10 = vadd.f32 %v2891_v54, %v2501_v55 }
 0x461   : > { %v7512_v40 = vpop.f32.mrb[9].mxu1  ;;  %4450 = vst.msk [vmem:[#allocation2 + $0x1a8] sm:$0xff] %vm4396_vm0, %v4394_v46  ;;  %v2816_v60 = vpop.permute.xlu0 %2815  ;;  %v3781_v32 = vmul.f32 %v10992_v52, %v3721_v19  ;;  %v1608_v18 = vadd.f32 %v1553_v62, %v1163_v24  ;;  %v2497_v2 = vadd.f32 %v2442_v5, %v2052_v44  ;;  %v4717_v13 = vsel %vm4620_vm4, %v4715_v61, %v4716_v35 }
 0x462   : > { %v11146_v15 = vpop.f32.mrb[10].mxu1  ;;  %4449 = vst.msk [vmem:[#allocation2 + $0x1a0] sm:$0xff] %vm4396_vm0, %v4393_v37  ;;  %v2443_v51 = vmul.f32 %v10925_v12, %v12340_v39  ;;  %v3391_v16 = vadd.f32 %v3336_v42, %v2946_v10  ;;  %v2888_v29 = vmul.f32 %v10951_v36, %v2816_v60  ;;  %v4844_v10 = vld [vmem:[#allocation3 + $0xf] sm:$0xff] }
 0x463   : > { %v7513_v58 = vpop.f32.mrb[11].mxu1  ;;  %4756 = vst.msk [vmem:[#allocation3 + $0x96] sm:$0x3] %vm4736_vm3, %v4723_v22  ;;  %v2053_v0 = vadd.f32 %v1998_v56, %v1608_v18  ;;  %v2942_v46 = vadd.f32 %v2887_v31, %v2497_v2  ;;  %v11185_v56 = vld [vmem:[#allocation3 + $0x80] sm:$0xff] }
 0x464   : > { %v3261_v6 = vpop.permute.xlu1 %3260  ;;  %v3836_v35 = vadd.f32 %v3781_v32, %v3391_v16  ;;  %v4760_v16 = vld [vmem:[#allocation3] sm:$0xff] }
 0x465   : > { %v4523_v11 = vld [vmem:[#allocation2 + $0x160] ss:$2 sm:$0xff]  ;;  %v4579_v20 = vld [vmem:[#allocation2 + $0x161] ss:$2 sm:$0xff]  ;;  %v3256_v47 = vpop.permute.xlu0 %3255  ;;  %v2498_v12 = vadd.f32 %v2443_v51, %v2053_v0  ;;  %v3333_v26 = vmul.f32 %v10975_v38, %v3261_v6 }
 0x466   : > { %v4612_v49 = vadd.f32 %v4579_v20, %v4523_v11  ;;  %v3332_v57 = vmul.f32 %v10975_v38, %v3256_v47  ;;  %v4797_v6 = vld [vmem:[#allocation3 + $0x81] sm:$0xff] }
 0x467   : > { %v2943_v54 = vadd.f32 %v2888_v29, %v2498_v12  ;;  %v4818_v0 = vld [vmem:[#allocation3 + $0x82] sm:$0xff] }
 0x468   : > { %v4720_v28 = vadd.f32 %v4717_v13, %v4612_v49  ;;  %v3701_v45 = vpop.permute.xlu1 %3700  ;;  %v3387_v22 = vadd.f32 %v3332_v57, %v2942_v46 }
 0x469   : > { %v4531_v7 = vld [vmem:[#allocation2 + $0x1a0] ss:$2 sm:$0xff]  ;;  %v4587_v21 = vld [vmem:[#allocation2 + $0x1a1] ss:$2 sm:$0xff]  ;;  %v3777_v53 = vmul.f32 %v10992_v52, %v3701_v45  ;;  %v4166_v50 = vpop.permute.xlu0 %4165  ;;  %v3388_v14 = vadd.f32 %v3333_v26, %v2943_v54 }
 0x46a   : > { %v4722_v37 = vmul.f32 0.25, %v4720_v28  ;;  %v11169_v19 = vadd.f32 %v4587_v21, %v4531_v7  ;;  %v4226_v40 = vmul.f32 %v11018_v17, %v4166_v50  ;;  %v4761_v45 = vld [vmem:[#allocation3 + $0x8] sm:$0xff] }
 0x46b   : > { %v3832_v36 = vadd.f32 %v3777_v53, %v3387_v22  ;;  %v4845_v53 = vld [vmem:[#allocation3 + $0x17] sm:$0xff] }
 0x46c   : > { %4755 = vst.msk [vmem:[#allocation3 + $0x8e] sm:$0xff] %vm4396_vm0, %v4722_v37  ;;  %v4726_v9 = vrot.slane %v11169_v19, 3  ;;  %v4281_v48 = vadd.f32 %v4226_v40, %v3836_v35  ;;  %v4146_v34 = vpop.permute.xlu1 %4145 }
 0x46d   : > { %v4222_v60 = vmul.f32 %v11018_v17, %v4146_v34  ;;  %v3706_v59 = vpop.permute.xlu0 %3705 }
 0x46e   : > { %v4731_v41 = vadd.f32 %v4726_v9, %v11116_v30  ;;  %v4340_v58 = vadd.f32 %v11042_v8, %v4281_v48  ;;  %v3778_v63 = vmul.f32 %v10992_v52, %v3706_v59 }
 0x46f   : > { %v4277_v62 = vadd.f32 %v4222_v60, %v3832_v36 }
 0x470   : > { %v4733_v43 = vmul.f32 0.25, %v4731_v41  ;;  %v4395_v5 = vmax.f32 %v4340_v58, 0.0  ;;  %v7593_v38 = vpop.permute.xlu1 %7592  ;;  %v3833_v42 = vadd.f32 %v3778_v63, %v3388_v14 }
 0x471   : > { %v4336_v24 = vadd.f32 %v11042_v8, %v4277_v62  ;;  %v4151_v55 = vpop.permute.xlu0 %4150  ;;  %v7594_v61 = vunpack.i.l.bf16 %v7593_v38  ;;  %v7595_v49 = vunpack.i.h.bf16 %v7593_v38 }
 0x472   : > { %4757 = vst.msk [vmem:[#allocation3 + $0x96] sm:$0xc0] %vm4738_vm5, %v4733_v43  ;;  %v4223_v30 = vmul.f32 %v11018_v17, %v4151_v55 }
 0x473   : > { %4452 = vst.msk [vmem:[#allocation2 + $0x1b0] sm:$0x3f] %vm4451_vm7, %v4395_v5  ;;  %v4391_v44 = vmax.f32 %v4336_v24, 0.0  ;;  %v4798_v25 = vld [vmem:[#allocation3 + $0x89] sm:$0xff]  ;;  %v4883_v13 = vld [vmem:[#allocation3 + $0x94] sm:$0xff]  ;;  %v5482_v50 = vsel %vm4396_vm0, %v4844_v10, %v7594_v61  ;;  %v5483_v12 = vsel %vm4396_vm0, %v4845_v53, %v7595_v49 }
 0x474   : > { %v11187_v52 = vld [vmem:[#allocation3 + $0x88] sm:$0xff]  ;;  %v4278_v11 = vadd.f32 %v4223_v30, %v3833_v42  ;;  %v7603_v20 = vpop.permute.xlu1 %7602  ;;  %v7836_v31 = vpack.i.bf16 %v4798_v25, %v4797_v6 }
 0x475   : > { %v7801_v47 = vpack.i.bf16 %v11187_v52, %v11185_v56  ;;  %4447 = vst.msk [vmem:[#allocation2 + $0x190] sm:$0xff] %vm4396_vm0, %v4391_v44  ;;  %v7604_v32 = vunpack.i.l.bf16 %v7603_v20  ;;  %v7598_v17 = vpop.permute.xlu0 %7597  ;;  %v4819_v18 = vld [vmem:[#allocation3 + $0x8a] sm:$0xff]  ;;  %v7605_v28 = vunpack.i.h.bf16 %v7603_v20 }
 0x476   : > { %v4882_v2 = vld [vmem:[#allocation3 + $0x8c] sm:$0xff]  ;;  %v4337_v57 = vadd.f32 %v11042_v8, %v4278_v11  ;;  %v7600_v39 = vunpack.i.h.bf16 %v7598_v17  ;;  %v7599_v51 = vunpack.i.l.bf16 %v7598_v17  ;;  %7837 = vrot.lane.b32.xlu0 %v7836_v31, %s8198_s29  ;;  %v7846_v46 = vpack.i.bf16 %v4819_v18, %v4818_v0 }
 0x477   : > { %7802 = vrot.lane.b32.xlu1 %v7801_v47, %s8198_s29  ;;  %v7811_v29 = vpack.i.bf16 %v4883_v13, %v4882_v2  ;;  %v5503_v26 = vsel %vm5438_vm9, %v5482_v50, %v7604_v32  ;;  %v4839_v59 = vld [vmem:[#allocation3 + $0x8e] sm:$0xff]  ;;  %v5504_v43 = vsel %vm5438_vm9, %v5483_v12, %v7605_v28 }
 0x478   : > { %v4392_v7 = vmax.f32 %v4337_v57, 0.0  ;;  %v7613_v21 = vpop.permute.xlu1 %7612  ;;  %v5418_v48 = vsel %vm4396_vm0, %v4761_v45, %v7600_v39  ;;  %v5417_v34 = vsel %vm4396_vm0, %v4760_v16, %v7599_v51  ;;  %v4903_v62 = vld [vmem:[#allocation3 + $0x8d] sm:$0xff]  ;;  %v4846_v45 = vld [vmem:[#allocation3 + $0x1f] sm:$0xff] }
 0x479   : > { %v7615_v35 = vunpack.i.h.bf16 %v7613_v21  ;;  %v7614_v40 = vunpack.i.l.bf16 %v7613_v21  ;;  %v7608_v22 = vpop.permute.xlu0 %7607  ;;  %v4840_v41 = vld [vmem:[#allocation3 + $0x96] sm:$0xff]  ;;  %v4847_v28 = vld [vmem:[#allocation3 + $0x27] sm:$0xff] }
 0x47a   : > { %v4533_v8 = vld [vmem:[#allocation2 + $0x1b0] ss:$2 sm:$0x7]  ;;  %v4589_v37 = vld [vmem:[#allocation2 + $0x1b1] ss:$2 sm:$0x7]  ;;  %v7610_v36 = vunpack.i.h.bf16 %v7608_v22  ;;  %v7609_v60 = vunpack.i.l.bf16 %v7608_v22  ;;  %7847 = vrot.lane.b32.xlu0 %v7846_v46, %s8199_s30  ;;  %v5568_v63 = vpack.c.bf16 %v4840_v41, %v4839_v59  ;;  %v7856_v24 = vpack.i.bf16 %v4840_v41, %v4839_v59 }
 0x47b   : > { %4448 = vst.msk [vmem:[#allocation2 + $0x198] sm:$0xff] %vm4396_vm0, %v4392_v7  ;;  %7812 = vrot.lane.b32.xlu1 %v7811_v29, %s8199_s30  ;;  %v4904_v54 = vld [vmem:[#allocation3 + $0x95] sm:$0xff]  ;;  %v4617_v58 = vadd.f32 %v4589_v37, %v4533_v8  ;;  %v5524_v14 = vsel %vm5460_vm10, %v5503_v26, %v7614_v40  ;;  %v5525_v55 = vsel %vm5460_vm10, %v5504_v43, %v7615_v35 }
 0x47c   : > { %v7623_v5 = vpop.permute.xlu1 %7622  ;;  %v7821_v38 = vpack.i.bf16 %v4904_v54, %v4903_v62  ;;  %7531 = vmatmul.mubr.msk.bf16.gmra.mrb[28].mxu1 %vm4396_vm0, %v5568_v63  ;;  %v5546_v30 = vpack.c.bf16 %v5525_v55, %v5524_v14  ;;  %v5439_v6 = vsel %vm5438_vm9, %v5417_v34, %v7609_v60  ;;  %v5440_v44 = vsel %vm5438_vm9, %v5418_v48, %v7610_v36  ;;  %v8173_v36 = vld [vmem:[#allocation3 + $0x18] sm:$0xff]  ;;  %v8174_v59 = vld [vmem:[#allocation3 + $0x10] sm:$0xff] }
 0x47d   : > { %v7618_v42 = vpop.permute.xlu0 %7617  ;;  %v4727_v11 = vrot.slane %v4617_v58, 3  ;;  %7534 = vmatprep.mubr.msk.bf16.mxu1 %vm8197_vm1, %v12053_v1  ;;  %v7625_v20 = vunpack.i.h.bf16 %v7623_v5  ;;  %v7624_v17 = vunpack.i.l.bf16 %v7623_v5 }
 0x47e   : > { %v7620_v25 = vunpack.i.h.bf16 %v7618_v42  ;;  %v7619_v61 = vunpack.i.l.bf16 %v7618_v42  ;;  %7857 = vrot.lane.b32.xlu0 %v7856_v24, %s8200_s12  ;;  %5791 = vmatprep.mubr.bf16.mxu0 %v5546_v30  ;;  %v11231_v30 = vld [vmem:[#allocation3 + $0xa6] sm:$0xff] }
 0x47f   : > { %7822 = vrot.lane.b32.xlu1 %v7821_v38, %s8200_s12  ;;  %v4728_v51 = vsel %vm4620_vm4, %v4726_v9, %v4727_v11  ;;  %v5485_v0 = vsel %vm4396_vm0, %v4847_v28, %v7625_v20  ;;  %v5484_v21 = vsel %vm4396_vm0, %v4846_v45, %v7624_v17 }
 0x480   : > { %v7633_v31 = vpop.permute.xlu1 %7632  ;;  %v5461_v47 = vsel %vm5460_vm10, %v5439_v6, %v7619_v61  ;;  %v5462_v10 = vsel %vm5460_vm10, %v5440_v44, %v7620_v25  ;;  %v4849_v6 = vld [vmem:[#allocation3 + $0x37] sm:$0xff] }
 0x481   : > { %v7628_v18 = vpop.permute.xlu0 %7627  ;;  %v5545_v2 = vpack.c.bf16 %v5462_v10, %v5461_v47  ;;  %v7635_v57 = vunpack.i.h.bf16 %v7633_v31  ;;  %v7634_v39 = vunpack.i.l.bf16 %v7633_v31  ;;  %v4799_v61 = vld [vmem:[#allocation3 + $0x91] sm:$0xff] }
 0x482   : > { %v4529_v49 = vld [vmem:[#allocation2 + $0x190] ss:$2 sm:$0xff]  ;;  %v4585_v32 = vld [vmem:[#allocation2 + $0x191] ss:$2 sm:$0xff]  ;;  %v7630_v46 = vunpack.i.h.bf16 %v7628_v18  ;;  %v7629_v35 = vunpack.i.l.bf16 %v7628_v18  ;;  %v4848_v47 = vld [vmem:[#allocation3 + $0x2f] sm:$0xff] }
 0x483   : > { %v4615_v13 = vadd.f32 %v4585_v32, %v4529_v49  ;;  %5792 = vmatmul.mubr.bf16.vlgmr.msra.gmra.mrb[0].mxu0 %v5545_v2  ;;  %v5505_v37 = vsel %vm5438_vm9, %v5484_v21, %v7634_v39  ;;  %v5506_v19 = vsel %vm5438_vm9, %v5485_v0, %v7635_v57  ;;  %v11240_v18 = vld [vmem:[#allocation3 + $0x90] sm:$0xff] }
 0x484   : > { %v7643_v7 = vpop.permute.xlu1 %7642  ;;  %v5420_v60 = vsel %vm4396_vm0, %v8173_v36, %v7630_v46  ;;  %v5419_v41 = vsel %vm4396_vm0, %v8174_v59, %v7629_v35 }
 0x485   : > { %v4732_v16 = vadd.f32 %v4728_v51, %v4615_v13  ;;  %v7645_v29 = vunpack.i.h.bf16 %v7643_v7  ;;  %v7644_v53 = vunpack.i.l.bf16 %v7643_v7  ;;  %v7638_v50 = vpop.permute.xlu0 %7637 }
 0x486   : > { %v7640_v9 = vunpack.i.h.bf16 %v7638_v50  ;;  %v7639_v40 = vunpack.i.l.bf16 %v7638_v50  ;;  %v4820_v50 = vld [vmem:[#allocation3 + $0x92] sm:$0xff] }
 0x487   : > { %v4734_v8 = vmul.f32 0.25, %v4732_v16  ;;  %v5526_v22 = vsel %vm5460_vm10, %v5505_v37, %v7644_v53  ;;  %v5527_v12 = vsel %vm5460_vm10, %v5506_v19, %v7645_v29 }
 0x488   : > { %v7653_v26 = vpop.permute.xlu1 %7652  ;;  %v5549_v48 = vpack.c.bf16 %v5527_v12, %v5526_v22  ;;  %v5441_v63 = vsel %vm5438_vm9, %v5419_v41, %v7639_v40  ;;  %v5442_v62 = vsel %vm5438_vm9, %v5420_v60, %v7640_v9 }
 0x489   : > { %4758 = vst.msk [vmem:[#allocation3 + $0x9e] sm:$0xff] %vm4396_vm0, %v4734_v8  ;;  %v7648_v34 = vpop.permute.xlu0 %7647  ;;  %v7655_v43 = vunpack.i.h.bf16 %v7653_v26  ;;  %v7654_v24 = vunpack.i.l.bf16 %v7653_v26  ;;  %v8175_v26 = vld [vmem:[#allocation3 + $0x28] sm:$0xff] }
 0x48a   : > { %v7650_v54 = vunpack.i.h.bf16 %v7648_v34  ;;  %v7649_v58 = vunpack.i.l.bf16 %v7648_v34  ;;  %5799 = vmatprep.mubr.bf16.mxu0 %v5549_v48  ;;  %v8176_v34 = vld [vmem:[#allocation3 + $0x20] sm:$0xff] }
 0x48b   : > { %v5487_v10 = vsel %vm4396_vm0, %v4849_v6, %v7655_v43  ;;  %v5486_v2 = vsel %vm4396_vm0, %v4848_v47, %v7654_v24  ;;  %v4866_v6 = vld [vmem:[#allocation3 + $0xa8] sm:$0xff] }
 0x48c   : > { %v7663_v14 = vpop.permute.xlu1 %7662  ;;  %v5463_v5 = vsel %vm5460_vm10, %v5441_v63, %v7649_v58  ;;  %v5464_v38 = vsel %vm5460_vm10, %v5442_v62, %v7650_v54 }
 0x48d   : > { %v7658_v55 = vpop.permute.xlu0 %7657  ;;  %v5548_v42 = vpack.c.bf16 %v5464_v38, %v5463_v5  ;;  %v7665_v44 = vunpack.i.h.bf16 %v7663_v14  ;;  %v7664_v25 = vunpack.i.l.bf16 %v7663_v14 }
 0x48e   : > { %v7660_v0 = vunpack.i.h.bf16 %v7658_v55  ;;  %v7659_v7 = vunpack.i.l.bf16 %v7658_v55 }
 0x48f   : > { %5800 = vmatmul.mubr.bf16.gmra.mrb[4].mxu0 %v5548_v42  ;;  %v5508_v16 = vsel %vm5438_vm9, %v5487_v10, %v7665_v44  ;;  %v5507_v45 = vsel %vm5438_vm9, %v5486_v2, %v7664_v25  ;;  %v4888_v42 = vld [vmem:[#allocation3 + $0xbc] sm:$0x3f]  ;;  %v4886_v44 = vld [vmem:[#allocation3 + $0xac] sm:$0xff] }
 0x490   : > { %v11233_v11 = vld [vmem:[#allocation3 + $0x9e] sm:$0xff]  ;;  %v7673_v49 = vpop.permute.xlu1 %7672  ;;  %v5422_v48 = vsel %vm4396_vm0, %v8175_v26, %v7660_v0  ;;  %v5421_v36 = vsel %vm4396_vm0, %v8176_v34, %v7659_v7  ;;  %v4908_v26 = vld [vmem:[#allocation3 + $0xb5] sm:$0xff] }
 0x491   : > { %v4800_v20 = vld [vmem:[#allocation3 + $0x99] sm:$0xff]  ;;  %v5571_v32 = vpack.c.bf16 %v11231_v30, %v11233_v11  ;;  %v7675_v13 = vunpack.i.h.bf16 %v7673_v49  ;;  %v7674_v57 = vunpack.i.l.bf16 %v7673_v49  ;;  %v7668_v39 = vpop.permute.xlu0 %7667  ;;  %v4885_v46 = vld [vmem:[#allocation3 + $0xa4] sm:$0xff]  ;;  %v7886_v38 = vpack.i.bf16 %v11231_v30, %v11233_v11 }
 0x492   : > { %v11235_v31 = vld [vmem:[#allocation3 + $0x98] sm:$0xff]  ;;  %v7866_v17 = vpack.i.bf16 %v4800_v20, %v4799_v61  ;;  %v7670_v29 = vunpack.i.h.bf16 %v7668_v39  ;;  %v7669_v53 = vunpack.i.l.bf16 %v7668_v39  ;;  %v4906_v58 = vld [vmem:[#allocation3 + $0xa5] sm:$0xff] }
 0x493   : > { %v7831_v51 = vpack.i.bf16 %v11235_v31, %v11240_v18  ;;  %v4821_v28 = vld [vmem:[#allocation3 + $0x9a] sm:$0xff]  ;;  %7535 = vmatmul.mubr.msk.bf16.gmra.mrb[32].mxu1 %vm4396_vm0, %v5571_v32  ;;  %v5528_v8 = vsel %vm5460_vm10, %v5507_v45, %v7674_v57  ;;  %v5529_v37 = vsel %vm5460_vm10, %v5508_v16, %v7675_v13  ;;  %v4822_v49 = vld [vmem:[#allocation3 + $0xa2] sm:$0x3f] }
 0x494   : > { %7867 = vrot.lane.b32.xlu0 %v7866_v17, %s8198_s29  ;;  %v4884_v21 = vld [vmem:[#allocation3 + $0x9c] sm:$0xff]  ;;  %v7683_v19 = vpop.permute.xlu1 %7682  ;;  %v7876_v35 = vpack.i.bf16 %v4821_v28, %v4820_v50  ;;  %v5552_v9 = vpack.c.bf16 %v5529_v37, %v5528_v8  ;;  %7538 = vmatprep.mubr.msk.bf16.mxu1 %vm8197_vm1, %v12053_v1  ;;  %v5443_v63 = vsel %vm5438_vm9, %v5421_v36, %v7669_v53  ;;  %v4887_v17 = vld [vmem:[#allocation3 + $0xb4] sm:$0xff]  ;;  %v4851_v11 = vld [vmem:[#allocation3 + $0x47] sm:$0xff] }
 0x495   : > { %7832 = vrot.lane.b32.xlu1 %v7831_v51, %s8198_s29  ;;  %v11254_v40 = vpop.f32.mrb[12].mxu1  ;;  %v7678_v22 = vpop.permute.xlu0 %7677  ;;  %v7841_v12 = vpack.i.bf16 %v4885_v46, %v4884_v21  ;;  %v4905_v54 = vld [vmem:[#allocation3 + $0x9d] sm:$0xff]  ;;  %v5444_v62 = vsel %vm5438_vm9, %v5422_v48, %v7670_v29  ;;  %v7685_v25 = vunpack.i.h.bf16 %v7683_v19  ;;  %v7684_v61 = vunpack.i.l.bf16 %v7683_v19 }
 0x496   : > { %v7680_v60 = vunpack.i.h.bf16 %v7678_v22  ;;  %v7679_v59 = vunpack.i.l.bf16 %v7678_v22  ;;  %v7516_v41 = vpop.f32.mrb[13].mxu1  ;;  %5807 = vmatprep.mubr.bf16.mxu0 %v5552_v9  ;;  %v7851_v47 = vpack.i.bf16 %v4906_v58, %v4905_v54  ;;  %v4865_v32 = vld [vmem:[#allocation3 + $0xa0] sm:$0xff]  ;;  %v7896_v39 = vpack.i.bf16 %v4822_v49, %v4888_v42  ;;  %v8177_v34 = vld [vmem:[#allocation3 + $0x38] sm:$0xff]  ;;  %v4910_v58 = vld [vmem:[#allocation3 + $0xae] sm:$0xff] }
 0x497   : > { %v11262_v43 = vpop.f32.mrb[14].mxu1  ;;  %v4850_v30 = vld [vmem:[#allocation3 + $0x3f] sm:$0xff]  ;;  %v7861_v51 = vpack.i.bf16 %v4866_v6, %v4865_v32  ;;  %v7871_v28 = vpack.i.bf16 %v4887_v17, %v4886_v44  ;;  %v5489_v16 = vsel %vm4396_vm0, %v4851_v11, %v7685_v25  ;;  %v4867_v44 = vld [vmem:[#allocation3 + $0xb0] sm:$0x3f] }
 0x498   : > { %7877 = vrot.lane.b32.xlu0 %v7876_v35, %s8199_s30  ;;  %v7517_v14 = vpop.f32.mrb[15].mxu1  ;;  %v7693_v5 = vpop.permute.xlu1 %7692  ;;  %v5465_v24 = vsel %vm5460_vm10, %v5443_v63, %v7679_v59  ;;  %v5466_v55 = vsel %vm5460_vm10, %v5444_v62, %v7680_v60  ;;  %v5488_v45 = vsel %vm4396_vm0, %v4850_v30, %v7684_v61  ;;  %v8178_v60 = vld [vmem:[#allocation3 + $0x30] sm:$0xff]  ;;  %v4909_v49 = vld [vmem:[#allocation3 + $0xbd] sm:$0x3f] }
 0x499   : > { %7842 = vrot.lane.b32.xlu1 %v7841_v12, %s8199_s30  ;;  %v7688_v20 = vpop.permute.xlu0 %7687  ;;  %v5551_v10 = vpack.c.bf16 %v5466_v55, %v5465_v24  ;;  %v7695_v2 = vunpack.i.h.bf16 %v7693_v5  ;;  %v7694_v13 = vunpack.i.l.bf16 %v7693_v5  ;;  %v4907_v12 = vld [vmem:[#allocation3 + $0xad] sm:$0xff]  ;;  %v4911_v63 = vld [vmem:[#allocation3 + $0xb6] sm:$0xff] }
 0x49a   : > { %v7690_v53 = vunpack.i.h.bf16 %v7688_v20  ;;  %v7689_v50 = vunpack.i.l.bf16 %v7688_v20  ;;  %v7881_v5 = vpack.i.bf16 %v4908_v26, %v4907_v12  ;;  %v8179_v12 = vld [vmem:[#allocation3 + $0x48] sm:$0xff] }
 0x49b   : > { %5808 = vmatmul.mubr.bf16.gmra.mrb[8].mxu0 %v5551_v10  ;;  %v5510_v46 = vsel %vm5438_vm9, %v5489_v16, %v7695_v2  ;;  %v5509_v29 = vsel %vm5438_vm9, %v5488_v45, %v7694_v13  ;;  %v4843_v10 = vld [vmem:[#allocation3 + $0xae] sm:$0x3f]  ;;  %v4853_v2 = vld [vmem:[#allocation3 + $0x57] sm:$0xff] }
 0x49c   : > { %7887 = vrot.lane.b32.xlu0 %v7886_v38, %s8200_s12  ;;  %v7703_v57 = vpop.permute.xlu1 %7702  ;;  %v5424_v36 = vsel %vm4396_vm0, %v8177_v34, %v7690_v53  ;;  %v5423_v59 = vsel %vm4396_vm0, %v8178_v60, %v7689_v50  ;;  %v5574_v38 = vpack.c.bf16 %v4911_v63, %v4910_v58  ;;  %v4852_v13 = vld [vmem:[#allocation3 + $0x4f] sm:$0xff] }
 0x49d   : > { %7852 = vrot.lane.b32.xlu1 %v7851_v47, %s8200_s12  ;;  %v7705_v0 = vunpack.i.h.bf16 %v7703_v57  ;;  %v7704_v7 = vunpack.i.l.bf16 %v7703_v57  ;;  %v7698_v21 = vpop.permute.xlu0 %7697  ;;  %v4801_v47 = vld [vmem:[#allocation3 + $0xa1] sm:$0x3f] }
 0x49e   : > { %v7700_v8 = vunpack.i.h.bf16 %v7698_v21  ;;  %v7699_v37 = vunpack.i.l.bf16 %v7698_v21  ;;  %7539 = vmatmul.mubr.msk.bf16.gmra.mrb[36].mxu1 %vm4396_vm0, %v5574_v38  ;;  %v7891_v57 = vpack.i.bf16 %v4801_v47, %v4867_v44 }
 0x49f   : > { %v5530_v19 = vsel %vm5460_vm10, %v5509_v29, %v7704_v7  ;;  %v5531_v35 = vsel %vm5460_vm10, %v5510_v46, %v7705_v0  ;;  %7542 = vmatprep.mubr.msk.bf16.mxu1 %vm8197_vm1, %v12053_v1 }
 0x4a0   : > { %7897 = vrot.lane.b32.xlu0 %v7896_v39, %s8199_s30  ;;  %v7713_v9 = vpop.permute.xlu1 %7712  ;;  %v5555_v22 = vpack.c.bf16 %v5531_v35, %v5530_v19  ;;  %v5445_v62 = vsel %vm5438_vm9, %v5423_v59, %v7699_v37  ;;  %v5446_v14 = vsel %vm5438_vm9, %v5424_v36, %v7700_v8  ;;  %v7901_v39 = vpack.i.bf16 %v4843_v10, %v4909_v49 }
 0x4a1   : > { %7862 = vrot.lane.b32.xlu1 %v7861_v51, %s8198_s29  ;;  %v7708_v48 = vpop.permute.xlu0 %7707  ;;  %v7715_v24 = vunpack.i.h.bf16 %v7713_v9  ;;  %v7714_v25 = vunpack.i.l.bf16 %v7713_v9  ;;  %v4912_v51 = vld [vmem:[#allocation3 + $0xbe] sm:$0x3f] }
 0x4a2   : > { %v7710_v41 = vunpack.i.h.bf16 %v7708_v48  ;;  %v7709_v54 = vunpack.i.l.bf16 %v7708_v48  ;;  %5815 = vmatprep.mubr.bf16.mxu0 %v5555_v22  ;;  %v5577_v7 = vpack.c.bf16 %v4912_v51, %v4912_v51  ;;  %v8180_v48 = vld [vmem:[#allocation3 + $0x40] sm:$0xff] }
 0x4a3   : > { %v5491_v30 = vsel %vm4396_vm0, %v4853_v2, %v7715_v24 }
 0x4a4   : > { %v7723_v55 = vpop.permute.xlu1 %7722  ;;  %v5467_v42 = vsel %vm5460_vm10, %v5445_v62, %v7709_v54  ;;  %v5468_v6 = vsel %vm5460_vm10, %v5446_v14, %v7710_v41 }
 0x4a5   : > { %7872 = vrot.lane.b32.xlu1 %v7871_v28, %s8199_s30  ;;  %v7718_v61 = vpop.permute.xlu0 %7717  ;;  %v5554_v20 = vpack.c.bf16 %v5468_v6, %v5467_v42  ;;  %v7725_v32 = vunpack.i.h.bf16 %v7723_v55  ;;  %v7724_v17 = vunpack.i.l.bf16 %v7723_v55  ;;  %v5490_v28 = vsel %vm4396_vm0, %v4852_v13, %v7714_v25  ;;  %v4854_v42 = vld [vmem:[#allocation3 + $0x5f] sm:$0xff]  ;;  %v4855_v6 = vld [vmem:[#allocation3 + $0x67] sm:$0xff] }
 0x4a6   : > { %v7720_v29 = vunpack.i.h.bf16 %v7718_v61  ;;  %v7719_v53 = vunpack.i.l.bf16 %v7718_v61  ;;  %7543 = vmatmul.mubr.msk.bf16.gmra.mrb[40].mxu1 %vm4396_vm0, %v5577_v7 }
 0x4a7   : > { %5816 = vmatmul.mubr.bf16.gmra.mrb[12].mxu0 %v5554_v20  ;;  %v5512_v21 = vsel %vm5438_vm9, %v5491_v30, %v7725_v32  ;;  %v5511_v46 = vsel %vm5438_vm9, %v5490_v28, %v7724_v17 }
 0x4a8   : > { %v7733_v11 = vpop.permute.xlu1 %7732  ;;  %v5426_v26 = vsel %vm4396_vm0, %v8179_v12, %v7720_v29  ;;  %v5425_v34 = vsel %vm4396_vm0, %v8180_v48, %v7719_v53  ;;  %v4856_v48 = vld [vmem:[#allocation3 + $0x6f] sm:$0xff] }
 0x4a9   : > { %7882 = vrot.lane.b32.xlu1 %v7881_v5, %s8200_s12  ;;  %v7735_v16 = vunpack.i.h.bf16 %v7733_v11  ;;  %v7734_v45 = vunpack.i.l.bf16 %v7733_v11  ;;  %v7728_v0 = vpop.permute.xlu0 %7727 }
 0x4aa   : > { %v7730_v50 = vunpack.i.h.bf16 %v7728_v0  ;;  %v7729_v8 = vunpack.i.l.bf16 %v7728_v0  ;;  %v8182_v0 = vld [vmem:[#allocation3 + $0x50] sm:$0xff] }
 0x4ab   : > { %v5532_v37 = vsel %vm5460_vm10, %v5511_v46, %v7734_v45  ;;  %v5533_v19 = vsel %vm5460_vm10, %v5512_v21, %v7735_v16  ;;  %v8181_v16 = vld [vmem:[#allocation3 + $0x58] sm:$0xff] }
 0x4ac   : > { %v7743_v35 = vpop.permute.xlu1 %7742  ;;  %v5558_v9 = vpack.c.bf16 %v5533_v19, %v5532_v37  ;;  %v5447_v59 = vsel %vm5438_vm9, %v5425_v34, %v7729_v8  ;;  %v5448_v41 = vsel %vm5438_vm9, %v5426_v26, %v7730_v50  ;;  %v4857_v34 = vld [vmem:[#allocation3 + $0x77] sm:$0xff] }
 0x4ad   : > { %7892 = vrot.lane.b32.xlu1 %v7891_v57, %s8198_s29  ;;  %v7738_v22 = vpop.permute.xlu0 %7737  ;;  %v7745_v62 = vunpack.i.h.bf16 %v7743_v35  ;;  %v7744_v14 = vunpack.i.l.bf16 %v7743_v35 }
 0x4ae   : > { %v7740_v36 = vunpack.i.h.bf16 %v7738_v22  ;;  %v7739_v60 = vunpack.i.l.bf16 %v7738_v22  ;;  %5823 = vmatprep.mubr.bf16.mxu0 %v5558_v9 }
 0x4af   : > { %v5493_v25 = vsel %vm4396_vm0, %v4855_v6, %v7745_v62  ;;  %v5492_v61 = vsel %vm4396_vm0, %v4854_v42, %v7744_v14 }
 0x4b0   : > { %v7753_v54 = vpop.permute.xlu1 %7752  ;;  %v5469_v58 = vsel %vm5460_vm10, %v5447_v59, %v7739_v60  ;;  %v5470_v63 = vsel %vm5460_vm10, %v5448_v41, %v7740_v36 }
 0x4b1   : > { %7902 = vrot.lane.b32.xlu1 %v7901_v39, %s8200_s12  ;;  %v7748_v5 = vpop.permute.xlu0 %7747  ;;  %v5557_v38 = vpack.c.bf16 %v5470_v63, %v5469_v58  ;;  %v7755_v24 = vunpack.i.h.bf16 %v7753_v54  ;;  %v7754_v55 = vunpack.i.l.bf16 %v7753_v54 }
 0x4b2   : > { %v7750_v17 = vunpack.i.h.bf16 %v7748_v5  ;;  %v7749_v2 = vunpack.i.l.bf16 %v7748_v5 }
 0x4b3   : > { %5824 = vmatmul.mubr.bf16.gmra.mrb[16].mxu0 %v5557_v38  ;;  %v5514_v49 = vsel %vm5438_vm9, %v5493_v25, %v7755_v24  ;;  %v5513_v32 = vsel %vm5438_vm9, %v5492_v61, %v7754_v55  ;;  %v8183_v25 = vld [vmem:[#allocation3 + $0x68] sm:$0xff] }
 0x4b4   : > { %v7763_v44 = vpop.permute.xlu1 %7762  ;;  %v5428_v45 = vsel %vm4396_vm0, %v8181_v16, %v7750_v17  ;;  %v5427_v7 = vsel %vm4396_vm0, %v8182_v0, %v7749_v2 }
 0x4b5   : > { %v7765_v20 = vunpack.i.h.bf16 %v7763_v44  ;;  %v7764_v47 = vunpack.i.l.bf16 %v7763_v44  ;;  %v7758_v10 = vpop.permute.xlu0 %7757 }
 0x4b6   : > { %v7760_v13 = vunpack.i.h.bf16 %v7758_v10  ;;  %v7759_v30 = vunpack.i.l.bf16 %v7758_v10 }
 0x4b7   : > { %v5534_v11 = vsel %vm5460_vm10, %v5513_v32, %v7764_v47  ;;  %v5535_v57 = vsel %vm5460_vm10, %v5514_v49, %v7765_v20  ;;  %v8184_v20 = vld [vmem:[#allocation3 + $0x60] sm:$0xff] }
 0x4b8   : > { %v7773_v39 = vpop.permute.xlu1 %7772  ;;  %v5561_v51 = vpack.c.bf16 %v5535_v57, %v5534_v11  ;;  %v5449_v29 = vsel %vm5438_vm9, %v5427_v7, %v7759_v30  ;;  %v5450_v53 = vsel %vm5438_vm9, %v5428_v45, %v7760_v13 }
 0x4b9   : > { %v7768_v28 = vpop.permute.xlu0 %7767  ;;  %v7775_v19 = vunpack.i.h.bf16 %v7773_v39  ;;  %v7774_v35 = vunpack.i.l.bf16 %v7773_v39 }
 0x4ba   : > { %v7770_v21 = vunpack.i.h.bf16 %v7768_v28  ;;  %v7769_v46 = vunpack.i.l.bf16 %v7768_v28  ;;  %5831 = vmatprep.mubr.bf16.mxu0 %v5561_v51 }
 0x4bb   : > { %v5495_v60 = vsel %vm4396_vm0, %v4857_v34, %v7775_v19  ;;  %v5494_v59 = vsel %vm4396_vm0, %v4856_v48, %v7774_v35 }
 0x4bc   : > { %v7783_v50 = vpop.permute.xlu1 %7782  ;;  %v5471_v8 = vsel %vm5460_vm10, %v5449_v29, %v7769_v46  ;;  %v5472_v37 = vsel %vm5460_vm10, %v5450_v53, %v7770_v21 }
 0x4bd   : > { %v7778_v9 = vpop.permute.xlu0 %7777  ;;  %v5560_v22 = vpack.c.bf16 %v5472_v37, %v5471_v8  ;;  %v7785_v12 = vunpack.i.h.bf16 %v7783_v50  ;;  %v7784_v26 = vunpack.i.l.bf16 %v7783_v50 }
 0x4be   : > { %v7780_v14 = vunpack.i.h.bf16 %v7778_v9  ;;  %v7779_v5 = vunpack.i.l.bf16 %v7778_v9 }
 0x4bf   : > { %5832 = vmatmul.mubr.bf16.gmra.mrb[20].mxu0 %v5560_v22  ;;  %v5516_v63 = vsel %vm5438_vm9, %v5495_v60, %v7785_v12  ;;  %v5515_v62 = vsel %vm5438_vm9, %v5494_v59, %v7784_v26  ;;  %v8185_v22 = vld [vmem:[#allocation3 + $0x78] sm:$0xff]  ;;  %v8186_v26 = vld [vmem:[#allocation3 + $0x70] sm:$0xff]  ;;  %v4859_v59 = vld [vmem:[#allocation3 + $0x87] sm:$0xff] }
 0x4c0   : > { %v7793_v36 = vpop.permute.xlu1 %7792  ;;  %v5430_v61 = vsel %vm4396_vm0, %v8183_v25, %v7780_v14  ;;  %v5429_v47 = vsel %vm4396_vm0, %v8184_v20, %v7779_v5  ;;  %v4858_v60 = vld [vmem:[#allocation3 + $0x7f] sm:$0xff] }
 0x4c1   : > { %v7795_v41 = vunpack.i.h.bf16 %v7793_v36  ;;  %v7794_v54 = vunpack.i.l.bf16 %v7793_v36  ;;  %v7788_v58 = vpop.permute.xlu0 %7787 }
 0x4c2   : > { %v7790_v38 = vunpack.i.h.bf16 %v7788_v58  ;;  %v7789_v24 = vunpack.i.l.bf16 %v7788_v58 }
 0x4c3   : > { %v5536_v55 = vsel %vm5460_vm10, %v5515_v62, %v7794_v54  ;;  %v5537_v42 = vsel %vm5460_vm10, %v5516_v63, %v7795_v41 }
 0x4c4   : > { %v5564_v6 = vpack.c.bf16 %v5537_v42, %v5536_v55  ;;  %v5451_v32 = vsel %vm5438_vm9, %v5429_v47, %v7789_v24  ;;  %v5452_v17 = vsel %vm5438_vm9, %v5430_v61, %v7790_v38 }
 0x4c5   : > { %v7798_v44 = vpop.permute.xlu0 %7797 }
 0x4c6   : > { %v7800_v10 = vunpack.i.h.bf16 %v7798_v44  ;;  %v7799_v49 = vunpack.i.l.bf16 %v7798_v44  ;;  %5839 = vmatprep.mubr.bf16.mxu0 %v5564_v6 }
 0x4c8   : > { %v5473_v2 = vsel %vm5460_vm10, %v5451_v32, %v7799_v49  ;;  %v5474_v13 = vsel %vm5460_vm10, %v5452_v17, %v7800_v10  ;;  %v6183_v32 = vld [vmem:[#allocation5 + $0x1] sm:$0xff]  ;;  %v6184_v17 = vld [vmem:[#allocation5 + $0x9] sm:$0xff] }
 0x4c9   : > { %v11328_v30 = vpop.f32.mrb[16].mxu1  ;;  %v5563_v11 = vpack.c.bf16 %v5474_v13, %v5473_v2  ;;  %v7808_v28 = vpop.permute.xlu0 %7807  ;;  %v7911_v13 = vpack.i.bf16 %v6184_v17, %v6183_v32 }
 0x4ca   : > { %v7520_v57 = vpop.f32.mrb[17].mxu1  ;;  %v7810_v0 = vunpack.i.h.bf16 %v7808_v28  ;;  %v7809_v7 = vunpack.i.l.bf16 %v7808_v28 }
 0x4cb   : > { %5840 = vmatmul.mubr.bf16.gmra.mrb[24].mxu0 %v5563_v11  ;;  %v11330_v39 = vpop.f32.mrb[18].mxu1  ;;  %7912 = vrot.lane.b32.xlu1 %v7911_v13, %s8198_s29  ;;  %v6193_v57 = vld [vmem:[#allocation5 + $0x2] sm:$0xff] }
 0x4cc   : > { %v7521_v51 = vpop.f32.mrb[19].mxu1  ;;  %v5432_v12 = vsel %vm4396_vm0, %v8185_v22, %v7810_v0  ;;  %v5431_v48 = vsel %vm4396_vm0, %v8186_v26, %v7809_v7  ;;  %v4860_v26 = vld [vmem:[#allocation3 + $0x8f] sm:$0xff] }
 0x4cd   : > { %v7818_v16 = vpop.permute.xlu0 %7817  ;;  %v11349_v51 = vld [vmem:[#allocation5 + $0xa] sm:$0xff] }
 0x4ce   : > { %v7820_v46 = vunpack.i.h.bf16 %v7818_v16  ;;  %v7819_v29 = vunpack.i.l.bf16 %v7818_v16  ;;  %v7921_v0 = vpack.i.bf16 %v11349_v51, %v6193_v57 }
 0x4d0   : > { %v5453_v34 = vsel %vm5438_vm9, %v5431_v48, %v7819_v29  ;;  %v5454_v36 = vsel %vm5438_vm9, %v5432_v12, %v7820_v46  ;;  %7922 = vrot.lane.b32.xlu1 %v7921_v0, %s8199_s30  ;;  %v4861_v48 = vld [vmem:[#allocation3 + $0x97] sm:$0xff] }
 0x4d1   : > { %v7828_v21 = vpop.permute.xlu0 %7827 }
 0x4d2   : > { %v7830_v37 = vunpack.i.h.bf16 %v7828_v21  ;;  %v7829_v19 = vunpack.i.l.bf16 %v7828_v21 }
 0x4d4   : > { %v5475_v42 = vsel %vm5460_vm10, %v5453_v34, %v7829_v19  ;;  %v5476_v6 = vsel %vm5460_vm10, %v5454_v36, %v7830_v37 }
 0x4d5   : > { %v5566_v47 = vpack.c.bf16 %v5476_v6, %v5475_v42 }
 0x4e8   : > { %v7838_v10 = vpop.permute.xlu0 %7837 }
 0x4e9   : > { %v7803_v45 = vpop.permute.xlu1 %7802  ;;  %v7840_v28 = vunpack.i.h.bf16 %v7838_v10  ;;  %v7839_v16 = vunpack.i.l.bf16 %v7838_v10 }
 0x4ea   : > { %v7805_v50 = vunpack.i.h.bf16 %v7803_v45  ;;  %v7804_v8 = vunpack.i.l.bf16 %v7803_v45 }
 0x4ec   : > { %v5497_v58 = vsel %vm4396_vm0, %v4859_v59, %v7805_v50  ;;  %v5496_v63 = vsel %vm4396_vm0, %v4858_v60, %v7804_v8  ;;  %v7848_v49 = vpop.permute.xlu0 %7847 }
 0x4ed   : > { %v7813_v53 = vpop.permute.xlu1 %7812  ;;  %v7850_v7 = vunpack.i.h.bf16 %v7848_v49  ;;  %v7849_v21 = vunpack.i.l.bf16 %v7848_v49 }
 0x4ee   : > { %v7815_v35 = vunpack.i.h.bf16 %v7813_v53  ;;  %v7814_v9 = vunpack.i.l.bf16 %v7813_v53 }
 0x4f0   : > { %v11336_v41 = vpop.f32.mrb[20].mxu1  ;;  %v5517_v38 = vsel %vm5438_vm9, %v5496_v63, %v7814_v9  ;;  %v5518_v24 = vsel %vm5438_vm9, %v5497_v58, %v7815_v35  ;;  %v7858_v2 = vpop.permute.xlu0 %7857  ;;  %v5434_v35 = vsel %vm4396_vm0, %v11187_v52, %v7840_v28  ;;  %v5433_v9 = vsel %vm4396_vm0, %v11185_v56, %v7839_v16  ;;  %v4863_v28 = vld [vmem:[#allocation3 + $0xa7] sm:$0xff] }
 0x4f1   : > { %v7823_v54 = vpop.permute.xlu1 %7822  ;;  %v7524_v5 = vpop.f32.mrb[21].mxu1  ;;  %v7860_v50 = vunpack.i.h.bf16 %v7858_v2  ;;  %v7859_v8 = vunpack.i.l.bf16 %v7858_v2  ;;  %v5455_v22 = vsel %vm5438_vm9, %v5433_v9, %v7849_v21  ;;  %v5456_v12 = vsel %vm5438_vm9, %v5434_v35, %v7850_v7 }
 0x4f2   : > { %v7825_v62 = vunpack.i.h.bf16 %v7823_v54  ;;  %v7824_v14 = vunpack.i.l.bf16 %v7823_v54  ;;  %v11342_v55 = vpop.f32.mrb[22].mxu1 }
 0x4f3   : > { %v7525_v44 = vpop.f32.mrb[23].mxu1  ;;  %v5477_v56 = vsel %vm5460_vm10, %v5455_v22, %v7859_v8 }
 0x4f4   : > { %v5538_v25 = vsel %vm5460_vm10, %v5517_v38, %v7824_v14  ;;  %v5539_v61 = vsel %vm5460_vm10, %v5518_v24, %v7825_v62  ;;  %v5478_v62 = vsel %vm5460_vm10, %v5456_v12, %v7860_v50 }
 0x4f5   : > { %v5567_v20 = vpack.c.bf16 %v5539_v61, %v5538_v25  ;;  %v5569_v25 = vpack.c.bf16 %v5478_v62, %v5477_v56 }
 0x4f7   : > { %5847 = vmatprep.mubr.bf16.mxu0 %v5567_v20 }
 0x4f8   : > { %5848 = vmatmul.mubr.bf16.gmra.mrb[28].mxu0 %v5566_v47 }
 0x506   : > { %v7868_v45 = vpop.permute.xlu0 %7867 }
 0x507   : > { %v7833_v11 = vpop.permute.xlu1 %7832  ;;  %v7870_v20 = vunpack.i.h.bf16 %v7868_v45  ;;  %v7869_v47 = vunpack.i.l.bf16 %v7868_v45 }
 0x508   : > { %v7835_v29 = vunpack.i.h.bf16 %v7833_v11  ;;  %v7834_v53 = vunpack.i.l.bf16 %v7833_v11 }
 0x509   : > { %v5436_v7 = vsel %vm4396_vm0, %v11235_v31, %v7870_v20  ;;  %v5435_v21 = vsel %vm4396_vm0, %v11240_v18, %v7869_v47 }
 0x50a   : > { %v5499_v36 = vsel %vm4396_vm0, %v4861_v48, %v7835_v29  ;;  %v5498_v60 = vsel %vm4396_vm0, %v4860_v26, %v7834_v53  ;;  %v7878_v59 = vpop.permute.xlu0 %7877  ;;  %v4862_v29 = vld [vmem:[#allocation3 + $0x9f] sm:$0xff]  ;;  %v4864_v26 = vld [vmem:[#allocation3 + $0xaf] sm:$0x3f] }
 0x50b   : > { %v7843_v46 = vpop.permute.xlu1 %7842  ;;  %v7880_v49 = vunpack.i.h.bf16 %v7878_v59  ;;  %v7879_v32 = vunpack.i.l.bf16 %v7878_v59 }
 0x50c   : > { %v7845_v37 = vunpack.i.h.bf16 %v7843_v46  ;;  %v7844_v19 = vunpack.i.l.bf16 %v7843_v46 }
 0x50d   : > { %v5457_v45 = vsel %vm5438_vm9, %v5435_v21, %v7879_v32  ;;  %v5458_v46 = vsel %vm5438_vm9, %v5436_v7, %v7880_v49 }
 0x50e   : > { %v5519_v63 = vsel %vm5438_vm9, %v5498_v60, %v7844_v19  ;;  %v5520_v52 = vsel %vm5438_vm9, %v5499_v36, %v7845_v37  ;;  %v7888_v10 = vpop.permute.xlu0 %7887  ;;  %v8109_v36 = vld [vmem:[%s11808_s3 + $0x80] sm:$0xff]  }
 0x50f   : > { %v7853_v34 = vpop.permute.xlu1 %7852  ;;  %v7890_v11 = vunpack.i.h.bf16 %v7888_v10  ;;  %v7889_v57 = vunpack.i.l.bf16 %v7888_v10  ;;  %7547 = vmatpush3.bf16.msra.mxu0 %v8109_v36 }
 0x510   : > { %v7855_v54 = vunpack.i.h.bf16 %v7853_v34  ;;  %v7854_v58 = vunpack.i.l.bf16 %v7853_v34  ;;  %v11365_v14 = vpop.f32.mrb[24].mxu1  ;;  %7548 = vmatprep.subr.bf16.mxu0 %v12053_v1 }
 0x511   : > { %v7528_v42 = vpop.f32.mrb[25].mxu1  ;;  %v5479_v31 = vsel %vm5460_vm10, %v5457_v45, %v7889_v57  ;;  %v5480_v18 = vsel %vm5460_vm10, %v5458_v46, %v7890_v11  ;;  %v11407_v57 = vld [vmem:[%s11811_s6 + $0x1] ss:$0 sm:$0xff] }
 0x512   : > { %v5540_v5 = vsel %vm5460_vm10, %v5519_v63, %v7854_v58  ;;  %v5541_v38 = vsel %vm5460_vm10, %v5520_v52, %v7855_v54  ;;  %v11369_v44 = vpop.f32.mrb[26].mxu1  ;;  %v7898_v60 = vpop.permute.xlu0 %7897  ;;  %v5572_v58 = vpack.c.bf16 %v5480_v18, %v5479_v31  ;;  %v4780_v63 = vld [vmem:[#allocation3 + $0xa0] sm:$0x3f] }
 0x513   : > { %v7863_v24 = vpop.permute.xlu1 %7862  ;;  %v5570_v6 = vpack.c.bf16 %v5541_v38, %v5540_v5  ;;  %v7529_v61 = vpop.f32.mrb[27].mxu1  ;;  %v7900_v62 = vunpack.i.h.bf16 %v7898_v60  ;;  %v7899_v5 = vunpack.i.l.bf16 %v7898_v60 }
 0x514   : > { %v7865_v2 = vunpack.i.h.bf16 %v7863_v24  ;;  %v7864_v13 = vunpack.i.l.bf16 %v7863_v24  ;;  %v8110_v24 = vld [vmem:[%s11808_s3 + $0x88] sm:$0xff]  }
 0x515   : > { %5855 = vmatprep.mubr.bf16.mxu0 %v5570_v6  ;;  %7549 = vmatpush3.bf16.msra.mxu0 %v8110_v24 }
 0x516   : > { %5856 = vmatmul.mubr.bf16.gmra.mrb[32].mxu0 %v5569_v25  ;;  %v5501_v50 = vsel %vm4396_vm0, %v4863_v28, %v7865_v2  ;;  %v5500_v8 = vsel %vm4396_vm0, %v4862_v29, %v7864_v13 }
 0x517   : > { %v7873_v17 = vpop.permute.xlu1 %7872 }
 0x518   : > { %v7875_v16 = vunpack.i.h.bf16 %v7873_v17  ;;  %v7874_v0 = vunpack.i.l.bf16 %v7873_v17 }
 0x51a   : > { %v5521_v35 = vsel %vm5438_vm9, %v5500_v8, %v7874_v0  ;;  %v5522_v9 = vsel %vm5438_vm9, %v5501_v50, %v7875_v16 }
 0x51b   : > { %v7883_v53 = vpop.permute.xlu1 %7882 }
 0x51c   : > { %v7885_v37 = vunpack.i.h.bf16 %v7883_v53  ;;  %v7884_v19 = vunpack.i.l.bf16 %v7883_v53 }
 0x51e   : > { %v5542_v22 = vsel %vm5460_vm10, %v5521_v35, %v7884_v19  ;;  %v5543_v12 = vsel %vm5460_vm10, %v5522_v9, %v7885_v37 }
 0x51f   : > { %v7893_v48 = vpop.permute.xlu1 %7892  ;;  %v5573_v34 = vpack.c.bf16 %v5543_v12, %v5542_v22 }
 0x520   : > { %v7895_v59 = vunpack.i.h.bf16 %v7893_v48  ;;  %v7894_v54 = vunpack.i.l.bf16 %v7893_v48 }
 0x521   : > { %5863 = vmatprep.mubr.bf16.mxu0 %v5573_v34 }
 0x522   : > { %v5437_v52 = vsel %vm4396_vm0, %v4780_v63, %v7895_v59  ;;  %v5502_v56 = vsel %vm4396_vm0, %v4864_v26, %v7894_v54  ;;  %5864 = vmatmul.mubr.bf16.gmra.mrb[36].mxu0 %v5572_v58 }
 0x523   : > { %v7903_v38 = vpop.permute.xlu1 %7902  ;;  %v5523_v25 = vsel %vm5438_vm9, %v5502_v56, %v7899_v5  ;;  %v5459_v61 = vsel %vm5438_vm9, %v5437_v52, %v7900_v62 }
 0x524   : > { %v7905_v42 = vunpack.i.h.bf16 %v7903_v38  ;;  %v7904_v6 = vunpack.i.l.bf16 %v7903_v38 }
 0x526   : > { %v5544_v20 = vsel %vm5460_vm10, %v5523_v25, %v7904_v6  ;;  %v5481_v47 = vsel %vm5460_vm10, %v5459_v61, %v7905_v42 }
 0x527   : > { %v5576_v10 = vpack.c.bf16 %v5544_v20, %v5544_v20  ;;  %v5575_v49 = vpack.c.bf16 %v5481_v47, %v5481_v47 }
 0x529   : > { %5871 = vmatprep.mubr.bf16.mxu0 %v5576_v10 }
 0x52a   : > { %5872 = vmatmul.mubr.bf16.gmra.mrb[40].mxu0 %v5575_v49 }
 0x52b   : > { %7550 = vmatprep.mubr.msk.bf16.mxu0 %vm8197_vm1, %v12053_v1 }
 0x54f   : > { %v11400_v32 = vpop.f32.mrb[28].mxu1 }
 0x550   : > { %v7532_v17 = vpop.f32.mrb[29].mxu1 }
 0x551   : > { %v11402_v2 = vpop.f32.mrb[30].mxu1 }
 0x552   : > { %v7533_v13 = vpop.f32.mrb[31].mxu1 }
 0x556   : > { %v7344_v11 = vpop.f32.mrb[0].mxu0 }
 0x557   : > { %v7345_v28 = vpop.f32.mrb[1].mxu0 }
 0x558   : > { %v7346_v16 = vadd.f32 %v7345_v28, %v7344_v11  ;;  %v7347_v0 = vpop.f32.mrb[2].mxu0 }
 0x559   : > { %v7348_v7 = vpop.f32.mrb[3].mxu0 }
 0x55a   : > { %v5794_v21 = vadd.f32 %v7346_v16, %v11407_v57  ;;  %v7349_v45 = vadd.f32 %v7348_v7, %v7347_v0 }
 0x55c   : > { %v5914_v46 = vadd.f32 %v10751_v27, %v5794_v21  ;;  %v5797_v29 = vadd.f32 %v7349_v45, %v11407_v57 }
 0x55e   : > { %v5999_v53 = vmax.f32 %v5914_v46, 0.0  ;;  %v5917_v50 = vadd.f32 %v10760_v3, %v5797_v29 }
 0x560   : > { %6020 = vst.msk [vmem:[#allocation4] sm:$0xff] %vm4396_vm0, %v5999_v53  ;;  %v6000_v8 = vmax.f32 %v5917_v50, 0.0 }
 0x562   : > { %6021 = vst.msk [vmem:[#allocation4 + $0x8] sm:$0xff] %vm4396_vm0, %v6000_v8  ;;  %v7350_v37 = vpop.f32.mrb[4].mxu0 }
 0x563   : > { %v7351_v19 = vpop.f32.mrb[5].mxu0 }
 0x564   : > { %v7352_v35 = vadd.f32 %v7351_v19, %v7350_v37  ;;  %v7353_v9 = vpop.f32.mrb[6].mxu0 }
 0x565   : > { %v7354_v31 = vpop.f32.mrb[7].mxu0 }
 0x566   : > { %v11415_v18 = vpop.f32.mrb[32].mxu1  ;;  %v5802_v22 = vadd.f32 %v7352_v35, %v11407_v57  ;;  %v7355_v27 = vadd.f32 %v7354_v31, %v7353_v9  ;;  %v8111_v31 = vld [vmem:[%s11808_s3 + $0x40] sm:$0xff]  }
 0x567   : > { %v7536_v12 = vpop.f32.mrb[33].mxu1  ;;  %7423 = vmatprep.subr.bf16.mxu1 %v8111_v31 }
 0x568   : > { %v11418_v26 = vpop.f32.mrb[34].mxu1  ;;  %v5922_v3 = vadd.f32 %v10955_v33, %v5802_v22  ;;  %v5805_v48 = vadd.f32 %v7355_v27, %v11407_v57 }
 0x569   : > { %v7537_v34 = vpop.f32.mrb[35].mxu1  ;;  %v6054_v56 = vld [vmem:[#allocation4] ss:$2 sm:$0xff]  ;;  %v6076_v62 = vld [vmem:[#allocation4 + $0x1] ss:$2 sm:$0xff] }
 0x56a   : > { %v6001_v36 = vmax.f32 %v5922_v3, 0.0  ;;  %v5925_v60 = vadd.f32 %v10979_v23, %v5805_v48  ;;  %v6097_v24 = vadd.f32 %v6076_v62, %v6054_v56  ;;  %v8112_v48 = vld [vmem:[%s11808_s3] sm:$0xff]  }
 0x56b   : > { %7424 = vmatpush3.bf16.msra.mxu1 %v8112_v48 }
 0x56c   : > { %6022 = vst.msk [vmem:[#allocation4 + $0x10] sm:$0xff] %vm4396_vm0, %v6001_v36  ;;  %v6002_v59 = vmax.f32 %v5925_v60, 0.0  ;;  %v6111_v10 = vrot.slane %v6097_v24, 7  ;;  %v6215_v60 = vld [vmem:[#allocation5 + $0xc] sm:$0xff] }
 0x56e   : > { %6023 = vst.msk [vmem:[#allocation4 + $0x18] sm:$0xff] %vm4396_vm0, %v6002_v59  ;;  %v7356_v54 = vpop.f32.mrb[8].mxu0 }
 0x56f   : > { %v7357_v58 = vpop.f32.mrb[9].mxu0 }
 0x570   : > { %v7358_v63 = vadd.f32 %v7357_v58, %v7356_v54  ;;  %v7359_v52 = vpop.f32.mrb[10].mxu0  ;;  %v8113_v54 = vld [vmem:[%s11808_s3 + $0x48] sm:$0xff]  }
 0x571   : > { %v7360_v5 = vpop.f32.mrb[11].mxu0  ;;  %v11430_v13 = vpop.f32.mrb[36].mxu1  ;;  %7425 = vmatprep.subr.bf16.mxu1 %v8113_v54 }
 0x572   : > { %v5810_v33 = vadd.f32 %v7358_v63, %v11407_v57  ;;  %v7361_v38 = vadd.f32 %v7360_v5, %v7359_v52  ;;  %v7540_v28 = vpop.f32.mrb[37].mxu1 }
 0x573   : > { %v11434_v7 = vpop.f32.mrb[38].mxu1 }
 0x574   : > { %v5930_v42 = vadd.f32 %v11139_v4, %v5810_v33  ;;  %v5813_v23 = vadd.f32 %v7361_v38, %v11407_v57  ;;  %v7541_v45 = vpop.f32.mrb[39].mxu1 }
 0x575   : > { %v6056_v6 = vld [vmem:[#allocation4 + $0x10] ss:$2 sm:$0xff]  ;;  %v6078_v25 = vld [vmem:[#allocation4 + $0x11] ss:$2 sm:$0xff]  ;;  %v8119_v45 = vld [vmem:[%s11808_s3 + $0x60] sm:$0xff]  }
 0x576   : > { %v6098_v61 = vadd.f32 %v6078_v25, %v6056_v6  ;;  %v6003_v20 = vmax.f32 %v5930_v42, 0.0  ;;  %v5933_v47 = vadd.f32 %v11146_v15, %v5813_v23  ;;  %v8114_v42 = vld [vmem:[%s11808_s3 + $0x8] sm:$0xff]   ;;  %v8115_v6 = vld [vmem:[%s11808_s3 + $0x50] sm:$0xff]  }
 0x577   : > { %7426 = vmatpush3.bf16.msra.mxu1 %v8114_v42 }
 0x578   : > { %v6112_v49 = vrot.slane %v6098_v61, 7  ;;  %6024 = vst.msk [vmem:[#allocation4 + $0x20] sm:$0xff] %vm4396_vm0, %v6003_v20  ;;  %v6004_v17 = vmax.f32 %v5933_v47, 0.0  ;;  %7427 = vmatprep.subr.bf16.mxu1 %v8115_v6 }
 0x579   : > { %v11440_v9 = vpop.f32.mrb[40].mxu1 }
 0x57a   : > { %v6113_v11 = vsel %vm6110_vm11, %v6111_v10, %v6112_v49  ;;  %6025 = vst.msk [vmem:[#allocation4 + $0x28] sm:$0xff] %vm4396_vm0, %v6004_v17  ;;  %v7362_v4 = vpop.f32.mrb[12].mxu0  ;;  %v7544_v3 = vpop.f32.mrb[41].mxu1  ;;  %v8117_v17 = vld [vmem:[%s11808_s3 + $0x58] sm:$0xff]  }
 0x57b   : > { %v6115_v16 = vadd.f32 %v6113_v11, %v6097_v24  ;;  %v7363_v0 = vpop.f32.mrb[13].mxu0 }
 0x57c   : > { %v7364_v21 = vadd.f32 %v7363_v0, %v7362_v4  ;;  %v7365_v15 = vpop.f32.mrb[14].mxu0 }
 0x57d   : > { %v6116_v46 = vmul.f32 0.25, %v6115_v16  ;;  %v7366_v29 = vpop.f32.mrb[15].mxu0  ;;  %v8118_v16 = vld [vmem:[%s11808_s3 + $0x18] sm:$0xff]  }
 0x57e   : > { %v5818_v53 = vadd.f32 %v7364_v21, %v11407_v57  ;;  %v7367_v50 = vadd.f32 %v7366_v29, %v7365_v15 }
 0x57f   : > { %6163 = vst.msk [vmem:[#allocation5 + $0x16] sm:$0x3f] %vm4451_vm7, %v6116_v46 }
 0x580   : > { %v5938_v8 = vadd.f32 %v11254_v40, %v5818_v53  ;;  %v5821_v37 = vadd.f32 %v7367_v50, %v11407_v57  ;;  %v5996_v40 = vpop.f32.mrb[42].mxu1  ;;  %v8120_v53 = vld [vmem:[%s11808_s3 + $0x20] sm:$0xff]  }
 0x581   : > { %v6058_v19 = vld [vmem:[#allocation4 + $0x20] ss:$2 sm:$0xff]  ;;  %v6080_v35 = vld [vmem:[#allocation4 + $0x21] ss:$2 sm:$0xff]  ;;  %v7545_v59 = vpop.f32.mrb[43].mxu1 }
 0x582   : > { %v6099_v22 = vadd.f32 %v6080_v35, %v6058_v19  ;;  %v6005_v27 = vmax.f32 %v5938_v8, 0.0  ;;  %v5941_v12 = vadd.f32 %v11262_v43, %v5821_v37 }
 0x584   : > { %v6119_v34 = vrot.slane %v6099_v22, 7  ;;  %6026 = vst.msk [vmem:[#allocation4 + $0x30] sm:$0xff] %vm4396_vm0, %v6005_v27  ;;  %v6006_v36 = vmax.f32 %v5941_v12, 0.0  ;;  %v8121_v12 = vld [vmem:[%s11808_s3 + $0x68] sm:$0xff]  }
 0x586   : > { %v6124_v58 = vadd.f32 %v6119_v34, %v6098_v61  ;;  %6027 = vst.msk [vmem:[#allocation4 + $0x38] sm:$0xff] %vm4396_vm0, %v6006_v36  ;;  %v7368_v43 = vpop.f32.mrb[16].mxu0  ;;  %v11454_v63 = vld [vmem:[#allocation5 + $0x14] sm:$0xff]  ;;  %v8116_v61 = vld [vmem:[%s11808_s3 + $0x10] sm:$0xff]  }
 0x587   : > { %v6195_v52 = vld [vmem:[#allocation5 + $0x12] sm:$0xff]  ;;  %v7369_v56 = vpop.f32.mrb[17].mxu0  ;;  %v7906_v62 = vpack.i.bf16 %v11454_v63, %v6215_v60  ;;  %7428 = vmatpush3.bf16.msra.mxu1 %v8116_v61 }
 0x588   : > { %v7931_v5 = vpack.i.bf16 %v6195_v52, %v11349_v51  ;;  %v6126_v33 = vmul.f32 0.25, %v6124_v58  ;;  %v7370_v38 = vadd.f32 %v7369_v56, %v7368_v43  ;;  %v7371_v24 = vpop.f32.mrb[18].mxu0  ;;  %7429 = vmatprep.subr.bf16.mxu1 %v8117_v17  ;;  %v6185_v21 = vld [vmem:[#allocation5 + $0x11] sm:$0xff]  ;;  %v8124_v56 = vld [vmem:[%s11808_s3 + $0x30] sm:$0xff]  }
 0x589   : > { %v7372_v23 = vpop.f32.mrb[19].mxu0  ;;  %7907 = vrot.lane.b32.xlu0 %v7906_v62, %s8198_s29 }
 0x58a   : > { %7932 = vrot.lane.b32.xlu1 %v7931_v5, %s8200_s12  ;;  %6164 = vst.msk [vmem:[#allocation5 + $0x1a] sm:$0xc0] %vm4738_vm5, %v6126_v33  ;;  %v5826_v51 = vadd.f32 %v7370_v38, %v11407_v57  ;;  %v7373_v25 = vadd.f32 %v7372_v23, %v7371_v24  ;;  %v6237_v33 = vld [vmem:[#allocation5 + $0x16] sm:$0xff] }
 0x58b   : > { %7430 = vmatpush3.bf16.msra.mxu1 %v8118_v16 }
 0x58c   : > { %v5946_v20 = vadd.f32 %v11328_v30, %v5826_v51  ;;  %v5829_v47 = vadd.f32 %v7373_v25, %v11407_v57  ;;  %7431 = vmatprep.subr.bf16.mxu1 %v8119_v45 }
 0x58d   : > { %v6060_v10 = vld [vmem:[#allocation4 + $0x30] ss:$2 sm:$0xff]  ;;  %v6082_v49 = vld [vmem:[#allocation4 + $0x31] ss:$2 sm:$0xff] }
 0x58e   : > { %v6100_v11 = vadd.f32 %v6082_v49, %v6060_v10  ;;  %v6007_v4 = vmax.f32 %v5946_v20, 0.0  ;;  %v5949_v28 = vadd.f32 %v11330_v39, %v5829_v47  ;;  %v8126_v20 = vld [vmem:[%s11808_s3 + $0x38] sm:$0xff]  }
 0x58f   : > { %7432 = vmatpush3.bf16.msra.mxu1 %v8120_v53 }
 0x590   : > { %v6120_v0 = vrot.slane %v6100_v11, 7  ;;  %6028 = vst.msk [vmem:[#allocation4 + $0x40] sm:$0xff] %vm4396_vm0, %v6007_v4  ;;  %v6008_v30 = vmax.f32 %v5949_v28, 0.0  ;;  %7433 = vmatprep.subr.bf16.mxu1 %v8121_v12  ;;  %v6227_v28 = vld [vmem:[#allocation5 + $0x15] sm:$0xff] }
 0x591   : > { %v6186_v15 = vld [vmem:[#allocation5 + $0x19] sm:$0xff] }
 0x592   : > { %v6121_v46 = vsel %vm6110_vm11, %v6119_v34, %v6120_v0  ;;  %6029 = vst.msk [vmem:[#allocation4 + $0x48] sm:$0xff] %vm4396_vm0, %v6008_v30  ;;  %v7374_v39 = vpop.f32.mrb[20].mxu0  ;;  %v7941_v29 = vpack.i.bf16 %v6186_v15, %v6185_v21  ;;  %v6196_v37 = vld [vmem:[#allocation5 + $0x1a] sm:$0xff]  ;;  %v8123_v34 = vld [vmem:[%s11808_s3 + $0x70] sm:$0xff]  }
 0x593   : > { %v6125_v50 = vadd.f32 %v6121_v46, %v6099_v22  ;;  %v7375_v8 = vpop.f32.mrb[21].mxu0  ;;  %v7951_v40 = vpack.i.bf16 %v6196_v37, %v6195_v52  ;;  %v8122_v22 = vld [vmem:[%s11808_s3 + $0x28] sm:$0xff]  }
 0x594   : > { %v7376_v19 = vadd.f32 %v7375_v8, %v7374_v39  ;;  %v7377_v35 = vpop.f32.mrb[22].mxu0  ;;  %7942 = vrot.lane.b32.xlu1 %v7941_v29, %s8198_s29  ;;  %7434 = vmatpush3.bf16.msra.mxu1 %v8122_v22 }
 0x595   : > { %v6127_v31 = vmul.f32 0.25, %v6125_v50  ;;  %v7378_v27 = vpop.f32.mrb[23].mxu0  ;;  %7435 = vmatprep.subr.bf16.mxu1 %v8123_v34 }
 0x596   : > { %v5834_v3 = vadd.f32 %v7376_v19, %v11407_v57  ;;  %v7379_v48 = vadd.f32 %v7378_v27, %v7377_v35 }
 0x597   : > { %6165 = vst.msk [vmem:[#allocation5 + $0x22] sm:$0xf] %vm4477_vm2, %v6127_v31 }
 0x598   : > { %v5954_v36 = vadd.f32 %v11336_v41, %v5834_v3  ;;  %v5837_v60 = vadd.f32 %v7379_v48, %v11407_v57  ;;  %7952 = vrot.lane.b32.xlu1 %v7951_v40, %s8199_s30  ;;  %v8125_v41 = vld [vmem:[%s11808_s3 + $0x78] sm:$0xff]   ;;  %7436 = vmatpush3.bf16.msra.mxu1 %v8124_v56 }
 0x599   : > { %v6062_v59 = vld [vmem:[#allocation4 + $0x40] ss:$2 sm:$0xff]  ;;  %v6084_v54 = vld [vmem:[#allocation4 + $0x41] ss:$2 sm:$0xff]  ;;  %7437 = vmatprep.subr.bf16.mxu1 %v8125_v41 }
 0x59a   : > { %v6101_v58 = vadd.f32 %v6084_v54, %v6062_v59  ;;  %v6009_v43 = vmax.f32 %v5954_v36, 0.0  ;;  %v5957_v52 = vadd.f32 %v11342_v55, %v5837_v60 }
 0x59c   : > { %v6130_v62 = vrot.slane %v6101_v58, 7  ;;  %6030 = vst.msk [vmem:[#allocation4 + $0x50] sm:$0xff] %vm4396_vm0, %v6009_v43  ;;  %v6010_v5 = vmax.f32 %v5957_v52, 0.0  ;;  %7438 = vmatpush3.bf16.msra.mxu1 %v8126_v20 }
 0x59e   : > { %v6135_v38 = vadd.f32 %v6130_v62, %v6100_v11  ;;  %6031 = vst.msk [vmem:[#allocation4 + $0x58] sm:$0xff] %vm4396_vm0, %v6010_v5  ;;  %v7380_v24 = vpop.f32.mrb[24].mxu0  ;;  %v6238_v55 = vld [vmem:[#allocation5 + $0x1e] sm:$0xff] }
 0x59f   : > { %v6217_v42 = vld [vmem:[#allocation5 + $0x1c] sm:$0xff]  ;;  %v7381_v6 = vpop.f32.mrb[25].mxu0  ;;  %v6533_v51 = vpack.c.bf16 %v6238_v55, %v6237_v33 }
 0x5a0   : > { %v6197_v23 = vld [vmem:[#allocation5 + $0x22] sm:$0xff]  ;;  %v7916_v25 = vpack.i.bf16 %v6217_v42, %v11454_v63  ;;  %v6137_v47 = vmul.f32 0.25, %v6135_v38  ;;  %v7382_v10 = vadd.f32 %v7381_v6, %v7380_v24  ;;  %v7383_v49 = vpop.f32.mrb[26].mxu0 }
 0x5a1   : > { %v7961_v61 = vpack.i.bf16 %v6197_v23, %v6196_v37  ;;  %v6228_v17 = vld [vmem:[#allocation5 + $0x1d] sm:$0xff]  ;;  %v7384_v11 = vpop.f32.mrb[27].mxu0  ;;  %7551 = vmatmul.mubr.msk.bf16.vlgmr.msra.gmra.mrb[44].mxu0 %vm4396_vm0, %v6533_v51 }
 0x5a2   : > { %7917 = vrot.lane.b32.xlu0 %v7916_v25, %s8199_s30  ;;  %6166 = vst.msk [vmem:[#allocation5 + $0x26] sm:$0xf0] %vm4741_vm6, %v6137_v47  ;;  %v5842_v4 = vadd.f32 %v7382_v10, %v11407_v57  ;;  %v7385_v63 = vadd.f32 %v7384_v11, %v7383_v49  ;;  %7554 = vmatprep.mubr.msk.bf16.mxu0 %vm8197_vm1, %v12053_v1  ;;  %v6187_v48 = vld [vmem:[#allocation5 + $0x21] sm:$0xff] }
 0x5a3   : > { %7962 = vrot.lane.b32.xlu1 %v7961_v61, %s8200_s12  ;;  %v7926_v16 = vpack.i.bf16 %v6228_v17, %v6227_v28 }
 0x5a4   : > { %v5962_v0 = vadd.f32 %v11365_v14, %v5842_v4  ;;  %v5845_v30 = vadd.f32 %v7385_v63, %v11407_v57 }
 0x5a5   : > { %v6064_v21 = vld [vmem:[#allocation4 + $0x50] ss:$2 sm:$0xff]  ;;  %v6086_v15 = vld [vmem:[#allocation4 + $0x51] ss:$2 sm:$0xff] }
 0x5a6   : > { %7927 = vrot.lane.b32.xlu0 %v7926_v16, %s8200_s12  ;;  %v6102_v45 = vadd.f32 %v6086_v15, %v6064_v21  ;;  %v6011_v46 = vmax.f32 %v5962_v0, 0.0  ;;  %v5965_v39 = vadd.f32 %v11369_v44, %v5845_v30 }
 0x5a8   : > { %v6131_v29 = vrot.slane %v6102_v45, 7  ;;  %6032 = vst.msk [vmem:[#allocation4 + $0x60] sm:$0xff] %vm4396_vm0, %v6011_v46  ;;  %v6012_v53 = vmax.f32 %v5965_v39, 0.0 }
 0x5a9   : > { %v6218_v50 = vld [vmem:[#allocation5 + $0x24] sm:$0xff] }
 0x5aa   : > { %6033 = vst.msk [vmem:[#allocation4 + $0x68] sm:$0xff] %vm4396_vm0, %v6012_v53  ;;  %v7936_v8 = vpack.i.bf16 %v6218_v50, %v6217_v42  ;;  %v6132_v14 = vsel %vm6110_vm11, %v6130_v62, %v6131_v29  ;;  %v6239_v54 = vld [vmem:[#allocation5 + $0x26] sm:$0xff] }
 0x5ab   : > { %v6136_v37 = vadd.f32 %v6132_v14, %v6101_v58  ;;  %v6229_v58 = vld [vmem:[#allocation5 + $0x25] sm:$0xff] }
 0x5ac   : > { %7937 = vrot.lane.b32.xlu0 %v7936_v8, %s8198_s29 }
 0x5ad   : > { %v6138_v19 = vmul.f32 0.25, %v6136_v37 }
 0x5af   : > { %6167 = vst.msk [vmem:[#allocation5 + $0x2e] sm:$0x3] %vm4736_vm3, %v6138_v19 }
 0x5b1   : > { %v6066_v35 = vld [vmem:[#allocation4 + $0x60] ss:$2 sm:$0xff]  ;;  %v6088_v31 = vld [vmem:[#allocation4 + $0x61] ss:$2 sm:$0xff] }
 0x5b2   : > { %v6103_v27 = vadd.f32 %v6088_v31, %v6066_v35 }
 0x5b4   : > { %v6140_v44 = vrot.slane %v6103_v27, 7 }
 0x5b6   : > { %v6142_v12 = vadd.f32 %v6140_v44, %v6102_v45  ;;  %v6219_v3 = vld [vmem:[#allocation5 + $0x2c] sm:$0xff] }
 0x5b7   : > { %v6188_v40 = vld [vmem:[#allocation5 + $0x29] sm:$0xff]  ;;  %v7946_v22 = vpack.i.bf16 %v6219_v3, %v6218_v50 }
 0x5b8   : > { %v7971_v34 = vpack.i.bf16 %v6188_v40, %v6187_v48  ;;  %v6143_v36 = vmul.f32 0.25, %v6142_v12  ;;  %v6198_v60 = vld [vmem:[#allocation5 + $0x2a] sm:$0xff] }
 0x5b9   : > { %7947 = vrot.lane.b32.xlu0 %v7946_v22, %s8199_s30  ;;  %v7981_v59 = vpack.i.bf16 %v6198_v60, %v6197_v23 }
 0x5ba   : > { %7972 = vrot.lane.b32.xlu1 %v7971_v34, %s8198_s29  ;;  %6168 = vst.msk [vmem:[#allocation5 + $0x32] sm:$0xfc] %vm4744_vm8, %v6143_v36 }
 0x5be   : > { %7982 = vrot.lane.b32.xlu1 %v7981_v59, %s8199_s30 }
 0x5c1   : > { %v6240_v43 = vld [vmem:[#allocation5 + $0x2e] sm:$0xff] }
 0x5c2   : > { %v6230_v52 = vld [vmem:[#allocation5 + $0x2d] sm:$0xff]  ;;  %v6536_v41 = vpack.c.bf16 %v6240_v43, %v6239_v54 }
 0x5c3   : > { %v11537_v56 = vld [vmem:[#allocation5 + $0x32] sm:$0xff]  ;;  %v7956_v62 = vpack.i.bf16 %v6230_v52, %v6229_v58 }
 0x5c4   : > { %v7991_v5 = vpack.i.bf16 %v11537_v56, %v6198_v60  ;;  %v11540_v33 = vld [vmem:[#allocation5 + $0x34] sm:$0xff]  ;;  %7555 = vmatmul.mubr.msk.bf16.gmra.mrb[48].mxu0 %vm4396_vm0, %v6536_v41  ;;  %v7913_v41 = vpop.permute.xlu1 %7912 }
 0x5c5   : > { %7957 = vrot.lane.b32.xlu0 %v7956_v62, %s8200_s12  ;;  %7558 = vmatprep.mubr.msk.bf16.mxu0 %vm8197_vm1, %v12053_v1  ;;  %v7966_v38 = vpack.i.bf16 %v11540_v33, %v6219_v3 }
 0x5c6   : > { %7992 = vrot.lane.b32.xlu1 %v7991_v5, %s8200_s12 }
 0x5c9   : > { %7967 = vrot.lane.b32.xlu0 %v7966_v38, %s8198_s29 }
 0x5cb   : > { %v7386_v24 = vpop.f32.mrb[28].mxu0 }
 0x5cc   : > { %v7387_v55 = vpop.f32.mrb[29].mxu0 }
 0x5cd   : > { %v7388_v42 = vadd.f32 %v7387_v55, %v7386_v24  ;;  %v7389_v23 = vpop.f32.mrb[30].mxu0  ;;  %v6241_v55 = vld [vmem:[#allocation5 + $0x36] sm:$0xff] }
 0x5ce   : > { %v7390_v6 = vpop.f32.mrb[31].mxu0 }
 0x5cf   : > { %v5850_v51 = vadd.f32 %v7388_v42, %v11407_v57  ;;  %v7391_v25 = vadd.f32 %v7390_v6, %v7389_v23  ;;  %v6189_v42 = vld [vmem:[#allocation5 + $0x31] sm:$0xff] }
 0x5d1   : > { %v5970_v61 = vadd.f32 %v11400_v32, %v5850_v51  ;;  %v5853_v20 = vadd.f32 %v7391_v25, %v11407_v57  ;;  %v7923_v25 = vpop.permute.xlu1 %7922 }
 0x5d3   : > { %v6013_v47 = vmax.f32 %v5970_v61, 0.0  ;;  %v5973_v10 = vadd.f32 %v11402_v2, %v5853_v20 }
 0x5d5   : > { %6034 = vst.msk [vmem:[#allocation4 + $0x70] sm:$0xff] %vm4396_vm0, %v6013_v47  ;;  %v6014_v49 = vmax.f32 %v5973_v10, 0.0 }
 0x5d7   : > { %6035 = vst.msk [vmem:[#allocation4 + $0x78] sm:$0xff] %vm4396_vm0, %v6014_v49 }
 0x5de   : > { %v6068_v53 = vld [vmem:[#allocation4 + $0x70] ss:$2 sm:$0xff]  ;;  %v6090_v50 = vld [vmem:[#allocation4 + $0x71] ss:$2 sm:$0xff] }
 0x5df   : > { %v6104_v37 = vadd.f32 %v6090_v50, %v6068_v53 }
 0x5e1   : > { %v6146_v40 = vrot.slane %v6104_v37, 7 }
 0x5e9   : > { %v7392_v17 = vpop.f32.mrb[32].mxu0 }
 0x5ea   : > { %v7393_v11 = vpop.f32.mrb[33].mxu0 }
 0x5eb   : > { %v7394_v4 = vadd.f32 %v7393_v11, %v7392_v17  ;;  %v7395_v63 = vpop.f32.mrb[34].mxu0 }
 0x5ec   : > { %v7396_v28 = vpop.f32.mrb[35].mxu0 }
 0x5ed   : > { %v5858_v16 = vadd.f32 %v7394_v4, %v11407_v57  ;;  %v7397_v0 = vadd.f32 %v7396_v28, %v7395_v63  ;;  %v7915_v63 = vunpack.i.h.bf16 %v7913_v41  ;;  %v7914_v28 = vunpack.i.l.bf16 %v7913_v41  ;;  %v6244_v41 = vld [vmem:[#allocation5 + $0x4e] sm:$0xff] }
 0x5ef   : > { %v5978_v32 = vadd.f32 %v11415_v18, %v5858_v16  ;;  %v5861_v30 = vadd.f32 %v7397_v0, %v11407_v57 }
 0x5f1   : > { %v6015_v21 = vmax.f32 %v5978_v32, 0.0  ;;  %v5981_v2 = vadd.f32 %v11418_v26, %v5861_v30  ;;  %v6231_v32 = vld [vmem:[#allocation5 + $0x35] sm:$0xff]  ;;  %v6174_v30 = vld [vmem:[#allocation5 + $0x8] sm:$0xff] }
 0x5f2   : > { %v6472_v53 = vsel %vm4396_vm0, %v6174_v30, %v7915_v63  ;;  %v6225_v63 = vld [vmem:[#allocation5 + $0x54] sm:$0xff]  ;;  %v6236_v30 = vld [vmem:[#allocation5 + $0x5d] sm:$0x3f] }
 0x5f3   : > { %6036 = vst.msk [vmem:[#allocation4 + $0x80] sm:$0xff] %vm4396_vm0, %v6015_v21  ;;  %v6016_v15 = vmax.f32 %v5981_v2, 0.0 }
 0x5f5   : > { %6037 = vst.msk [vmem:[#allocation4 + $0x88] sm:$0xff] %vm4396_vm0, %v6016_v15  ;;  %v7398_v45 = vpop.f32.mrb[36].mxu0 }
 0x5f6   : > { %v7399_v46 = vpop.f32.mrb[37].mxu0 }
 0x5f7   : > { %v7400_v39 = vadd.f32 %v7399_v46, %v7398_v45  ;;  %v7401_v29 = vpop.f32.mrb[38].mxu0  ;;  %v7925_v45 = vunpack.i.h.bf16 %v7923_v25  ;;  %v7924_v46 = vunpack.i.l.bf16 %v7923_v25 }
 0x5f8   : > { %v7402_v8 = vpop.f32.mrb[39].mxu0 }
 0x5f9   : > { %v5866_v14 = vadd.f32 %v7400_v39, %v11407_v57  ;;  %v7403_v18 = vadd.f32 %v7402_v8, %v7401_v29 }
 0x5fb   : > { %v5986_v19 = vadd.f32 %v11430_v13, %v5866_v14  ;;  %v5869_v26 = vadd.f32 %v7403_v18, %v11407_v57  ;;  %v7908_v16 = vpop.permute.xlu0 %7907 }
 0x5fc   : > { %v6070_v35 = vld [vmem:[#allocation4 + $0x80] ss:$2 sm:$0xff]  ;;  %v6092_v31 = vld [vmem:[#allocation4 + $0x81] ss:$2 sm:$0xff]  ;;  %v7933_v39 = vpop.permute.xlu1 %7932  ;;  %v7910_v14 = vunpack.i.h.bf16 %v7908_v16  ;;  %v7909_v18 = vunpack.i.l.bf16 %v7908_v16 }
 0x5fd   : > { %v6105_v27 = vadd.f32 %v6092_v31, %v6070_v35  ;;  %v6017_v44 = vmax.f32 %v5986_v19, 0.0  ;;  %v5989_v12 = vadd.f32 %v11434_v7, %v5869_v26  ;;  %v7404_v3 = vpop.f32.mrb[40].mxu0  ;;  %v6205_v19 = vld [vmem:[#allocation5 + $0xb] sm:$0xff]  ;;  %v7935_v26 = vunpack.i.h.bf16 %v7933_v39 }
 0x5fe   : > { %v7405_v48 = vpop.f32.mrb[41].mxu0  ;;  %v7934_v35 = vunpack.i.l.bf16 %v7933_v39 }
 0x5ff   : > { %v6147_v22 = vrot.slane %v6105_v27, 7  ;;  %6038 = vst.msk [vmem:[#allocation4 + $0x90] sm:$0xff] %vm4396_vm0, %v6017_v44  ;;  %v6018_v34 = vmax.f32 %v5989_v12, 0.0  ;;  %v7406_v36 = vadd.f32 %v7405_v48, %v7404_v3  ;;  %v7407_v60 = vpop.f32.mrb[42].mxu0  ;;  %v6482_v44 = vsel %vm5438_vm9, %v6472_v53, %v7925_v45  ;;  %v6206_v3 = vld [vmem:[#allocation5 + $0x13] sm:$0xff] }
 0x600   : > { %v7408_v59 = vpop.f32.mrb[43].mxu0 }
 0x601   : > { %v6148_v13 = vsel %vm6110_vm11, %v6146_v40, %v6147_v22  ;;  %6039 = vst.msk [vmem:[#allocation4 + $0x98] sm:$0xff] %vm4396_vm0, %v6018_v34  ;;  %v5874_v54 = vadd.f32 %v7406_v36, %v11407_v57  ;;  %v6501_v22 = vsel %vm4396_vm0, %v6205_v19, %v7909_v18  ;;  %v6502_v34 = vsel %vm4396_vm0, %v6206_v3, %v7910_v14  ;;  %v6176_v19 = vld [vmem:[#allocation5 + $0x18] sm:$0xff] }
 0x602   : > { %v6150_v58 = vadd.f32 %v6148_v13, %v6104_v37  ;;  %v6492_v59 = vsel %vm5460_vm10, %v6482_v44, %v7935_v26 }
 0x603   : > { %v5994_v43 = vadd.f32 %v11440_v9, %v5874_v54 }
 0x604   : > { %v6151_v7 = vmul.f32 0.25, %v6150_v58 }
 0x605   : > { %v6019_v52 = vmax.f32 %v5994_v43, 0.0 }
 0x606   : > { %6169 = vst.msk [vmem:[#allocation5 + $0x3e] sm:$0x3f] %vm4451_vm7, %v6151_v7 }
 0x607   : > { %6040 = vst.msk [vmem:[#allocation4 + $0xa0] sm:$0x3f] %vm4451_vm7, %v6019_v52 }
 0x608   : > { %v6072_v62 = vld [vmem:[#allocation4 + $0x90] ss:$2 sm:$0xff]  ;;  %v6094_v5 = vld [vmem:[#allocation4 + $0x91] ss:$2 sm:$0xff] }
 0x609   : > { %v6106_v38 = vadd.f32 %v6094_v5, %v6072_v62 }
 0x60b   : > { %v6154_v24 = vrot.slane %v6106_v38, 7 }
 0x60d   : > { %v6159_v23 = vadd.f32 %v6154_v24, %v6105_v27  ;;  %v6242_v6 = vld [vmem:[#allocation5 + $0x3e] sm:$0xff] }
 0x60e   : > { %v11572_v51 = vld [vmem:[#allocation5 + $0x3c] sm:$0xff]  ;;  %v6539_v20 = vpack.c.bf16 %v6242_v6, %v6241_v55 }
 0x60f   : > { %v6190_v57 = vld [vmem:[#allocation5 + $0x39] sm:$0xff]  ;;  %v7976_v47 = vpack.i.bf16 %v11572_v51, %v11540_v33  ;;  %v6161_v49 = vmul.f32 0.25, %v6159_v23 }
 0x610   : > { %v6074_v9 = vld [vmem:[#allocation4 + $0xa0] ss:$2 sm:$0x7]  ;;  %v6096_v61 = vld [vmem:[#allocation4 + $0xa1] ss:$2 sm:$0x7]  ;;  %v8001_v10 = vpack.i.bf16 %v6190_v57, %v6189_v42  ;;  %7559 = vmatmul.mubr.msk.bf16.gmra.mrb[52].mxu0 %vm4396_vm0, %v6539_v20 }
 0x611   : > { %v6107_v17 = vadd.f32 %v6096_v61, %v6074_v9  ;;  %v6232_v11 = vld [vmem:[#allocation5 + $0x3d] sm:$0xff]  ;;  %7977 = vrot.lane.b32.xlu0 %v7976_v47, %s8199_s30  ;;  %6170 = vst.msk [vmem:[#allocation5 + $0x42] sm:$0xc0] %vm4738_vm5, %v6161_v49  ;;  %7562 = vmatprep.mubr.msk.bf16.mxu0 %vm8197_vm1, %v12053_v1 }
 0x612   : > { %v6200_v4 = vld [vmem:[#allocation5 + $0x3a] sm:$0xff]  ;;  %8002 = vrot.lane.b32.xlu1 %v8001_v10, %s8198_s29  ;;  %v7986_v21 = vpack.i.bf16 %v6232_v11, %v6231_v32 }
 0x613   : > { %v6155_v0 = vrot.slane %v6107_v17, 7  ;;  %v6173_v33 = vld [vmem:[#allocation5] sm:$0xff]  ;;  %v8011_v15 = vpack.i.bf16 %v6200_v4, %v11537_v56  ;;  %v7943_v17 = vpop.permute.xlu1 %7942 }
 0x614   : > { %v6471_v50 = vsel %vm4396_vm0, %v6173_v33, %v7914_v28  ;;  %v7918_v8 = vpop.permute.xlu0 %7917  ;;  %v7944_v39 = vunpack.i.l.bf16 %v7943_v17 }
 0x615   : > { %v6156_v2 = vsel %vm6110_vm11, %v6154_v24, %v6155_v0  ;;  %7987 = vrot.lane.b32.xlu0 %v7986_v21, %s8200_s12  ;;  %v7920_v56 = vunpack.i.h.bf16 %v7918_v8  ;;  %v7919_v31 = vunpack.i.l.bf16 %v7918_v8  ;;  %v6481_v27 = vsel %vm5438_vm9, %v6471_v50, %v7924_v46  ;;  %v6235_v0 = vld [vmem:[#allocation5 + $0x55] sm:$0xff] }
 0x616   : > { %v6160_v29 = vadd.f32 %v6156_v2, %v6106_v38  ;;  %8012 = vrot.lane.b32.xlu1 %v8011_v15, %s8199_s30  ;;  %v6491_v13 = vsel %vm5460_vm10, %v6481_v27, %v7934_v35  ;;  %v6245_v21 = vld [vmem:[#allocation5 + $0x56] sm:$0xff]  ;;  %v6246_v2 = vld [vmem:[#allocation5 + $0x5e] sm:$0x3f]  ;;  %v8046_v45 = vpack.i.bf16 %v6236_v30, %v6235_v0  ;;  %v7945_v46 = vunpack.i.h.bf16 %v7943_v17  ;;  %v6178_v17 = vld [vmem:[#allocation5 + $0x28] sm:$0xff] }
 0x617   : > { %v6511_v54 = vsel %vm5438_vm9, %v6501_v22, %v7919_v31  ;;  %v6512_v58 = vsel %vm5438_vm9, %v6502_v34, %v7920_v56  ;;  %v6531_v62 = vpack.c.bf16 %v6492_v59, %v6491_v13  ;;  %v7953_v32 = vpop.permute.xlu1 %7952  ;;  %v6545_v15 = vpack.c.bf16 %v6246_v2, %v6245_v21  ;;  %v6210_v30 = vld [vmem:[#allocation5 + $0x33] sm:$0xff] }
 0x618   : > { %v6162_v37 = vmul.f32 0.25, %v6160_v29  ;;  %v6201_v12 = vld [vmem:[#allocation5 + $0x42] sm:$0xff]  ;;  %v7928_v48 = vpop.permute.xlu0 %7927  ;;  %v7955_v50 = vunpack.i.h.bf16 %v7953_v32  ;;  %v7954_v8 = vunpack.i.l.bf16 %v7953_v32  ;;  %v6474_v44 = vsel %vm4396_vm0, %v6176_v19, %v7945_v46 }
 0x619   : > { %v8021_v40 = vpack.i.bf16 %v6201_v12, %v6200_v4  ;;  %v7930_v36 = vunpack.i.h.bf16 %v7928_v48  ;;  %v7929_v60 = vunpack.i.l.bf16 %v7928_v48  ;;  %v6191_v5 = vld [vmem:[#allocation5 + $0x41] sm:$0xff]  ;;  %v6224_v4 = vld [vmem:[#allocation5 + $0x54] sm:$0x3f] }
 0x61a   : > { %6171 = vst.msk [vmem:[#allocation5 + $0x4a] sm:$0xf] %vm4477_vm2, %v6162_v37  ;;  %v6175_v37 = vld [vmem:[#allocation5 + $0x10] sm:$0xff]  ;;  %v6484_v3 = vsel %vm5438_vm9, %v6474_v44, %v7955_v50  ;;  %v6208_v48 = vld [vmem:[#allocation5 + $0x23] sm:$0xff]  ;;  %vm6998_vm2 = vcmask 916480  }
 0x61b   : > { %8022 = vrot.lane.b32.xlu1 %v8021_v40, %s8200_s12  ;;  %v6521_v43 = vsel %vm5460_vm10, %v6511_v54, %v7929_v60  ;;  %v6522_v7 = vsel %vm5460_vm10, %v6512_v58, %v7930_v36  ;;  %v7963_v29 = vpop.permute.xlu1 %7962  ;;  %v6473_v27 = vsel %vm4396_vm0, %v6175_v37, %v7944_v39  ;;  %v6207_v40 = vld [vmem:[#allocation5 + $0x1b] sm:$0xff] }
 0x61c   : > { %v6532_v52 = vpack.c.bf16 %v6522_v7, %v6521_v43  ;;  %v7965_v26 = vunpack.i.h.bf16 %v7963_v29  ;;  %v7964_v35 = vunpack.i.l.bf16 %v7963_v29 }
 0x61e   : > { %6741 = vmatprep.mubr.bf16.mxu1 %v6532_v52  ;;  %v7938_v33 = vpop.permute.xlu0 %7937  ;;  %v6494_v43 = vsel %vm5460_vm10, %v6484_v3, %v7965_v26 }
 0x61f   : > { %6742 = vmatmul.mubr.bf16.vlgmr.msra.gmra.mrb[44].mxu1 %v6531_v62  ;;  %v7940_v14 = vunpack.i.h.bf16 %v7938_v33  ;;  %v7939_v18 = vunpack.i.l.bf16 %v7938_v33  ;;  %v6209_v33 = vld [vmem:[#allocation5 + $0x2b] sm:$0xff] }
 0x621   : > { %v6243_v38 = vld [vmem:[#allocation5 + $0x46] sm:$0xff]  ;;  %v6504_v34 = vsel %vm4396_vm0, %v6208_v48, %v7940_v14  ;;  %v6503_v36 = vsel %vm4396_vm0, %v6207_v40, %v7939_v18 }
 0x622   : > { %v6222_v24 = vld [vmem:[#allocation5 + $0x44] sm:$0xff]  ;;  %v6542_v42 = vpack.c.bf16 %v6244_v41, %v6243_v38  ;;  %v6223_v57 = vld [vmem:[#allocation5 + $0x4c] sm:$0xff] }
 0x623   : > { %v6192_v55 = vld [vmem:[#allocation5 + $0x49] sm:$0x3f]  ;;  %v7996_v23 = vpack.i.bf16 %v6222_v24, %v11572_v51  ;;  %v8006_v9 = vpack.i.bf16 %v6223_v57, %v6222_v24  ;;  %v6204_v51 = vld [vmem:[#allocation5 + $0x52] sm:$0x3f]  ;;  %v8026_v28 = vpack.i.bf16 %v6224_v4, %v6223_v57 }
 0x624   : > { %v8031_v6 = vpack.i.bf16 %v6192_v55, %v6191_v5  ;;  %7563 = vmatmul.mubr.msk.bf16.gmra.mrb[56].mxu0 %vm4396_vm0, %v6542_v42  ;;  %v6202_v25 = vld [vmem:[#allocation5 + $0x4a] sm:$0x3f] }
 0x625   : > { %7997 = vrot.lane.b32.xlu0 %v7996_v23, %s8198_s29  ;;  %7566 = vmatprep.mubr.msk.bf16.mxu0 %vm8197_vm1, %v12053_v1  ;;  %v8041_v61 = vpack.i.bf16 %v6202_v25, %v6201_v12  ;;  %v6233_v20 = vld [vmem:[#allocation5 + $0x45] sm:$0xff]  ;;  %v6234_v47 = vld [vmem:[#allocation5 + $0x4d] sm:$0xff]  ;;  %v6226_v1 = vld [vmem:[#allocation5 + $0x5c] sm:$0x3f]  ;;  %v6483_v12 = vsel %vm5438_vm9, %v6473_v27, %v7954_v8  ;;  %vm6995_vm1 = vcmask 654336  }
 0x626   : > { %8032 = vrot.lane.b32.xlu1 %v8031_v6, %s8198_s29  ;;  %v6203_v10 = vld [vmem:[#allocation5 + $0x4a] sm:$0xff]  ;;  %v8016_v49 = vpack.i.bf16 %v6234_v47, %v6233_v20  ;;  %v8036_v16 = vpack.i.bf16 %v6226_v1, %v6225_v63  ;;  %v6493_v58 = vsel %vm5460_vm10, %v6483_v12, %v7964_v35 }
 0x627   : > { %v8051_v11 = vpack.i.bf16 %v6204_v51, %v6203_v10  ;;  %v6534_v62 = vpack.c.bf16 %v6494_v43, %v6493_v58 }
 0x629   : > { %8007 = vrot.lane.b32.xlu0 %v8006_v9, %s8199_s30 }
 0x62a   : > { %8042 = vrot.lane.b32.xlu1 %v8041_v61, %s8199_s30 }
 0x62b   : > { %v7948_v53 = vpop.permute.xlu0 %7947 }
 0x62c   : > { %7567 = vmatmul.mubr.msk.bf16.gmra.mrb[60].mxu0 %vm4396_vm0, %v6545_v15  ;;  %v7950_v56 = vunpack.i.h.bf16 %v7948_v53  ;;  %v7949_v31 = vunpack.i.l.bf16 %v7948_v53  ;;  %v7973_v38 = vpop.permute.xlu1 %7972 }
 0x62d   : > { %8017 = vrot.lane.b32.xlu0 %v8016_v49, %s8200_s12  ;;  %v7975_v57 = vunpack.i.h.bf16 %v7973_v38  ;;  %v7974_v25 = vunpack.i.l.bf16 %v7973_v38  ;;  %v6177_v49 = vld [vmem:[#allocation5 + $0x20] sm:$0xff] }
 0x62e   : > { %8052 = vrot.lane.b32.xlu1 %v8051_v11, %s8200_s12  ;;  %v6513_v13 = vsel %vm5438_vm9, %v6503_v36, %v7949_v31  ;;  %v6514_v54 = vsel %vm5438_vm9, %v6504_v34, %v7950_v56  ;;  %v6179_v36 = vld [vmem:[#allocation5 + $0x30] sm:$0xff] }
 0x630   : > { %v7983_v23 = vpop.permute.xlu1 %7982 }
 0x631   : > { %8027 = vrot.lane.b32.xlu0 %v8026_v28, %s8198_s29  ;;  %v7985_v61 = vunpack.i.h.bf16 %v7983_v23  ;;  %v7984_v20 = vunpack.i.l.bf16 %v7983_v23  ;;  %v6476_v28 = vsel %vm4396_vm0, %v6178_v17, %v7975_v57 }
 0x633   : > { %v6486_v32 = vsel %vm5438_vm9, %v6476_v28, %v7985_v61 }
 0x635   : > { %8037 = vrot.lane.b32.xlu0 %v8036_v16, %s8199_s30  ;;  %v6475_v16 = vsel %vm4396_vm0, %v6177_v49, %v7974_v25 }
 0x636   : > { %v6485_v0 = vsel %vm5438_vm9, %v6475_v16, %v7984_v20 }
 0x637   : > { %v7958_v22 = vpop.permute.xlu0 %7957 }
 0x638   : > { %v7960_v60 = vunpack.i.h.bf16 %v7958_v22  ;;  %v7959_v59 = vunpack.i.l.bf16 %v7958_v22  ;;  %v7993_v9 = vpop.permute.xlu1 %7992 }
 0x639   : > { %8047 = vrot.lane.b32.xlu0 %v8046_v45, %s8200_s12  ;;  %v7995_v11 = vunpack.i.h.bf16 %v7993_v9  ;;  %v7994_v4 = vunpack.i.l.bf16 %v7993_v9 }
 0x63a   : > { %v6523_v7 = vsel %vm5460_vm10, %v6513_v13, %v7959_v59  ;;  %v6524_v52 = vsel %vm5460_vm10, %v6514_v54, %v7960_v60  ;;  %v6180_v60 = vld [vmem:[#allocation5 + $0x38] sm:$0xff] }
 0x63b   : > { %v6535_v41 = vpack.c.bf16 %v6524_v52, %v6523_v7  ;;  %v7968_v6 = vpop.permute.xlu0 %7967  ;;  %v6495_v53 = vsel %vm5460_vm10, %v6485_v0, %v7994_v4  ;;  %v6496_v50 = vsel %vm5460_vm10, %v6486_v32, %v7995_v11 }
 0x63c   : > { %v7970_v10 = vunpack.i.h.bf16 %v7968_v6  ;;  %v7969_v51 = vunpack.i.l.bf16 %v7968_v6  ;;  %v6537_v19 = vpack.c.bf16 %v6496_v50, %v6495_v53 }
 0x63d   : > { %6749 = vmatprep.mubr.bf16.mxu1 %v6535_v41 }
 0x63e   : > { %6750 = vmatmul.mubr.bf16.gmra.mrb[48].mxu1 %v6534_v62  ;;  %v6506_v2 = vsel %vm4396_vm0, %v6210_v30, %v7970_v10  ;;  %v6505_v15 = vsel %vm4396_vm0, %v6209_v33, %v7969_v51 }
 0x674   : > { %v11626_v5 = vpop.f32.mrb[44].mxu0 }
 0x675   : > { %v7552_v24 = vpop.f32.mrb[45].mxu0 }
 0x676   : > { %v11628_v55 = vpop.f32.mrb[46].mxu0  ;;  %v6211_v24 = vld [vmem:[#allocation5 + $0x3b] sm:$0xff] }
 0x677   : > { %v7553_v42 = vpop.f32.mrb[47].mxu0 }
 0x678   : > { %v6212_v42 = vld [vmem:[#allocation5 + $0x43] sm:$0xff] }
 0x683   : > { %v7978_v47 = vpop.permute.xlu0 %7977 }
 0x684   : > { %v7980_v63 = vunpack.i.h.bf16 %v7978_v47  ;;  %v7979_v1 = vunpack.i.l.bf16 %v7978_v47  ;;  %v8003_v8 = vpop.permute.xlu1 %8002 }
 0x685   : > { %v8005_v31 = vunpack.i.h.bf16 %v8003_v8  ;;  %v8004_v27 = vunpack.i.l.bf16 %v8003_v8 }
 0x686   : > { %v6515_v39 = vsel %vm5438_vm9, %v6505_v15, %v7979_v1  ;;  %v6516_v29 = vsel %vm5438_vm9, %v6506_v2, %v7980_v63  ;;  %v6181_v15 = vld [vmem:[#allocation5 + $0x40] sm:$0xff] }
 0x687   : > { %v7988_v21 = vpop.permute.xlu0 %7987  ;;  %v6478_v7 = vsel %vm4396_vm0, %v6180_v60, %v8005_v31  ;;  %v6477_v52 = vsel %vm4396_vm0, %v6179_v36, %v8004_v27 }
 0x688   : > { %v7990_v45 = vunpack.i.h.bf16 %v7988_v21  ;;  %v7989_v46 = vunpack.i.l.bf16 %v7988_v21  ;;  %v8013_v26 = vpop.permute.xlu1 %8012 }
 0x689   : > { %v8015_v12 = vunpack.i.h.bf16 %v8013_v26  ;;  %v8014_v3 = vunpack.i.l.bf16 %v8013_v26 }
 0x68a   : > { %v6525_v14 = vsel %vm5460_vm10, %v6515_v39, %v7989_v46  ;;  %v6526_v18 = vsel %vm5460_vm10, %v6516_v29, %v7990_v45  ;;  %v6182_v45 = vld [vmem:[#allocation5 + $0x48] sm:$0x3f]  ;;  %v6214_v29 = vld [vmem:[#allocation5 + $0x53] sm:$0x3f] }
 0x68b   : > { %v6538_v37 = vpack.c.bf16 %v6526_v18, %v6525_v14  ;;  %v6487_v62 = vsel %vm5438_vm9, %v6477_v52, %v8014_v3  ;;  %v6488_v38 = vsel %vm5438_vm9, %v6478_v7, %v8015_v12  ;;  %v11677_v7 = vld [vmem:[%s11811_s6 + $0x2] ss:$0 sm:$0xff] }
 0x68d   : > { %6757 = vmatprep.mubr.bf16.mxu1 %v6538_v37  ;;  %v8023_v35 = vpop.permute.xlu1 %8022 }
 0x68e   : > { %6758 = vmatmul.mubr.bf16.gmra.mrb[52].mxu1 %v6537_v19  ;;  %v8025_v59 = vunpack.i.h.bf16 %v8023_v35  ;;  %v8024_v13 = vunpack.i.l.bf16 %v8023_v35  ;;  %v6213_v19 = vld [vmem:[#allocation5 + $0x4b] sm:$0xff] }
 0x690   : > { %v6497_v51 = vsel %vm5460_vm10, %v6487_v62, %v8024_v13  ;;  %v6498_v49 = vsel %vm5460_vm10, %v6488_v38, %v8025_v59 }
 0x691   : > { %v6540_v1 = vpack.c.bf16 %v6498_v49, %v6497_v51 }
 0x697   : > { %v7998_v56 = vpop.permute.xlu0 %7997  ;;  %v11642_v34 = vpop.f32.mrb[48].mxu0 }
 0x698   : > { %v8033_v44 = vpop.permute.xlu1 %8032  ;;  %v8000_v40 = vunpack.i.h.bf16 %v7998_v56  ;;  %v7999_v22 = vunpack.i.l.bf16 %v7998_v56  ;;  %v7556_v43 = vpop.f32.mrb[49].mxu0 }
 0x699   : > { %v11646_v41 = vpop.f32.mrb[50].mxu0  ;;  %v8035_v28 = vunpack.i.h.bf16 %v8033_v44  ;;  %v8034_v16 = vunpack.i.l.bf16 %v8033_v44 }
 0x69a   : > { %v7557_v6 = vpop.f32.mrb[51].mxu0  ;;  %v6508_v57 = vsel %vm4396_vm0, %v6212_v42, %v8000_v40  ;;  %v6507_v25 = vsel %vm4396_vm0, %v6211_v24, %v7999_v22 }
 0x69b   : > { %v8008_v48 = vpop.permute.xlu0 %8007  ;;  %v6480_v8 = vsel %vm4396_vm0, %v6182_v45, %v8035_v28  ;;  %v6479_v14 = vsel %vm4396_vm0, %v6181_v15, %v8034_v16  ;;  %v8127_v15 = vld [vmem:[%s11809_s4 + $0x40] sm:$0xff]  }
 0x69c   : > { %v8010_v54 = vunpack.i.h.bf16 %v8008_v48  ;;  %v8009_v58 = vunpack.i.l.bf16 %v8008_v48  ;;  %v8043_v9 = vpop.permute.xlu1 %8042  ;;  %v8128_v45 = vld [vmem:[%s11809_s4] sm:$0xff]   ;;  %7476 = vmatprep.subr.bf16.mxu1 %v8127_v15 }
 0x69d   : > { %v8045_v32 = vunpack.i.h.bf16 %v8043_v9  ;;  %v8044_v33 = vunpack.i.l.bf16 %v8043_v9  ;;  %7477 = vmatpush3.bf16.msra.mxu1 %v8128_v45 }
 0x69e   : > { %v6517_v47 = vsel %vm5438_vm9, %v6507_v25, %v8009_v58  ;;  %v6518_v10 = vsel %vm5438_vm9, %v6508_v57, %v8010_v54 }
 0x69f   : > { %v8018_v23 = vpop.permute.xlu0 %8017  ;;  %v6489_v18 = vsel %vm5438_vm9, %v6479_v14, %v8044_v33  ;;  %v6490_v37 = vsel %vm5438_vm9, %v6480_v8, %v8045_v32 }
 0x6a0   : > { %v8020_v61 = vunpack.i.h.bf16 %v8018_v23  ;;  %v8019_v20 = vunpack.i.l.bf16 %v8018_v23  ;;  %v8053_v0 = vpop.permute.xlu1 %8052 }
 0x6a1   : > { %v8055_v46 = vunpack.i.h.bf16 %v8053_v0  ;;  %v8054_v39 = vunpack.i.l.bf16 %v8053_v0 }
 0x6a2   : > { %v6527_v17 = vsel %vm5460_vm10, %v6517_v47, %v8019_v20  ;;  %v6528_v11 = vsel %vm5460_vm10, %v6518_v10, %v8020_v61 }
 0x6a3   : > { %v8028_v4 = vpop.permute.xlu0 %8027  ;;  %v6541_v63 = vpack.c.bf16 %v6528_v11, %v6527_v17  ;;  %v6499_v3 = vsel %vm5460_vm10, %v6489_v18, %v8054_v39  ;;  %v6500_v48 = vsel %vm5460_vm10, %v6490_v37, %v8055_v46  ;;  %v8131_v46 = vld [vmem:[%s11809_s4 + $0x50] sm:$0xff]  }
 0x6a4   : > { %v8030_v21 = vunpack.i.h.bf16 %v8028_v4  ;;  %v8029_v2 = vunpack.i.l.bf16 %v8028_v4  ;;  %v6543_v60 = vpack.c.bf16 %v6500_v48, %v6499_v3  ;;  %v8132_v39 = vld [vmem:[%s11809_s4 + $0x10] sm:$0xff]  }
 0x6a5   : > { %6765 = vmatprep.mubr.bf16.mxu1 %v6541_v63 }
 0x6a6   : > { %6766 = vmatmul.mubr.bf16.gmra.mrb[56].mxu1 %v6540_v1  ;;  %v6510_v35 = vsel %vm4396_vm0, %v6214_v29, %v8030_v21  ;;  %v6509_v56 = vsel %vm4396_vm0, %v6213_v19, %v8029_v2  ;;  %v8133_v29 = vld [vmem:[%s11809_s4 + $0x58] sm:$0xff]  }
 0x6a7   : > { %v8038_v30 = vpop.permute.xlu0 %8037 }
 0x6a8   : > { %v8040_v53 = vunpack.i.h.bf16 %v8038_v30  ;;  %v8039_v50 = vunpack.i.l.bf16 %v8038_v30 }
 0x6aa   : > { %v6519_v44 = vsel %vm5438_vm9, %v6509_v56, %v8039_v50  ;;  %v6520_v12 = vsel %vm5438_vm9, %v6510_v35, %v8040_v53  ;;  %v8134_v53 = vld [vmem:[%s11809_s4 + $0x18] sm:$0xff]  }
 0x6ab   : > { %v8048_v26 = vpop.permute.xlu0 %8047 }
 0x6ac   : > { %v8050_v31 = vunpack.i.h.bf16 %v8048_v26  ;;  %v8049_v27 = vunpack.i.l.bf16 %v8048_v26 }
 0x6ae   : > { %v6529_v40 = vsel %vm5460_vm10, %v6519_v44, %v8049_v27  ;;  %v6530_v22 = vsel %vm5460_vm10, %v6520_v12, %v8050_v31 }
 0x6af   : > { %v6544_v36 = vpack.c.bf16 %v6530_v22, %v6529_v40 }
 0x6b1   : > { %6773 = vmatprep.mubr.bf16.mxu1 %v6544_v36 }
 0x6b2   : > { %6774 = vmatmul.mubr.bf16.gmra.mrb[60].mxu1 %v6543_v60 }
 0x6e3   : > { %v11670_v59 = vpop.f32.mrb[52].mxu0 }
 0x6e4   : > { %v7560_v13 = vpop.f32.mrb[53].mxu0 }
 0x6e5   : > { %v11672_v54 = vpop.f32.mrb[54].mxu0 }
 0x6e6   : > { %v7561_v58 = vpop.f32.mrb[55].mxu0 }
 0x6f2   : > { %v7439_v43 = vpop.f32.mrb[44].mxu1 }
 0x6f3   : > { %v7440_v52 = vpop.f32.mrb[45].mxu1 }
 0x6f4   : > { %v7441_v62 = vadd.f32 %v7440_v52, %v7439_v43  ;;  %v7442_v24 = vpop.f32.mrb[46].mxu1 }
 0x6f5   : > { %v7443_v23 = vpop.f32.mrb[47].mxu1 }
 0x6f6   : > { %v6744_v6 = vadd.f32 %v7441_v62, %v11677_v7  ;;  %v7444_v57 = vadd.f32 %v7443_v23, %v7442_v24 }
 0x6f7   : > { %v11679_v38 = vpop.f32.mrb[56].mxu0 }
 0x6f8   : > { %v7564_v42 = vpop.f32.mrb[57].mxu0  ;;  %v6817_v61 = vadd.f32 %v11626_v5, %v6744_v6  ;;  %v6747_v20 = vadd.f32 %v7444_v57, %v11677_v7 }
 0x6f9   : > { %v11682_v25 = vpop.f32.mrb[58].mxu0 }
 0x6fa   : > { %v7565_v9 = vpop.f32.mrb[59].mxu0  ;;  %v6855_v47 = vmax.f32 %v6817_v61, 0.0  ;;  %v6820_v10 = vadd.f32 %v11628_v55, %v6747_v20 }
 0x6fc   : > { %6866 = vst.msk [vmem:[#allocation6] sm:$0xff] %vm6865_vm12, %v6855_v47  ;;  %v6856_v51 = vmax.f32 %v6820_v10, 0.0 }
 0x6fe   : > { %6867 = vst.msk [vmem:[#allocation6 + $0x8] sm:$0xff] %vm6865_vm12, %v6856_v51 }
 0x6ff   : > { %v11689_v49 = vpop.f32.mrb[60].mxu0 }
 0x700   : > { %v7568_v17 = vpop.f32.mrb[61].mxu0 }
 0x701   : > { %v11691_v11 = vpop.f32.mrb[62].mxu0 }
 0x702   : > { %v7569_v4 = vpop.f32.mrb[63].mxu0 }
 0x705   : > { %v6877_v62 = vld [vmem:[#allocation6] ss:$2 sm:$0xff]  ;;  %v6887_v24 = vld [vmem:[#allocation6 + $0x1] ss:$2 sm:$0xff] }
 0x706   : > { %v6896_v6 = vadd.f32 %v6887_v24, %v6877_v62 }
 0x708   : > { %v6904_v10 = vrot.slane %v6896_v6, 5 }
 0x711   : > { %v7445_v63 = vpop.f32.mrb[48].mxu1 }
 0x712   : > { %v7446_v1 = vpop.f32.mrb[49].mxu1 }
 0x713   : > { %v7447_v5 = vadd.f32 %v7446_v1, %v7445_v63  ;;  %v7448_v28 = vpop.f32.mrb[50].mxu1 }
 0x714   : > { %v7449_v16 = vpop.f32.mrb[51].mxu1 }
 0x715   : > { %v6752_v0 = vadd.f32 %v7447_v5, %v11677_v7  ;;  %v7450_v32 = vadd.f32 %v7449_v16, %v7448_v28 }
 0x717   : > { %v6825_v55 = vadd.f32 %v11642_v34, %v6752_v0  ;;  %v6755_v33 = vadd.f32 %v7450_v32, %v11677_v7  ;;  %v8129_v34 = vld [vmem:[%s11809_s4 + $0x48] sm:$0xff]  }
 0x718   : > { %7478 = vmatprep.subr.bf16.mxu1 %v8129_v34  ;;  %v8137_v34 = vld [vmem:[%s11809_s4 + $0x68] sm:$0xff]  }
 0x719   : > { %v6857_v30 = vmax.f32 %v6825_v55, 0.0  ;;  %v6828_v21 = vadd.f32 %v11646_v41, %v6755_v33  ;;  %v8130_v41 = vld [vmem:[%s11809_s4 + $0x8] sm:$0xff]  }
 0x71a   : > { %7479 = vmatpush3.bf16.msra.mxu1 %v8130_v41  ;;  %v8138_v41 = vld [vmem:[%s11809_s4 + $0x28] sm:$0xff]  }
 0x71b   : > { %6868 = vst.msk [vmem:[#allocation6 + $0x10] sm:$0xff] %vm6865_vm12, %v6857_v30  ;;  %v6858_v2 = vmax.f32 %v6828_v21, 0.0  ;;  %7480 = vmatprep.subr.bf16.mxu1 %v8131_v46  ;;  %v8135_v21 = vld [vmem:[%s11809_s4 + $0x60] sm:$0xff]  }
 0x71d   : > { %6869 = vst.msk [vmem:[#allocation6 + $0x18] sm:$0xff] %vm6865_vm12, %v6858_v2 }
 0x71e   : > { %7481 = vmatpush3.bf16.msra.mxu1 %v8132_v39 }
 0x71f   : > { %7482 = vmatprep.subr.bf16.mxu1 %v8133_v29 }
 0x722   : > { %7483 = vmatpush3.bf16.msra.mxu1 %v8134_v53 }
 0x723   : > { %7484 = vmatprep.subr.bf16.mxu1 %v8135_v21 }
 0x724   : > { %v6879_v58 = vld [vmem:[#allocation6 + $0x10] ss:$2 sm:$0xff]  ;;  %v6889_v43 = vld [vmem:[#allocation6 + $0x11] ss:$2 sm:$0xff] }
 0x725   : > { %v6897_v42 = vadd.f32 %v6889_v43, %v6879_v58 }
 0x727   : > { %v6905_v61 = vrot.slane %v6897_v42, 5 }
 0x729   : > { %v6906_v17 = vsel %vm6903_vm13, %v6904_v10, %v6905_v61 }
 0x72a   : > { %v6908_v33 = vadd.f32 %v6906_v17, %v6896_v6 }
 0x72c   : > { %v11747_v15 = vmul.f32 0.25, %v6908_v33 }
 0x72e   : > { %v6933_v39 = vrot.slane %v11747_v15, 2  ;;  %v6929_v53 = vrot.slane %v11747_v15, 1 }
 0x761   : > { %v7451_v50 = vpop.f32.mrb[52].mxu1 }
 0x762   : > { %v7452_v8 = vpop.f32.mrb[53].mxu1 }
 0x763   : > { %v7453_v14 = vadd.f32 %v7452_v8, %v7451_v50  ;;  %v7454_v18 = vpop.f32.mrb[54].mxu1 }
 0x764   : > { %v7455_v37 = vpop.f32.mrb[55].mxu1 }
 0x765   : > { %v6760_v19 = vadd.f32 %v7453_v14, %v11677_v7  ;;  %v7456_v26 = vadd.f32 %v7455_v37, %v7454_v18 }
 0x767   : > { %v6833_v35 = vadd.f32 %v11670_v59, %v6760_v19  ;;  %v6763_v56 = vadd.f32 %v7456_v26, %v11677_v7 }
 0x769   : > { %v6859_v31 = vmax.f32 %v6833_v35, 0.0  ;;  %v6836_v27 = vadd.f32 %v11672_v54, %v6763_v56  ;;  %v6937_v35 = vrot.slane %v11747_v15, 3 }
 0x76b   : > { %6870 = vst.msk [vmem:[#allocation6 + $0x20] sm:$0xff] %vm6865_vm12, %v6859_v31  ;;  %v6860_v44 = vmax.f32 %v6836_v27, 0.0 }
 0x76d   : > { %6871 = vst.msk [vmem:[#allocation6 + $0x28] sm:$0xff] %vm6865_vm12, %v6860_v44 }
 0x774   : > { %v6881_v1 = vld [vmem:[#allocation6 + $0x20] ss:$2 sm:$0xff]  ;;  %v6891_v5 = vld [vmem:[#allocation6 + $0x21] ss:$2 sm:$0xff] }
 0x775   : > { %v6898_v30 = vadd.f32 %v6891_v5, %v6881_v1 }
 0x777   : > { %v6911_v45 = vrot.slane %v6898_v30, 5 }
 0x779   : > { %v7457_v12 = vpop.f32.mrb[56].mxu1  ;;  %v6912_v8 = vsel %vm6903_vm13, %v6905_v61, %v6911_v45 }
 0x77a   : > { %v7458_v3 = vpop.f32.mrb[57].mxu1  ;;  %v6914_v31 = vadd.f32 %v6912_v8, %v6897_v42 }
 0x77b   : > { %v7459_v48 = vadd.f32 %v7458_v3, %v7457_v12  ;;  %v7460_v40 = vpop.f32.mrb[58].mxu1  ;;  %v8139_v12 = vld [vmem:[%s11809_s4 + $0x70] sm:$0xff]  }
 0x77c   : > { %v7461_v22 = vpop.f32.mrb[59].mxu1  ;;  %v8140_v3 = vld [vmem:[%s11809_s4 + $0x30] sm:$0xff]  }
 0x77d   : > { %v6768_v36 = vadd.f32 %v7459_v48, %v11677_v7  ;;  %v7462_v60 = vadd.f32 %v7461_v22, %v7460_v40  ;;  %v6915_v48 = vmul.f32 0.25, %v6914_v31 }
 0x77f   : > { %v6841_v59 = vadd.f32 %v11679_v38, %v6768_v36  ;;  %v6771_v13 = vadd.f32 %v7462_v60, %v11677_v7  ;;  %v6942_v58 = vrot.slane %v6915_v48, 2  ;;  %v6954_v6 = vrot.slane %v6915_v48, 5 }
 0x781   : > { %v6861_v54 = vmax.f32 %v6841_v59, 0.0  ;;  %v6844_v52 = vadd.f32 %v11682_v25, %v6771_v13  ;;  %v8141_v59 = vld [vmem:[%s11809_s4 + $0x78] sm:$0xff]  }
 0x782   : > { %v8142_v13 = vld [vmem:[%s11809_s4 + $0x38] sm:$0xff]  }
 0x783   : > { %6872 = vst.msk [vmem:[#allocation6 + $0x30] sm:$0xff] %vm6865_vm12, %v6861_v54  ;;  %v6862_v23 = vmax.f32 %v6844_v52, 0.0  ;;  %v6946_v54 = vrot.slane %v6915_v48, 3 }
 0x785   : > { %6873 = vst.msk [vmem:[#allocation6 + $0x38] sm:$0xff] %vm6865_vm12, %v6862_v23  ;;  %v7463_v57 = vpop.f32.mrb[60].mxu1  ;;  %v6950_v23 = vrot.slane %v6915_v48, 4 }
 0x786   : > { %v7464_v9 = vpop.f32.mrb[61].mxu1 }
 0x787   : > { %v7465_v38 = vadd.f32 %v7464_v9, %v7463_v57  ;;  %v7466_v20 = vpop.f32.mrb[62].mxu1 }
 0x788   : > { %v7467_v47 = vpop.f32.mrb[63].mxu1 }
 0x789   : > { %v6776_v51 = vadd.f32 %v7465_v38, %v11677_v7  ;;  %v7468_v25 = vadd.f32 %v7467_v47, %v7466_v20 }
 0x78b   : > { %v6849_v4 = vadd.f32 %v11689_v49, %v6776_v51  ;;  %v6779_v63 = vadd.f32 %v7468_v25, %v11677_v7  ;;  %v8136_v49 = vld [vmem:[%s11809_s4 + $0x20] sm:$0xff]  }
 0x78c   : > { %v6883_v28 = vld [vmem:[#allocation6 + $0x30] ss:$2 sm:$0xff]  ;;  %v6893_v16 = vld [vmem:[#allocation6 + $0x31] ss:$2 sm:$0xff]  ;;  %7485 = vmatpush3.bf16.msra.mxu1 %v8136_v49 }
 0x78d   : > { %v6863_v0 = vmax.f32 %v6849_v4, 0.0  ;;  %v6852_v32 = vadd.f32 %v11691_v11, %v6779_v63  ;;  %v6899_v55 = vadd.f32 %v6893_v16, %v6883_v28  ;;  %7486 = vmatprep.subr.bf16.mxu1 %v8137_v34 }
 0x78f   : > { %6874 = vst.msk [vmem:[#allocation6 + $0x40] sm:$0xff] %vm6865_vm12, %v6863_v0  ;;  %v6864_v7 = vmax.f32 %v6852_v32, 0.0  ;;  %v6917_v2 = vrot.slane %v6899_v55, 5 }
 0x790   : > { %7487 = vmatpush3.bf16.msra.mxu1 %v8138_v41 }
 0x791   : > { %6876 = vst.msk [vmem:[#allocation6 + $0x48] sm:$0x3f] %vm6875_vm14, %v6864_v7  ;;  %v6919_v11 = vadd.f32 %v6917_v2, %v6898_v30  ;;  %7488 = vmatprep.subr.bf16.mxu1 %v8139_v12 }
 0x793   : > { %v11755_v46 = vmul.f32 0.25, %v6919_v11 }
 0x794   : > { %7489 = vmatpush3.bf16.msra.mxu1 %v8140_v3  ;;  %v7180_v3 = vld [vmem:[%s11810_s5] sm:$0x1] }
 0x795   : > { %v6965_v29 = vrot.slane %v11755_v46, 6  ;;  %v6961_v50 = vrot.slane %v11755_v46, 5  ;;  %v6969_v37 = vrot.slane %v11755_v46, 7  ;;  %7490 = vmatprep.subr.bf16.mxu1 %v8141_v59  ;;  %v6959_v51 = vrot.slane %v11755_v46, 4 }
 0x797   : > { %v8061_v14 = vpack.i.bf16 %v6933_v39, %v6965_v29  ;;  %v8056_v18 = vpack.i.bf16 %v6929_v53, %v6961_v50  ;;  %v8066_v27 = vpack.i.bf16 %v6937_v35, %v6969_v37  ;;  %v7007_v35 = vld [vmem:[%s11811_s6 + $0x3] sm:$0x1] }
 0x798   : > { %v6885_v19 = vld [vmem:[#allocation6 + $0x40] ss:$2 sm:$0x7f]  ;;  %v6895_v26 = vld [vmem:[#allocation6 + $0x41] ss:$2 sm:$0x7f]  ;;  %7491 = vmatpush3.bf16.msra.mxu1 %v8142_v13 }
 0x799   : > { %8062 = vrot.lane.b32.xlu1 %v8061_v14, %s8198_s29  ;;  %8057 = vrot.lane.b32.xlu0 %v8056_v18, %s8201_s19  ;;  %v6900_v56 = vadd.f32 %v6895_v26, %v6885_v19 }
 0x79b   : > { %v6922_v44 = vrot.slane %v6900_v56, 5 }
 0x79d   : > { %8067 = vrot.lane.b32.xlu0 %v8066_v27, %s8202_s26  ;;  %v6924_v40 = vadd.f32 %v6922_v44, %v6899_v55  ;;  %v6925_v22 = vadd.f32 %v6922_v44, %v6900_v56 }
 0x79f   : > { %v6926_v36 = vmul.f32 0.25, %v6924_v40  ;;  %v6927_v60 = vmul.f32 0.25, %v6925_v22 }
 0x7a1   : > { %v6974_v43 = vrot.slane %v6926_v36, 6  ;;  %v6978_v52 = vrot.slane %v6926_v36, 7  ;;  %v6986_v42 = vrot.slane %v6927_v60, 1  ;;  %v8081_v57 = vpack.i.bf16 %v6950_v23, %v6927_v60  ;;  %v7008_v36 = vld [vmem:[%s11811_s6 + $0x4] sm:$0x1] }
 0x7a3   : > { %v8071_v62 = vpack.i.bf16 %v6942_v58, %v6974_v43  ;;  %v8076_v24 = vpack.i.bf16 %v6946_v54, %v6978_v52  ;;  %v8086_v9 = vpack.i.bf16 %v6954_v6, %v6986_v42 }
 0x7a5   : > { %8072 = vrot.lane.b32.xlu1 %v8071_v62, %s8199_s30  ;;  %8077 = vrot.lane.b32.xlu0 %v8076_v24, %s8203_s9 }
 0x7a9   : > { %8082 = vrot.lane.b32.xlu1 %v8081_v57, %s8200_s12  ;;  %8087 = vrot.lane.b32.xlu0 %v8086_v9, %s8204_s10 }
 0x80b   : > { %v8058_v61 = vpop.permute.xlu0 %8057  ;;  %v8063_v38 = vpop.permute.xlu1 %8062 }
 0x80c   : > { %v8060_v20 = vunpack.i.h.bf16 %v8058_v61  ;;  %v8059_v47 = vunpack.i.l.bf16 %v8058_v61  ;;  %v8065_v25 = vunpack.i.h.bf16 %v8063_v38  ;;  %v8064_v17 = vunpack.i.l.bf16 %v8063_v38 }
 0x80e   : > { %v6990_v4 = vsel %vm6865_vm12, %v11747_v15, %v8060_v20  ;;  %v7000_v63 = vsel %vm6865_vm12, %v6959_v51, %v8059_v47 }
 0x80f   : > { %v8068_v10 = vpop.permute.xlu0 %8067  ;;  %v6991_v0 = vsel %vm4396_vm0, %v6990_v4, %v8065_v25  ;;  %v7001_v32 = vsel %vm4396_vm0, %v7000_v63, %v8064_v17  ;;  %vm7182_vm0 = vcmask 57344  }
 0x810   : > { %v8070_v1 = vunpack.i.h.bf16 %v8068_v10  ;;  %v8069_v5 = vunpack.i.l.bf16 %v8068_v10 }
 0x812   : > { %v6993_v30 = vsel %vm6992_vm15, %v6991_v0, %v8070_v1  ;;  %v7002_v21 = vsel %vm6992_vm15, %v7001_v32, %v8069_v5 }
 0x817   : > { %v8073_v28 = vpop.permute.xlu1 %8072  ;;  %v8078_v16 = vpop.permute.xlu0 %8077 }
 0x818   : > { %v8075_v55 = vunpack.i.h.bf16 %v8073_v28  ;;  %v8074_v33 = vunpack.i.l.bf16 %v8073_v28  ;;  %v8080_v49 = vunpack.i.h.bf16 %v8078_v16  ;;  %v8079_v7 = vunpack.i.l.bf16 %v8078_v16 }
 0x81a   : > { %v6994_v2 = vsel %vm5438_vm9, %v6993_v30, %v8075_v55  ;;  %v7003_v15 = vsel %vm5438_vm9, %v7002_v21, %v8074_v33 }
 0x81b   : > { %v8083_v11 = vpop.permute.xlu1 %8082  ;;  %v8088_v45 = vpop.permute.xlu0 %8087  ;;  %v6996_v29 = vsel %vm6995_vm1, %v6994_v2, %v8080_v49  ;;  %v7004_v53 = vsel %vm6995_vm1, %v7003_v15, %v8079_v7 }
 0x81c   : > { %v8085_v34 = vunpack.i.h.bf16 %v8083_v11  ;;  %v8084_v41 = vunpack.i.l.bf16 %v8083_v11  ;;  %v8090_v46 = vunpack.i.h.bf16 %v8088_v45  ;;  %v8089_v39 = vunpack.i.l.bf16 %v8088_v45 }
 0x81e   : > { %v6997_v50 = vsel %vm5460_vm10, %v6996_v29, %v8085_v34  ;;  %v7005_v8 = vsel %vm5460_vm10, %v7004_v53, %v8084_v41 }
 0x81f   : > { %v6999_v14 = vsel %vm6998_vm2, %v6997_v50, %v8090_v46  ;;  %v7006_v18 = vsel %vm6998_vm2, %v7005_v8, %v8089_v39 }
 0x820   : > { %v7009_v37 = vpack.c.bf16 %v6999_v14, %v6999_v14  ;;  %v7010_v19 = vpack.c.bf16 %v7006_v18, %v7006_v18 }
 0x822   : > { %7171 = vmatprep.mubr.bf16.mxu1 %v7010_v19 }
 0x823   : > { %7172 = vmatmul.mubr.bf16.vlgmr.msra.gmra.mrb[64].mxu1 %v7009_v37 }
 0x8f6   : > { %v7492_v26 = vpop.f32.mrb[64].mxu1 }
 0x8f7   : > { %v7493_v56 = vpop.f32.mrb[65].mxu1 }
 0x8f8   : > { %v7494_v31 = vadd.f32 %v7493_v56, %v7492_v26  ;;  %v7495_v27 = vpop.f32.mrb[66].mxu1 }
 0x8f9   : > { %v7496_v44 = vpop.f32.mrb[67].mxu1 }
 0x8fa   : > { %v7174_v12 = vadd.f32 %v7494_v31, %v7007_v35 }
 0x8fc   : > { %v7179_v48 = vmax.f32 %v7174_v12, 0.0 }
 0x8fe   : > { %v7181_v40 = vmul.f32 %v7180_v3, %v7179_v48 }
 0x900   : > { %v7183_v22 = vsel %vm7182_vm0, %v7181_v40, 0.0 }
 0x901   : > { %7184 = vadd.xlane.f32.xlu1 %v7183_v22 }
 0x98e   : > { %v7185_v60 = vpop.xlane.xlu1 %7184 }
 0x98f   : > { %v7186_v59 = vadd.f32 %v7185_v60, %v7008_v36 }
 0x991   : > { %7189 = vperm.xlu0 %7589, %v7186_v59  }
 0xa10   : > { %v7190_v13 = vpop.permute.xlu0 %7189 }
 0xa11   : > { %7192 = vst [vmem:[%s274_s18] sm:$0x1] %v7190_v13 }
 0xa12 PF: > { %s17_s24 = sadd.s32 1, %s8193_s24  }
 0xa13   : > { %p14_p4 = scmp.ge.s32.totalorder %s17_s24, 4  }
 0xa15   :  { %16 = sbr.rel (!%p14_p4) target bundleno = 1 (0x1), region = 163 }

</bundles_post_ra>
